<compile_context>
chip_gen: v6e
topology: v6e:2x2x1
jax: 0.10.0
libtpu: 0.0.40
codegen_flags: <defaults>
</compile_context>

<pallas_src>
import jax
import jax.numpy as jnp
from jax.experimental import pallas as pl
from jax.experimental.pallas import tpu as pltpu

FEATURE_LENGTH = 16
D_IN = FEATURE_LENGTH * 11          # 176
HIDDEN = 2048
D_OUT = 40
D_OUT_PAD = 128                     # pad layer3 output to a full lane width
BN_EPS = 1e-5


def _ff_kernel(x_ref, w1_ref, b1_ref, w2q_ref, s2_ref, b2_ref, w3_ref, b3_ref,
               out_ref):
    """One grid step = (hidden-N split j, batch tile b). All weights stay VMEM-resident
    (constant block indices), so they are streamed once and reused across batch tiles."""
    j = pl.program_id(0)

    # Layer 1: relu(x @ W1 + b1)                         (BN1 pre-folded into W1/b1)
    h1 = jnp.dot(x_ref[...], w1_ref[...], preferred_element_type=jnp.float32)
    h1 = jnp.maximum(h1 + b1_ref[...], 0.0).astype(jnp.bfloat16)

    # Layer 2 (this split's N-slab): W2 stored int8; per-output-channel scale is
    # factored out of the dot, so only the int8->bf16 cast runs on the idle VPU.
    h2 = jnp.dot(h1, w2q_ref[...].astype(jnp.bfloat16),
                 preferred_element_type=jnp.float32)
    h2 = jnp.maximum(h2 * s2_ref[...] + b2_ref[...], 0.0).astype(jnp.bfloat16)

    # Layer 3 partial contribution of this split (full result when n_split == 1).
    out = jnp.dot(h2, w3_ref[...], preferred_element_type=jnp.float32)
    out = out + jnp.where(j == 0, 1.0, 0.0) * b3_ref[...]   # add b3 exactly once
    out_ref[...] = out.astype(out_ref.dtype)


@jax.jit
def _ff_forward(x, params):
    w1, b1, w2q, s2, b2, w3, b3 = params
    n_split = w2q.shape[0]          # baked into the prepared params
    hn = HIDDEN // n_split
    B = x.shape[0]

    # Pad batch to a multiple of 8 (sublane) and pick a batch-tile size.
    B8 = -(-B // 8) * 8
    if B8 <= 128:
        bt, B_pad = B8, B8
    else:
        bt, B_pad = 128, -(-B // 128) * 128
    n_bt = B_pad // bt

    x = x.astype(jnp.bfloat16)
    if B_pad != B:
        x = jnp.pad(x, ((0, B_pad - B), (0, 0)))

    flops = 2 * B_pad * (D_IN * HIDDEN + HIDDEN * HIDDEN + HIDDEN * D_OUT_PAD)
    bytes_accessed = (D_IN * HIDDEN * 2            # W1 bf16
                      + HIDDEN * HIDDEN * 1        # W2 int8
                      + HIDDEN * 4 * 3             # b1, b2, W2 scales (f32)
                      + HIDDEN * D_OUT_PAD * 2     # W3 bf16 (padded)
                      + D_OUT_PAD * 4              # b3
                      + B_pad * D_IN * 2           # x bf16
                      + n_split * B_pad * D_OUT_PAD * 4)   # output (partials)

    grid_spec = pltpu.PrefetchScalarGridSpec(
        num_scalar_prefetch=0,
        grid=(n_split, n_bt),
        in_specs=[
            pl.BlockSpec((bt, D_IN), lambda j, b: (b, 0)),               # x batch tile
            pl.BlockSpec((D_IN, HIDDEN), lambda j, b: (0, 0)),           # W1 (resident)
            pl.BlockSpec((1, HIDDEN), lambda j, b: (0, 0)),              # b1 (resident)
            pl.BlockSpec((None, HIDDEN, hn), lambda j, b: (j, 0, 0)),    # W2 int8 slab j
            pl.BlockSpec((None, 1, hn), lambda j, b: (j, 0, 0)),         # W2 scales slab
            pl.BlockSpec((None, 1, hn), lambda j, b: (j, 0, 0)),         # b2 slab j
            pl.BlockSpec((None, hn, D_OUT_PAD), lambda j, b: (j, 0, 0)), # W3 slab j
            pl.BlockSpec((1, D_OUT_PAD), lambda j, b: (0, 0)),           # b3 (padded)
        ],
        out_specs=pl.BlockSpec((None, bt, D_OUT_PAD), lambda j, b: (j, b, 0)),
    )

    partials = pl.pallas_call(
        _ff_kernel,
        out_shape=jax.ShapeDtypeStruct((n_split, B_pad, D_OUT_PAD), jnp.float32),
        grid_spec=grid_spec,
        compiler_params=pltpu.CompilerParams(
            # Split axis "parallel" so 2-TC chips shard W2/W3 halves across cores;
            # batch axis "arbitrary" so a single core just loops batch tiles while
            # the weights stay resident in VMEM.
            dimension_semantics=("parallel", "arbitrary"),
            # Covers double-buffered resident weights (~10.5 MB worst case) plus the
            # int8->bf16 cast temporary (~4 MB) on every generation (<= v7x physical).
            vmem_limit_bytes=32 * 1024 * 1024,
        ),
        cost_estimate=pl.CostEstimate(flops=flops, transcendentals=0,
                                      bytes_accessed=bytes_accessed),
    )(x, w1, b1, w2q, s2, b2, w3, b3)

    # n_split == 1: no epilogue reduction at all (b3 already added in-kernel).
    out = partials[0] if n_split == 1 else jnp.sum(partials, axis=0)
    return out[:B, :D_OUT]


def _num_tensorcores_per_chip():
    """Best-effort detection of chips with 2 TensorCores sharing HBM (v4/v5p/v7x)."""
    try:
        kind = jax.devices()[0].device_kind.lower()
    except Exception:
        return 1
    return 2 if any(tag in kind for tag in ("v4", "v5p", "v7", "7x")) else 1


def crazy_feedforward(x, C, params):
    """Forward pass of CrazyFeedForward. `C` is unused (as in the PyTorch module).
    The hidden-N split count is baked into `params` by prepare_params."""
    del C
    return _ff_forward(x, params)


def init_raw_params(key):
    """PyTorch-style init of the raw module parameters (shapes per __init__)."""
    k1, k2, k3, k4, k5, k6 = jax.random.split(key, 6)

    def linear_init(kw, kb, fan_in, fan_out):
        bound = 1.0 / (fan_in ** 0.5)
        w = jax.random.uniform(kw, (fan_in, fan_out), jnp.float32, -bound, bound)
        b = jax.random.uniform(kb, (fan_out,), jnp.float32, -bound, bound)
        return w, b

    w1, b1 = linear_init(k1, k2, D_IN, HIDDEN)
    w2, b2 = linear_init(k3, k4, HIDDEN, HIDDEN)
    w3, b3 = linear_init(k5, k6, HIDDEN, D_OUT)

    # BatchNorm1d defaults: weight=1, bias=0, running_mean=0, running_var=1.
    bn1 = (jnp.ones((D_IN,), jnp.float32), jnp.zeros((D_IN,), jnp.float32),
           jnp.zeros((D_IN,), jnp.float32), jnp.ones((D_IN,), jnp.float32))
    bn2 = (jnp.ones((HIDDEN,), jnp.float32), jnp.zeros((HIDDEN,), jnp.float32),
           jnp.zeros((HIDDEN,), jnp.float32), jnp.ones((HIDDEN,), jnp.float32))
    return dict(w1=w1, b1=b1, w2=w2, b2=b2, w3=w3, b3=b3, bn1=bn1, bn2=bn2)


def prepare_params(raw, n_split=None):
    """One-time (off the hot path) parameter preparation:
      * fold BN1/BN2 into the Linear weights/biases (f32 math),
      * quantize the dominant W2 to int8 with per-output-channel scales,
      * cast W1/W3 to bf16, pad W3/b3 to 128 lanes,
      * lay W2/scales/b2/W3 out as contiguous per-split slabs for the n-split path.
    """
    if n_split is None:
        n_split = _num_tensorcores_per_chip()
    assert HIDDEN % n_split == 0
    hn = HIDDEN // n_split

    def fold(gamma, beta, mean, var):
        s = gamma / jnp.sqrt(var + BN_EPS)
        t = beta - mean * s
        return s, t

    s1, t1 = fold(*raw["bn1"])
    s2, t2 = fold(*raw["bn2"])

    w1 = s1[:, None] * raw["w1"]
    b1 = raw["b1"] + t1 @ raw["w1"]
    w2 = s2[:, None] * raw["w2"]
    b2 = raw["b2"] + t2 @ raw["w2"]
    w3 = s2[:, None] * raw["w3"]
    b3 = raw["b3"] + t2 @ raw["w3"]

    # int8 per-output-channel quantization of W2 (87% of HBM bytes).
    w2_scale = jnp.maximum(jnp.max(jnp.abs(w2), axis=0), 1e-8) / 127.0   # (HIDDEN,)
    w2_q = jnp.clip(jnp.round(w2 / w2_scale), -127.0, 127.0).astype(jnp.int8)

    # Contiguous per-split slabs: split j owns hidden columns [j*hn, (j+1)*hn).
    w2_q = w2_q.reshape(HIDDEN, n_split, hn).transpose(1, 0, 2)          # (ns,K,hn)
    w2_s = w2_scale.astype(jnp.float32).reshape(n_split, 1, hn)
    b2_s = b2.astype(jnp.float32).reshape(n_split, 1, hn)

    # W3 padded to 128 lanes, split by its hidden *rows* [j*hn, (j+1)*hn).
    w3 = jnp.pad(w3, ((0, 0), (0, D_OUT_PAD - D_OUT)))
    w3_s = w3.astype(jnp.bfloat16).reshape(n_split, hn, D_OUT_PAD)
    b3_p = jnp.pad(b3, (0, D_OUT_PAD - D_OUT)).astype(jnp.float32).reshape(1, D_OUT_PAD)

    return (w1.astype(jnp.bfloat16),
            b1.astype(jnp.float32).reshape(1, HIDDEN),
            w2_q, w2_s, b2_s, w3_s, b3_p)


def reference_forward(x, raw):
    """Pure-f32 JAX reference of the PyTorch module in eval mode."""
    def bn(h, stats):
        gamma, beta, mean, var = stats
        return (h - mean) / jnp.sqrt(var + BN_EPS) * gamma + beta

    h = bn(x, raw["bn1"])                                   # dropout = identity (eval)
    h = jnp.maximum(h @ raw["w1"] + raw["b1"], 0.0)
    h = bn(h, raw["bn2"])
    h = jnp.maximum(h @ raw["w2"] + raw["b2"], 0.0)
    h = bn(h, raw["bn2"])
    return h @ raw["w3"] + raw["b3"]


if __name__ == "__main__":
    key = jax.random.PRNGKey(0)
    kx, kc, kp = jax.random.split(key, 3)

    B = 8
    x = jax.random.normal(kx, (B, D_IN), jnp.float32)
    C = jax.random.normal(kc, (B,), jnp.float32)   # unused, mirrors forward(x, C)

    raw = init_raw_params(kp)
    ref = reference_forward(x, raw)

    # Default path: split count auto-detected from the local chip.
    params = prepare_params(raw)
    out = jax.block_until_ready(crazy_feedforward(x, C, params))
    assert out.shape == (B, D_OUT), out.shape
    assert jnp.allclose(out, ref, atol=5e-2, rtol=5e-2), \
        float(jnp.max(jnp.abs(out - ref)))

    # Exercise both the single-core and the 2-TensorCore (N-split) code paths.
    for ns in (1, 2):
        p = prepare_params(raw, n_split=ns)
        o = jax.block_until_ready(crazy_feedforward(x, C, p))
        assert o.shape == (B, D_OUT), o.shape
        assert jnp.allclose(o, ref, atol=5e-2, rtol=5e-2), \
            (ns, float(jnp.max(jnp.abs(o - ref))))

    print("KERNEL_OK")
</pallas_src>

<mosaic_0001>
module attributes {stable_mosaic.version = 11 : i64} {
  func.func @_ff_kernel(%arg0: i32, %arg1: i32, %arg2: memref<8x176xbf16, #tpu.memory_space<vmem>>, %arg3: memref<176x2048xbf16, #tpu.memory_space<vmem>>, %arg4: memref<1x2048xf32, #tpu.memory_space<vmem>>, %arg5: memref<1x2048x2048xi8, #tpu.memory_space<vmem>>, %arg6: memref<1x1x2048xf32, #tpu.memory_space<vmem>>, %arg7: memref<1x1x2048xf32, #tpu.memory_space<vmem>>, %arg8: memref<1x2048x128xbf16, #tpu.memory_space<vmem>>, %arg9: memref<1x128xf32, #tpu.memory_space<vmem>>, %arg10: memref<1x8x128xf32, #tpu.memory_space<vmem>>) attributes {dimension_semantics = [#tpu.dimension_semantics<parallel>, #tpu.dimension_semantics<arbitrary>], iteration_bounds = array<i64: 1, 1>, scalar_prefetch = 0 : i64, scratch_operands = 0 : i64, tpu.core_type = #tpu.core_type<tc>, window_params = [{transform_indices = @transform_0, window_bounds = array<i64: 8, 176>}, {pipeline_mode = #tpu.pipeline_mode<synchronous>, transform_indices = @transform_1, window_bounds = array<i64: 176, 2048>}, {pipeline_mode = #tpu.pipeline_mode<synchronous>, transform_indices = @transform_2, window_bounds = array<i64: 1, 2048>}, {transform_indices = @transform_3, window_bounds = array<i64: 1, 2048, 2048>}, {transform_indices = @transform_4, window_bounds = array<i64: 1, 1, 2048>}, {transform_indices = @transform_5, window_bounds = array<i64: 1, 1, 2048>}, {transform_indices = @transform_6, window_bounds = array<i64: 1, 2048, 128>}, {pipeline_mode = #tpu.pipeline_mode<synchronous>, transform_indices = @transform_7, window_bounds = array<i64: 1, 128>}, {transform_indices = @transform_8, window_bounds = array<i64: 1, 8, 128>}]} {
    %c0 = arith.constant 0 : index
    %c0_0 = arith.constant 0 : index
    %0 = vector.load %arg2[%c0, %c0_0] : memref<8x176xbf16, #tpu.memory_space<vmem>>, vector<8x176xbf16>
    %c0_1 = arith.constant 0 : index
    %c0_2 = arith.constant 0 : index
    %1 = vector.load %arg3[%c0_1, %c0_2] : memref<176x2048xbf16, #tpu.memory_space<vmem>>, vector<176x2048xbf16>
    %cst = arith.constant dense<0.000000e+00> : vector<8x2048xf32>
    %2 = tpu.matmul %0, %1, %cst {dimension_numbers = #tpu.dot_dimension_numbers<[1], [0], [0], [1], [0, 0, 1, 1], [], []>} : vector<8x176xbf16>, vector<176x2048xbf16>, vector<8x2048xf32> -> vector<8x2048xf32>
    %c0_3 = arith.constant 0 : index
    %c0_4 = arith.constant 0 : index
    %3 = vector.load %arg4[%c0_3, %c0_4] : memref<1x2048xf32, #tpu.memory_space<vmem>>, vector<1x2048xf32>
    %4 = vector.broadcast %3 : vector<1x2048xf32> to vector<8x2048xf32>
    %5 = arith.addf %2, %4 : vector<8x2048xf32>
    %cst_5 = arith.constant 0.000000e+00 : f32
    %6 = vector.broadcast %cst_5 : f32 to vector<8x2048xf32>
    %7 = arith.maximumf %5, %6 : vector<8x2048xf32>
    %8 = arith.truncf %7 : vector<8x2048xf32> to vector<8x2048xbf16>
    %c0_6 = arith.constant 0 : index
    %c0_7 = arith.constant 0 : index
    %c0_8 = arith.constant 0 : index
    %9 = vector.load %arg5[%c0_6, %c0_7, %c0_8] : memref<1x2048x2048xi8, #tpu.memory_space<vmem>>, vector<1x2048x2048xi8>
    %10 = vector.shape_cast %9 : vector<1x2048x2048xi8> to vector<2048x2048xi8>
    %11 = arith.sitofp %10 : vector<2048x2048xi8> to vector<2048x2048xbf16>
    %cst_9 = arith.constant dense<0.000000e+00> : vector<8x2048xf32>
    %12 = tpu.matmul %8, %11, %cst_9 {dimension_numbers = #tpu.dot_dimension_numbers<[1], [0], [0], [1], [0, 0, 1, 1], [], []>} : vector<8x2048xbf16>, vector<2048x2048xbf16>, vector<8x2048xf32> -> vector<8x2048xf32>
    %c0_10 = arith.constant 0 : index
    %c0_11 = arith.constant 0 : index
    %c0_12 = arith.constant 0 : index
    %13 = vector.load %arg6[%c0_10, %c0_11, %c0_12] : memref<1x1x2048xf32, #tpu.memory_space<vmem>>, vector<1x1x2048xf32>
    %14 = vector.shape_cast %13 : vector<1x1x2048xf32> to vector<1x2048xf32>
    %15 = vector.broadcast %14 : vector<1x2048xf32> to vector<8x2048xf32>
    %16 = arith.mulf %12, %15 : vector<8x2048xf32>
    %c0_13 = arith.constant 0 : index
    %c0_14 = arith.constant 0 : index
    %c0_15 = arith.constant 0 : index
    %17 = vector.load %arg7[%c0_13, %c0_14, %c0_15] : memref<1x1x2048xf32, #tpu.memory_space<vmem>>, vector<1x1x2048xf32>
    %18 = vector.shape_cast %17 : vector<1x1x2048xf32> to vector<1x2048xf32>
    %19 = vector.broadcast %18 : vector<1x2048xf32> to vector<8x2048xf32>
    %20 = arith.addf %16, %19 : vector<8x2048xf32>
    %cst_16 = arith.constant 0.000000e+00 : f32
    %21 = vector.broadcast %cst_16 : f32 to vector<8x2048xf32>
    %22 = arith.maximumf %20, %21 : vector<8x2048xf32>
    %23 = arith.truncf %22 : vector<8x2048xf32> to vector<8x2048xbf16>
    %c0_17 = arith.constant 0 : index
    %c0_18 = arith.constant 0 : index
    %c0_19 = arith.constant 0 : index
    %24 = vector.load %arg8[%c0_17, %c0_18, %c0_19] : memref<1x2048x128xbf16, #tpu.memory_space<vmem>>, vector<1x2048x128xbf16>
    %25 = vector.shape_cast %24 : vector<1x2048x128xbf16> to vector<2048x128xbf16>
    %cst_20 = arith.constant dense<0.000000e+00> : vector<8x128xf32>
    %26 = tpu.matmul %23, %25, %cst_20 {dimension_numbers = #tpu.dot_dimension_numbers<[1], [0], [0], [1], [0, 0, 1, 1], [], []>} : vector<8x2048xbf16>, vector<2048x128xbf16>, vector<8x128xf32> -> vector<8x128xf32>
    %c0_i32 = arith.constant 0 : i32
    %27 = arith.cmpi eq, %arg0, %c0_i32 : i32
    %cst_21 = arith.constant 1.000000e+00 : f32
    %cst_22 = arith.constant 0.000000e+00 : f32
    %28 = arith.select %27, %cst_21, %cst_22 : f32
    %c0_23 = arith.constant 0 : index
    %c0_24 = arith.constant 0 : index
    %29 = vector.load %arg9[%c0_23, %c0_24] : memref<1x128xf32, #tpu.memory_space<vmem>>, vector<1x128xf32>
    %30 = vector.broadcast %28 : f32 to vector<1x128xf32>
    %31 = arith.mulf %30, %29 : vector<1x128xf32>
    %32 = vector.broadcast %31 : vector<1x128xf32> to vector<8x128xf32>
    %33 = arith.addf %26, %32 : vector<8x128xf32>
    %c0_25 = arith.constant 0 : index
    %c0_26 = arith.constant 0 : index
    %c0_27 = arith.constant 0 : index
    %34 = vector.load %arg10[%c0_25, %c0_26, %c0_27] : memref<1x8x128xf32, #tpu.memory_space<vmem>>, vector<1x8x128xf32>
    %35 = vector.shape_cast %34 : vector<1x8x128xf32> to vector<8x128xf32>
    %36 = vector.shape_cast %33 : vector<8x128xf32> to vector<1x8x128xf32>
    tpu.vector_store %arg10[%c0_25, %c0_26, %c0_27], %36 {strides = array<i32>} : memref<1x8x128xf32, #tpu.memory_space<vmem>>, vector<1x8x128xf32>,
    return
  }
  func.func @transform_0(%arg0: i32, %arg1: i32) -> (i32, i32) {
    %c0_i32 = arith.constant 0 : i32
    %c0_i32_0 = arith.constant 0 : i32
    return %arg1, %c0_i32 : i32, i32
  }
  func.func @transform_1(%arg0: i32, %arg1: i32) -> (i32, i32) {
    %c0_i32 = arith.constant 0 : i32
    %c0_i32_0 = arith.constant 0 : i32
    %c0_i32_1 = arith.constant 0 : i32
    return %c0_i32, %c0_i32_0 : i32, i32
  }
  func.func @transform_2(%arg0: i32, %arg1: i32) -> (i32, i32) {
    %c0_i32 = arith.constant 0 : i32
    %c0_i32_0 = arith.constant 0 : i32
    %c0_i32_1 = arith.constant 0 : i32
    return %c0_i32, %c0_i32_0 : i32, i32
  }
  func.func @transform_3(%arg0: i32, %arg1: i32) -> (i32, i32, i32) {
    %c0_i32 = arith.constant 0 : i32
    %c0_i32_0 = arith.constant 0 : i32
    %c0_i32_1 = arith.constant 0 : i32
    return %arg0, %c0_i32, %c0_i32_0 : i32, i32, i32
  }
  func.func @transform_4(%arg0: i32, %arg1: i32) -> (i32, i32, i32) {
    %c0_i32 = arith.constant 0 : i32
    %c0_i32_0 = arith.constant 0 : i32
    %c0_i32_1 = arith.constant 0 : i32
    return %arg0, %c0_i32, %c0_i32_0 : i32, i32, i32
  }
  func.func @transform_5(%arg0: i32, %arg1: i32) -> (i32, i32, i32) {
    %c0_i32 = arith.constant 0 : i32
    %c0_i32_0 = arith.constant 0 : i32
    %c0_i32_1 = arith.constant 0 : i32
    return %arg0, %c0_i32, %c0_i32_0 : i32, i32, i32
  }
  func.func @transform_6(%arg0: i32, %arg1: i32) -> (i32, i32, i32) {
    %c0_i32 = arith.constant 0 : i32
    %c0_i32_0 = arith.constant 0 : i32
    %c0_i32_1 = arith.constant 0 : i32
    return %arg0, %c0_i32, %c0_i32_0 : i32, i32, i32
  }
  func.func @transform_7(%arg0: i32, %arg1: i32) -> (i32, i32) {
    %c0_i32 = arith.constant 0 : i32
    %c0_i32_0 = arith.constant 0 : i32
    %c0_i32_1 = arith.constant 0 : i32
    return %c0_i32, %c0_i32_0 : i32, i32
  }
  func.func @transform_8(%arg0: i32, %arg1: i32) -> (i32, i32, i32) {
    %c0_i32 = arith.constant 0 : i32
    %c0_i32_0 = arith.constant 0 : i32
    return %arg0, %arg1, %c0_i32 : i32, i32, i32
  }
}

</mosaic_0001>

<bundles_post_ra>
// kernel: _ff_forward.1
= control target key start
LH: loop header
LB: loop body
LE: loop exit
PB: predicated region body
PF: predicated region fallthrough
CT: control target
= control target key end

     0   :  { %13 = vsyncpa [#allocation3], 0  ;;  %s10346_s0 = inlined_call_operand.vmem [shape: bf16[8,176], index: 0, kind: input, shape index: {}]   ;;  %s10347_s1 = inlined_call_operand.hbm [shape: bf16[176,2048], index: 1, kind: input, shape index: {}]   ;;  %s10348_s2 = inlined_call_operand.hbm [shape: f32[1,2048], index: 2, kind: input, shape index: {}]   ;;  %s10349_s3 = inlined_call_operand.hbm [shape: s8[1,2048,2048], index: 3, kind: input, shape index: {}]   ;;  %s10350_s4 = inlined_call_operand.hbm [shape: f32[1,1,2048], index: 4, kind: input, shape index: {}]   ;;  %s10351_s5 = inlined_call_operand.hbm [shape: f32[1,1,2048], index: 5, kind: input, shape index: {}]   ;;  %s10352_s6 = inlined_call_operand.hbm [shape: bf16[1,2048,128], index: 6, kind: input, shape index: {}]   ;;  %s10353_s7 = inlined_call_operand.hbm [shape: f32[1,128], index: 7, kind: input, shape index: {}]   ;;  %s10354_s8 = inlined_call_operand.hbm [shape: f32[1,8,128], index: 8, kind: output, shape index: {}]  }
   0x1   :  { %14 = vsyncpa [#allocation6], 0 }
   0x2   :  { %15 = vsyncpa [#allocation9], 0 }
   0x3   :  { %16 = vsyncpa [#allocation12], 0 }
   0x4   :  { %17 = vsyncpa [#allocation4], 0  ;;  %s9735_s27 = smov [#allocation5]   ;;  %s9736_s29 = smov [#allocation8]  }
   0x5   :  { %s38_s28 = sshll.u32 %s9735_s27, 4  ;;  %s60_s30 = sshll.u32 %s9736_s29, 4  ;;  %s39_s28 = int_to_ptr.vmem [resolvable:$true] %s38_s28  ;;  %s61_s30 = int_to_ptr.vmem [resolvable:$true] %s60_s30 }
   0x6   :  { %s9573_s9 = scalar_lea.vmem %s39_s28, 256  ;;  %p9578_p1 = scmp.lt.s32.totalorder %s39_s28, %s39_s28 }
   0x7   :  { %p9574_p0 = scmp.ne.s32.totalorder %s39_s28, %s9573_s9  ;;  %p9579_p2 = scmp.lt.s32.totalorder %s9573_s9, %s9573_s9 }
   0x9   :  { %p9580_p3 = por %p9579_p2, %p9578_p1 }
   0xb   :  { %p9581_p4 = pnand %p9580_p3, %p9574_p0 }
   0xd   :  { %9584 = shalt.err (!%p9581_p4)
}
   0xe   :  { %41 = dma.hbm_to_vmem [thread:$0]  %s10348_s2, 256, %s39_s28, [#allocation6]  }
   0xf   :  { %s9593_s12 = scalar_lea.vmem %s61_s30, 256  ;;  %p9598_p6 = scmp.lt.s32.totalorder %s61_s30, %s61_s30 }
  0x10   :  { %p9594_p5 = scmp.ne.s32.totalorder %s61_s30, %s9593_s12  ;;  %p9599_p7 = scmp.lt.s32.totalorder %s9593_s12, %s9593_s12 }
  0x12   :  { %p9600_p8 = por %p9599_p7, %p9598_p6 }
  0x14   :  { %p9601_p9 = pnand %p9600_p8, %p9594_p5 }
  0x16   :  { %9604 = shalt.err (!%p9601_p9)
}
  0x17   :  { %63 = dma.hbm_to_vmem [thread:$0]  %s10350_s4, 256, %s61_s30, [#allocation9]  }
  0x18   :  { %s9737_s15 = smov [#allocation11]  }
  0x19   :  { %s79_s16 = sshll.u32 %s9737_s15, 4  ;;  %s80_s16 = int_to_ptr.vmem [resolvable:$true] %s79_s16 }
  0x1a   :  { %s9613_s17 = scalar_lea.vmem %s80_s16, 16384  ;;  %p9618_p11 = scmp.lt.s32.totalorder %s80_s16, %s80_s16 }
  0x1b   :  { %p9614_p10 = scmp.ne.s32.totalorder %s80_s16, %s9613_s17  ;;  %p9619_p12 = scmp.lt.s32.totalorder %s9613_s17, %s9613_s17 }
  0x1d   :  { %p9620_p13 = por %p9619_p12, %p9618_p11 }
  0x1f   :  { %p9621_p0 = pnand %p9620_p13, %p9614_p10 }
  0x21   :  { %9624 = shalt.err (!%p9621_p0)
}
  0x22   :  { %s9738_s2 = smov 64   ;;  %s9739_s18 = smov 4  }
  0x23   :  { %85 = dma.hbm_to_vmem [thread:$0]  %s10352_s6, 16384, %s80_s16, [#allocation12], %s9738_s2, %s9738_s2, %s9739_s18  }
  0x24   :  { %s9740_s21 = smov [#allocation2]  }
  0x25   :  { %s25_s22 = sshll.u32 %s9740_s21, 4  ;;  %s26_s22 = int_to_ptr.vmem [resolvable:$true] %s25_s22 }
  0x26   :  { %s9633_s4 = scalar_lea.vmem %s26_s22, 22528  ;;  %p9638_p2 = scmp.lt.s32.totalorder %s26_s22, %s26_s22 }
  0x27   :  { %p9634_p1 = scmp.ne.s32.totalorder %s26_s22, %s9633_s4  ;;  %p9639_p3 = scmp.lt.s32.totalorder %s9633_s4, %s9633_s4 }
  0x29   :  { %p9640_p4 = por %p9639_p3, %p9638_p2 }
  0x2b   :  { %p9641_p5 = pnand %p9640_p4, %p9634_p1 }
  0x2d   :  { %9644 = shalt.err (!%p9641_p5)
}
  0x2e   :  { %s9741_s23 = smov 1024   ;;  %s9742_s26 = smov [#allocation7]  }
  0x2f   :  { %31 = dma.hbm_to_vmem [thread:$0]  %s10347_s1, 22528, %s26_s22, [#allocation3], %s9741_s23, %s9741_s23, %s9738_s2  }
  0x30   :  { %s47_s27 = sshll.u32 %s9742_s26, 4  ;;  %s48_s27 = int_to_ptr.vmem [resolvable:$true] %s47_s27 }
  0x31   :  { %s9653_s28 = scalar_lea.vmem %s48_s27, 131072  ;;  %p9658_p7 = scmp.lt.s32.totalorder %s48_s27, %s48_s27 }
  0x32   :  { %p9654_p6 = scmp.ne.s32.totalorder %s48_s27, %s9653_s28  ;;  %p9659_p8 = scmp.lt.s32.totalorder %s9653_s28, %s9653_s28 }
  0x34   :  { %p9660_p9 = por %p9659_p8, %p9658_p7 }
  0x36   :  { %p9661_p10 = pnand %p9660_p9, %p9654_p6 }
  0x38   :  { %9664 = shalt.err (!%p9661_p10)
}
  0x39   :  { %s9743_s6 = smov 2048   ;;  %s9744_s29 = smov 128  }
  0x3a   :  { %53 = dma.hbm_to_vmem [thread:$0]  %s10349_s3, 131072, %s48_s27, [#allocation6], %s9743_s6, %s9743_s6, %s9744_s29  }
  0x3b   :  { %s9745_s10 = smov [#allocation10]   ;;  %s9746_s12 = smov [#allocation13]  }
  0x3c   :  { %s70_s11 = sshll.u32 %s9745_s10, 4  ;;  %s92_s1 = sshll.u32 %s9746_s12, 4  ;;  %s71_s11 = int_to_ptr.vmem [resolvable:$true] %s70_s11  ;;  %s93_s1 = int_to_ptr.vmem [resolvable:$true] %s92_s1 }
  0x3d   :  { %s9673_s13 = scalar_lea.vmem %s71_s11, 256  ;;  %p9678_p12 = scmp.lt.s32.totalorder %s71_s11, %s71_s11 }
  0x3e   :  { %p9674_p11 = scmp.ne.s32.totalorder %s71_s11, %s9673_s13  ;;  %p9679_p13 = scmp.lt.s32.totalorder %s9673_s13, %s9673_s13 }
  0x40   :  { %p9680_p0 = por %p9679_p13, %p9678_p12 }
  0x42   :  { %p9681_p1 = pnand %p9680_p0, %p9674_p11 }
  0x44   :  { %9684 = shalt.err (!%p9681_p1)
}
  0x45   :  { %73 = dma.hbm_to_vmem [thread:$0]  %s10351_s5, 256, %s71_s11, [#allocation9]  }
  0x46   :  { %s9693_s16 = scalar_lea.vmem %s93_s1, 16  ;;  %s9697_s3 = scalar_lea.vmem %s93_s1, 32 }
  0x47   :  { %p9694_p2 = scmp.ne.s32.totalorder %s93_s1, %s9693_s16  ;;  %p9698_p3 = scmp.lt.s32.totalorder %s93_s1, %s93_s1 }
  0x48   :  { %p9699_p4 = scmp.lt.s32.totalorder %s9697_s3, %s9693_s16 }
  0x4a   :  { %p9700_p5 = por %p9699_p4, %p9698_p3 }
  0x4c   :  { %p9701_p6 = pnand %p9700_p5, %p9694_p2 }
  0x4e   :  { %9704 = shalt.err (!%p9701_p6)
}
  0x4f   :  { %95 = dma.hbm_to_vmem [thread:$0]  %s10353_s7, 16, %s93_s1, [#allocation12]  }
  0x50   :  { %9725 = dma.done.wait [#allocation3], 22528  }
  0x51   :  { %9726 = vsyncadd [#allocation3], 4294944768 }
  0x52   :  { %9727 = dma.done.wait [#allocation6], 131328  }
  0x53   :  { %9728 = vsyncadd [#allocation6], 4294835968 }
  0x54   :  { %9729 = dma.done.wait [#allocation9], 512  }
  0x55   :  { %9730 = vsyncadd [#allocation9], 4294966784 }
  0x56   :  { %9731 = dma.done.wait [#allocation12], 16400  }
  0x57   :  { %9732 = vsyncadd [#allocation12], 4294950896  ;;  %v231_v0 = vld [vmem:[#allocation2 + $0x380] sm:$0xff]  ;;  %v232_v2 = vld [vmem:[#allocation2 + $0x388] sm:$0xff]  ;;  %vm1265_vm0 = vcmask 392192  }
  0x58   :  { %v239_v1 = vld [vmem:[#allocation2 + $0x3c0] sm:$0xff]  ;;  %v240_v4 = vld [vmem:[#allocation2 + $0x3c8] sm:$0xff] }
  0x59   :  { %v9046_v3 = vcombine.high %v231_v0, %v239_v1  ;;  %v9045_v5 = vcombine.low %v231_v0, %v239_v1  ;;  %v215_v6 = vld [vmem:[#allocation2 + $0x300] sm:$0xff]  ;;  %v9048_v8 = vcombine.high %v232_v2, %v240_v4  ;;  %v9047_v9 = vcombine.low %v232_v2, %v240_v4  ;;  %v216_v11 = vld [vmem:[#allocation2 + $0x308] sm:$0xff] }
  0x5a   :  { %v223_v7 = vld [vmem:[#allocation2 + $0x340] sm:$0xff]  ;;  %v224_v12 = vld [vmem:[#allocation2 + $0x348] sm:$0xff] }
  0x5b   :  { %v9030_v10 = vcombine.high %v215_v6, %v223_v7  ;;  %v199_v13 = vld [vmem:[#allocation2 + $0x280] sm:$0xff]  ;;  %1269 = vmatprep.subr.bf16.mxu0 %v9046_v3  ;;  %v9032_v14 = vcombine.high %v216_v11, %v224_v12  ;;  %v200_v16 = vld [vmem:[#allocation2 + $0x288] sm:$0xff]  ;;  %1310 = vmatprep.subr.bf16.mxu1 %v9048_v8  ;;  %v9029_v18 = vcombine.low %v215_v6, %v223_v7 }
  0x5c   :  { %v207_v15 = vld [vmem:[#allocation2 + $0x2c0] sm:$0xff]  ;;  %v208_v17 = vld [vmem:[#allocation2 + $0x2c8] sm:$0xff]  ;;  %1270 = vmatpush1.bf16.msra.mxu0 %v9045_v5  ;;  %1311 = vmatpush1.bf16.msra.mxu1 %v9047_v9  ;;  %v9031_v19 = vcombine.low %v216_v11, %v224_v12 }
  0x5d   :  { %1271 = vmatprep.subr.bf16.mxu0 %v9030_v10  ;;  %v9014_v20 = vcombine.high %v199_v13, %v207_v15  ;;  %1312 = vmatprep.subr.bf16.mxu1 %v9032_v14  ;;  %v9016_v21 = vcombine.high %v200_v16, %v208_v17  ;;  %v183_v22 = vld [vmem:[#allocation2 + $0x200] sm:$0xff]  ;;  %v184_v24 = vld [vmem:[#allocation2 + $0x208] sm:$0xff]  ;;  %v9013_v26 = vcombine.low %v199_v13, %v207_v15 }
  0x5e   :  { %v191_v23 = vld [vmem:[#allocation2 + $0x240] sm:$0xff]  ;;  %v192_v25 = vld [vmem:[#allocation2 + $0x248] sm:$0xff]  ;;  %v9015_v27 = vcombine.low %v200_v16, %v208_v17 }
  0x5f   :  { %v8998_v28 = vcombine.high %v183_v22, %v191_v23  ;;  %v9000_v29 = vcombine.high %v184_v24, %v192_v25  ;;  %v167_v30 = vld [vmem:[#allocation2 + $0x180] sm:$0xff]  ;;  %v168_v32 = vld [vmem:[#allocation2 + $0x188] sm:$0xff]  ;;  %v8997_v34 = vcombine.low %v183_v22, %v191_v23  ;;  %v8999_v35 = vcombine.low %v184_v24, %v192_v25  ;;  %v233_v24 = vld [vmem:[#allocation2 + $0x390] sm:$0xff] }
  0x60   :  { %1272 = vmatpush1.bf16.msra.mxu0 %v9029_v18  ;;  %1313 = vmatpush1.bf16.msra.mxu1 %v9031_v19  ;;  %v175_v31 = vld [vmem:[#allocation2 + $0x1c0] sm:$0xff]  ;;  %v176_v33 = vld [vmem:[#allocation2 + $0x1c8] sm:$0xff]  ;;  %v241_v25 = vld [vmem:[#allocation2 + $0x3d0] sm:$0xff] }
  0x61   :  { %1273 = vmatprep.subr.bf16.mxu0 %v9014_v20  ;;  %1314 = vmatprep.subr.bf16.mxu1 %v9016_v21  ;;  %v8982_v36 = vcombine.high %v167_v30, %v175_v31  ;;  %v8984_v37 = vcombine.high %v168_v32, %v176_v33  ;;  %v151_v38 = vld [vmem:[#allocation2 + $0x100] sm:$0xff]  ;;  %v152_v41 = vld [vmem:[#allocation2 + $0x108] sm:$0xff]  ;;  %v8981_v44 = vcombine.low %v167_v30, %v175_v31 }
  0x62   :  { %v159_v39 = vld [vmem:[#allocation2 + $0x140] sm:$0xff]  ;;  %v160_v42 = vld [vmem:[#allocation2 + $0x148] sm:$0xff]  ;;  %v8983_v45 = vcombine.low %v168_v32, %v176_v33  ;;  %v9050_v30 = vcombine.high %v233_v24, %v241_v25  ;;  %v217_v32 = vld [vmem:[#allocation2 + $0x310] sm:$0xff] }
  0x63   :  { %v9817_v40 = vld [vmem:[%s10346_s0] sm:$0xff]  ;;  %v8966_v46 = vcombine.high %v151_v38, %v159_v39  ;;  %v8968_v47 = vcombine.high %v152_v41, %v160_v42  ;;  %v136_v50 = vld [vmem:[#allocation2 + $0x88] sm:$0xff]  ;;  %v8965_v52 = vcombine.low %v151_v38, %v159_v39  ;;  %v8967_v53 = vcombine.low %v152_v41, %v160_v42  ;;  %v225_v33 = vld [vmem:[#allocation2 + $0x350] sm:$0xff]  ;;  %s9747_s0 = smov [#allocation14]  }
  0x64   :  { %1274 = vmatpush1.bf16.msra.mxu0 %v9013_v26  ;;  %1315 = vmatpush1.bf16.msra.mxu1 %v9015_v27  ;;  %v9821_v43 = vcombine.high %v9817_v40, %v9817_v40  ;;  %v135_v48 = vld [vmem:[#allocation2 + $0x80] sm:$0xff]  ;;  %v144_v51 = vld [vmem:[#allocation2 + $0xc8] sm:$0xff]  ;;  %v234_v26 = vld [vmem:[#allocation2 + $0x398] sm:$0xff]  ;;  %v9034_v39 = vcombine.high %v217_v32, %v225_v33  ;;  %s8919_s18 = sshll.u32 %s9747_s0, 4  ;;  %s8920_s18 = int_to_ptr.vmem [resolvable:$true] %s8919_s18 }
  0x65   :  { %1275 = vmatprep.subr.bf16.mxu0 %v8998_v28  ;;  %1316 = vmatprep.subr.bf16.mxu1 %v9000_v29  ;;  %v143_v49 = vld [vmem:[#allocation2 + $0xc0] sm:$0xff]  ;;  %v8952_v55 = vcombine.high %v136_v50, %v144_v51  ;;  %v120_v58 = vld [vmem:[#allocation2 + $0x8] sm:$0xff]  ;;  %v8951_v61 = vcombine.low %v136_v50, %v144_v51  ;;  %v242_v27 = vld [vmem:[#allocation2 + $0x3d8] sm:$0xff]  ;;  %s9705_s19 = scalar_lea.vmem %s8920_s18, 128  ;;  %p9710_p8 = scmp.lt.s32.totalorder %s8920_s18, %s8920_s18 }
  0x66   :  { %9109 = vmatprep.mubr.msk.bf16.mxu0 %vm1265_vm0, %v9821_v43  ;;  %9110 = vmatprep.mubr.msk.bf16.mxu1 %vm1265_vm0, %v9821_v43  ;;  %v8950_v54 = vcombine.high %v135_v48, %v143_v49  ;;  %v119_v56 = vld [vmem:[#allocation2] sm:$0xff]  ;;  %v128_v59 = vld [vmem:[#allocation2 + $0x48] sm:$0xff]  ;;  %v8949_v60 = vcombine.low %v135_v48, %v143_v49  ;;  %v9052_v31 = vcombine.high %v234_v26, %v242_v27  ;;  %v201_v42 = vld [vmem:[#allocation2 + $0x290] sm:$0xff]  ;;  %p9706_p7 = scmp.ne.s32.totalorder %s8920_s18, %s9705_s19  ;;  %p9711_p9 = scmp.lt.s32.totalorder %s9705_s19, %s9705_s19 }
  0x67   :  { %v127_v57 = vld [vmem:[#allocation2 + $0x40] sm:$0xff]  ;;  %v8936_v63 = vcombine.high %v120_v58, %v128_v59  ;;  %v280_v2 = vld [vmem:[#allocation2 + $0x508] sm:$0xff]  ;;  %v8935_v5 = vcombine.low %v120_v58, %v128_v59  ;;  %v9051_v38 = vcombine.low %v234_v26, %v242_v27  ;;  %v185_v50 = vld [vmem:[#allocation2 + $0x210] sm:$0xff] }
  0x68   :  { %1276 = vmatpush1.bf16.msra.mxu0 %v8997_v34  ;;  %1317 = vmatpush1.bf16.msra.mxu1 %v8999_v35  ;;  %v8934_v62 = vcombine.high %v119_v56, %v127_v57  ;;  %v279_v0 = vld [vmem:[#allocation2 + $0x500] sm:$0xff]  ;;  %v288_v3 = vld [vmem:[#allocation2 + $0x548] sm:$0xff]  ;;  %v8933_v4 = vcombine.low %v119_v56, %v127_v57  ;;  %v9829_v34 = vcombine.low %v9817_v40, %v9817_v40  ;;  %v218_v35 = vld [vmem:[#allocation2 + $0x318] sm:$0xff]  ;;  %p9712_p10 = por %p9711_p9, %p9710_p8 }
  0x69   :  { %1277 = vmatprep.subr.bf16.mxu0 %v8982_v36  ;;  %1318 = vmatprep.subr.bf16.mxu1 %v8984_v37  ;;  %v287_v1 = vld [vmem:[#allocation2 + $0x540] sm:$0xff]  ;;  %v9096_v7 = vcombine.high %v280_v2, %v288_v3  ;;  %v264_v10 = vld [vmem:[#allocation2 + $0x488] sm:$0xff]  ;;  %v9095_v13 = vcombine.low %v280_v2, %v288_v3  ;;  %v226_v36 = vld [vmem:[#allocation2 + $0x358] sm:$0xff]  ;;  %v9049_v37 = vcombine.low %v233_v24, %v241_v25 }
  0x6a   :  { %v9094_v6 = vcombine.high %v279_v0, %v287_v1  ;;  %v263_v8 = vld [vmem:[#allocation2 + $0x480] sm:$0xff]  ;;  %v272_v11 = vld [vmem:[#allocation2 + $0x4c8] sm:$0xff]  ;;  %v9093_v12 = vcombine.low %v279_v0, %v287_v1  ;;  %v9036_v41 = vcombine.high %v218_v35, %v226_v36  ;;  %v9033_v40 = vcombine.low %v217_v32, %v225_v33  ;;  %v193_v51 = vld [vmem:[#allocation2 + $0x250] sm:$0xff]  ;;  %p9713_p11 = pnand %p9712_p10, %p9706_p7 }
  0x6b   :  { %v271_v9 = vld [vmem:[#allocation2 + $0x4c0] sm:$0xff]  ;;  %v9080_v15 = vcombine.high %v264_v10, %v272_v11  ;;  %v248_v18 = vld [vmem:[#allocation2 + $0x408] sm:$0xff]  ;;  %v9079_v21 = vcombine.low %v264_v10, %v272_v11  ;;  %v9002_v56 = vcombine.high %v185_v50, %v193_v51  ;;  %v169_v58 = vld [vmem:[#allocation2 + $0x190] sm:$0xff] }
  0x6c   :  { %1278 = vmatpush1.bf16.msra.mxu0 %v8981_v44  ;;  %1319 = vmatpush1.bf16.msra.mxu1 %v8983_v45  ;;  %v9078_v14 = vcombine.high %v263_v8, %v271_v9  ;;  %v247_v16 = vld [vmem:[#allocation2 + $0x400] sm:$0xff]  ;;  %v256_v19 = vld [vmem:[#allocation2 + $0x448] sm:$0xff]  ;;  %v9077_v20 = vcombine.low %v263_v8, %v271_v9  ;;  %v209_v44 = vld [vmem:[#allocation2 + $0x2d0] sm:$0xff] }
  0x6d   :  { %1279 = vmatprep.subr.bf16.mxu0 %v8966_v46  ;;  %1320 = vmatprep.subr.bf16.mxu1 %v8968_v47  ;;  %v255_v17 = vld [vmem:[#allocation2 + $0x440] sm:$0xff]  ;;  %v9064_v23 = vcombine.high %v248_v18, %v256_v19  ;;  %v9063_v29 = vcombine.low %v248_v18, %v256_v19  ;;  %v202_v45 = vld [vmem:[#allocation2 + $0x298] sm:$0xff]  ;;  %v9035_v47 = vcombine.low %v218_v35, %v226_v36  ;;  %v177_v59 = vld [vmem:[#allocation2 + $0x1d0] sm:$0xff] }
  0x6e   :  { %v9062_v22 = vcombine.high %v247_v16, %v255_v17  ;;  %v9061_v28 = vcombine.low %v247_v16, %v255_v17  ;;  %v210_v46 = vld [vmem:[#allocation2 + $0x2d8] sm:$0xff]  ;;  %v9018_v48 = vcombine.high %v201_v42, %v209_v44  ;;  %v8986_v0 = vcombine.high %v169_v58, %v177_v59  ;;  %v153_v2 = vld [vmem:[#allocation2 + $0x110] sm:$0xff] }
  0x6f   :  { %v9020_v49 = vcombine.high %v202_v45, %v210_v46  ;;  %v161_v3 = vld [vmem:[#allocation2 + $0x150] sm:$0xff]  ;;  %v138_v11 = vld [vmem:[#allocation2 + $0x98] sm:$0xff] }
  0x70   :  { %1280 = vmatpush1.bf16.msra.mxu0 %v8965_v52  ;;  %1321 = vmatpush1.bf16.msra.mxu1 %v8967_v53  ;;  %v186_v52 = vld [vmem:[#allocation2 + $0x218] sm:$0xff]  ;;  %v145_v8 = vld [vmem:[#allocation2 + $0xd0] sm:$0xff]  ;;  %v8970_v10 = vcombine.high %v153_v2, %v161_v3 }
  0x71   :  { %1281 = vmatprep.subr.bf16.mxu0 %v8950_v54  ;;  %1322 = vmatprep.subr.bf16.mxu1 %v8952_v55  ;;  %v194_v53 = vld [vmem:[#allocation2 + $0x258] sm:$0xff]  ;;  %v9017_v54 = vcombine.low %v201_v42, %v209_v44  ;;  %v9019_v55 = vcombine.low %v202_v45, %v210_v46  ;;  %v129_v18 = vld [vmem:[#allocation2 + $0x50] sm:$0xff] }
  0x72   :  { %v9004_v57 = vcombine.high %v186_v52, %v194_v53  ;;  %v122_v19 = vld [vmem:[#allocation2 + $0x18] sm:$0xff]  ;;  %v289_v24 = vld [vmem:[#allocation2 + $0x550] sm:$0xff] }
  0x73   :  { %v282_v27 = vld [vmem:[#allocation2 + $0x518] sm:$0xff]  ;;  %v273_v35 = vld [vmem:[#allocation2 + $0x4d0] sm:$0xff] }
  0x74   :  { %1282 = vmatpush1.bf16.msra.mxu0 %v8949_v60  ;;  %1323 = vmatpush1.bf16.msra.mxu1 %v8951_v61  ;;  %v170_v60 = vld [vmem:[#allocation2 + $0x198] sm:$0xff]  ;;  %v257_v42 = vld [vmem:[#allocation2 + $0x450] sm:$0xff] }
  0x75   :  { %1283 = vmatprep.subr.bf16.mxu0 %v8934_v62  ;;  %1324 = vmatprep.subr.bf16.mxu1 %v8936_v63  ;;  %v178_v61 = vld [vmem:[#allocation2 + $0x1d8] sm:$0xff]  ;;  %v9001_v62 = vcombine.low %v185_v50, %v193_v51  ;;  %v9003_v63 = vcombine.low %v186_v52, %v194_v53  ;;  %v243_v52 = vld [vmem:[#allocation2 + $0x3e0] sm:$0xff]  ;;  %v236_v53 = vld [vmem:[#allocation2 + $0x3a8] sm:$0xff] }
  0x76   :  { %v8988_v1 = vcombine.high %v170_v60, %v178_v61  ;;  %v8987_v9 = vcombine.low %v170_v60, %v178_v61  ;;  %v266_v36 = vld [vmem:[#allocation2 + $0x498] sm:$0xff]  ;;  %v220_v61 = vld [vmem:[#allocation2 + $0x328] sm:$0xff] }
  0x77   :  { %v250_v46 = vld [vmem:[#allocation2 + $0x418] sm:$0xff] }
  0x78   :  { %1284 = vmatpush1.bf16.msra.mxu0 %v8933_v4  ;;  %1325 = vmatpush1.bf16.msra.mxu1 %v8935_v5  ;;  %v154_v4 = vld [vmem:[#allocation2 + $0x118] sm:$0xff] }
  0x79   :  { %1295 = vmatprep.subr.bf16.mxu0 %v9094_v6  ;;  %1336 = vmatprep.subr.bf16.mxu1 %v9096_v7  ;;  %v162_v5 = vld [vmem:[#allocation2 + $0x158] sm:$0xff]  ;;  %v8985_v6 = vcombine.low %v169_v58, %v177_v59  ;;  %v137_v7 = vld [vmem:[#allocation2 + $0x90] sm:$0xff]  ;;  %v227_v58 = vld [vmem:[#allocation2 + $0x360] sm:$0xff] }
  0x7a   :  { %v8971_v16 = vcombine.low %v154_v4, %v162_v5  ;;  %v8954_v17 = vcombine.high %v137_v7, %v145_v8 }
  0x7c   :  { %1296 = vmatpush2.bf16.msra.mxu0 %v9093_v12  ;;  %1337 = vmatpush2.bf16.msra.mxu1 %v9095_v13  ;;  %v146_v12 = vld [vmem:[#allocation2 + $0xd8] sm:$0xff]  ;;  %v8972_v13 = vcombine.high %v154_v4, %v162_v5  ;;  %v211_v4 = vld [vmem:[#allocation2 + $0x2e0] sm:$0xff]  ;;  %v204_v5 = vld [vmem:[#allocation2 + $0x2a8] sm:$0xff] }
  0x7d   :  { %1297 = vmatprep.subr.bf16.mxu0 %v9078_v14  ;;  %1338 = vmatprep.subr.bf16.mxu1 %v9080_v15  ;;  %v8969_v14 = vcombine.low %v153_v2, %v161_v3  ;;  %v121_v15 = vld [vmem:[#allocation2 + $0x10] sm:$0xff]  ;;  %v8955_v25 = vcombine.low %v138_v11, %v146_v12 }
  0x7e   :  { %v8938_v26 = vcombine.high %v121_v15, %v129_v18 }
  0x80   :  { %1298 = vmatpush2.bf16.msra.mxu0 %v9077_v20  ;;  %1339 = vmatpush2.bf16.msra.mxu1 %v9079_v21  ;;  %v8956_v20 = vcombine.high %v138_v11, %v146_v12  ;;  %v130_v21 = vld [vmem:[#allocation2 + $0x58] sm:$0xff] }
  0x81   :  { %1299 = vmatprep.subr.bf16.mxu0 %v9062_v22  ;;  %1340 = vmatprep.subr.bf16.mxu1 %v9064_v23  ;;  %v8953_v22 = vcombine.low %v137_v7, %v145_v8  ;;  %v281_v23 = vld [vmem:[#allocation2 + $0x510] sm:$0xff]  ;;  %v8939_v32 = vcombine.low %v122_v19, %v130_v21  ;;  %v212_v7 = vld [vmem:[#allocation2 + $0x2e8] sm:$0xff] }
  0x82   :  { %v9098_v33 = vcombine.high %v281_v23, %v289_v24 }
  0x84   :  { %1300 = vmatpush2.bf16.msra.mxu0 %v9061_v28  ;;  %1341 = vmatpush2.bf16.msra.mxu1 %v9063_v29  ;;  %v290_v28 = vld [vmem:[#allocation2 + $0x558] sm:$0xff]  ;;  %v8940_v29 = vcombine.high %v122_v19, %v130_v21  ;;  %v172_v21 = vld [vmem:[#allocation2 + $0x1a8] sm:$0xff] }
  0x85   :  { %1351 = vmatprep.subr.bf16.mxu0 %v9050_v30  ;;  %1392 = vmatprep.subr.bf16.mxu1 %v9052_v31  ;;  %v8937_v30 = vcombine.low %v121_v15, %v129_v18  ;;  %v265_v31 = vld [vmem:[#allocation2 + $0x490] sm:$0xff]  ;;  %v9099_v44 = vcombine.low %v282_v27, %v290_v28  ;;  %v9024_v15 = vcombine.high %v204_v5, %v212_v7 }
  0x86   :  { %v9082_v45 = vcombine.high %v265_v31, %v273_v35  ;;  %v9023_v18 = vcombine.low %v204_v5, %v212_v7  ;;  %v252_v7 = vld [vmem:[#allocation2 + $0x428] sm:$0xff] }
  0x87   :  { %1302 = vmatmul.mubr.bf16.vlgmr.msra.gmra.mxu0 %v9829_v34  ;;  %1343 = vmatmul.mubr.bf16.vlgmr.msra.gmra.mxu1 %v9829_v34 }
  0x88   :  { %1352 = vmatpush1.bf16.msra.mxu0 %v9049_v37  ;;  %1393 = vmatpush1.bf16.msra.mxu1 %v9051_v38  ;;  %v9100_v37 = vcombine.high %v282_v27, %v290_v28  ;;  %v274_v38 = vld [vmem:[#allocation2 + $0x4d8] sm:$0xff] }
  0x89   :  { %1353 = vmatprep.subr.bf16.mxu0 %v9034_v39  ;;  %1394 = vmatprep.subr.bf16.mxu1 %v9036_v41  ;;  %v9097_v39 = vcombine.low %v281_v23, %v289_v24  ;;  %v249_v41 = vld [vmem:[#allocation2 + $0x410] sm:$0xff]  ;;  %v9083_v50 = vcombine.low %v266_v36, %v274_v38  ;;  %v180_v23 = vld [vmem:[#allocation2 + $0x1e8] sm:$0xff] }
  0x8a   :  { %9111 = vmatprep.mubr.msk.bf16.mxu0 %vm1265_vm0, %v9821_v43  ;;  %9112 = vmatprep.mubr.msk.bf16.mxu1 %vm1265_vm0, %v9821_v43  ;;  %v9066_v51 = vcombine.high %v249_v41, %v257_v42 }
  0x8c   :  { %1354 = vmatpush1.bf16.msra.mxu0 %v9033_v40  ;;  %1395 = vmatpush1.bf16.msra.mxu1 %v9035_v47  ;;  %v258_v40 = vld [vmem:[#allocation2 + $0x458] sm:$0xff]  ;;  %v9084_v47 = vcombine.high %v266_v36, %v274_v38  ;;  %v8991_v36 = vcombine.low %v172_v21, %v180_v23  ;;  %v140_v38 = vld [vmem:[#allocation2 + $0xa8] sm:$0xff] }
  0x8d   :  { %1355 = vmatprep.subr.bf16.mxu0 %v9018_v48  ;;  %1396 = vmatprep.subr.bf16.mxu1 %v9020_v49  ;;  %v9081_v48 = vcombine.low %v265_v31, %v273_v35  ;;  %v235_v49 = vld [vmem:[#allocation2 + $0x3a0] sm:$0xff]  ;;  %v9067_v59 = vcombine.low %v250_v46, %v258_v40  ;;  %v8992_v31 = vcombine.high %v172_v21, %v180_v23  ;;  %v222_v23 = vld [vmem:[#allocation2 + $0x338] sm:$0xff] }
  0x8e   :  { %v9054_v60 = vcombine.high %v235_v49, %v243_v52  ;;  %v147_v35 = vld [vmem:[#allocation2 + $0xe0] sm:$0xff] }
  0x90   :  { %1356 = vmatpush1.bf16.msra.mxu0 %v9017_v54  ;;  %1397 = vmatpush1.bf16.msra.mxu1 %v9019_v55  ;;  %v9068_v54 = vcombine.high %v250_v46, %v258_v40  ;;  %v244_v55 = vld [vmem:[#allocation2 + $0x3e8] sm:$0xff]  ;;  %v123_v40 = vld [vmem:[#allocation2 + $0x20] sm:$0xff] }
  0x91   :  { %1357 = vmatprep.subr.bf16.mxu0 %v9002_v56  ;;  %1398 = vmatprep.subr.bf16.mxu1 %v9004_v57  ;;  %v9065_v56 = vcombine.low %v249_v41, %v257_v42  ;;  %v219_v57 = vld [vmem:[#allocation2 + $0x320] sm:$0xff]  ;;  %v9055_v2 = vcombine.low %v236_v53, %v244_v55  ;;  %v148_v41 = vld [vmem:[#allocation2 + $0xe8] sm:$0xff] }
  0x92   :  { %v9038_v3 = vcombine.high %v219_v57, %v227_v58  ;;  %v9037_v8 = vcombine.low %v219_v57, %v227_v58  ;;  %v8960_v46 = vcombine.high %v140_v38, %v148_v41 }
  0x94   :  { %1358 = vmatpush1.bf16.msra.mxu0 %v9001_v62  ;;  %1399 = vmatpush1.bf16.msra.mxu1 %v9003_v63  ;;  %v228_v62 = vld [vmem:[#allocation2 + $0x368] sm:$0xff]  ;;  %v9056_v63 = vcombine.high %v236_v53, %v244_v55  ;;  %v8959_v53 = vcombine.low %v140_v38, %v148_v41  ;;  %v190_v41 = vld [vmem:[#allocation2 + $0x238] sm:$0xff] }
  0x95   :  { %1359 = vmatprep.subr.bf16.mxu0 %v8986_v0  ;;  %1400 = vmatprep.subr.bf16.mxu1 %v8988_v1  ;;  %v9053_v0 = vcombine.low %v235_v49, %v243_v52  ;;  %v203_v1 = vld [vmem:[#allocation2 + $0x2a0] sm:$0xff]  ;;  %v9039_v11 = vcombine.low %v220_v61, %v228_v62  ;;  %v132_v49 = vld [vmem:[#allocation2 + $0x68] sm:$0xff] }
  0x96   :  { %v9022_v12 = vcombine.high %v203_v1, %v211_v4  ;;  %v291_v52 = vld [vmem:[#allocation2 + $0x560] sm:$0xff]  ;;  %v284_v55 = vld [vmem:[#allocation2 + $0x528] sm:$0xff] }
  0x98   :  { %1360 = vmatpush1.bf16.msra.mxu0 %v8985_v6  ;;  %1401 = vmatpush1.bf16.msra.mxu1 %v8987_v9  ;;  %v9040_v6 = vcombine.high %v220_v61, %v228_v62  ;;  %v187_v9 = vld [vmem:[#allocation2 + $0x220] sm:$0xff] }
  0x99   :  { %1361 = vmatprep.subr.bf16.mxu0 %v8970_v10  ;;  %1402 = vmatprep.subr.bf16.mxu1 %v8972_v13  ;;  %v195_v10 = vld [vmem:[#allocation2 + $0x260] sm:$0xff]  ;;  %v188_v13 = vld [vmem:[#allocation2 + $0x228] sm:$0xff] }
  0x9a   :  { %v9006_v19 = vcombine.high %v187_v9, %v195_v10  ;;  %v9005_v24 = vcombine.low %v187_v9, %v195_v10  ;;  %v267_v62 = vld [vmem:[#allocation2 + $0x4a0] sm:$0xff] }
  0x9c   :  { %1362 = vmatpush1.bf16.msra.mxu0 %v8969_v14  ;;  %1403 = vmatpush1.bf16.msra.mxu1 %v8971_v16  ;;  %v196_v14 = vld [vmem:[#allocation2 + $0x268] sm:$0xff]  ;;  %v9021_v16 = vcombine.low %v203_v1, %v211_v4  ;;  %v259_v4 = vld [vmem:[#allocation2 + $0x460] sm:$0xff] }
  0x9d   :  { %1363 = vmatprep.subr.bf16.mxu0 %v8954_v17  ;;  %1404 = vmatprep.subr.bf16.mxu1 %v8956_v20  ;;  %v171_v17 = vld [vmem:[#allocation2 + $0x1a0] sm:$0xff]  ;;  %v9007_v27 = vcombine.low %v188_v13, %v196_v14  ;;  %v276_v1 = vld [vmem:[#allocation2 + $0x4e8] sm:$0xff] }
  0x9e   :  { %v179_v20 = vld [vmem:[#allocation2 + $0x1e0] sm:$0xff] }
  0x9f   :  { %v8990_v28 = vcombine.high %v171_v17, %v179_v20 }
  0xa0   :  { %1364 = vmatpush1.bf16.msra.mxu0 %v8953_v22  ;;  %1405 = vmatpush1.bf16.msra.mxu1 %v8955_v25  ;;  %v9008_v22 = vcombine.high %v188_v13, %v196_v14  ;;  %v155_v25 = vld [vmem:[#allocation2 + $0x120] sm:$0xff] }
  0xa1   :  { %1365 = vmatprep.subr.bf16.mxu0 %v8938_v26  ;;  %1406 = vmatprep.subr.bf16.mxu1 %v8940_v29  ;;  %v163_v26 = vld [vmem:[#allocation2 + $0x160] sm:$0xff]  ;;  %v156_v29 = vld [vmem:[#allocation2 + $0x128] sm:$0xff] }
  0xa2   :  { %v8973_v42 = vcombine.low %v155_v25, %v163_v26 }
  0xa4   :  { %1366 = vmatpush1.bf16.msra.mxu0 %v8937_v30  ;;  %1407 = vmatpush1.bf16.msra.mxu1 %v8939_v32  ;;  %v164_v30 = vld [vmem:[#allocation2 + $0x168] sm:$0xff]  ;;  %v8989_v32 = vcombine.low %v171_v17, %v179_v20  ;;  %v246_v17 = vld [vmem:[#allocation2 + $0x3f8] sm:$0xff]  ;;  %v229_v20 = vld [vmem:[#allocation2 + $0x370] sm:$0xff] }
  0xa5   :  { %1377 = vmatprep.subr.bf16.mxu0 %v9098_v33  ;;  %1418 = vmatprep.subr.bf16.mxu1 %v9100_v37  ;;  %v139_v33 = vld [vmem:[#allocation2 + $0xa0] sm:$0xff]  ;;  %v8974_v37 = vcombine.high %v155_v25, %v163_v26 }
  0xa8   :  { %1378 = vmatpush2.bf16.msra.mxu0 %v9097_v39  ;;  %1419 = vmatpush2.bf16.msra.mxu1 %v9099_v44  ;;  %v8976_v39 = vcombine.high %v156_v29, %v164_v30  ;;  %v8975_v44 = vcombine.low %v156_v29, %v164_v30 }
  0xa9   :  { %1379 = vmatprep.subr.bf16.mxu0 %v9082_v45  ;;  %1420 = vmatprep.subr.bf16.mxu1 %v9084_v47  ;;  %v8958_v45 = vcombine.high %v139_v33, %v147_v35  ;;  %v131_v47 = vld [vmem:[#allocation2 + $0x60] sm:$0xff] }
  0xaa   :  { %v8941_v58 = vcombine.low %v123_v40, %v131_v47 }
  0xac   :  { %1380 = vmatpush2.bf16.msra.mxu0 %v9081_v48  ;;  %1421 = vmatpush2.bf16.msra.mxu1 %v9083_v50  ;;  %v124_v48 = vld [vmem:[#allocation2 + $0x28] sm:$0xff]  ;;  %v8957_v50 = vcombine.low %v139_v33, %v147_v35  ;;  %v214_v33 = vld [vmem:[#allocation2 + $0x2f8] sm:$0xff] }
  0xad   :  { %1381 = vmatprep.subr.bf16.mxu0 %v9066_v51  ;;  %1422 = vmatprep.subr.bf16.mxu1 %v9068_v54  ;;  %v283_v51 = vld [vmem:[#allocation2 + $0x520] sm:$0xff]  ;;  %v8942_v54 = vcombine.high %v123_v40, %v131_v47  ;;  %v8944_v57 = vcombine.high %v124_v48, %v132_v49  ;;  %v181_v40 = vld [vmem:[#allocation2 + $0x1f0] sm:$0xff] }
  0xb0   :  { %1382 = vmatpush2.bf16.msra.mxu0 %v9065_v56  ;;  %1423 = vmatpush2.bf16.msra.mxu1 %v9067_v59  ;;  %v292_v56 = vld [vmem:[#allocation2 + $0x568] sm:$0xff]  ;;  %v8943_v59 = vcombine.low %v124_v48, %v132_v49 }
  0xb1   :  { %1433 = vmatprep.subr.bf16.mxu0 %v9054_v60  ;;  %1474 = vmatprep.subr.bf16.mxu1 %v9056_v63  ;;  %v9102_v60 = vcombine.high %v283_v51, %v291_v52  ;;  %v9104_v61 = vcombine.high %v284_v55, %v292_v56  ;;  %v275_v63 = vld [vmem:[#allocation2 + $0x4e0] sm:$0xff]  ;;  %v9103_v5 = vcombine.low %v284_v55, %v292_v56  ;;  %v158_v56 = vld [vmem:[#allocation2 + $0x138] sm:$0xff] }
  0xb2   :  { %v9085_v10 = vcombine.low %v267_v62, %v275_v63 }
  0xb3   :  { %1384 = vmatmul.mubr.bf16.vlgmr.msra.gmra.mxu0 %v9829_v34  ;;  %1425 = vmatmul.mubr.bf16.vlgmr.msra.gmra.mxu1 %v9829_v34 }
  0xb4   :  { %1434 = vmatpush1.bf16.msra.mxu0 %v9053_v0  ;;  %1475 = vmatpush1.bf16.msra.mxu1 %v9055_v2  ;;  %v268_v0 = vld [vmem:[#allocation2 + $0x4a8] sm:$0xff]  ;;  %v9101_v2 = vcombine.low %v283_v51, %v291_v52  ;;  %v182_v51 = vld [vmem:[#allocation2 + $0x1f8] sm:$0xff] }
  0xb5   :  { %1435 = vmatprep.subr.bf16.mxu0 %v9038_v3  ;;  %1476 = vmatprep.subr.bf16.mxu1 %v9040_v6  ;;  %v251_v3 = vld [vmem:[#allocation2 + $0x420] sm:$0xff]  ;;  %v9086_v6 = vcombine.high %v267_v62, %v275_v63  ;;  %v9088_v9 = vcombine.high %v268_v0, %v276_v1  ;;  %v9087_v13 = vcombine.low %v268_v0, %v276_v1  ;;  %v142_v1 = vld [vmem:[#allocation2 + $0xb8] sm:$0xff] }
  0xb6   :  { %9113 = vmatprep.mubr.msk.bf16.mxu0 %vm1265_vm0, %v9821_v43  ;;  %9114 = vmatprep.mubr.msk.bf16.mxu1 %vm1265_vm0, %v9821_v43  ;;  %v9070_v14 = vcombine.high %v251_v3, %v259_v4 }
  0xb8   :  { %1436 = vmatpush1.bf16.msra.mxu0 %v9037_v8  ;;  %1477 = vmatpush1.bf16.msra.mxu1 %v9039_v11  ;;  %v260_v8 = vld [vmem:[#allocation2 + $0x468] sm:$0xff]  ;;  %v237_v11 = vld [vmem:[#allocation2 + $0x3b0] sm:$0xff] }
  0xb9   :  { %1437 = vmatprep.subr.bf16.mxu0 %v9022_v12  ;;  %1478 = vmatprep.subr.bf16.mxu1 %v9024_v15  ;;  %v245_v12 = vld [vmem:[#allocation2 + $0x3f0] sm:$0xff]  ;;  %v9072_v15 = vcombine.high %v252_v7, %v260_v8  ;;  %v9071_v21 = vcombine.low %v252_v7, %v260_v8  ;;  %v126_v8 = vld [vmem:[#allocation2 + $0x38] sm:$0xff] }
  0xba   :  { %v9057_v26 = vcombine.low %v237_v11, %v245_v12 }
  0xbc   :  { %1438 = vmatpush1.bf16.msra.mxu0 %v9021_v16  ;;  %1479 = vmatpush1.bf16.msra.mxu1 %v9023_v18  ;;  %v238_v16 = vld [vmem:[#allocation2 + $0x3b8] sm:$0xff]  ;;  %v9069_v18 = vcombine.low %v251_v3, %v259_v4  ;;  %v125_v4 = vld [vmem:[#allocation2 + $0x30] sm:$0xff] }
  0xbd   :  { %1439 = vmatprep.subr.bf16.mxu0 %v9006_v19  ;;  %1480 = vmatprep.subr.bf16.mxu1 %v9008_v22  ;;  %v221_v19 = vld [vmem:[#allocation2 + $0x330] sm:$0xff]  ;;  %v9058_v22 = vcombine.high %v237_v11, %v245_v12  ;;  %v9060_v25 = vcombine.high %v238_v16, %v246_v17  ;;  %v9059_v29 = vcombine.low %v238_v16, %v246_v17  ;;  %v286_v17 = vld [vmem:[#allocation2 + $0x538] sm:$0xff] }
  0xbe   :  { %v9042_v30 = vcombine.high %v221_v19, %v229_v20  ;;  %v9041_v35 = vcombine.low %v221_v19, %v229_v20  ;;  %v285_v12 = vld [vmem:[#allocation2 + $0x530] sm:$0xff] }
  0xbf   :  { %v269_v20 = vld [vmem:[#allocation2 + $0x4b0] sm:$0xff] }
  0xc0   :  { %1440 = vmatpush1.bf16.msra.mxu0 %v9005_v24  ;;  %1481 = vmatpush1.bf16.msra.mxu1 %v9007_v27  ;;  %v230_v24 = vld [vmem:[#allocation2 + $0x378] sm:$0xff]  ;;  %v205_v27 = vld [vmem:[#allocation2 + $0x2b0] sm:$0xff] }
  0xc1   :  { %1441 = vmatprep.subr.bf16.mxu0 %v8990_v28  ;;  %1482 = vmatprep.subr.bf16.mxu1 %v8992_v31  ;;  %v213_v28 = vld [vmem:[#allocation2 + $0x2f0] sm:$0xff]  ;;  %v9044_v31 = vcombine.high %v222_v23, %v230_v24  ;;  %v9043_v38 = vcombine.low %v222_v23, %v230_v24  ;;  %v270_v24 = vld [vmem:[#allocation2 + $0x4b8] sm:$0xff] }
  0xc4   :  { %1442 = vmatpush1.bf16.msra.mxu0 %v8989_v32  ;;  %1483 = vmatpush1.bf16.msra.mxu1 %v8991_v36  ;;  %v206_v32 = vld [vmem:[#allocation2 + $0x2b8] sm:$0xff]  ;;  %v189_v36 = vld [vmem:[#allocation2 + $0x230] sm:$0xff] }
  0xc5   :  { %1443 = vmatprep.subr.bf16.mxu0 %v8974_v37  ;;  %1484 = vmatprep.subr.bf16.mxu1 %v8976_v39  ;;  %v197_v37 = vld [vmem:[#allocation2 + $0x270] sm:$0xff]  ;;  %v9026_v39 = vcombine.high %v205_v27, %v213_v28  ;;  %v9027_v47 = vcombine.low %v206_v32, %v214_v33 }
  0xc6   :  { %v9010_v48 = vcombine.high %v189_v36, %v197_v37  ;;  %v9009_v52 = vcombine.low %v189_v36, %v197_v37 }
  0xc8   :  { %1444 = vmatpush1.bf16.msra.mxu0 %v8973_v42  ;;  %1485 = vmatpush1.bf16.msra.mxu1 %v8975_v44  ;;  %v198_v42 = vld [vmem:[#allocation2 + $0x278] sm:$0xff]  ;;  %v9028_v44 = vcombine.high %v206_v32, %v214_v33  ;;  %v261_v32 = vld [vmem:[#allocation2 + $0x470] sm:$0xff] }
  0xc9   :  { %1445 = vmatprep.subr.bf16.mxu0 %v8958_v45  ;;  %1486 = vmatprep.subr.bf16.mxu1 %v8960_v46  ;;  %v9025_v45 = vcombine.low %v205_v27, %v213_v28  ;;  %v173_v46 = vld [vmem:[#allocation2 + $0x1b0] sm:$0xff]  ;;  %v9012_v49 = vcombine.high %v190_v41, %v198_v42  ;;  %v9011_v55 = vcombine.low %v190_v41, %v198_v42  ;;  %v254_v33 = vld [vmem:[#allocation2 + $0x438] sm:$0xff] }
  0xca   :  { %v1678_v41 = vld [vmem:[#allocation7 + $0x188] sm:$0xff] }
  0xcb   :  { %v1806_v42 = vld [vmem:[#allocation7 + $0x588] sm:$0xff] }
  0xcc   :  { %1446 = vmatpush1.bf16.msra.mxu0 %v8957_v50  ;;  %1487 = vmatpush1.bf16.msra.mxu1 %v8959_v53  ;;  %v174_v50 = vld [vmem:[#allocation2 + $0x1b8] sm:$0xff]  ;;  %v157_v53 = vld [vmem:[#allocation2 + $0x130] sm:$0xff] }
  0xcd   :  { %1447 = vmatprep.subr.bf16.mxu0 %v8942_v54  ;;  %1488 = vmatprep.subr.bf16.mxu1 %v8944_v57  ;;  %v165_v54 = vld [vmem:[#allocation2 + $0x170] sm:$0xff]  ;;  %v166_v57 = vld [vmem:[#allocation2 + $0x178] sm:$0xff]  ;;  %v8995_v62 = vcombine.low %v174_v50, %v182_v51 }
  0xce   :  { %v8978_v63 = vcombine.high %v157_v53, %v165_v54  ;;  %v8980_v0 = vcombine.high %v158_v56, %v166_v57  ;;  %v8977_v3 = vcombine.low %v157_v53, %v165_v54  ;;  %v1662_v53 = vld [vmem:[#allocation7 + $0x108] sm:$0xff] }
  0xcf   :  { %v1790_v54 = vld [vmem:[#allocation7 + $0x508] sm:$0xff] }
  0xd0   :  { %1448 = vmatpush1.bf16.msra.mxu0 %v8941_v58  ;;  %1489 = vmatpush1.bf16.msra.mxu1 %v8943_v59  ;;  %v8996_v58 = vcombine.high %v174_v50, %v182_v51  ;;  %v8993_v59 = vcombine.low %v173_v46, %v181_v40  ;;  %v2750_v51 = vunpack.c.l.s8.bf16 %v1678_v41 }
  0xd1   :  { %1459 = vmatprep.subr.bf16.mxu0 %v9102_v60  ;;  %1500 = vmatprep.subr.bf16.mxu1 %v9104_v61  ;;  %v141_v60 = vld [vmem:[#allocation2 + $0xb0] sm:$0xff] }
  0xd2   :  { %v149_v61 = vld [vmem:[#allocation2 + $0xf0] sm:$0xff] }
  0xd3   :  { %v8962_v7 = vcombine.high %v141_v60, %v149_v61  ;;  %v8961_v11 = vcombine.low %v141_v60, %v149_v61 }
  0xd4   :  { %1460 = vmatpush2.bf16.msra.mxu0 %v9101_v2  ;;  %1501 = vmatpush2.bf16.msra.mxu1 %v9103_v5  ;;  %v150_v2 = vld [vmem:[#allocation2 + $0xf8] sm:$0xff]  ;;  %v133_v5 = vld [vmem:[#allocation2 + $0x70] sm:$0xff] }
  0xd5   :  { %1461 = vmatprep.subr.bf16.mxu0 %v9086_v6  ;;  %1502 = vmatprep.subr.bf16.mxu1 %v9088_v9  ;;  %v8979_v6 = vcombine.low %v158_v56, %v166_v57  ;;  %v8964_v9 = vcombine.high %v142_v1, %v150_v2  ;;  %v8945_v19 = vcombine.low %v125_v4, %v133_v5  ;;  %v2734_v56 = vunpack.c.h.s8.bf16 %v1662_v53  ;;  %v1661_v57 = vld [vmem:[#allocation7 + $0x100] sm:$0xff] }
  0xd6   :  { %v2733_v60 = vunpack.c.h.s8.bf16 %v1661_v57 }
  0xd8   :  { %1462 = vmatpush2.bf16.msra.mxu0 %v9085_v10  ;;  %1503 = vmatpush2.bf16.msra.mxu1 %v9087_v13  ;;  %v134_v10 = vld [vmem:[#allocation2 + $0x78] sm:$0xff]  ;;  %v293_v13 = vld [vmem:[#allocation2 + $0x570] sm:$0xff] }
  0xd9   :  { %1463 = vmatprep.subr.bf16.mxu0 %v9070_v14  ;;  %1504 = vmatprep.subr.bf16.mxu1 %v9072_v15  ;;  %v8963_v14 = vcombine.low %v142_v1, %v150_v2  ;;  %v8946_v15 = vcombine.high %v125_v4, %v133_v5  ;;  %v8948_v16 = vcombine.high %v126_v8, %v134_v10  ;;  %v2717_v1 = vunpack.c.l.s8.bf16 %v1661_v57  ;;  %v1645_v4 = vld [vmem:[#allocation7 + $0x80] sm:$0xff] }
  0xda   :  { %v9106_v23 = vcombine.high %v285_v12, %v293_v13  ;;  %v9105_v27 = vcombine.low %v285_v12, %v293_v13  ;;  %v1758_v12 = vld [vmem:[#allocation7 + $0x408] sm:$0xff]  ;;  %v2685_v13 = vunpack.c.l.s8.bf16 %v1645_v4  ;;  %v299_v57 = vlaneseq }
  0xdc   :  { %1464 = vmatpush2.bf16.msra.mxu0 %v9069_v18  ;;  %1505 = vmatpush2.bf16.msra.mxu1 %v9071_v21  ;;  %v294_v18 = vld [vmem:[#allocation2 + $0x578] sm:$0xff]  ;;  %v277_v21 = vld [vmem:[#allocation2 + $0x4f0] sm:$0xff] }
  0xdd   :  { %1515 = vmatprep.subr.bf16.mxu0 %v9058_v22  ;;  %1556 = vmatprep.subr.bf16.mxu1 %v9060_v25  ;;  %v8947_v22 = vcombine.low %v126_v8, %v134_v10  ;;  %v9108_v25 = vcombine.high %v286_v17, %v294_v18  ;;  %v9107_v28 = vcombine.low %v286_v17, %v294_v18  ;;  %v2926_v17 = vunpack.c.h.s8.bf16 %v1758_v12  ;;  %v1757_v18 = vld [vmem:[#allocation7 + $0x400] sm:$0xff] }
  0xde   :  { %v9089_v36 = vcombine.low %v269_v20, %v277_v21 }
  0xdf   :  { %1466 = vmatmul.mubr.bf16.vlgmr.msra.gmra.mxu0 %v9829_v34  ;;  %1507 = vmatmul.mubr.bf16.vlgmr.msra.gmra.mxu1 %v9829_v34 }
  0xe0   :  { %1516 = vmatpush1.bf16.msra.mxu0 %v9057_v26  ;;  %1557 = vmatpush1.bf16.msra.mxu1 %v9059_v29  ;;  %v278_v26 = vld [vmem:[#allocation2 + $0x4f8] sm:$0xff]  ;;  %v9090_v29 = vcombine.high %v269_v20, %v277_v21  ;;  %v2925_v20 = vunpack.c.h.s8.bf16 %v1757_v18 }
  0xe1   :  { %1517 = vmatprep.subr.bf16.mxu0 %v9042_v30  ;;  %1558 = vmatprep.subr.bf16.mxu1 %v9044_v31  ;;  %v9092_v30 = vcombine.high %v270_v24, %v278_v26  ;;  %v253_v31 = vld [vmem:[#allocation2 + $0x430] sm:$0xff]  ;;  %v9091_v37 = vcombine.low %v270_v24, %v278_v26  ;;  %v1870_v24 = vld [vmem:[#allocation7 + $0x788] sm:$0xff]  ;;  %v2909_v26 = vunpack.c.l.s8.bf16 %v1757_v18 }
  0xe2   :  { %9115 = vmatprep.mubr.msk.bf16.mxu0 %vm1265_vm0, %v9821_v43  ;;  %9116 = vmatprep.mubr.msk.bf16.mxu1 %vm1265_vm0, %v9821_v43  ;;  %v8994_v43 = vcombine.high %v173_v46, %v181_v40  ;;  %v2766_v46 = vunpack.c.h.s8.bf16 %v1678_v41  ;;  %v1677_v40 = vld [vmem:[#allocation7 + $0x180] sm:$0xff] }
  0xe4   :  { %1518 = vmatpush1.bf16.msra.mxu0 %v9041_v35  ;;  %1559 = vmatpush1.bf16.msra.mxu1 %v9043_v38  ;;  %v262_v35 = vld [vmem:[#allocation2 + $0x478] sm:$0xff]  ;;  %v9074_v38 = vcombine.high %v253_v31, %v261_v32 }
  0xe5   :  { %1519 = vmatprep.subr.bf16.mxu0 %v9026_v39  ;;  %1560 = vmatprep.subr.bf16.mxu1 %v9028_v44  ;;  %v9076_v39 = vcombine.high %v254_v33, %v262_v35  ;;  %v9073_v44 = vcombine.low %v253_v31, %v261_v32 }
  0xe8   :  { %1520 = vmatpush1.bf16.msra.mxu0 %v9025_v45  ;;  %1561 = vmatpush1.bf16.msra.mxu1 %v9027_v47  ;;  %v9075_v45 = vcombine.low %v254_v33, %v262_v35  ;;  %v3022_v47 = vunpack.c.h.s8.bf16 %v1806_v42  ;;  %v3134_v35 = vunpack.c.l.s8.bf16 %v1870_v24 }
  0xe9   :  { %1521 = vmatprep.subr.bf16.mxu0 %v9010_v48  ;;  %1562 = vmatprep.subr.bf16.mxu1 %v9012_v49  ;;  %v1805_v48 = vld [vmem:[#allocation7 + $0x580] sm:$0xff]  ;;  %v2765_v49 = vunpack.c.h.s8.bf16 %v1677_v40 }
  0xea   :  { %v3021_v50 = vunpack.c.h.s8.bf16 %v1805_v48 }
  0xec   :  { %1522 = vmatpush1.bf16.msra.mxu0 %v9009_v52  ;;  %1563 = vmatpush1.bf16.msra.mxu1 %v9011_v55  ;;  %v3006_v52 = vunpack.c.l.s8.bf16 %v1806_v42  ;;  %v2749_v55 = vunpack.c.l.s8.bf16 %v1677_v40  ;;  %v1725_v42 = vld [vmem:[#allocation7 + $0x300] sm:$0xff] }
  0xed   :  { %1523 = vmatprep.subr.bf16.mxu0 %v8994_v43  ;;  %1564 = vmatprep.subr.bf16.mxu1 %v8996_v58  ;;  %v3005_v43 = vunpack.c.l.s8.bf16 %v1805_v48  ;;  %v2990_v58 = vunpack.c.h.s8.bf16 %v1790_v54 }
  0xf0   :  { %1524 = vmatpush1.bf16.msra.mxu0 %v8993_v59  ;;  %1565 = vmatpush1.bf16.msra.mxu1 %v8995_v62  ;;  %v1789_v59 = vld [vmem:[#allocation7 + $0x500] sm:$0xff]  ;;  %v2718_v62 = vunpack.c.l.s8.bf16 %v1662_v53 }
  0xf1   :  { %1525 = vmatprep.subr.bf16.mxu0 %v8978_v63  ;;  %1566 = vmatprep.subr.bf16.mxu1 %v8980_v0  ;;  %v2989_v61 = vunpack.c.h.s8.bf16 %v1789_v59  ;;  %v2974_v63 = vunpack.c.l.s8.bf16 %v1790_v54  ;;  %v1646_v0 = vld [vmem:[#allocation7 + $0x88] sm:$0xff]  ;;  %v2973_v2 = vunpack.c.l.s8.bf16 %v1789_v59  ;;  %v1709_v54 = vld [vmem:[#allocation7 + $0x280] sm:$0xff] }
  0xf4   :  { %1526 = vmatpush1.bf16.msra.mxu0 %v8977_v3  ;;  %1567 = vmatpush1.bf16.msra.mxu1 %v8979_v6  ;;  %v2702_v3 = vunpack.c.h.s8.bf16 %v1646_v0  ;;  %v1773_v6 = vld [vmem:[#allocation7 + $0x480] sm:$0xff] }
  0xf5   :  { %1527 = vmatprep.subr.bf16.mxu0 %v8962_v7  ;;  %1568 = vmatprep.subr.bf16.mxu1 %v8964_v9  ;;  %v2701_v7 = vunpack.c.h.s8.bf16 %v1645_v4  ;;  %v2957_v8 = vunpack.c.h.s8.bf16 %v1773_v6  ;;  %v2686_v9 = vunpack.c.l.s8.bf16 %v1646_v0  ;;  %v9851_v0 = vshrl.u32 %v299_v57, 7  ;;  %v1821_v4 = vld [vmem:[#allocation7 + $0x600] sm:$0xff] }
  0xf8   :  { %1528 = vmatpush1.bf16.msra.mxu0 %v8961_v11  ;;  %1569 = vmatpush1.bf16.msra.mxu1 %v8963_v14  ;;  %v1630_v11 = vld [vmem:[#allocation7 + $0x8] sm:$0xff]  ;;  %v2941_v14 = vunpack.c.l.s8.bf16 %v1773_v6 }
  0xf9   :  { %1529 = vmatprep.subr.bf16.mxu0 %v8946_v15  ;;  %1570 = vmatprep.subr.bf16.mxu1 %v8948_v16  ;;  %v2670_v15 = vunpack.c.h.s8.bf16 %v1630_v11  ;;  %v1629_v16 = vld [vmem:[#allocation7] sm:$0xff]  ;;  %v2654_v21 = vunpack.c.l.s8.bf16 %v1630_v11  ;;  %v9862_v11 = vsub.s32 1, %v9851_v0 }
  0xfc   :  { %1530 = vmatpush1.bf16.msra.mxu0 %v8945_v19  ;;  %1571 = vmatpush1.bf16.msra.mxu1 %v8947_v22  ;;  %v2669_v19 = vunpack.c.h.s8.bf16 %v1629_v16  ;;  %v2910_v22 = vunpack.c.l.s8.bf16 %v1758_v12 }
  0xfd   :  { %1541 = vmatprep.subr.bf16.mxu0 %v9106_v23  ;;  %1582 = vmatprep.subr.bf16.mxu1 %v9108_v25  ;;  %v1742_v23 = vld [vmem:[#allocation7 + $0x388] sm:$0xff]  ;;  %v2653_v25 = vunpack.c.l.s8.bf16 %v1629_v16 }
  0xfe   :  { %v2878_v33 = vunpack.c.l.s8.bf16 %v1742_v23 }
 0x100   :  { %1542 = vmatpush2.bf16.msra.mxu0 %v9105_v27  ;;  %1583 = vmatpush2.bf16.msra.mxu1 %v9107_v28  ;;  %v2894_v27 = vunpack.c.h.s8.bf16 %v1742_v23  ;;  %v1741_v28 = vld [vmem:[#allocation7 + $0x380] sm:$0xff] }
 0x101   :  { %1543 = vmatprep.subr.bf16.mxu0 %v9090_v29  ;;  %1584 = vmatprep.subr.bf16.mxu1 %v9092_v30  ;;  %v3150_v29 = vunpack.c.h.s8.bf16 %v1870_v24  ;;  %v1869_v30 = vld [vmem:[#allocation7 + $0x780] sm:$0xff]  ;;  %v2893_v31 = vunpack.c.h.s8.bf16 %v1741_v28 }
 0x102   :  { %v3149_v32 = vunpack.c.h.s8.bf16 %v1869_v30 }
 0x104   :  { %1544 = vmatpush2.bf16.msra.mxu0 %v9089_v36  ;;  %1585 = vmatpush2.bf16.msra.mxu1 %v9091_v37  ;;  %v1726_v36 = vld [vmem:[#allocation7 + $0x308] sm:$0xff] }
 0x105   :  { %1545 = vmatprep.subr.bf16.mxu0 %v9074_v38  ;;  %1586 = vmatprep.subr.bf16.mxu1 %v9076_v39  ;;  %v1854_v37 = vld [vmem:[#allocation7 + $0x708] sm:$0xff]  ;;  %v2877_v38 = vunpack.c.l.s8.bf16 %v1741_v28  ;;  %v3133_v39 = vunpack.c.l.s8.bf16 %v1869_v30  ;;  %v2862_v41 = vunpack.c.h.s8.bf16 %v1726_v36 }
 0x106   :  { %v3102_v48 = vunpack.c.l.s8.bf16 %v1854_v37 }
 0x108   :  { %1546 = vmatpush2.bf16.msra.mxu0 %v9073_v44  ;;  %1587 = vmatpush2.bf16.msra.mxu1 %v9075_v45  ;;  %v3118_v44 = vunpack.c.h.s8.bf16 %v1854_v37  ;;  %v1853_v45 = vld [vmem:[#allocation7 + $0x700] sm:$0xff] }
 0x109   :  { %4701 = vmatprep.subr.bf16.mxu0 %v2766_v46  ;;  %4742 = vmatprep.subr.bf16.mxu1 %v3022_v47  ;;  %v2861_v46 = vunpack.c.h.s8.bf16 %v1725_v42  ;;  %v3117_v40 = vunpack.c.h.s8.bf16 %v1853_v45  ;;  %v2846_v47 = vunpack.c.l.s8.bf16 %v1726_v36  ;;  %v1933_v36 = vld [vmem:[#allocation7 + $0x980] sm:$0xff] }
 0x10b   :  { %1548 = vmatmul.mubr.bf16.vlgmr.msra.gmra.mxu0 %v9829_v34  ;;  %1589 = vmatmul.mubr.bf16.vlgmr.msra.gmra.mxu1 %v9829_v34  ;;  %v1774_v34 = vld [vmem:[#allocation7 + $0x488] sm:$0xff] }
 0x10c   :  { %4702 = vmatpush1.bf16.msra.mxu0 %v2765_v49  ;;  %4743 = vmatpush1.bf16.msra.mxu1 %v3021_v50  ;;  %v2958_v5 = vunpack.c.h.s8.bf16 %v1774_v34  ;;  %v2942_v10 = vunpack.c.l.s8.bf16 %v1774_v34  ;;  %v1710_v49 = vld [vmem:[#allocation7 + $0x288] sm:$0xff] }
 0x10d   :  { %4703 = vmatprep.subr.bf16.mxu0 %v2750_v51  ;;  %4744 = vmatprep.subr.bf16.mxu1 %v3006_v52  ;;  %v1838_v50 = vld [vmem:[#allocation7 + $0x688] sm:$0xff]  ;;  %v2845_v51 = vunpack.c.l.s8.bf16 %v1725_v42  ;;  %v3101_v52 = vunpack.c.l.s8.bf16 %v1853_v45  ;;  %v2830_v53 = vunpack.c.h.s8.bf16 %v1710_v49  ;;  %v2814_v59 = vunpack.c.l.s8.bf16 %v1710_v49 }
 0x110   :  { %4704 = vmatpush1.bf16.msra.mxu0 %v2749_v55  ;;  %4745 = vmatpush1.bf16.msra.mxu1 %v3005_v43  ;;  %v3086_v55 = vunpack.c.h.s8.bf16 %v1838_v50  ;;  %v1837_v43 = vld [vmem:[#allocation7 + $0x680] sm:$0xff] }
 0x111   :  { %4705 = vmatprep.subr.bf16.mxu0 %v2734_v56  ;;  %4746 = vmatprep.subr.bf16.mxu1 %v2990_v58  ;;  %v2829_v56 = vunpack.c.h.s8.bf16 %v1709_v54  ;;  %v3085_v58 = vunpack.c.h.s8.bf16 %v1837_v43  ;;  %v3069_v34 = vunpack.c.l.s8.bf16 %v1837_v43 }
 0x114   :  { %4706 = vmatpush1.bf16.msra.mxu0 %v2733_v60  ;;  %4747 = vmatpush1.bf16.msra.mxu1 %v2989_v61  ;;  %v3070_v60 = vunpack.c.l.s8.bf16 %v1838_v50  ;;  %v1694_v61 = vld [vmem:[#allocation7 + $0x208] sm:$0xff] }
 0x115   :  { %4707 = vmatprep.subr.bf16.mxu0 %v2718_v62  ;;  %4748 = vmatprep.subr.bf16.mxu1 %v2974_v63  ;;  %v1822_v62 = vld [vmem:[#allocation7 + $0x608] sm:$0xff]  ;;  %v2813_v63 = vunpack.c.l.s8.bf16 %v1709_v54  ;;  %v3261_v54 = vunpack.c.l.s8.bf16 %v1933_v36 }
 0x116   :  { %v3038_v12 = vunpack.c.l.s8.bf16 %v1822_v62 }
 0x118   :  { %4708 = vmatpush1.bf16.msra.mxu0 %v2717_v1  ;;  %4749 = vmatpush1.bf16.msra.mxu1 %v2973_v2  ;;  %v2798_v1 = vunpack.c.h.s8.bf16 %v1694_v61  ;;  %v1693_v2 = vld [vmem:[#allocation7 + $0x200] sm:$0xff] }
 0x119   :  { %4709 = vmatprep.subr.bf16.mxu0 %v2702_v3  ;;  %4750 = vmatprep.subr.bf16.mxu1 %v2958_v5  ;;  %v3054_v3 = vunpack.c.h.s8.bf16 %v1822_v62  ;;  %v9854_v5 = vsub.s32 0, %v9851_v0  ;;  %v2797_v6 = vunpack.c.h.s8.bf16 %v1693_v2 }
 0x11c   :  { %4710 = vmatpush1.bf16.msra.mxu0 %v2701_v7  ;;  %4751 = vmatpush1.bf16.msra.mxu1 %v2957_v8  ;;  %v9856_v7 = vld [vmem:[#allocation5] sm:$0xff]  ;;  %v9859_v8 = vsub.s32 2, %v9851_v0 }
 0x11d   :  { %4711 = vmatprep.subr.bf16.mxu0 %v2686_v9  ;;  %4752 = vmatprep.subr.bf16.mxu1 %v2942_v10  ;;  %v3053_v9 = vunpack.c.h.s8.bf16 %v1821_v4  ;;  %v2782_v10 = vunpack.c.l.s8.bf16 %v1694_v61  ;;  %v302_v16 = vrot.slane %v9856_v7, %v9854_v5 }
 0x11e   :  { %v310_v18 = vrot.slane %v9856_v7, %v9859_v8 }
 0x120   :  { %4712 = vmatpush1.bf16.msra.mxu0 %v2685_v13  ;;  %4753 = vmatpush1.bf16.msra.mxu1 %v2941_v14  ;;  %v1934_v13 = vld [vmem:[#allocation7 + $0x988] sm:$0xff]  ;;  %v9865_v14 = vsub.s32 3, %v9851_v0 }
 0x121   :  { %4713 = vmatprep.subr.bf16.mxu0 %v2670_v15  ;;  %4754 = vmatprep.subr.bf16.mxu1 %v2926_v17  ;;  %v2062_v15 = vld [vmem:[#allocation7 + $0xd88] sm:$0xff]  ;;  %v2781_v17 = vunpack.c.l.s8.bf16 %v1693_v2  ;;  %v3262_v50 = vunpack.c.l.s8.bf16 %v1934_v13 }
 0x122   :  { %v314_v24 = vrot.slane %v9856_v7, %v9865_v14 }
 0x124   :  { %4714 = vmatpush1.bf16.msra.mxu0 %v2669_v19  ;;  %4755 = vmatpush1.bf16.msra.mxu1 %v2925_v20  ;;  %v3037_v19 = vunpack.c.l.s8.bf16 %v1821_v4  ;;  %v3278_v20 = vunpack.c.h.s8.bf16 %v1934_v13  ;;  %v1901_v4 = vld [vmem:[#allocation7 + $0x880] sm:$0xff] }
 0x125   :  { %4715 = vmatprep.subr.bf16.mxu0 %v2654_v21  ;;  %4756 = vmatprep.subr.bf16.mxu1 %v2910_v22  ;;  %v306_v21 = vrot.slane %v9856_v7, %v9862_v11  ;;  %v3534_v22 = vunpack.c.h.s8.bf16 %v2062_v15 }
 0x128   :  { %4716 = vmatpush1.bf16.msra.mxu0 %v2653_v25  ;;  %4757 = vmatpush1.bf16.msra.mxu1 %v2909_v26 }
 0x129   :  { %4717 = vmatprep.subr.bf16.mxu0 %v2894_v27  ;;  %4758 = vmatprep.subr.bf16.mxu1 %v3150_v29 }
 0x12c   :  { %4718 = vmatpush2.bf16.msra.mxu0 %v2893_v31  ;;  %4759 = vmatpush2.bf16.msra.mxu1 %v3149_v32 }
 0x12d   :  { %4719 = vmatprep.subr.bf16.mxu0 %v2878_v33  ;;  %4760 = vmatprep.subr.bf16.mxu1 %v3134_v35 }
 0x130   :  { %4720 = vmatpush2.bf16.msra.mxu0 %v2877_v38  ;;  %4761 = vmatpush2.bf16.msra.mxu1 %v3133_v39  ;;  %v2061_v39 = vld [vmem:[#allocation7 + $0xd80] sm:$0xff] }
 0x131   :  { %4721 = vmatprep.subr.bf16.mxu0 %v2862_v41  ;;  %4762 = vmatprep.subr.bf16.mxu1 %v3118_v44  ;;  %v3533_v49 = vunpack.c.h.s8.bf16 %v2061_v39 }
 0x134   :  { %4722 = vmatpush2.bf16.msra.mxu0 %v2861_v46  ;;  %4763 = vmatpush2.bf16.msra.mxu1 %v3117_v40  ;;  %v3277_v40 = vunpack.c.h.s8.bf16 %v1933_v36  ;;  %v2125_v36 = vld [vmem:[#allocation7 + $0xf80] sm:$0xff] }
 0x135   :  { %4723 = vmatprep.subr.bf16.mxu0 %v2846_v47  ;;  %4764 = vmatprep.subr.bf16.mxu1 %v3102_v48 }
 0x138   :  { %4724 = vmatpush2.bf16.msra.mxu0 %v2845_v51  ;;  %4765 = vmatpush2.bf16.msra.mxu1 %v3101_v52  ;;  %v3518_v51 = vunpack.c.l.s8.bf16 %v2062_v15  ;;  %v1918_v52 = vld [vmem:[#allocation7 + $0x908] sm:$0xff] }
 0x139   :  { %4725 = vmatprep.subr.bf16.mxu0 %v2830_v53  ;;  %4766 = vmatprep.subr.bf16.mxu1 %v3086_v55  ;;  %v2046_v53 = vld [vmem:[#allocation7 + $0xd08] sm:$0xff]  ;;  %v3517_v55 = vunpack.c.l.s8.bf16 %v2061_v39  ;;  %v3246_v43 = vunpack.c.h.s8.bf16 %v1918_v52  ;;  %v3230_v61 = vunpack.c.l.s8.bf16 %v1918_v52  ;;  %v3661_v39 = vunpack.c.h.s8.bf16 %v2125_v36 }
 0x13a   :  { %v3502_v57 = vunpack.c.h.s8.bf16 %v2046_v53  ;;  %v3486_v62 = vunpack.c.l.s8.bf16 %v2046_v53  ;;  %v3645_v53 = vunpack.c.l.s8.bf16 %v2125_v36 }
 0x13c   :  { %4726 = vmatpush2.bf16.msra.mxu0 %v2829_v56  ;;  %4767 = vmatpush2.bf16.msra.mxu1 %v3085_v58  ;;  %v1917_v56 = vld [vmem:[#allocation7 + $0x900] sm:$0xff] }
 0x13d   :  { %4727 = vmatprep.subr.bf16.mxu0 %v2814_v59  ;;  %4768 = vmatprep.subr.bf16.mxu1 %v3070_v60  ;;  %v2045_v58 = vld [vmem:[#allocation7 + $0xd00] sm:$0xff]  ;;  %v3245_v59 = vunpack.c.h.s8.bf16 %v1917_v56 }
 0x13e   :  { %v3501_v60 = vunpack.c.h.s8.bf16 %v2045_v58  ;;  %v3485_v2 = vunpack.c.l.s8.bf16 %v2045_v58  ;;  %v2109_v58 = vld [vmem:[#allocation7 + $0xf00] sm:$0xff] }
 0x140   :  { %4728 = vmatpush2.bf16.msra.mxu0 %v2813_v63  ;;  %4769 = vmatpush2.bf16.msra.mxu1 %v3069_v34  ;;  %v1902_v63 = vld [vmem:[#allocation7 + $0x888] sm:$0xff] }
 0x141   :  { %4729 = vmatprep.subr.bf16.mxu0 %v2798_v1  ;;  %4770 = vmatprep.subr.bf16.mxu1 %v3054_v3  ;;  %v2030_v34 = vld [vmem:[#allocation7 + $0xc88] sm:$0xff]  ;;  %v3229_v1 = vunpack.c.l.s8.bf16 %v1917_v56  ;;  %v3214_v3 = vunpack.c.h.s8.bf16 %v1902_v63  ;;  %v3198_v13 = vunpack.c.l.s8.bf16 %v1902_v63 }
 0x142   :  { %v3454_v15 = vunpack.c.l.s8.bf16 %v2030_v34 }
 0x144   :  { %4730 = vmatpush2.bf16.msra.mxu0 %v2797_v6  ;;  %4771 = vmatpush2.bf16.msra.mxu1 %v3053_v9  ;;  %v3470_v6 = vunpack.c.h.s8.bf16 %v2030_v34  ;;  %v2029_v9 = vld [vmem:[#allocation7 + $0xc80] sm:$0xff] }
 0x145   :  { %4731 = vmatprep.subr.bf16.mxu0 %v2782_v10  ;;  %4772 = vmatprep.subr.bf16.mxu1 %v3038_v12  ;;  %v3213_v10 = vunpack.c.h.s8.bf16 %v1901_v4  ;;  %v3469_v12 = vunpack.c.h.s8.bf16 %v2029_v9 }
 0x147   :  { %v1303_v23 = vpop.f32.mrf.mxu0  ;;  %v1344_v26 = vpop.f32.mrf.mxu1 }
 0x148   :  { %v1304_v25 = vadd.f32 %v1303_v23, %v302_v16  ;;  %4732 = vmatpush2.bf16.msra.mxu0 %v2781_v17  ;;  %v1345_v27 = vadd.f32 %v1344_v26, %v310_v18  ;;  %4773 = vmatpush2.bf16.msra.mxu1 %v3037_v19  ;;  %v1886_v16 = vld [vmem:[#allocation7 + $0x808] sm:$0xff]  ;;  %v3197_v18 = vunpack.c.l.s8.bf16 %v1901_v4  ;;  %v3453_v19 = vunpack.c.l.s8.bf16 %v2029_v9  ;;  %v2013_v23 = vld [vmem:[#allocation7 + $0xc00] sm:$0xff] }
 0x149   :  { %v1305_v28 = vpop.f32.mrf.mxu0  ;;  %4783 = vmatprep.subr.bf16.mxu0 %v3278_v20  ;;  %v1346_v30 = vpop.f32.mrf.mxu1  ;;  %4824 = vmatprep.subr.bf16.mxu1 %v3534_v22  ;;  %v2014_v17 = vld [vmem:[#allocation7 + $0xc08] sm:$0xff]  ;;  %v3182_v20 = vunpack.c.h.s8.bf16 %v1886_v16  ;;  %v3166_v26 = vunpack.c.l.s8.bf16 %v1886_v16 }
 0x14a   :  { %v1306_v29 = vadd.f32 %v1305_v28, %v306_v21  ;;  %v1597_v31 = vmax.f32 %v1304_v25, 0.0  ;;  %v1599_v32 = vmax.f32 %v1345_v27, 0.0  ;;  %v1347_v33 = vadd.f32 %v1346_v30, %v314_v24  ;;  %v1885_v21 = vld [vmem:[#allocation7 + $0x800] sm:$0xff]  ;;  %v1998_v28 = vld [vmem:[#allocation7 + $0xb88] sm:$0xff] }
 0x14b   :  { %v1307_v35 = vpop.f32.mrf.mxu0  ;;  %v1348_v38 = vpop.f32.mrf.mxu1  ;;  %v3438_v22 = vunpack.c.h.s8.bf16 %v2014_v17  ;;  %v3181_v24 = vunpack.c.h.s8.bf16 %v1885_v21  ;;  %v3437_v25 = vunpack.c.h.s8.bf16 %v2013_v23  ;;  %v3422_v27 = vunpack.c.l.s8.bf16 %v2014_v17  ;;  %v1966_v9 = vld [vmem:[#allocation7 + $0xa88] sm:$0xff] }
 0x14c   :  { %v1598_v37 = vmax.f32 %v1306_v29, 0.0  ;;  %v1600_v41 = vmax.f32 %v1347_v33, 0.0  ;;  %v9875_v44 = vpack.c.bf16 %v1599_v32, %v1599_v32  ;;  %v9879_v47 = vpack.c.bf16 %v1597_v31, %v1597_v31  ;;  %v2126_v29 = vld [vmem:[#allocation7 + $0xf88] sm:$0xff]  ;;  %v1997_v33 = vld [vmem:[#allocation7 + $0xb80] sm:$0xff] }
 0x14d   :  { %v1308_v42 = vpop.f32.mrf.mxu0  ;;  %v1349_v46 = vpop.f32.mrf.mxu1  ;;  %v3165_v30 = vunpack.c.l.s8.bf16 %v1885_v21  ;;  %v3421_v31 = vunpack.c.l.s8.bf16 %v2013_v23  ;;  %v3406_v32 = vunpack.c.h.s8.bf16 %v1998_v28  ;;  %v3662_v35 = vunpack.c.h.s8.bf16 %v2126_v29  ;;  %v1965_v21 = vld [vmem:[#allocation7 + $0xa80] sm:$0xff] }
 0x14e   :  { %v9877_v45 = vpack.c.bf16 %v1598_v37, %v1598_v37  ;;  %v9881_v48 = vpack.c.bf16 %v1600_v41, %v1600_v41  ;;  %v3405_v37 = vunpack.c.h.s8.bf16 %v1997_v33  ;;  %v9888_v38 = vsub.s32 5, %v9851_v0  ;;  %v2093_v23 = vld [vmem:[#allocation7 + $0xe80] sm:$0xff] }
 0x14f   :  { %v3390_v41 = vunpack.c.l.s8.bf16 %v1998_v28  ;;  %v9891_v42 = vsub.s32 7, %v9851_v0  ;;  %v3646_v46 = vunpack.c.l.s8.bf16 %v2126_v29  ;;  %v9911_v28 = vsub.s32 6, %v9851_v0 }
 0x150   :  { %4733 = vmatprep.mubr.bf16.mxu0 %v9877_v45  ;;  %4774 = vmatprep.mubr.bf16.mxu1 %v9881_v48 }
 0x151   :  { %4734 = vmatmul.mubr.bf16.vlgmr.msra.gmra.mxu0 %v9879_v47  ;;  %4775 = vmatmul.mubr.bf16.vlgmr.msra.gmra.mxu1 %v9875_v44 }
 0x152   :  { %4784 = vmatpush1.bf16.msra.mxu0 %v3277_v40  ;;  %4825 = vmatpush1.bf16.msra.mxu1 %v3533_v49  ;;  %v1982_v40 = vld [vmem:[#allocation7 + $0xb08] sm:$0xff] }
 0x153   :  { %4785 = vmatprep.subr.bf16.mxu0 %v3262_v50  ;;  %4826 = vmatprep.subr.bf16.mxu1 %v3518_v51  ;;  %v2110_v49 = vld [vmem:[#allocation7 + $0xf08] sm:$0xff]  ;;  %v322_v50 = vrot.slane %v9856_v7, %v9888_v38  ;;  %v3389_v51 = vunpack.c.l.s8.bf16 %v1997_v33 }
 0x156   :  { %4786 = vmatpush1.bf16.msra.mxu0 %v3261_v54  ;;  %4827 = vmatpush1.bf16.msra.mxu1 %v3517_v55  ;;  %v330_v54 = vrot.slane %v9856_v7, %v9891_v42  ;;  %v3374_v55 = vunpack.c.h.s8.bf16 %v1982_v40 }
 0x157   :  { %4787 = vmatprep.subr.bf16.mxu0 %v3246_v43  ;;  %4828 = vmatprep.subr.bf16.mxu1 %v3502_v57  ;;  %v1981_v43 = vld [vmem:[#allocation7 + $0xb00] sm:$0xff]  ;;  %v3630_v57 = vunpack.c.h.s8.bf16 %v2110_v49 }
 0x158   :  { %v3357_v17 = vunpack.c.l.s8.bf16 %v1981_v43 }
 0x15a   :  { %4788 = vmatpush1.bf16.msra.mxu0 %v3245_v59  ;;  %4829 = vmatpush1.bf16.msra.mxu1 %v3501_v60 }
 0x15b   :  { %4789 = vmatprep.subr.bf16.mxu0 %v3230_v61  ;;  %4830 = vmatprep.subr.bf16.mxu1 %v3486_v62  ;;  %v3373_v62 = vunpack.c.h.s8.bf16 %v1981_v43 }
 0x15e   :  { %4790 = vmatpush1.bf16.msra.mxu0 %v3229_v1  ;;  %4831 = vmatpush1.bf16.msra.mxu1 %v3485_v2  ;;  %v3629_v1 = vunpack.c.h.s8.bf16 %v2109_v58  ;;  %v3358_v2 = vunpack.c.l.s8.bf16 %v1982_v40 }
 0x15f   :  { %4791 = vmatprep.subr.bf16.mxu0 %v3214_v3  ;;  %4832 = vmatprep.subr.bf16.mxu1 %v3470_v6  ;;  %v3614_v6 = vunpack.c.l.s8.bf16 %v2110_v49 }
 0x162   :  { %4792 = vmatpush1.bf16.msra.mxu0 %v3213_v10  ;;  %4833 = vmatpush1.bf16.msra.mxu1 %v3469_v12 }
 0x163   :  { %4793 = vmatprep.subr.bf16.mxu0 %v3198_v13  ;;  %4834 = vmatprep.subr.bf16.mxu1 %v3454_v15  ;;  %v2094_v13 = vld [vmem:[#allocation7 + $0xe88] sm:$0xff] }
 0x164   :  { %v3582_v29 = vunpack.c.l.s8.bf16 %v2094_v13 }
 0x166   :  { %4794 = vmatpush1.bf16.msra.mxu0 %v3197_v18  ;;  %4835 = vmatpush1.bf16.msra.mxu1 %v3453_v19  ;;  %v3613_v19 = vunpack.c.l.s8.bf16 %v2109_v58 }
 0x167   :  { %4795 = vmatprep.subr.bf16.mxu0 %v3182_v20  ;;  %4836 = vmatprep.subr.bf16.mxu1 %v3438_v22  ;;  %v3342_v20 = vunpack.c.h.s8.bf16 %v1966_v9  ;;  %v3598_v22 = vunpack.c.h.s8.bf16 %v2094_v13 }
 0x16a   :  { %4796 = vmatpush1.bf16.msra.mxu0 %v3181_v24  ;;  %4837 = vmatpush1.bf16.msra.mxu1 %v3437_v25  ;;  %v3341_v24 = vunpack.c.h.s8.bf16 %v1965_v21  ;;  %v9908_v25 = vsub.s32 4, %v9851_v0 }
 0x16b   :  { %4797 = vmatprep.subr.bf16.mxu0 %v3166_v26  ;;  %4838 = vmatprep.subr.bf16.mxu1 %v3422_v27  ;;  %v3597_v26 = vunpack.c.h.s8.bf16 %v2093_v23  ;;  %v3326_v27 = vunpack.c.l.s8.bf16 %v1966_v9 }
 0x16c   :  { %v318_v33 = vrot.slane %v9856_v7, %v9908_v25 }
 0x16e   :  { %4798 = vmatpush1.bf16.msra.mxu0 %v3165_v30  ;;  %4839 = vmatpush1.bf16.msra.mxu1 %v3421_v31  ;;  %v1950_v30 = vld [vmem:[#allocation7 + $0xa08] sm:$0xff] }
 0x16f   :  { %4799 = vmatprep.subr.bf16.mxu0 %v3406_v32  ;;  %4840 = vmatprep.subr.bf16.mxu1 %v3662_v35  ;;  %v2078_v31 = vld [vmem:[#allocation7 + $0xe08] sm:$0xff]  ;;  %v3325_v32 = vunpack.c.l.s8.bf16 %v1965_v21  ;;  %v3581_v35 = vunpack.c.l.s8.bf16 %v2093_v23  ;;  %v3310_v36 = vunpack.c.h.s8.bf16 %v1950_v30 }
 0x170   :  { %v3566_v0 = vunpack.c.h.s8.bf16 %v2078_v31  ;;  %v2286_v23 = vld [vmem:[#allocation7 + $0x1488] sm:$0xff] }
 0x172   :  { %4800 = vmatpush2.bf16.msra.mxu0 %v3405_v37  ;;  %4841 = vmatpush2.bf16.msra.mxu1 %v3661_v39  ;;  %v1949_v37 = vld [vmem:[#allocation7 + $0xa00] sm:$0xff]  ;;  %v326_v39 = vrot.slane %v9856_v7, %v9911_v28 }
 0x173   :  { %v9895_v52 = vpop.f32.mrf.mxu0  ;;  %4801 = vmatprep.subr.bf16.mxu0 %v3390_v41  ;;  %4842 = vmatprep.subr.bf16.mxu1 %v3646_v46  ;;  %v9899_v56 = vpop.f32.mrf.mxu1  ;;  %v2077_v41 = vld [vmem:[#allocation7 + $0xe00] sm:$0xff]  ;;  %v3309_v46 = vunpack.c.h.s8.bf16 %v1949_v37  ;;  %v3293_v43 = vunpack.c.l.s8.bf16 %v1949_v37 }
 0x174   :  { %v1386_v40 = vadd.f32 %v9895_v52, %v318_v33  ;;  %v3565_v49 = vunpack.c.h.s8.bf16 %v2077_v41 }
 0x175   :  { %v1387_v59 = vpop.f32.mrf.mxu0  ;;  %v1428_v61 = vpop.f32.mrf.mxu1 }
 0x176   :  { %v1388_v60 = vadd.f32 %v1387_v59, %v322_v50  ;;  %4802 = vmatpush2.bf16.msra.mxu0 %v3389_v51  ;;  %4843 = vmatpush2.bf16.msra.mxu1 %v3645_v53  ;;  %v1429_v34 = vadd.f32 %v1428_v61, %v330_v54  ;;  %v3294_v50 = vunpack.c.l.s8.bf16 %v1950_v30  ;;  %v1427_v51 = vadd.f32 %v9899_v56, %v326_v39  ;;  %v2190_v54 = vld [vmem:[#allocation7 + $0x1188] sm:$0xff]  ;;  %v2189_v59 = vld [vmem:[#allocation7 + $0x1180] sm:$0xff] }
 0x177   :  { %v1389_v63 = vpop.f32.mrf.mxu0  ;;  %4803 = vmatprep.subr.bf16.mxu0 %v3374_v55  ;;  %4844 = vmatprep.subr.bf16.mxu1 %v3630_v57  ;;  %v1430_v4 = vpop.f32.mrf.mxu1  ;;  %v3550_v53 = vunpack.c.l.s8.bf16 %v2078_v31  ;;  %v2318_v55 = vld [vmem:[#allocation7 + $0x1588] sm:$0xff]  ;;  %v1601_v7 = vmax.f32 %v1386_v40, 0.0  ;;  %v3549_v57 = vunpack.c.l.s8.bf16 %v2077_v41  ;;  %v3790_v58 = vunpack.c.h.s8.bf16 %v2190_v54  ;;  %v2317_v61 = vld [vmem:[#allocation7 + $0x1580] sm:$0xff] }
 0x178   :  { %v1602_v3 = vmax.f32 %v1388_v60, 0.0  ;;  %v1604_v10 = vmax.f32 %v1429_v34, 0.0  ;;  %v1603_v60 = vmax.f32 %v1427_v51, 0.0  ;;  %v4046_v52 = vunpack.c.h.s8.bf16 %v2318_v55  ;;  %v2302_v4 = vld [vmem:[#allocation7 + $0x1508] sm:$0xff]  ;;  %v2157_v30 = vld [vmem:[#allocation7 + $0x1080] sm:$0xff] }
 0x179   :  { %v1390_v12 = vpop.f32.mrf.mxu0  ;;  %v1431_v16 = vpop.f32.mrf.mxu1  ;;  %v9919_v63 = vpack.c.bf16 %v1601_v7, %v1601_v7  ;;  %v4045_v56 = vunpack.c.h.s8.bf16 %v2317_v61  ;;  %v3774_v34 = vunpack.c.l.s8.bf16 %v2190_v54  ;;  %v4029_v9 = vunpack.c.l.s8.bf16 %v2317_v61  ;;  %v2142_v40 = vld [vmem:[#allocation7 + $0x1008] sm:$0xff]  ;;  %v2269_v61 = vld [vmem:[#allocation7 + $0x1400] sm:$0xff] }
 0x17a   :  { %v9901_v15 = vpack.c.bf16 %v1602_v3, %v1602_v3  ;;  %4804 = vmatpush2.bf16.msra.mxu0 %v3373_v62  ;;  %v9903_v18 = vpack.c.bf16 %v1604_v10, %v1604_v10  ;;  %4845 = vmatpush2.bf16.msra.mxu1 %v3629_v1  ;;  %v3789_v62 = vunpack.c.h.s8.bf16 %v2189_v59  ;;  %v9921_v1 = vpack.c.bf16 %v1603_v60, %v1603_v60  ;;  %v2174_v3 = vld [vmem:[#allocation7 + $0x1108] sm:$0xff]  ;;  %v2173_v12 = vld [vmem:[#allocation7 + $0x1100] sm:$0xff] }
 0x17b   :  { %4805 = vmatprep.subr.bf16.mxu0 %v3358_v2  ;;  %4846 = vmatprep.subr.bf16.mxu1 %v3614_v6  ;;  %v4030_v2 = vunpack.c.l.s8.bf16 %v2318_v55  ;;  %v3773_v6 = vunpack.c.l.s8.bf16 %v2189_v59  ;;  %v3758_v10 = vunpack.c.h.s8.bf16 %v2174_v3  ;;  %v4014_v13 = vunpack.c.h.s8.bf16 %v2302_v4  ;;  %v2301_v16 = vld [vmem:[#allocation7 + $0x1500] sm:$0xff] }
 0x17c   :  { %4815 = vmatprep.mubr.bf16.mxu0 %v9901_v15  ;;  %4856 = vmatprep.mubr.bf16.mxu1 %v9903_v18  ;;  %v3998_v21 = vunpack.c.l.s8.bf16 %v2302_v4  ;;  %v3982_v31 = vunpack.c.h.s8.bf16 %v2286_v23  ;;  %v3709_v54 = vunpack.c.l.s8.bf16 %v2157_v30 }
 0x17e   :  { %4806 = vmatpush2.bf16.msra.mxu0 %v3357_v17  ;;  %4847 = vmatpush2.bf16.msra.mxu1 %v3613_v19  ;;  %v3757_v17 = vunpack.c.h.s8.bf16 %v2173_v12  ;;  %v4013_v19 = vunpack.c.h.s8.bf16 %v2301_v16 }
 0x17f   :  { %4807 = vmatprep.subr.bf16.mxu0 %v3342_v20  ;;  %4848 = vmatprep.subr.bf16.mxu1 %v3598_v22  ;;  %v3742_v20 = vunpack.c.l.s8.bf16 %v2174_v3  ;;  %v2158_v22 = vld [vmem:[#allocation7 + $0x1088] sm:$0xff] }
 0x182   :  { %4808 = vmatpush2.bf16.msra.mxu0 %v3341_v24  ;;  %4849 = vmatpush2.bf16.msra.mxu1 %v3597_v26  ;;  %v3741_v24 = vunpack.c.l.s8.bf16 %v2173_v12  ;;  %v3997_v26 = vunpack.c.l.s8.bf16 %v2301_v16  ;;  %v2254_v12 = vld [vmem:[#allocation7 + $0x1388] sm:$0xff] }
 0x183   :  { %4809 = vmatprep.subr.bf16.mxu0 %v3326_v27  ;;  %4850 = vmatprep.subr.bf16.mxu1 %v3582_v29  ;;  %v9925_v27 = vld [vmem:[#allocation5 + $0x8] sm:$0xff]  ;;  %v3726_v29 = vunpack.c.h.s8.bf16 %v2158_v22 }
 0x184   :  { %v338_v33 = vrot.slane %v9925_v27, %v9862_v11  ;;  %v346_v39 = vrot.slane %v9925_v27, %v9865_v14 }
 0x186   :  { %4810 = vmatpush2.bf16.msra.mxu0 %v3325_v32  ;;  %4851 = vmatpush2.bf16.msra.mxu1 %v3581_v35  ;;  %v2285_v32 = vld [vmem:[#allocation7 + $0x1480] sm:$0xff]  ;;  %v3725_v35 = vunpack.c.h.s8.bf16 %v2157_v30  ;;  %v2238_v30 = vld [vmem:[#allocation7 + $0x1308] sm:$0xff] }
 0x187   :  { %4811 = vmatprep.subr.bf16.mxu0 %v3310_v36  ;;  %4852 = vmatprep.subr.bf16.mxu1 %v3566_v0  ;;  %v3981_v37 = vunpack.c.h.s8.bf16 %v2285_v32  ;;  %v3710_v0 = vunpack.c.l.s8.bf16 %v2158_v22  ;;  %v3965_v7 = vunpack.c.l.s8.bf16 %v2285_v32  ;;  %v2381_v22 = vld [vmem:[#allocation7 + $0x1780] sm:$0xff] }
 0x18a   :  { %4812 = vmatpush2.bf16.msra.mxu0 %v3309_v46  ;;  %4853 = vmatpush2.bf16.msra.mxu1 %v3565_v49  ;;  %v3966_v46 = vunpack.c.l.s8.bf16 %v2286_v23 }
 0x18b   :  { %4813 = vmatprep.subr.bf16.mxu0 %v3294_v50  ;;  %4854 = vmatprep.subr.bf16.mxu1 %v3550_v53  ;;  %v2270_v50 = vld [vmem:[#allocation7 + $0x1408] sm:$0xff] }
 0x18e   :  { %4814 = vmatpush2.bf16.msra.mxu0 %v3293_v43  ;;  %4855 = vmatpush2.bf16.msra.mxu1 %v3549_v57  ;;  %v3694_v57 = vunpack.c.h.s8.bf16 %v2142_v40 }
 0x18f   :  { %4865 = vmatprep.subr.bf16.mxu0 %v3790_v58  ;;  %4906 = vmatprep.subr.bf16.mxu1 %v4046_v52  ;;  %v2141_v58 = vld [vmem:[#allocation7 + $0x1000] sm:$0xff]  ;;  %v3950_v52 = vunpack.c.h.s8.bf16 %v2270_v50 }
 0x190   :  { %v3693_v3 = vunpack.c.h.s8.bf16 %v2141_v58  ;;  %v3677_v16 = vunpack.c.l.s8.bf16 %v2141_v58  ;;  %v2349_v58 = vld [vmem:[#allocation7 + $0x1680] sm:$0xff] }
 0x191   :  { %4816 = vmatmul.mubr.bf16.vlgmr.msra.gmra.mxu0 %v9919_v63  ;;  %4857 = vmatmul.mubr.bf16.vlgmr.msra.gmra.mxu1 %v9921_v1 }
 0x192   :  { %4866 = vmatpush1.bf16.msra.mxu0 %v3789_v62  ;;  %4907 = vmatpush1.bf16.msra.mxu1 %v4045_v56 }
 0x193   :  { %4867 = vmatprep.subr.bf16.mxu0 %v3774_v34  ;;  %4908 = vmatprep.subr.bf16.mxu1 %v4030_v2 }
 0x196   :  { %4868 = vmatpush1.bf16.msra.mxu0 %v3773_v6  ;;  %4909 = vmatpush1.bf16.msra.mxu1 %v4029_v9  ;;  %v3949_v6 = vunpack.c.h.s8.bf16 %v2269_v61  ;;  %v3678_v9 = vunpack.c.l.s8.bf16 %v2142_v40 }
 0x197   :  { %4869 = vmatprep.subr.bf16.mxu0 %v3758_v10  ;;  %4910 = vmatprep.subr.bf16.mxu1 %v4014_v13  ;;  %v3934_v10 = vunpack.c.l.s8.bf16 %v2270_v50  ;;  %v2382_v13 = vld [vmem:[#allocation7 + $0x1788] sm:$0xff] }
 0x19a   :  { %4870 = vmatpush1.bf16.msra.mxu0 %v3757_v17  ;;  %4911 = vmatpush1.bf16.msra.mxu1 %v4013_v19  ;;  %v3933_v17 = vunpack.c.l.s8.bf16 %v2269_v61  ;;  %v3918_v19 = vunpack.c.h.s8.bf16 %v2254_v12 }
 0x19b   :  { %4871 = vmatprep.subr.bf16.mxu0 %v3742_v20  ;;  %4912 = vmatprep.subr.bf16.mxu1 %v3998_v21  ;;  %v2253_v20 = vld [vmem:[#allocation7 + $0x1380] sm:$0xff]  ;;  %v4174_v21 = vunpack.c.h.s8.bf16 %v2382_v13 }
 0x19c   :  { %v3917_v23 = vunpack.c.h.s8.bf16 %v2253_v20  ;;  %v3901_v32 = vunpack.c.l.s8.bf16 %v2253_v20 }
 0x19e   :  { %4872 = vmatpush1.bf16.msra.mxu0 %v3741_v24  ;;  %4913 = vmatpush1.bf16.msra.mxu1 %v3997_v26  ;;  %v4173_v24 = vunpack.c.h.s8.bf16 %v2381_v22  ;;  %v3902_v26 = vunpack.c.l.s8.bf16 %v2254_v12  ;;  %v342_v12 = vrot.slane %v9925_v27, %v9859_v8 }
 0x19f   :  { %v9929_v36 = vpop.f32.mrf.mxu0  ;;  %4873 = vmatprep.subr.bf16.mxu0 %v3726_v29  ;;  %4914 = vmatprep.subr.bf16.mxu1 %v3982_v31  ;;  %v9933_v41 = vpop.f32.mrf.mxu1  ;;  %v4158_v29 = vunpack.c.l.s8.bf16 %v2382_v13  ;;  %v2366_v31 = vld [vmem:[#allocation7 + $0x1708] sm:$0xff] }
 0x1a0   :  { %v4126_v50 = vunpack.c.l.s8.bf16 %v2366_v31 }
 0x1a1   :  { %v1469_v49 = vpop.f32.mrf.mxu0  ;;  %v1510_v53 = vpop.f32.mrf.mxu1 }
 0x1a2   :  { %v1470_v51 = vadd.f32 %v1469_v49, %v338_v33  ;;  %4874 = vmatpush1.bf16.msra.mxu0 %v3725_v35  ;;  %4915 = vmatpush1.bf16.msra.mxu1 %v3981_v37  ;;  %v1511_v43 = vadd.f32 %v1510_v53, %v346_v39  ;;  %v4157_v33 = vunpack.c.l.s8.bf16 %v2381_v22  ;;  %v3886_v35 = vunpack.c.h.s8.bf16 %v2238_v30  ;;  %v2237_v37 = vld [vmem:[#allocation7 + $0x1300] sm:$0xff]  ;;  %v2350_v53 = vld [vmem:[#allocation7 + $0x1688] sm:$0xff] }
 0x1a3   :  { %v1471_v55 = vpop.f32.mrf.mxu0  ;;  %4875 = vmatprep.subr.bf16.mxu0 %v3710_v0  ;;  %4916 = vmatprep.subr.bf16.mxu1 %v3966_v46  ;;  %v1512_v60 = vpop.f32.mrf.mxu1  ;;  %v4142_v39 = vunpack.c.h.s8.bf16 %v2366_v31  ;;  %v2365_v0 = vld [vmem:[#allocation7 + $0x1700] sm:$0xff]  ;;  %v3885_v46 = vunpack.c.h.s8.bf16 %v2237_v37  ;;  %v3870_v49 = vunpack.c.l.s8.bf16 %v2238_v30  ;;  %v4094_v61 = vunpack.c.l.s8.bf16 %v2350_v53 }
 0x1a4   :  { %v1606_v59 = vmax.f32 %v1470_v51, 0.0  ;;  %v1608_v62 = vmax.f32 %v1511_v43, 0.0  ;;  %v4141_v40 = vunpack.c.h.s8.bf16 %v2365_v0  ;;  %v2222_v51 = vld [vmem:[#allocation7 + $0x1288] sm:$0xff]  ;;  %v4125_v55 = vunpack.c.l.s8.bf16 %v2365_v0 }
 0x1a5   :  { %v1472_v56 = vpop.f32.mrf.mxu0  ;;  %v1513_v2 = vpop.f32.mrf.mxu1  ;;  %v3854_v43 = vunpack.c.h.s8.bf16 %v2222_v51  ;;  %v4109_v60 = vunpack.c.h.s8.bf16 %v2349_v58  ;;  %v1509_v22 = vadd.f32 %v9933_v41, %v342_v12  ;;  %v2445_v41 = vld [vmem:[#allocation7 + $0x1980] sm:$0xff] }
 0x1a6   :  { %v9935_v34 = vpack.c.bf16 %v1606_v59, %v1606_v59  ;;  %4876 = vmatpush1.bf16.msra.mxu0 %v3709_v54  ;;  %v9937_v4 = vpack.c.bf16 %v1608_v62, %v1608_v62  ;;  %4917 = vmatpush1.bf16.msra.mxu1 %v3965_v7  ;;  %v3869_v54 = vunpack.c.l.s8.bf16 %v2237_v37  ;;  %v2221_v7 = vld [vmem:[#allocation7 + $0x1280] sm:$0xff]  ;;  %v2206_v62 = vld [vmem:[#allocation7 + $0x1208] sm:$0xff] }
 0x1a7   :  { %4877 = vmatprep.subr.bf16.mxu0 %v3694_v57  ;;  %4918 = vmatprep.subr.bf16.mxu1 %v3950_v52  ;;  %v4110_v57 = vunpack.c.h.s8.bf16 %v2350_v53  ;;  %v3853_v59 = vunpack.c.h.s8.bf16 %v2221_v7  ;;  %v3838_v52 = vunpack.c.l.s8.bf16 %v2222_v51  ;;  %v2334_v56 = vld [vmem:[#allocation7 + $0x1608] sm:$0xff]  ;;  %v3837_v2 = vunpack.c.l.s8.bf16 %v2221_v7 }
 0x1a8   :  { %4897 = vmatprep.mubr.bf16.mxu0 %v9935_v34  ;;  %4938 = vmatprep.mubr.bf16.mxu1 %v9937_v4  ;;  %v4078_v13 = vunpack.c.h.s8.bf16 %v2334_v56  ;;  %v1607_v37 = vmax.f32 %v1509_v22, 0.0  ;;  %v4301_v51 = vunpack.c.h.s8.bf16 %v2445_v41 }
 0x1aa   :  { %4878 = vmatpush1.bf16.msra.mxu0 %v3693_v3  ;;  %4919 = vmatpush1.bf16.msra.mxu1 %v3949_v6  ;;  %v334_v3 = vrot.slane %v9925_v27, %v9854_v5  ;;  %v4093_v6 = vunpack.c.l.s8.bf16 %v2349_v58 }
 0x1ab   :  { %4879 = vmatprep.subr.bf16.mxu0 %v3678_v9  ;;  %4920 = vmatprep.subr.bf16.mxu1 %v3934_v10  ;;  %v3822_v9 = vunpack.c.h.s8.bf16 %v2206_v62  ;;  %v2205_v10 = vld [vmem:[#allocation7 + $0x1200] sm:$0xff] }
 0x1ac   :  { %v3805_v30 = vunpack.c.l.s8.bf16 %v2205_v10 }
 0x1ae   :  { %4880 = vmatpush1.bf16.msra.mxu0 %v3677_v16  ;;  %4921 = vmatpush1.bf16.msra.mxu1 %v3933_v17  ;;  %v2333_v16 = vld [vmem:[#allocation7 + $0x1600] sm:$0xff]  ;;  %v3821_v17 = vunpack.c.h.s8.bf16 %v2205_v10 }
 0x1af   :  { %4881 = vmatprep.subr.bf16.mxu0 %v3918_v19  ;;  %4922 = vmatprep.subr.bf16.mxu1 %v4174_v21  ;;  %v1468_v19 = vadd.f32 %v9929_v36, %v334_v3  ;;  %v4077_v20 = vunpack.c.h.s8.bf16 %v2333_v16  ;;  %v3806_v21 = vunpack.c.l.s8.bf16 %v2206_v62  ;;  %v4061_v36 = vunpack.c.l.s8.bf16 %v2333_v16 }
 0x1b1   :  { %v1605_v31 = vmax.f32 %v1468_v19, 0.0 }
 0x1b2   :  { %4882 = vmatpush2.bf16.msra.mxu0 %v3917_v23  ;;  %4923 = vmatpush2.bf16.msra.mxu1 %v4173_v24  ;;  %v4062_v23 = vunpack.c.l.s8.bf16 %v2334_v56  ;;  %v2446_v24 = vld [vmem:[#allocation7 + $0x1988] sm:$0xff] }
 0x1b3   :  { %4883 = vmatprep.subr.bf16.mxu0 %v3902_v26  ;;  %4924 = vmatprep.subr.bf16.mxu1 %v4158_v29  ;;  %v2574_v26 = vld [vmem:[#allocation7 + $0x1d88] sm:$0xff]  ;;  %v354_v29 = vrot.slane %v9925_v27, %v9888_v38  ;;  %v9955_v53 = vpack.c.bf16 %v1605_v31, %v1605_v31  ;;  %v4286_v7 = vunpack.c.l.s8.bf16 %v2446_v24  ;;  %v2413_v31 = vld [vmem:[#allocation7 + $0x1880] sm:$0xff] }
 0x1b4   :  { %v4558_v0 = vunpack.c.h.s8.bf16 %v2574_v26  ;;  %v2558_v56 = vld [vmem:[#allocation7 + $0x1d08] sm:$0xff] }
 0x1b5   :  { %v4526_v16 = vunpack.c.h.s8.bf16 %v2558_v56  ;;  %v4510_v22 = vunpack.c.l.s8.bf16 %v2558_v56 }
 0x1b6   :  { %4884 = vmatpush2.bf16.msra.mxu0 %v3901_v32  ;;  %4925 = vmatpush2.bf16.msra.mxu1 %v4157_v33  ;;  %v362_v33 = vrot.slane %v9925_v27, %v9891_v42 }
 0x1b7   :  { %4885 = vmatprep.subr.bf16.mxu0 %v3886_v35  ;;  %4926 = vmatprep.subr.bf16.mxu1 %v4142_v39  ;;  %v4302_v35 = vunpack.c.h.s8.bf16 %v2446_v24  ;;  %v2542_v24 = vld [vmem:[#allocation7 + $0x1c88] sm:$0xff] }
 0x1ba   :  { %4886 = vmatpush2.bf16.msra.mxu0 %v3885_v46  ;;  %4927 = vmatpush2.bf16.msra.mxu1 %v4141_v40  ;;  %v2573_v46 = vld [vmem:[#allocation7 + $0x1d80] sm:$0xff] }
 0x1bb   :  { %4887 = vmatprep.subr.bf16.mxu0 %v3870_v49  ;;  %4928 = vmatprep.subr.bf16.mxu1 %v4126_v50  ;;  %v4541_v10 = vunpack.c.l.s8.bf16 %v2573_v46 }
 0x1be   :  { %4888 = vmatpush2.bf16.msra.mxu0 %v3869_v54  ;;  %4929 = vmatpush2.bf16.msra.mxu1 %v4125_v55 }
 0x1bf   :  { %4889 = vmatprep.subr.bf16.mxu0 %v3854_v43  ;;  %4930 = vmatprep.subr.bf16.mxu1 %v4110_v57  ;;  %v4557_v43 = vunpack.c.h.s8.bf16 %v2573_v46  ;;  %v9957_v57 = vpack.c.bf16 %v1607_v37, %v1607_v37  ;;  %v2398_v46 = vld [vmem:[#allocation7 + $0x1808] sm:$0xff] }
 0x1c2   :  { %4890 = vmatpush2.bf16.msra.mxu0 %v3853_v59  ;;  %4931 = vmatpush2.bf16.msra.mxu1 %v4109_v60  ;;  %v4542_v60 = vunpack.c.l.s8.bf16 %v2574_v26 }
 0x1c3   :  { %4891 = vmatprep.subr.bf16.mxu0 %v3838_v52  ;;  %4932 = vmatprep.subr.bf16.mxu1 %v4094_v61  ;;  %v2430_v52 = vld [vmem:[#allocation7 + $0x1908] sm:$0xff] }
 0x1c4   :  { %v4270_v12 = vunpack.c.h.s8.bf16 %v2430_v52 }
 0x1c6   :  { %4892 = vmatpush2.bf16.msra.mxu0 %v3837_v2  ;;  %4933 = vmatpush2.bf16.msra.mxu1 %v4093_v6  ;;  %v4285_v6 = vunpack.c.l.s8.bf16 %v2445_v41 }
 0x1c7   :  { %4893 = vmatprep.subr.bf16.mxu0 %v3822_v9  ;;  %4934 = vmatprep.subr.bf16.mxu1 %v4078_v13  ;;  %v2429_v13 = vld [vmem:[#allocation7 + $0x1900] sm:$0xff] }
 0x1c8   :  { %v4269_v19 = vunpack.c.h.s8.bf16 %v2429_v13  ;;  %v4253_v26 = vunpack.c.l.s8.bf16 %v2429_v13 }
 0x1ca   :  { %4894 = vmatpush2.bf16.msra.mxu0 %v3821_v17  ;;  %4935 = vmatpush2.bf16.msra.mxu1 %v4077_v20  ;;  %v2557_v17 = vld [vmem:[#allocation7 + $0x1d00] sm:$0xff] }
 0x1cb   :  { %v9949_v32 = vpop.f32.mrf.mxu0  ;;  %4895 = vmatprep.subr.bf16.mxu0 %v3806_v21  ;;  %4936 = vmatprep.subr.bf16.mxu1 %v4062_v23  ;;  %v9953_v39 = vpop.f32.mrf.mxu1  ;;  %v4525_v20 = vunpack.c.h.s8.bf16 %v2557_v17  ;;  %v4254_v21 = vunpack.c.l.s8.bf16 %v2430_v52  ;;  %v2414_v23 = vld [vmem:[#allocation7 + $0x1888] sm:$0xff] }
 0x1cc   :  { %v4222_v37 = vunpack.c.l.s8.bf16 %v2414_v23  ;;  %v2510_v52 = vld [vmem:[#allocation7 + $0x1b88] sm:$0xff] }
 0x1cd   :  { %v1551_v40 = vpop.f32.mrf.mxu0  ;;  %v1592_v50 = vpop.f32.mrf.mxu1 }
 0x1ce   :  { %v1552_v49 = vadd.f32 %v1551_v40, %v354_v29  ;;  %4896 = vmatpush2.bf16.msra.mxu0 %v3805_v30  ;;  %4937 = vmatpush2.bf16.msra.mxu1 %v4061_v36  ;;  %v1593_v55 = vadd.f32 %v1592_v50, %v362_v33  ;;  %v4509_v29 = vunpack.c.l.s8.bf16 %v2557_v17  ;;  %v4238_v30 = vunpack.c.h.s8.bf16 %v2414_v23  ;;  %v2541_v33 = vld [vmem:[#allocation7 + $0x1c80] sm:$0xff]  ;;  %v2526_v40 = vld [vmem:[#allocation7 + $0x1c08] sm:$0xff] }
 0x1cf   :  { %v1553_v54 = vpop.f32.mrf.mxu0  ;;  %4947 = vmatprep.subr.bf16.mxu0 %v4302_v35  ;;  %4988 = vmatprep.subr.bf16.mxu1 %v4558_v0  ;;  %v1594_v59 = vpop.f32.mrf.mxu1  ;;  %v4494_v36 = vunpack.c.h.s8.bf16 %v2542_v24  ;;  %v4237_v35 = vunpack.c.h.s8.bf16 %v2413_v31  ;;  %v4493_v41 = vunpack.c.h.s8.bf16 %v2541_v33  ;;  %v4478_v0 = vunpack.c.l.s8.bf16 %v2542_v24 }
 0x1d0   :  { %v1610_v58 = vmax.f32 %v1552_v49, 0.0  ;;  %v1612_v61 = vmax.f32 %v1593_v55, 0.0  ;;  %v4221_v49 = vunpack.c.l.s8.bf16 %v2413_v31  ;;  %v4477_v50 = vunpack.c.l.s8.bf16 %v2541_v33  ;;  %v2397_v54 = vld [vmem:[#allocation7 + $0x1800] sm:$0xff] }
 0x1d1   :  { %4898 = vmatmul.mubr.bf16.vlgmr.msra.gmra.mxu0 %v9955_v53  ;;  %v1554_v62 = vpop.f32.mrf.mxu0  ;;  %4939 = vmatmul.mubr.bf16.vlgmr.msra.gmra.mxu1 %v9957_v57  ;;  %v1595_v3 = vpop.f32.mrf.mxu1  ;;  %v4462_v55 = vunpack.c.h.s8.bf16 %v2526_v40  ;;  %v4190_v59 = vunpack.c.l.s8.bf16 %v2398_v46  ;;  %v4414_v17 = vunpack.c.l.s8.bf16 %v2510_v52 }
 0x1d2   :  { %v9960_v2 = vpack.c.bf16 %v1610_v58, %v1610_v58  ;;  %4948 = vmatpush1.bf16.msra.mxu0 %v4301_v51  ;;  %v9963_v9 = vpack.c.bf16 %v1612_v61, %v1612_v61  ;;  %4989 = vmatpush1.bf16.msra.mxu1 %v4557_v43  ;;  %v4206_v51 = vunpack.c.h.s8.bf16 %v2398_v46  ;;  %v2525_v43 = vld [vmem:[#allocation7 + $0x1c00] sm:$0xff]  ;;  %v2638_v61 = vld [vmem:[#allocation7 + $0x1f88] sm:$0xff]  ;;  %v4189_v62 = vunpack.c.l.s8.bf16 %v2397_v54 }
 0x1d3   :  { %4949 = vmatprep.subr.bf16.mxu0 %v4286_v7  ;;  %4990 = vmatprep.subr.bf16.mxu1 %v4542_v60  ;;  %v4205_v7 = vunpack.c.h.s8.bf16 %v2397_v54  ;;  %v4461_v58 = vunpack.c.h.s8.bf16 %v2525_v43  ;;  %v4446_v60 = vunpack.c.l.s8.bf16 %v2526_v40  ;;  %v4445_v56 = vunpack.c.l.s8.bf16 %v2525_v43 }
 0x1d4   :  { %4979 = vmatprep.mubr.bf16.mxu0 %v9960_v2  ;;  %5020 = vmatprep.mubr.bf16.mxu1 %v9963_v9  ;;  %v4430_v3 = vunpack.c.h.s8.bf16 %v2510_v52  ;;  %v350_v52 = vrot.slane %v9925_v27, %v9908_v25 }
 0x1d6   :  { %4950 = vmatpush1.bf16.msra.mxu0 %v4285_v6  ;;  %4991 = vmatpush1.bf16.msra.mxu1 %v4541_v10  ;;  %v2509_v6 = vld [vmem:[#allocation7 + $0x1b80] sm:$0xff]  ;;  %v4686_v10 = vunpack.c.h.s8.bf16 %v2638_v61 }
 0x1d7   :  { %4951 = vmatprep.subr.bf16.mxu0 %v4270_v12  ;;  %4992 = vmatprep.subr.bf16.mxu1 %v4526_v16  ;;  %v2637_v12 = vld [vmem:[#allocation7 + $0x1f80] sm:$0xff]  ;;  %v4429_v13 = vunpack.c.h.s8.bf16 %v2509_v6 }
 0x1d8   :  { %v4685_v16 = vunpack.c.h.s8.bf16 %v2637_v12  ;;  %v4669_v23 = vunpack.c.l.s8.bf16 %v2637_v12 }
 0x1da   :  { %4952 = vmatpush1.bf16.msra.mxu0 %v4269_v19  ;;  %4993 = vmatpush1.bf16.msra.mxu1 %v4525_v20  ;;  %v4670_v19 = vunpack.c.l.s8.bf16 %v2638_v61  ;;  %v2494_v20 = vld [vmem:[#allocation7 + $0x1b08] sm:$0xff] }
 0x1db   :  { %4953 = vmatprep.subr.bf16.mxu0 %v4254_v21  ;;  %4994 = vmatprep.subr.bf16.mxu1 %v4510_v22  ;;  %v2622_v21 = vld [vmem:[#allocation7 + $0x1f08] sm:$0xff]  ;;  %v4413_v22 = vunpack.c.l.s8.bf16 %v2509_v6  ;;  %v4398_v24 = vunpack.c.h.s8.bf16 %v2494_v20  ;;  %v4382_v33 = vunpack.c.l.s8.bf16 %v2494_v20 }
 0x1de   :  { %4954 = vmatpush1.bf16.msra.mxu0 %v4253_v26  ;;  %4995 = vmatpush1.bf16.msra.mxu1 %v4509_v29  ;;  %v2493_v26 = vld [vmem:[#allocation7 + $0x1b00] sm:$0xff]  ;;  %v4654_v29 = vunpack.c.h.s8.bf16 %v2622_v21 }
 0x1df   :  { %4955 = vmatprep.subr.bf16.mxu0 %v4238_v30  ;;  %4996 = vmatprep.subr.bf16.mxu1 %v4494_v36  ;;  %v2621_v30 = vld [vmem:[#allocation7 + $0x1f00] sm:$0xff]  ;;  %v4397_v31 = vunpack.c.h.s8.bf16 %v2493_v26 }
 0x1e0   :  { %v4653_v36 = vunpack.c.h.s8.bf16 %v2621_v30  ;;  %v4637_v46 = vunpack.c.l.s8.bf16 %v2621_v30 }
 0x1e2   :  { %4956 = vmatpush1.bf16.msra.mxu0 %v4237_v35  ;;  %4997 = vmatpush1.bf16.msra.mxu1 %v4493_v41  ;;  %v4638_v35 = vunpack.c.l.s8.bf16 %v2622_v21  ;;  %v2478_v41 = vld [vmem:[#allocation7 + $0x1a88] sm:$0xff]  ;;  %v1680_v21 = vld [vmem:[#allocation7 + $0x198] sm:$0xff] }
 0x1e3   :  { %4957 = vmatprep.subr.bf16.mxu0 %v4222_v37  ;;  %4998 = vmatprep.subr.bf16.mxu1 %v4478_v0  ;;  %v2606_v37 = vld [vmem:[#allocation7 + $0x1e88] sm:$0xff]  ;;  %v4381_v0 = vunpack.c.l.s8.bf16 %v2493_v26  ;;  %v4366_v40 = vunpack.c.h.s8.bf16 %v2478_v41  ;;  %v4350_v43 = vunpack.c.l.s8.bf16 %v2478_v41  ;;  %v2768_v26 = vunpack.c.h.s8.bf16 %v1680_v21 }
 0x1e4   :  { %v2752_v41 = vunpack.c.l.s8.bf16 %v1680_v21 }
 0x1e6   :  { %4958 = vmatpush1.bf16.msra.mxu0 %v4221_v49  ;;  %4999 = vmatpush1.bf16.msra.mxu1 %v4477_v50  ;;  %v2477_v49 = vld [vmem:[#allocation7 + $0x1a80] sm:$0xff]  ;;  %v4622_v50 = vunpack.c.h.s8.bf16 %v2606_v37 }
 0x1e7   :  { %4959 = vmatprep.subr.bf16.mxu0 %v4206_v51  ;;  %5000 = vmatprep.subr.bf16.mxu1 %v4462_v55  ;;  %v2605_v51 = vld [vmem:[#allocation7 + $0x1e80] sm:$0xff]  ;;  %v4365_v54 = vunpack.c.h.s8.bf16 %v2477_v49 }
 0x1e8   :  { %v4621_v55 = vunpack.c.h.s8.bf16 %v2605_v51  ;;  %v4605_v61 = vunpack.c.l.s8.bf16 %v2605_v51 }
 0x1ea   :  { %4960 = vmatpush1.bf16.msra.mxu0 %v4205_v7  ;;  %5001 = vmatpush1.bf16.msra.mxu1 %v4461_v58  ;;  %v4606_v7 = vunpack.c.l.s8.bf16 %v2606_v37  ;;  %v2462_v58 = vld [vmem:[#allocation7 + $0x1a08] sm:$0xff]  ;;  %v1664_v37 = vld [vmem:[#allocation7 + $0x118] sm:$0xff] }
 0x1eb   :  { %4961 = vmatprep.subr.bf16.mxu0 %v4190_v59  ;;  %5002 = vmatprep.subr.bf16.mxu1 %v4446_v60  ;;  %v2590_v59 = vld [vmem:[#allocation7 + $0x1e08] sm:$0xff]  ;;  %v4349_v60 = vunpack.c.l.s8.bf16 %v2477_v49 }
 0x1ec   :  { %v4590_v6 = vunpack.c.h.s8.bf16 %v2590_v59  ;;  %v4574_v20 = vunpack.c.l.s8.bf16 %v2590_v59 }
 0x1ee   :  { %4962 = vmatpush1.bf16.msra.mxu0 %v4189_v62  ;;  %5003 = vmatpush1.bf16.msra.mxu1 %v4445_v56  ;;  %v4334_v62 = vunpack.c.h.s8.bf16 %v2462_v58  ;;  %v2461_v56 = vld [vmem:[#allocation7 + $0x1a00] sm:$0xff] }
 0x1ef   :  { %4963 = vmatprep.subr.bf16.mxu0 %v4430_v3  ;;  %5004 = vmatprep.subr.bf16.mxu1 %v4686_v10  ;;  %v358_v3 = vrot.slane %v9925_v27, %v9911_v28  ;;  %v2589_v10 = vld [vmem:[#allocation7 + $0x1e00] sm:$0xff]  ;;  %v4333_v12 = vunpack.c.h.s8.bf16 %v2461_v56 }
 0x1f2   :  { %4964 = vmatpush2.bf16.msra.mxu0 %v4429_v13  ;;  %5005 = vmatpush2.bf16.msra.mxu1 %v4685_v16  ;;  %v1550_v13 = vadd.f32 %v9949_v32, %v350_v52  ;;  %v4589_v16 = vunpack.c.h.s8.bf16 %v2589_v10 }
 0x1f3   :  { %4965 = vmatprep.subr.bf16.mxu0 %v4414_v17  ;;  %5006 = vmatprep.subr.bf16.mxu1 %v4670_v19  ;;  %v4318_v17 = vunpack.c.l.s8.bf16 %v2462_v58  ;;  %v1591_v19 = vadd.f32 %v9953_v39, %v358_v3 }
 0x1f4   :  { %v1609_v27 = vmax.f32 %v1550_v13, 0.0 }
 0x1f5   :  { %v1611_v30 = vmax.f32 %v1591_v19, 0.0 }
 0x1f6   :  { %4966 = vmatpush2.bf16.msra.mxu0 %v4413_v22  ;;  %5007 = vmatpush2.bf16.msra.mxu1 %v4669_v23  ;;  %v1808_v22 = vld [vmem:[#allocation7 + $0x598] sm:$0xff]  ;;  %v4317_v23 = vunpack.c.l.s8.bf16 %v2461_v56 }
 0x1f7   :  { %4967 = vmatprep.subr.bf16.mxu0 %v4398_v24  ;;  %5008 = vmatprep.subr.bf16.mxu1 %v4654_v29  ;;  %v4573_v24 = vunpack.c.l.s8.bf16 %v2589_v10  ;;  %v1679_v29 = vld [vmem:[#allocation7 + $0x190] sm:$0xff]  ;;  %v3024_v32 = vunpack.c.h.s8.bf16 %v1808_v22  ;;  %v2720_v10 = vunpack.c.l.s8.bf16 %v1664_v37 }
 0x1fa   :  { %4968 = vmatpush2.bf16.msra.mxu0 %v4397_v31  ;;  %5009 = vmatpush2.bf16.msra.mxu1 %v4653_v36  ;;  %v1807_v31 = vld [vmem:[#allocation7 + $0x590] sm:$0xff]  ;;  %v2767_v36 = vunpack.c.h.s8.bf16 %v1679_v29 }
 0x1fb   :  { %4969 = vmatprep.subr.bf16.mxu0 %v4382_v33  ;;  %5010 = vmatprep.subr.bf16.mxu1 %v4638_v35  ;;  %v9973_v33 = vpack.c.bf16 %v1609_v27, %v1609_v27  ;;  %v3023_v39 = vunpack.c.h.s8.bf16 %v1807_v31  ;;  %v9975_v35 = vpack.c.bf16 %v1611_v30, %v1611_v30  ;;  %v1775_v27 = vld [vmem:[#allocation7 + $0x490] sm:$0xff] }
 0x1fe   :  { %4970 = vmatpush2.bf16.msra.mxu0 %v4381_v0  ;;  %5011 = vmatpush2.bf16.msra.mxu1 %v4637_v46  ;;  %v3008_v46 = vunpack.c.l.s8.bf16 %v1808_v22  ;;  %v1647_v22 = vld [vmem:[#allocation7 + $0x90] sm:$0xff] }
 0x1ff   :  { %4971 = vmatprep.subr.bf16.mxu0 %v4366_v40  ;;  %5012 = vmatprep.subr.bf16.mxu1 %v4622_v50  ;;  %v1792_v40 = vld [vmem:[#allocation7 + $0x518] sm:$0xff]  ;;  %v2751_v50 = vunpack.c.l.s8.bf16 %v1679_v29 }
 0x200   :  { %v2992_v59 = vunpack.c.h.s8.bf16 %v1792_v40  ;;  %v2976_v13 = vunpack.c.l.s8.bf16 %v1792_v40 }
 0x202   :  { %4972 = vmatpush2.bf16.msra.mxu0 %v4365_v54  ;;  %5013 = vmatpush2.bf16.msra.mxu1 %v4621_v55  ;;  %v3007_v55 = vunpack.c.l.s8.bf16 %v1807_v31  ;;  %v1760_v31 = vld [vmem:[#allocation7 + $0x418] sm:$0xff] }
 0x203   :  { %4973 = vmatprep.subr.bf16.mxu0 %v4350_v43  ;;  %5014 = vmatprep.subr.bf16.mxu1 %v4606_v7  ;;  %v2736_v43 = vunpack.c.h.s8.bf16 %v1664_v37  ;;  %v1663_v7 = vld [vmem:[#allocation7 + $0x110] sm:$0xff] }
 0x204   :  { %v2735_v56 = vunpack.c.h.s8.bf16 %v1663_v7  ;;  %v2719_v19 = vunpack.c.l.s8.bf16 %v1663_v7  ;;  %v1631_v37 = vld [vmem:[#allocation7 + $0x10] sm:$0xff] }
 0x205   :  { %v2671_v40 = vunpack.c.h.s8.bf16 %v1631_v37  ;;  %v2655_v7 = vunpack.c.l.s8.bf16 %v1631_v37  ;;  %v1839_v37 = vld [vmem:[#allocation7 + $0x690] sm:$0xff] }
 0x206   :  { %4974 = vmatpush2.bf16.msra.mxu0 %v4349_v60  ;;  %5015 = vmatpush2.bf16.msra.mxu1 %v4605_v61  ;;  %v1791_v60 = vld [vmem:[#allocation7 + $0x510] sm:$0xff] }
 0x207   :  { %4975 = vmatprep.subr.bf16.mxu0 %v4334_v62  ;;  %5016 = vmatprep.subr.bf16.mxu1 %v4590_v6  ;;  %v2991_v6 = vunpack.c.h.s8.bf16 %v1791_v60 }
 0x20a   :  { %4976 = vmatpush2.bf16.msra.mxu0 %v4333_v12  ;;  %5017 = vmatpush2.bf16.msra.mxu1 %v4589_v16  ;;  %v1648_v16 = vld [vmem:[#allocation7 + $0x98] sm:$0xff] }
 0x20b   :  { %4977 = vmatprep.subr.bf16.mxu0 %v4318_v17  ;;  %5018 = vmatprep.subr.bf16.mxu1 %v4574_v20  ;;  %v1776_v17 = vld [vmem:[#allocation7 + $0x498] sm:$0xff]  ;;  %v2975_v20 = vunpack.c.l.s8.bf16 %v1791_v60  ;;  %v2704_v21 = vunpack.c.h.s8.bf16 %v1648_v16  ;;  %v2688_v29 = vunpack.c.l.s8.bf16 %v1648_v16  ;;  %v1743_v60 = vld [vmem:[#allocation7 + $0x390] sm:$0xff] }
 0x20c   :  { %v2944_v30 = vunpack.c.l.s8.bf16 %v1776_v17  ;;  %v2879_v16 = vunpack.c.l.s8.bf16 %v1743_v60 }
 0x20e   :  { %4978 = vmatpush2.bf16.msra.mxu0 %v4317_v23  ;;  %5019 = vmatpush2.bf16.msra.mxu1 %v4573_v24  ;;  %v2960_v23 = vunpack.c.h.s8.bf16 %v1776_v17  ;;  %v2703_v24 = vunpack.c.h.s8.bf16 %v1647_v22 }
 0x20f   :  { %5029 = vmatprep.subr.bf16.mxu0 %v2768_v26  ;;  %5070 = vmatprep.subr.bf16.mxu1 %v3024_v32  ;;  %v2959_v26 = vunpack.c.h.s8.bf16 %v1775_v27  ;;  %v1632_v32 = vld [vmem:[#allocation7 + $0x18] sm:$0xff] }
 0x211   :  { %4980 = vmatmul.mubr.bf16.vlgmr.msra.gmra.mxu0 %v9973_v33  ;;  %v4735_v0 = vpop.f32.mrf.mxu0  ;;  %5021 = vmatmul.mubr.bf16.vlgmr.msra.gmra.mxu1 %v9975_v35  ;;  %v4776_v49 = vpop.f32.mrf.mxu1 }
 0x212   :  { %5030 = vmatpush1.bf16.msra.mxu0 %v2767_v36  ;;  %v9979_v51 = vadd.f32 %v4776_v49, %v4735_v0  ;;  %5061 = vmatprep.mubr.bf16.mxu0 %v9877_v45  ;;  %v2687_v36 = vunpack.c.l.s8.bf16 %v1647_v22  ;;  %v2928_v0 = vunpack.c.h.s8.bf16 %v1760_v31  ;;  %v1855_v22 = vld [vmem:[#allocation7 + $0x710] sm:$0xff] }
 0x213   :  { %5071 = vmatpush1.bf16.msra.mxu1 %v3023_v39  ;;  %v4737_v54 = vpop.f32.mrf.mxu0  ;;  %5102 = vmatprep.mubr.bf16.mxu1 %v9881_v48  ;;  %v4778_v58 = vpop.f32.mrf.mxu1  ;;  %v2943_v39 = vunpack.c.l.s8.bf16 %v1775_v27  ;;  %v3119_v27 = vunpack.c.h.s8.bf16 %v1855_v22 }
 0x214   :  { %5031 = vmatprep.subr.bf16.mxu0 %v2752_v41  ;;  %v9983_v52 = vadd.f32 %v4778_v58, %v4737_v54  ;;  %5072 = vmatprep.subr.bf16.mxu1 %v3008_v46  ;;  %v2672_v41 = vunpack.c.h.s8.bf16 %v1632_v32  ;;  %v1759_v46 = vld [vmem:[#allocation7 + $0x410] sm:$0xff]  ;;  %v2912_v54 = vunpack.c.l.s8.bf16 %v1760_v31  ;;  %v3103_v31 = vunpack.c.l.s8.bf16 %v1855_v22 }
 0x215   :  { %v4739_v61 = vpop.f32.mrf.mxu0  ;;  %v4780_v62 = vpop.f32.mrf.mxu1  ;;  %v2927_v49 = vunpack.c.h.s8.bf16 %v1759_v46  ;;  %v2911_v58 = vunpack.c.l.s8.bf16 %v1759_v46  ;;  %v3087_v46 = vunpack.c.h.s8.bf16 %v1839_v37 }
 0x216   :  { %5032 = vmatpush1.bf16.msra.mxu0 %v2751_v50  ;;  %v2656_v50 = vunpack.c.l.s8.bf16 %v1632_v32  ;;  %v1871_v62 = vld [vmem:[#allocation7 + $0x790] sm:$0xff] }
 0x217   :  { %5073 = vmatpush1.bf16.msra.mxu1 %v3007_v55  ;;  %v4740_v3 = vpop.f32.mrf.mxu0  ;;  %5033 = vmatprep.subr.bf16.mxu0 %v2736_v43  ;;  %v4781_v12 = vpop.f32.mrf.mxu1  ;;  %v1744_v55 = vld [vmem:[#allocation7 + $0x398] sm:$0xff]  ;;  %v3135_v17 = vunpack.c.l.s8.bf16 %v1871_v62 }
 0x218   :  { %5074 = vmatprep.subr.bf16.mxu1 %v2992_v59  ;;  %v1872_v43 = vld [vmem:[#allocation7 + $0x798] sm:$0xff]  ;;  %v2896_v59 = vunpack.c.h.s8.bf16 %v1744_v55  ;;  %v3151_v3 = vunpack.c.h.s8.bf16 %v1871_v62 }
 0x219   :  { %v3152_v61 = vunpack.c.h.s8.bf16 %v1872_v43  ;;  %v1728_v12 = vld [vmem:[#allocation7 + $0x318] sm:$0xff] }
 0x21a   :  { %5034 = vmatpush1.bf16.msra.mxu0 %v2735_v56  ;;  %v2895_v56 = vunpack.c.h.s8.bf16 %v1743_v60  ;;  %v1823_v60 = vld [vmem:[#allocation7 + $0x610] sm:$0xff] }
 0x21b   :  { %5075 = vmatpush1.bf16.msra.mxu1 %v2991_v6  ;;  %5035 = vmatprep.subr.bf16.mxu0 %v2720_v10  ;;  %v2880_v6 = vunpack.c.l.s8.bf16 %v1744_v55  ;;  %v3136_v10 = vunpack.c.l.s8.bf16 %v1872_v43  ;;  %v3071_v43 = vunpack.c.l.s8.bf16 %v1839_v37  ;;  %v3055_v62 = vunpack.c.h.s8.bf16 %v1823_v60  ;;  %v1919_v37 = vld [vmem:[#allocation7 + $0x910] sm:$0xff] }
 0x21c   :  { %5076 = vmatprep.subr.bf16.mxu1 %v2976_v13  ;;  %v1856_v13 = vld [vmem:[#allocation7 + $0x718] sm:$0xff] }
 0x21e   :  { %5036 = vmatpush1.bf16.msra.mxu0 %v2719_v19  ;;  %v2864_v19 = vunpack.c.h.s8.bf16 %v1728_v12 }
 0x21f   :  { %5077 = vmatpush1.bf16.msra.mxu1 %v2975_v20  ;;  %5037 = vmatprep.subr.bf16.mxu0 %v2704_v21  ;;  %v1727_v20 = vld [vmem:[#allocation7 + $0x310] sm:$0xff]  ;;  %v3120_v21 = vunpack.c.h.s8.bf16 %v1856_v13 }
 0x220   :  { %5078 = vmatprep.subr.bf16.mxu1 %v2960_v23  ;;  %v2863_v23 = vunpack.c.h.s8.bf16 %v1727_v20  ;;  %v2847_v32 = vunpack.c.l.s8.bf16 %v1727_v20  ;;  %v2063_v20 = vld [vmem:[#allocation7 + $0xd90] sm:$0xff] }
 0x221   :  { %v3535_v22 = vunpack.c.h.s8.bf16 %v2063_v20 }
 0x222   :  { %5038 = vmatpush1.bf16.msra.mxu0 %v2703_v24  ;;  %v2848_v24 = vunpack.c.l.s8.bf16 %v1728_v12 }
 0x223   :  { %5079 = vmatpush1.bf16.msra.mxu1 %v2959_v26  ;;  %5039 = vmatprep.subr.bf16.mxu0 %v2688_v29  ;;  %v3104_v26 = vunpack.c.l.s8.bf16 %v1856_v13  ;;  %v1712_v29 = vld [vmem:[#allocation7 + $0x298] sm:$0xff]  ;;  %v3039_v13 = vunpack.c.l.s8.bf16 %v1823_v60 }
 0x224   :  { %5080 = vmatprep.subr.bf16.mxu1 %v2944_v30  ;;  %v1840_v30 = vld [vmem:[#allocation7 + $0x698] sm:$0xff] }
 0x226   :  { %5040 = vmatpush1.bf16.msra.mxu0 %v2687_v36  ;;  %v2832_v36 = vunpack.c.h.s8.bf16 %v1712_v29 }
 0x227   :  { %5081 = vmatpush1.bf16.msra.mxu1 %v2943_v39  ;;  %5041 = vmatprep.subr.bf16.mxu0 %v2672_v41  ;;  %v1711_v39 = vld [vmem:[#allocation7 + $0x290] sm:$0xff]  ;;  %v3088_v41 = vunpack.c.h.s8.bf16 %v1840_v30 }
 0x228   :  { %5082 = vmatprep.subr.bf16.mxu1 %v2928_v0  ;;  %v2831_v0 = vunpack.c.h.s8.bf16 %v1711_v39  ;;  %v2815_v55 = vunpack.c.l.s8.bf16 %v1711_v39  ;;  %v3519_v39 = vunpack.c.l.s8.bf16 %v2063_v20 }
 0x22a   :  { %5042 = vmatpush1.bf16.msra.mxu0 %v2671_v40  ;;  %v2816_v40 = vunpack.c.l.s8.bf16 %v1712_v29  ;;  %v2048_v29 = vld [vmem:[#allocation7 + $0xd18] sm:$0xff] }
 0x22b   :  { %5083 = vmatpush1.bf16.msra.mxu1 %v2927_v49  ;;  %5043 = vmatprep.subr.bf16.mxu0 %v2656_v50  ;;  %v3072_v49 = vunpack.c.l.s8.bf16 %v1840_v30  ;;  %v1696_v50 = vld [vmem:[#allocation7 + $0x218] sm:$0xff] }
 0x22c   :  { %5084 = vmatprep.subr.bf16.mxu1 %v2912_v54  ;;  %v1824_v54 = vld [vmem:[#allocation7 + $0x618] sm:$0xff] }
 0x22e   :  { %5044 = vmatpush1.bf16.msra.mxu0 %v2655_v7  ;;  %v2800_v7 = vunpack.c.h.s8.bf16 %v1696_v50 }
 0x22f   :  { %5085 = vmatpush1.bf16.msra.mxu1 %v2911_v58  ;;  %5045 = vmatprep.subr.bf16.mxu0 %v2896_v59  ;;  %v1695_v58 = vld [vmem:[#allocation7 + $0x210] sm:$0xff]  ;;  %v3056_v59 = vunpack.c.h.s8.bf16 %v1824_v54 }
 0x230   :  { %5086 = vmatprep.subr.bf16.mxu1 %v3152_v61  ;;  %v2799_v61 = vunpack.c.h.s8.bf16 %v1695_v58  ;;  %v2783_v12 = vunpack.c.l.s8.bf16 %v1695_v58 }
 0x232   :  { %5046 = vmatpush2.bf16.msra.mxu0 %v2895_v56  ;;  %v2784_v56 = vunpack.c.l.s8.bf16 %v1696_v50 }
 0x233   :  { %5087 = vmatpush2.bf16.msra.mxu1 %v3151_v3  ;;  %5047 = vmatprep.subr.bf16.mxu0 %v2880_v6  ;;  %v3040_v3 = vunpack.c.l.s8.bf16 %v1824_v54  ;;  %v1936_v6 = vld [vmem:[#allocation7 + $0x998] sm:$0xff] }
 0x234   :  { %5088 = vmatprep.subr.bf16.mxu1 %v3136_v10  ;;  %v2064_v10 = vld [vmem:[#allocation7 + $0xd98] sm:$0xff] }
 0x236   :  { %5048 = vmatpush2.bf16.msra.mxu0 %v2879_v16  ;;  %v3280_v16 = vunpack.c.h.s8.bf16 %v1936_v6 }
 0x237   :  { %5089 = vmatpush2.bf16.msra.mxu1 %v3135_v17  ;;  %5049 = vmatprep.subr.bf16.mxu0 %v2864_v19  ;;  %v1935_v17 = vld [vmem:[#allocation7 + $0x990] sm:$0xff]  ;;  %v3536_v19 = vunpack.c.h.s8.bf16 %v2064_v10 }
 0x238   :  { %5090 = vmatprep.subr.bf16.mxu1 %v3120_v21  ;;  %v3279_v21 = vunpack.c.h.s8.bf16 %v1935_v17 }
 0x23a   :  { %5050 = vmatpush2.bf16.msra.mxu0 %v2863_v23  ;;  %v3264_v23 = vunpack.c.l.s8.bf16 %v1936_v6 }
 0x23b   :  { %5091 = vmatpush2.bf16.msra.mxu1 %v3119_v27  ;;  %5051 = vmatprep.subr.bf16.mxu0 %v2848_v24  ;;  %v1920_v27 = vld [vmem:[#allocation7 + $0x918] sm:$0xff] }
 0x23c   :  { %5092 = vmatprep.subr.bf16.mxu1 %v3104_v26  ;;  %v3520_v26 = vunpack.c.l.s8.bf16 %v2064_v10  ;;  %v1903_v10 = vld [vmem:[#allocation7 + $0x890] sm:$0xff] }
 0x23e   :  { %5052 = vmatpush2.bf16.msra.mxu0 %v2847_v32 }
 0x23f   :  { %5093 = vmatpush2.bf16.msra.mxu1 %v3103_v31  ;;  %5053 = vmatprep.subr.bf16.mxu0 %v2832_v36  ;;  %v3263_v31 = vunpack.c.l.s8.bf16 %v1935_v17 }
 0x240   :  { %5094 = vmatprep.subr.bf16.mxu1 %v3088_v41  ;;  %v3248_v41 = vunpack.c.h.s8.bf16 %v1920_v27 }
 0x242   :  { %5054 = vmatpush2.bf16.msra.mxu0 %v2831_v0 }
 0x243   :  { %5095 = vmatpush2.bf16.msra.mxu1 %v3087_v46  ;;  %5055 = vmatprep.subr.bf16.mxu0 %v2816_v40 }
 0x244   :  { %5096 = vmatprep.subr.bf16.mxu1 %v3072_v49  ;;  %v2047_v49 = vld [vmem:[#allocation7 + $0xd10] sm:$0xff] }
 0x245   :  { %v3503_v58 = vunpack.c.h.s8.bf16 %v2047_v49 }
 0x246   :  { %5056 = vmatpush2.bf16.msra.mxu0 %v2815_v55 }
 0x247   :  { %5097 = vmatpush2.bf16.msra.mxu1 %v3071_v43  ;;  %5057 = vmatprep.subr.bf16.mxu0 %v2800_v7  ;;  %v3247_v43 = vunpack.c.h.s8.bf16 %v1919_v37 }
 0x248   :  { %5098 = vmatprep.subr.bf16.mxu1 %v3056_v59  ;;  %v3232_v59 = vunpack.c.l.s8.bf16 %v1920_v27 }
 0x24a   :  { %5058 = vmatpush2.bf16.msra.mxu0 %v2799_v61  ;;  %v3488_v61 = vunpack.c.l.s8.bf16 %v2048_v29 }
 0x24b   :  { %5099 = vmatpush2.bf16.msra.mxu1 %v3055_v62  ;;  %5059 = vmatprep.subr.bf16.mxu0 %v2784_v56  ;;  %v2032_v62 = vld [vmem:[#allocation7 + $0xc98] sm:$0xff]  ;;  %v3231_v56 = vunpack.c.l.s8.bf16 %v1919_v37 }
 0x24c   :  { %5100 = vmatprep.subr.bf16.mxu1 %v3040_v3  ;;  %v3487_v3 = vunpack.c.l.s8.bf16 %v2047_v49  ;;  %v3456_v20 = vunpack.c.l.s8.bf16 %v2032_v62  ;;  %v2128_v37 = vld [vmem:[#allocation7 + $0xf98] sm:$0xff]  ;;  %v1999_v49 = vld [vmem:[#allocation7 + $0xb90] sm:$0xff] }
 0x24e   :  { %5060 = vmatpush2.bf16.msra.mxu0 %v2783_v12  ;;  %v3472_v12 = vunpack.c.h.s8.bf16 %v2032_v62 }
 0x24f   :  { %5101 = vmatpush2.bf16.msra.mxu1 %v3039_v13  ;;  %5111 = vmatprep.subr.bf16.mxu0 %v3280_v16  ;;  %v2031_v13 = vld [vmem:[#allocation7 + $0xc90] sm:$0xff]  ;;  %v3215_v16 = vunpack.c.h.s8.bf16 %v1903_v10 }
 0x250   :  { %5152 = vmatprep.subr.bf16.mxu1 %v3536_v19  ;;  %v3471_v17 = vunpack.c.h.s8.bf16 %v2031_v13  ;;  %v3455_v27 = vunpack.c.l.s8.bf16 %v2031_v13 }
 0x251   :  { %v4817_v24 = vpop.f32.mrf.mxu0  ;;  %5062 = vmatmul.mubr.bf16.vlgmr.msra.gmra.mxu0 %v9879_v47  ;;  %v4858_v32 = vpop.f32.mrf.mxu1 }
 0x252   :  { %v4818_v30 = vadd.f32 %v4817_v24, %v9979_v51  ;;  %5103 = vmatmul.mubr.bf16.vlgmr.msra.gmra.mxu1 %v9875_v44  ;;  %5112 = vmatpush1.bf16.msra.mxu0 %v3279_v21  ;;  %v3504_v51 = vunpack.c.h.s8.bf16 %v2048_v29  ;;  %v1888_v21 = vld [vmem:[#allocation7 + $0x818] sm:$0xff] }
 0x253   :  { %5143 = vmatprep.mubr.bf16.mxu0 %v9901_v15  ;;  %5153 = vmatpush1.bf16.msra.mxu1 %v3535_v22  ;;  %v4819_v36 = vpop.f32.mrf.mxu0  ;;  %v4860_v40 = vpop.f32.mrf.mxu1  ;;  %v2016_v22 = vld [vmem:[#allocation7 + $0xc18] sm:$0xff]  ;;  %v3184_v24 = vunpack.c.h.s8.bf16 %v1888_v21 }
 0x254   :  { %v9989_v0 = vadd.f32 %v4858_v32, %v4818_v30  ;;  %5184 = vmatprep.mubr.bf16.mxu1 %v9903_v18  ;;  %v4820_v46 = vadd.f32 %v4819_v36, %v9983_v52  ;;  %5113 = vmatprep.subr.bf16.mxu0 %v3264_v23  ;;  %v1904_v52 = vld [vmem:[#allocation7 + $0x898] sm:$0xff]  ;;  %v3199_v23 = vunpack.c.l.s8.bf16 %v1903_v10  ;;  %v3440_v29 = vunpack.c.h.s8.bf16 %v2016_v22  ;;  %v2015_v30 = vld [vmem:[#allocation7 + $0xc10] sm:$0xff] }
 0x255   :  { %v4821_v50 = vpop.f32.mrf.mxu0  ;;  %5154 = vmatprep.subr.bf16.mxu1 %v3520_v26  ;;  %v4862_v55 = vpop.f32.mrf.mxu1  ;;  %v3216_v6 = vunpack.c.h.s8.bf16 %v1904_v52  ;;  %v3200_v19 = vunpack.c.l.s8.bf16 %v1904_v52  ;;  %v1887_v26 = vld [vmem:[#allocation7 + $0x810] sm:$0xff]  ;;  %v3168_v36 = vunpack.c.l.s8.bf16 %v1888_v21  ;;  %v3391_v52 = vunpack.c.l.s8.bf16 %v1999_v49 }
 0x256   :  { %v9993_v54 = vadd.f32 %v4860_v40, %v4820_v46  ;;  %5114 = vmatpush1.bf16.msra.mxu0 %v3263_v31  ;;  %v3183_v32 = vunpack.c.h.s8.bf16 %v1887_v26  ;;  %v3439_v31 = vunpack.c.h.s8.bf16 %v2015_v30  ;;  %v3167_v46 = vunpack.c.l.s8.bf16 %v1887_v26  ;;  %v2127_v55 = vld [vmem:[#allocation7 + $0xf90] sm:$0xff] }
 0x257   :  { %5155 = vmatpush1.bf16.msra.mxu1 %v3519_v39  ;;  %v4822_v7 = vpop.f32.mrf.mxu0  ;;  %5115 = vmatprep.subr.bf16.mxu0 %v3248_v41  ;;  %v4863_v60 = vpop.f32.mrf.mxu1  ;;  %v3424_v39 = vunpack.c.l.s8.bf16 %v2016_v22  ;;  %v2000_v41 = vld [vmem:[#allocation7 + $0xb98] sm:$0xff]  ;;  %v3423_v40 = vunpack.c.l.s8.bf16 %v2015_v30  ;;  %v3664_v50 = vunpack.c.h.s8.bf16 %v2128_v37  ;;  %v3647_v62 = vunpack.c.l.s8.bf16 %v2127_v55  ;;  %v2111_v10 = vld [vmem:[#allocation7 + $0xf10] sm:$0xff] }
 0x258   :  { %5156 = vmatprep.subr.bf16.mxu1 %v3504_v51  ;;  %v3408_v51 = vunpack.c.h.s8.bf16 %v2000_v41  ;;  %v3663_v7 = vunpack.c.h.s8.bf16 %v2127_v55  ;;  %v1984_v60 = vld [vmem:[#allocation7 + $0xb18] sm:$0xff]  ;;  %v3631_v13 = vunpack.c.h.s8.bf16 %v2111_v10  ;;  %v3615_v22 = vunpack.c.l.s8.bf16 %v2111_v10  ;;  %v2095_v26 = vld [vmem:[#allocation7 + $0xe90] sm:$0xff] }
 0x259   :  { %v3599_v30 = vunpack.c.h.s8.bf16 %v2095_v26 }
 0x25a   :  { %5116 = vmatpush1.bf16.msra.mxu0 %v3247_v43  ;;  %v3407_v43 = vunpack.c.h.s8.bf16 %v1999_v49  ;;  %v2079_v49 = vld [vmem:[#allocation7 + $0xe10] sm:$0xff] }
 0x25b   :  { %5157 = vmatpush1.bf16.msra.mxu1 %v3503_v58  ;;  %5117 = vmatprep.subr.bf16.mxu0 %v3232_v59  ;;  %v3392_v58 = vunpack.c.l.s8.bf16 %v2000_v41  ;;  %v3648_v59 = vunpack.c.l.s8.bf16 %v2128_v37  ;;  %v3583_v37 = vunpack.c.l.s8.bf16 %v2095_v26  ;;  %v3567_v55 = vunpack.c.h.s8.bf16 %v2079_v49  ;;  %v2175_v26 = vld [vmem:[#allocation7 + $0x1110] sm:$0xff] }
 0x25c   :  { %5158 = vmatprep.subr.bf16.mxu1 %v3488_v61  ;;  %v2112_v61 = vld [vmem:[#allocation7 + $0xf18] sm:$0xff] }
 0x25e   :  { %5118 = vmatpush1.bf16.msra.mxu0 %v3231_v56  ;;  %v3376_v56 = vunpack.c.h.s8.bf16 %v1984_v60 }
 0x25f   :  { %5159 = vmatpush1.bf16.msra.mxu1 %v3487_v3  ;;  %5119 = vmatprep.subr.bf16.mxu0 %v3216_v6  ;;  %v1983_v3 = vld [vmem:[#allocation7 + $0xb10] sm:$0xff]  ;;  %v3632_v6 = vunpack.c.h.s8.bf16 %v2112_v61 }
 0x260   :  { %5160 = vmatprep.subr.bf16.mxu1 %v3472_v12  ;;  %v3375_v12 = vunpack.c.h.s8.bf16 %v1983_v3  ;;  %v3359_v21 = vunpack.c.l.s8.bf16 %v1983_v3  ;;  %v2319_v3 = vld [vmem:[#allocation7 + $0x1590] sm:$0xff] }
 0x261   :  { %v4047_v10 = vunpack.c.h.s8.bf16 %v2319_v3 }
 0x262   :  { %5120 = vmatpush1.bf16.msra.mxu0 %v3215_v16  ;;  %v3360_v16 = vunpack.c.l.s8.bf16 %v1984_v60 }
 0x263   :  { %5161 = vmatpush1.bf16.msra.mxu1 %v3471_v17  ;;  %5121 = vmatprep.subr.bf16.mxu0 %v3200_v19  ;;  %v3616_v17 = vunpack.c.l.s8.bf16 %v2112_v61  ;;  %v1968_v19 = vld [vmem:[#allocation7 + $0xa98] sm:$0xff]  ;;  %v3551_v61 = vunpack.c.l.s8.bf16 %v2079_v49 }
 0x264   :  { %5162 = vmatprep.subr.bf16.mxu1 %v3456_v20  ;;  %v2096_v20 = vld [vmem:[#allocation7 + $0xe98] sm:$0xff] }
 0x266   :  { %5122 = vmatpush1.bf16.msra.mxu0 %v3199_v23  ;;  %v3344_v23 = vunpack.c.h.s8.bf16 %v1968_v19 }
 0x267   :  { %5163 = vmatpush1.bf16.msra.mxu1 %v3455_v27  ;;  %5123 = vmatprep.subr.bf16.mxu0 %v3184_v24  ;;  %v1967_v27 = vld [vmem:[#allocation7 + $0xa90] sm:$0xff]  ;;  %v3600_v24 = vunpack.c.h.s8.bf16 %v2096_v20 }
 0x268   :  { %5164 = vmatprep.subr.bf16.mxu1 %v3440_v29  ;;  %v3343_v29 = vunpack.c.h.s8.bf16 %v1967_v27  ;;  %v3327_v41 = vunpack.c.l.s8.bf16 %v1967_v27  ;;  %v4031_v27 = vunpack.c.l.s8.bf16 %v2319_v3 }
 0x26a   :  { %5124 = vmatpush1.bf16.msra.mxu0 %v3183_v32  ;;  %v3328_v32 = vunpack.c.l.s8.bf16 %v1968_v19  ;;  %v2304_v19 = vld [vmem:[#allocation7 + $0x1518] sm:$0xff] }
 0x26b   :  { %5165 = vmatpush1.bf16.msra.mxu1 %v3439_v31  ;;  %5125 = vmatprep.subr.bf16.mxu0 %v3168_v36  ;;  %v3584_v31 = vunpack.c.l.s8.bf16 %v2096_v20  ;;  %v1952_v36 = vld [vmem:[#allocation7 + $0xa18] sm:$0xff] }
 0x26c   :  { %5166 = vmatprep.subr.bf16.mxu1 %v3424_v39  ;;  %v2080_v39 = vld [vmem:[#allocation7 + $0xe18] sm:$0xff] }
 0x26e   :  { %5126 = vmatpush1.bf16.msra.mxu0 %v3167_v46  ;;  %v3312_v46 = vunpack.c.h.s8.bf16 %v1952_v36 }
 0x26f   :  { %5167 = vmatpush1.bf16.msra.mxu1 %v3423_v40  ;;  %5127 = vmatprep.subr.bf16.mxu0 %v3408_v51  ;;  %v1951_v40 = vld [vmem:[#allocation7 + $0xa10] sm:$0xff]  ;;  %v3568_v51 = vunpack.c.h.s8.bf16 %v2080_v39 }
 0x270   :  { %5168 = vmatprep.subr.bf16.mxu1 %v3664_v50  ;;  %v3311_v50 = vunpack.c.h.s8.bf16 %v1951_v40  ;;  %v3295_v60 = vunpack.c.l.s8.bf16 %v1951_v40 }
 0x272   :  { %5128 = vmatpush2.bf16.msra.mxu0 %v3407_v43  ;;  %v3296_v43 = vunpack.c.l.s8.bf16 %v1952_v36 }
 0x273   :  { %5169 = vmatpush2.bf16.msra.mxu1 %v3663_v7  ;;  %5129 = vmatprep.subr.bf16.mxu0 %v3392_v58  ;;  %v3552_v7 = vunpack.c.l.s8.bf16 %v2080_v39  ;;  %v2192_v58 = vld [vmem:[#allocation7 + $0x1198] sm:$0xff] }
 0x274   :  { %5170 = vmatprep.subr.bf16.mxu1 %v3648_v59  ;;  %v2320_v59 = vld [vmem:[#allocation7 + $0x1598] sm:$0xff] }
 0x276   :  { %5130 = vmatpush2.bf16.msra.mxu0 %v3391_v52  ;;  %v3792_v52 = vunpack.c.h.s8.bf16 %v2192_v58 }
 0x277   :  { %5171 = vmatpush2.bf16.msra.mxu1 %v3647_v62  ;;  %5131 = vmatprep.subr.bf16.mxu0 %v3376_v56  ;;  %v2191_v62 = vld [vmem:[#allocation7 + $0x1190] sm:$0xff]  ;;  %v4048_v56 = vunpack.c.h.s8.bf16 %v2320_v59 }
 0x278   :  { %5172 = vmatprep.subr.bf16.mxu1 %v3632_v6  ;;  %v3791_v6 = vunpack.c.h.s8.bf16 %v2191_v62 }
 0x27a   :  { %5132 = vmatpush2.bf16.msra.mxu0 %v3375_v12  ;;  %v3776_v12 = vunpack.c.l.s8.bf16 %v2192_v58 }
 0x27b   :  { %5173 = vmatpush2.bf16.msra.mxu1 %v3631_v13  ;;  %5133 = vmatprep.subr.bf16.mxu0 %v3360_v16  ;;  %v2176_v13 = vld [vmem:[#allocation7 + $0x1118] sm:$0xff] }
 0x27c   :  { %5174 = vmatprep.subr.bf16.mxu1 %v3616_v17  ;;  %v4032_v17 = vunpack.c.l.s8.bf16 %v2320_v59  ;;  %v2159_v59 = vld [vmem:[#allocation7 + $0x1090] sm:$0xff] }
 0x27e   :  { %5134 = vmatpush2.bf16.msra.mxu0 %v3359_v21 }
 0x27f   :  { %5175 = vmatpush2.bf16.msra.mxu1 %v3615_v22  ;;  %5135 = vmatprep.subr.bf16.mxu0 %v3344_v23  ;;  %v3775_v22 = vunpack.c.l.s8.bf16 %v2191_v62 }
 0x280   :  { %5176 = vmatprep.subr.bf16.mxu1 %v3600_v24  ;;  %v3760_v24 = vunpack.c.h.s8.bf16 %v2176_v13 }
 0x282   :  { %5136 = vmatpush2.bf16.msra.mxu0 %v3343_v29 }
 0x283   :  { %5177 = vmatpush2.bf16.msra.mxu1 %v3599_v30  ;;  %5137 = vmatprep.subr.bf16.mxu0 %v3328_v32 }
 0x284   :  { %5178 = vmatprep.subr.bf16.mxu1 %v3584_v31  ;;  %v2303_v31 = vld [vmem:[#allocation7 + $0x1510] sm:$0xff] }
 0x285   :  { %v4015_v40 = vunpack.c.h.s8.bf16 %v2303_v31 }
 0x286   :  { %5138 = vmatpush2.bf16.msra.mxu0 %v3327_v41 }
 0x287   :  { %5179 = vmatpush2.bf16.msra.mxu1 %v3583_v37  ;;  %5139 = vmatprep.subr.bf16.mxu0 %v3312_v46  ;;  %v3759_v37 = vunpack.c.h.s8.bf16 %v2175_v26 }
 0x288   :  { %5180 = vmatprep.subr.bf16.mxu1 %v3568_v51  ;;  %v3744_v51 = vunpack.c.l.s8.bf16 %v2176_v13 }
 0x28a   :  { %5140 = vmatpush2.bf16.msra.mxu0 %v3311_v50  ;;  %v4000_v50 = vunpack.c.l.s8.bf16 %v2304_v19 }
 0x28b   :  { %5181 = vmatpush2.bf16.msra.mxu1 %v3567_v55  ;;  %5141 = vmatprep.subr.bf16.mxu0 %v3296_v43  ;;  %v2288_v55 = vld [vmem:[#allocation7 + $0x1498] sm:$0xff]  ;;  %v3743_v43 = vunpack.c.l.s8.bf16 %v2175_v26 }
 0x28c   :  { %5182 = vmatprep.subr.bf16.mxu1 %v3552_v7  ;;  %v3999_v7 = vunpack.c.l.s8.bf16 %v2303_v31  ;;  %v3968_v3 = vunpack.c.l.s8.bf16 %v2288_v55  ;;  %v2384_v26 = vld [vmem:[#allocation7 + $0x1798] sm:$0xff]  ;;  %v2255_v31 = vld [vmem:[#allocation7 + $0x1390] sm:$0xff] }
 0x28e   :  { %5142 = vmatpush2.bf16.msra.mxu0 %v3295_v60  ;;  %v3984_v60 = vunpack.c.h.s8.bf16 %v2288_v55 }
 0x28f   :  { %5183 = vmatpush2.bf16.msra.mxu1 %v3551_v61  ;;  %5193 = vmatprep.subr.bf16.mxu0 %v3792_v52  ;;  %v2287_v61 = vld [vmem:[#allocation7 + $0x1490] sm:$0xff]  ;;  %v3727_v52 = vunpack.c.h.s8.bf16 %v2159_v59 }
 0x290   :  { %5234 = vmatprep.subr.bf16.mxu1 %v4048_v56  ;;  %v3983_v62 = vunpack.c.h.s8.bf16 %v2287_v61  ;;  %v3967_v13 = vunpack.c.l.s8.bf16 %v2287_v61 }
 0x291   :  { %v4899_v16 = vpop.f32.mrf.mxu0  ;;  %5144 = vmatmul.mubr.bf16.vlgmr.msra.gmra.mxu0 %v9919_v63  ;;  %v4940_v21 = vpop.f32.mrf.mxu1 }
 0x292   :  { %v4900_v20 = vadd.f32 %v4899_v16, %v9989_v0  ;;  %5185 = vmatmul.mubr.bf16.vlgmr.msra.gmra.mxu1 %v9921_v1  ;;  %5194 = vmatpush1.bf16.msra.mxu0 %v3791_v6  ;;  %v4016_v0 = vunpack.c.h.s8.bf16 %v2304_v19  ;;  %v2144_v6 = vld [vmem:[#allocation7 + $0x1018] sm:$0xff] }
 0x293   :  { %5225 = vmatprep.mubr.bf16.mxu0 %v9935_v34  ;;  %5235 = vmatpush1.bf16.msra.mxu1 %v4047_v10  ;;  %v4901_v23 = vpop.f32.mrf.mxu0  ;;  %v4942_v32 = vpop.f32.mrf.mxu1  ;;  %v2272_v10 = vld [vmem:[#allocation7 + $0x1418] sm:$0xff]  ;;  %v3696_v16 = vunpack.c.h.s8.bf16 %v2144_v6 }
 0x294   :  { %v9999_v29 = vadd.f32 %v4940_v21, %v4900_v20  ;;  %5266 = vmatprep.mubr.bf16.mxu1 %v9937_v4  ;;  %v4902_v30 = vadd.f32 %v4901_v23, %v9993_v54  ;;  %5195 = vmatprep.subr.bf16.mxu0 %v3776_v12  ;;  %v2160_v54 = vld [vmem:[#allocation7 + $0x1098] sm:$0xff]  ;;  %v3711_v12 = vunpack.c.l.s8.bf16 %v2159_v59  ;;  %v3952_v19 = vunpack.c.h.s8.bf16 %v2272_v10  ;;  %v2271_v20 = vld [vmem:[#allocation7 + $0x1410] sm:$0xff] }
 0x295   :  { %v4903_v36 = vpop.f32.mrf.mxu0  ;;  %5236 = vmatprep.subr.bf16.mxu1 %v4032_v17  ;;  %v4944_v41 = vpop.f32.mrf.mxu1  ;;  %v3728_v58 = vunpack.c.h.s8.bf16 %v2160_v54  ;;  %v3712_v56 = vunpack.c.l.s8.bf16 %v2160_v54  ;;  %v2143_v17 = vld [vmem:[#allocation7 + $0x1010] sm:$0xff]  ;;  %v3680_v23 = vunpack.c.l.s8.bf16 %v2144_v6  ;;  %v3903_v54 = vunpack.c.l.s8.bf16 %v2255_v31 }
 0x296   :  { %v10003_v39 = vadd.f32 %v4942_v32, %v4902_v30  ;;  %5196 = vmatpush1.bf16.msra.mxu0 %v3775_v22  ;;  %v3695_v21 = vunpack.c.h.s8.bf16 %v2143_v17  ;;  %v3951_v22 = vunpack.c.h.s8.bf16 %v2271_v20  ;;  %v3679_v30 = vunpack.c.l.s8.bf16 %v2143_v17  ;;  %v2383_v41 = vld [vmem:[#allocation7 + $0x1790] sm:$0xff] }
 0x297   :  { %5237 = vmatpush1.bf16.msra.mxu1 %v4031_v27  ;;  %v4904_v46 = vpop.f32.mrf.mxu0  ;;  %5197 = vmatprep.subr.bf16.mxu0 %v3760_v24  ;;  %v4945_v49 = vpop.f32.mrf.mxu1  ;;  %v3936_v27 = vunpack.c.l.s8.bf16 %v2272_v10  ;;  %v2256_v24 = vld [vmem:[#allocation7 + $0x1398] sm:$0xff]  ;;  %v3935_v32 = vunpack.c.l.s8.bf16 %v2271_v20  ;;  %v4176_v36 = vunpack.c.h.s8.bf16 %v2384_v26  ;;  %v4159_v55 = vunpack.c.l.s8.bf16 %v2383_v41  ;;  %v2367_v59 = vld [vmem:[#allocation7 + $0x1710] sm:$0xff] }
 0x298   :  { %5238 = vmatprep.subr.bf16.mxu1 %v4016_v0  ;;  %v3920_v0 = vunpack.c.h.s8.bf16 %v2256_v24  ;;  %v4175_v46 = vunpack.c.h.s8.bf16 %v2383_v41  ;;  %v2240_v49 = vld [vmem:[#allocation7 + $0x1318] sm:$0xff]  ;;  %v4143_v61 = vunpack.c.h.s8.bf16 %v2367_v59  ;;  %v4127_v10 = vunpack.c.l.s8.bf16 %v2367_v59  ;;  %v2351_v17 = vld [vmem:[#allocation7 + $0x1690] sm:$0xff] }
 0x299   :  { %v4111_v20 = vunpack.c.h.s8.bf16 %v2351_v17 }
 0x29a   :  { %5198 = vmatpush1.bf16.msra.mxu0 %v3759_v37  ;;  %v3919_v37 = vunpack.c.h.s8.bf16 %v2255_v31  ;;  %v2335_v31 = vld [vmem:[#allocation7 + $0x1610] sm:$0xff] }
 0x29b   :  { %5239 = vmatpush1.bf16.msra.mxu1 %v4015_v40  ;;  %5199 = vmatprep.subr.bf16.mxu0 %v3744_v51  ;;  %v3904_v40 = vunpack.c.l.s8.bf16 %v2256_v24  ;;  %v4160_v51 = vunpack.c.l.s8.bf16 %v2384_v26  ;;  %v4095_v26 = vunpack.c.l.s8.bf16 %v2351_v17  ;;  %v4079_v41 = vunpack.c.h.s8.bf16 %v2335_v31  ;;  %v2431_v17 = vld [vmem:[#allocation7 + $0x1910] sm:$0xff] }
 0x29c   :  { %5240 = vmatprep.subr.bf16.mxu1 %v4000_v50  ;;  %v2368_v50 = vld [vmem:[#allocation7 + $0x1718] sm:$0xff] }
 0x29e   :  { %5200 = vmatpush1.bf16.msra.mxu0 %v3743_v43  ;;  %v3888_v43 = vunpack.c.h.s8.bf16 %v2240_v49 }
 0x29f   :  { %5241 = vmatpush1.bf16.msra.mxu1 %v3999_v7  ;;  %5201 = vmatprep.subr.bf16.mxu0 %v3728_v58  ;;  %v2239_v7 = vld [vmem:[#allocation7 + $0x1310] sm:$0xff]  ;;  %v4144_v58 = vunpack.c.h.s8.bf16 %v2368_v50 }
 0x2a0   :  { %5242 = vmatprep.subr.bf16.mxu1 %v3984_v60  ;;  %v3887_v60 = vunpack.c.h.s8.bf16 %v2239_v7  ;;  %v3871_v6 = vunpack.c.l.s8.bf16 %v2239_v7  ;;  %v2575_v7 = vld [vmem:[#allocation7 + $0x1d90] sm:$0xff] }
 0x2a1   :  { %v4559_v59 = vunpack.c.h.s8.bf16 %v2575_v7 }
 0x2a2   :  { %5202 = vmatpush1.bf16.msra.mxu0 %v3727_v52  ;;  %v3872_v52 = vunpack.c.l.s8.bf16 %v2240_v49 }
 0x2a3   :  { %5243 = vmatpush1.bf16.msra.mxu1 %v3983_v62  ;;  %5203 = vmatprep.subr.bf16.mxu0 %v3712_v56  ;;  %v4128_v62 = vunpack.c.l.s8.bf16 %v2368_v50  ;;  %v2224_v56 = vld [vmem:[#allocation7 + $0x1298] sm:$0xff]  ;;  %v4063_v50 = vunpack.c.l.s8.bf16 %v2335_v31 }
 0x2a4   :  { %5244 = vmatprep.subr.bf16.mxu1 %v3968_v3  ;;  %v2352_v3 = vld [vmem:[#allocation7 + $0x1698] sm:$0xff] }
 0x2a6   :  { %5204 = vmatpush1.bf16.msra.mxu0 %v3711_v12  ;;  %v3856_v12 = vunpack.c.h.s8.bf16 %v2224_v56 }
 0x2a7   :  { %5245 = vmatpush1.bf16.msra.mxu1 %v3967_v13  ;;  %5205 = vmatprep.subr.bf16.mxu0 %v3696_v16  ;;  %v2223_v13 = vld [vmem:[#allocation7 + $0x1290] sm:$0xff]  ;;  %v4112_v16 = vunpack.c.h.s8.bf16 %v2352_v3 }
 0x2a8   :  { %5246 = vmatprep.subr.bf16.mxu1 %v3952_v19  ;;  %v3855_v19 = vunpack.c.h.s8.bf16 %v2223_v13  ;;  %v3839_v24 = vunpack.c.l.s8.bf16 %v2223_v13  ;;  %v4543_v13 = vunpack.c.l.s8.bf16 %v2575_v7 }
 0x2aa   :  { %5206 = vmatpush1.bf16.msra.mxu0 %v3695_v21  ;;  %v3840_v21 = vunpack.c.l.s8.bf16 %v2224_v56  ;;  %v2560_v56 = vld [vmem:[#allocation7 + $0x1d18] sm:$0xff] }
 0x2ab   :  { %5247 = vmatpush1.bf16.msra.mxu1 %v3951_v22  ;;  %5207 = vmatprep.subr.bf16.mxu0 %v3680_v23  ;;  %v4096_v22 = vunpack.c.l.s8.bf16 %v2352_v3  ;;  %v2208_v23 = vld [vmem:[#allocation7 + $0x1218] sm:$0xff] }
 0x2ac   :  { %5248 = vmatprep.subr.bf16.mxu1 %v3936_v27  ;;  %v2336_v27 = vld [vmem:[#allocation7 + $0x1618] sm:$0xff] }
 0x2ae   :  { %5208 = vmatpush1.bf16.msra.mxu0 %v3679_v30  ;;  %v3824_v30 = vunpack.c.h.s8.bf16 %v2208_v23 }
 0x2af   :  { %5249 = vmatpush1.bf16.msra.mxu1 %v3935_v32  ;;  %5209 = vmatprep.subr.bf16.mxu0 %v3920_v0  ;;  %v2207_v32 = vld [vmem:[#allocation7 + $0x1210] sm:$0xff]  ;;  %v4080_v0 = vunpack.c.h.s8.bf16 %v2336_v27 }
 0x2b0   :  { %5250 = vmatprep.subr.bf16.mxu1 %v4176_v36  ;;  %v3823_v36 = vunpack.c.h.s8.bf16 %v2207_v32  ;;  %v3807_v49 = vunpack.c.l.s8.bf16 %v2207_v32 }
 0x2b2   :  { %5210 = vmatpush2.bf16.msra.mxu0 %v3919_v37  ;;  %v3808_v37 = vunpack.c.l.s8.bf16 %v2208_v23 }
 0x2b3   :  { %5251 = vmatpush2.bf16.msra.mxu1 %v4175_v46  ;;  %5211 = vmatprep.subr.bf16.mxu0 %v3904_v40  ;;  %v4064_v46 = vunpack.c.l.s8.bf16 %v2336_v27  ;;  %v2448_v40 = vld [vmem:[#allocation7 + $0x1998] sm:$0xff] }
 0x2b4   :  { %5252 = vmatprep.subr.bf16.mxu1 %v4160_v51  ;;  %v2576_v51 = vld [vmem:[#allocation7 + $0x1d98] sm:$0xff] }
 0x2b6   :  { %5212 = vmatpush2.bf16.msra.mxu0 %v3903_v54  ;;  %v4304_v54 = vunpack.c.h.s8.bf16 %v2448_v40 }
 0x2b7   :  { %5253 = vmatpush2.bf16.msra.mxu1 %v4159_v55  ;;  %5213 = vmatprep.subr.bf16.mxu0 %v3888_v43  ;;  %v2447_v55 = vld [vmem:[#allocation7 + $0x1990] sm:$0xff]  ;;  %v4560_v43 = vunpack.c.h.s8.bf16 %v2576_v51 }
 0x2b8   :  { %5254 = vmatprep.subr.bf16.mxu1 %v4144_v58  ;;  %v4303_v58 = vunpack.c.h.s8.bf16 %v2447_v55 }
 0x2ba   :  { %5214 = vmatpush2.bf16.msra.mxu0 %v3887_v60  ;;  %v4288_v60 = vunpack.c.l.s8.bf16 %v2448_v40 }
 0x2bb   :  { %5255 = vmatpush2.bf16.msra.mxu1 %v4143_v61  ;;  %5215 = vmatprep.subr.bf16.mxu0 %v3872_v52  ;;  %v2432_v61 = vld [vmem:[#allocation7 + $0x1918] sm:$0xff] }
 0x2bc   :  { %5256 = vmatprep.subr.bf16.mxu1 %v4128_v62  ;;  %v4544_v62 = vunpack.c.l.s8.bf16 %v2576_v51  ;;  %v2415_v51 = vld [vmem:[#allocation7 + $0x1890] sm:$0xff] }
 0x2be   :  { %5216 = vmatpush2.bf16.msra.mxu0 %v3871_v6 }
 0x2bf   :  { %5257 = vmatpush2.bf16.msra.mxu1 %v4127_v10  ;;  %5217 = vmatprep.subr.bf16.mxu0 %v3856_v12  ;;  %v4287_v10 = vunpack.c.l.s8.bf16 %v2447_v55 }
 0x2c0   :  { %5258 = vmatprep.subr.bf16.mxu1 %v4112_v16  ;;  %v4272_v16 = vunpack.c.h.s8.bf16 %v2432_v61 }
 0x2c2   :  { %5218 = vmatpush2.bf16.msra.mxu0 %v3855_v19 }
 0x2c3   :  { %5259 = vmatpush2.bf16.msra.mxu1 %v4111_v20  ;;  %5219 = vmatprep.subr.bf16.mxu0 %v3840_v21 }
 0x2c4   :  { %5260 = vmatprep.subr.bf16.mxu1 %v4096_v22  ;;  %v2559_v22 = vld [vmem:[#allocation7 + $0x1d10] sm:$0xff] }
 0x2c5   :  { %v4527_v32 = vunpack.c.h.s8.bf16 %v2559_v22 }
 0x2c6   :  { %5220 = vmatpush2.bf16.msra.mxu0 %v3839_v24 }
 0x2c7   :  { %5261 = vmatpush2.bf16.msra.mxu1 %v4095_v26  ;;  %5221 = vmatprep.subr.bf16.mxu0 %v3824_v30  ;;  %v4271_v26 = vunpack.c.h.s8.bf16 %v2431_v17 }
 0x2c8   :  { %5262 = vmatprep.subr.bf16.mxu1 %v4080_v0  ;;  %v4256_v0 = vunpack.c.l.s8.bf16 %v2432_v61 }
 0x2ca   :  { %5222 = vmatpush2.bf16.msra.mxu0 %v3823_v36  ;;  %v4512_v36 = vunpack.c.l.s8.bf16 %v2560_v56 }
 0x2cb   :  { %5263 = vmatpush2.bf16.msra.mxu1 %v4079_v41  ;;  %5223 = vmatprep.subr.bf16.mxu0 %v3808_v37  ;;  %v2544_v41 = vld [vmem:[#allocation7 + $0x1c98] sm:$0xff]  ;;  %v4255_v37 = vunpack.c.l.s8.bf16 %v2431_v17 }
 0x2cc   :  { %5264 = vmatprep.subr.bf16.mxu1 %v4064_v46  ;;  %v4511_v46 = vunpack.c.l.s8.bf16 %v2559_v22  ;;  %v4480_v7 = vunpack.c.l.s8.bf16 %v2544_v41  ;;  %v2640_v17 = vld [vmem:[#allocation7 + $0x1f98] sm:$0xff]  ;;  %v2511_v22 = vld [vmem:[#allocation7 + $0x1b90] sm:$0xff] }
 0x2ce   :  { %5224 = vmatpush2.bf16.msra.mxu0 %v3807_v49  ;;  %v4496_v49 = vunpack.c.h.s8.bf16 %v2544_v41 }
 0x2cf   :  { %5265 = vmatpush2.bf16.msra.mxu1 %v4063_v50  ;;  %5275 = vmatprep.subr.bf16.mxu0 %v4304_v54  ;;  %v2543_v50 = vld [vmem:[#allocation7 + $0x1c90] sm:$0xff]  ;;  %v4239_v54 = vunpack.c.h.s8.bf16 %v2415_v51 }
 0x2d0   :  { %5316 = vmatprep.subr.bf16.mxu1 %v4560_v43  ;;  %v4495_v55 = vunpack.c.h.s8.bf16 %v2543_v50  ;;  %v4479_v61 = vunpack.c.l.s8.bf16 %v2543_v50 }
 0x2d1   :  { %v4981_v52 = vpop.f32.mrf.mxu0  ;;  %5226 = vmatmul.mubr.bf16.vlgmr.msra.gmra.mxu0 %v9955_v53  ;;  %v5022_v6 = vpop.f32.mrf.mxu1 }
 0x2d2   :  { %v4982_v3 = vadd.f32 %v4981_v52, %v9999_v29  ;;  %5267 = vmatmul.mubr.bf16.vlgmr.msra.gmra.mxu1 %v9957_v57  ;;  %5276 = vmatpush1.bf16.msra.mxu0 %v4303_v58  ;;  %v4528_v29 = vunpack.c.h.s8.bf16 %v2560_v56  ;;  %v2400_v58 = vld [vmem:[#allocation7 + $0x1818] sm:$0xff] }
 0x2d3   :  { %5307 = vmatprep.mubr.bf16.mxu0 %v9960_v2  ;;  %5317 = vmatpush1.bf16.msra.mxu1 %v4559_v59  ;;  %v4983_v12 = vpop.f32.mrf.mxu0  ;;  %v5024_v21 = vpop.f32.mrf.mxu1  ;;  %v2528_v59 = vld [vmem:[#allocation7 + $0x1c18] sm:$0xff]  ;;  %v4208_v52 = vunpack.c.h.s8.bf16 %v2400_v58 }
 0x2d4   :  { %v10009_v19 = vadd.f32 %v5022_v6, %v4982_v3  ;;  %5348 = vmatprep.mubr.bf16.mxu1 %v9963_v9  ;;  %v4984_v20 = vadd.f32 %v4983_v12, %v10003_v39  ;;  %5277 = vmatprep.subr.bf16.mxu0 %v4288_v60  ;;  %v2416_v39 = vld [vmem:[#allocation7 + $0x1898] sm:$0xff]  ;;  %v4223_v60 = vunpack.c.l.s8.bf16 %v2415_v51  ;;  %v4464_v56 = vunpack.c.h.s8.bf16 %v2528_v59  ;;  %v2527_v3 = vld [vmem:[#allocation7 + $0x1c10] sm:$0xff] }
 0x2d5   :  { %v4985_v23 = vpop.f32.mrf.mxu0  ;;  %5318 = vmatprep.subr.bf16.mxu1 %v4544_v62  ;;  %v5026_v24 = vpop.f32.mrf.mxu1  ;;  %v4240_v40 = vunpack.c.h.s8.bf16 %v2416_v39  ;;  %v4224_v43 = vunpack.c.l.s8.bf16 %v2416_v39  ;;  %v2399_v62 = vld [vmem:[#allocation7 + $0x1810] sm:$0xff]  ;;  %v4192_v12 = vunpack.c.l.s8.bf16 %v2400_v58  ;;  %v4415_v39 = vunpack.c.l.s8.bf16 %v2511_v22 }
 0x2d6   :  { %v10013_v27 = vadd.f32 %v5024_v21, %v4984_v20  ;;  %5278 = vmatpush1.bf16.msra.mxu0 %v4287_v10  ;;  %v4207_v6 = vunpack.c.h.s8.bf16 %v2399_v62  ;;  %v4463_v10 = vunpack.c.h.s8.bf16 %v2527_v3  ;;  %v4191_v20 = vunpack.c.l.s8.bf16 %v2399_v62  ;;  %v2639_v24 = vld [vmem:[#allocation7 + $0x1f90] sm:$0xff] }
 0x2d7   :  { %5319 = vmatpush1.bf16.msra.mxu1 %v4543_v13  ;;  %v4986_v30 = vpop.f32.mrf.mxu0  ;;  %5279 = vmatprep.subr.bf16.mxu0 %v4272_v16  ;;  %v5027_v31 = vpop.f32.mrf.mxu1  ;;  %v4448_v13 = vunpack.c.l.s8.bf16 %v2528_v59  ;;  %v2512_v16 = vld [vmem:[#allocation7 + $0x1b98] sm:$0xff]  ;;  %v4447_v21 = vunpack.c.l.s8.bf16 %v2527_v3  ;;  %v4688_v23 = vunpack.c.h.s8.bf16 %v2640_v17  ;;  %v4671_v41 = vunpack.c.l.s8.bf16 %v2639_v24  ;;  %v2623_v51 = vld [vmem:[#allocation7 + $0x1f10] sm:$0xff] }
 0x2d8   :  { %5320 = vmatprep.subr.bf16.mxu1 %v4528_v29  ;;  %v4432_v29 = vunpack.c.h.s8.bf16 %v2512_v16  ;;  %v4687_v30 = vunpack.c.h.s8.bf16 %v2639_v24  ;;  %v2496_v31 = vld [vmem:[#allocation7 + $0x1b18] sm:$0xff]  ;;  %v4655_v50 = vunpack.c.h.s8.bf16 %v2623_v51  ;;  %v4639_v59 = vunpack.c.l.s8.bf16 %v2623_v51  ;;  %v2607_v62 = vld [vmem:[#allocation7 + $0x1e90] sm:$0xff] }
 0x2d9   :  { %v4623_v3 = vunpack.c.h.s8.bf16 %v2607_v62 }
 0x2da   :  { %5280 = vmatpush1.bf16.msra.mxu0 %v4271_v26  ;;  %v4431_v26 = vunpack.c.h.s8.bf16 %v2511_v22  ;;  %v2591_v22 = vld [vmem:[#allocation7 + $0x1e10] sm:$0xff] }
 0x2db   :  { %5321 = vmatpush1.bf16.msra.mxu1 %v4527_v32  ;;  %5281 = vmatprep.subr.bf16.mxu0 %v4256_v0  ;;  %v4416_v32 = vunpack.c.l.s8.bf16 %v2512_v16  ;;  %v4672_v0 = vunpack.c.l.s8.bf16 %v2640_v17  ;;  %v4607_v17 = vunpack.c.l.s8.bf16 %v2607_v62  ;;  %v4591_v24 = vunpack.c.h.s8.bf16 %v2591_v22  ;;  %v1665_v62 = vld [vmem:[#allocation7 + $0x120] sm:$0xff] }
 0x2dc   :  { %5322 = vmatprep.subr.bf16.mxu1 %v4512_v36  ;;  %v2624_v36 = vld [vmem:[#allocation7 + $0x1f18] sm:$0xff] }
 0x2de   :  { %5282 = vmatpush1.bf16.msra.mxu0 %v4255_v37  ;;  %v4400_v37 = vunpack.c.h.s8.bf16 %v2496_v31 }
 0x2df   :  { %5323 = vmatpush1.bf16.msra.mxu1 %v4511_v46  ;;  %5283 = vmatprep.subr.bf16.mxu0 %v4240_v40  ;;  %v2495_v46 = vld [vmem:[#allocation7 + $0x1b10] sm:$0xff]  ;;  %v4656_v40 = vunpack.c.h.s8.bf16 %v2624_v36 }
 0x2e0   :  { %5324 = vmatprep.subr.bf16.mxu1 %v4496_v49  ;;  %v4399_v49 = vunpack.c.h.s8.bf16 %v2495_v46  ;;  %v4383_v58 = vunpack.c.l.s8.bf16 %v2495_v46  ;;  %v1809_v46 = vld [vmem:[#allocation7 + $0x5a0] sm:$0xff] }
 0x2e1   :  { %v3025_v51 = vunpack.c.h.s8.bf16 %v1809_v46 }
 0x2e2   :  { %5284 = vmatpush1.bf16.msra.mxu0 %v4239_v54  ;;  %v4384_v54 = vunpack.c.l.s8.bf16 %v2496_v31 }
 0x2e3   :  { %5325 = vmatpush1.bf16.msra.mxu1 %v4495_v55  ;;  %5285 = vmatprep.subr.bf16.mxu0 %v4224_v43  ;;  %v4640_v55 = vunpack.c.l.s8.bf16 %v2624_v36  ;;  %v2480_v43 = vld [vmem:[#allocation7 + $0x1a98] sm:$0xff]  ;;  %v4575_v36 = vunpack.c.l.s8.bf16 %v2591_v22 }
 0x2e4   :  { %5326 = vmatprep.subr.bf16.mxu1 %v4480_v7  ;;  %v2608_v7 = vld [vmem:[#allocation7 + $0x1e98] sm:$0xff] }
 0x2e6   :  { %5286 = vmatpush1.bf16.msra.mxu0 %v4223_v60  ;;  %v4368_v60 = vunpack.c.h.s8.bf16 %v2480_v43 }
 0x2e7   :  { %5327 = vmatpush1.bf16.msra.mxu1 %v4479_v61  ;;  %5287 = vmatprep.subr.bf16.mxu0 %v4208_v52  ;;  %v2479_v61 = vld [vmem:[#allocation7 + $0x1a90] sm:$0xff]  ;;  %v4624_v52 = vunpack.c.h.s8.bf16 %v2608_v7 }
 0x2e8   :  { %5328 = vmatprep.subr.bf16.mxu1 %v4464_v56  ;;  %v4367_v56 = vunpack.c.h.s8.bf16 %v2479_v61  ;;  %v4351_v16 = vunpack.c.l.s8.bf16 %v2479_v61  ;;  %v3009_v61 = vunpack.c.l.s8.bf16 %v1809_v46 }
 0x2ea   :  { %5288 = vmatpush1.bf16.msra.mxu0 %v4207_v6  ;;  %v4352_v6 = vunpack.c.l.s8.bf16 %v2480_v43  ;;  %v1794_v43 = vld [vmem:[#allocation7 + $0x528] sm:$0xff] }
 0x2eb   :  { %5329 = vmatpush1.bf16.msra.mxu1 %v4463_v10  ;;  %5289 = vmatprep.subr.bf16.mxu0 %v4192_v12  ;;  %v4608_v10 = vunpack.c.l.s8.bf16 %v2608_v7  ;;  %v2464_v12 = vld [vmem:[#allocation7 + $0x1a18] sm:$0xff]  ;;  %v2978_v22 = vunpack.c.l.s8.bf16 %v1794_v43 }
 0x2ec   :  { %5330 = vmatprep.subr.bf16.mxu1 %v4448_v13  ;;  %v2592_v13 = vld [vmem:[#allocation7 + $0x1e18] sm:$0xff] }
 0x2ee   :  { %5290 = vmatpush1.bf16.msra.mxu0 %v4191_v20  ;;  %v4336_v20 = vunpack.c.h.s8.bf16 %v2464_v12 }
 0x2ef   :  { %5331 = vmatpush1.bf16.msra.mxu1 %v4447_v21  ;;  %5291 = vmatprep.subr.bf16.mxu0 %v4432_v29  ;;  %v2463_v21 = vld [vmem:[#allocation7 + $0x1a10] sm:$0xff]  ;;  %v4592_v29 = vunpack.c.h.s8.bf16 %v2592_v13 }
 0x2f0   :  { %5332 = vmatprep.subr.bf16.mxu1 %v4688_v23  ;;  %v4335_v23 = vunpack.c.h.s8.bf16 %v2463_v21  ;;  %v4319_v31 = vunpack.c.l.s8.bf16 %v2463_v21 }
 0x2f2   :  { %5292 = vmatpush2.bf16.msra.mxu0 %v4431_v26  ;;  %v4320_v26 = vunpack.c.l.s8.bf16 %v2464_v12 }
 0x2f3   :  { %5333 = vmatpush2.bf16.msra.mxu1 %v4687_v30  ;;  %5293 = vmatprep.subr.bf16.mxu0 %v4416_v32  ;;  %v4576_v30 = vunpack.c.l.s8.bf16 %v2592_v13  ;;  %v1682_v32 = vld [vmem:[#allocation7 + $0x1a8] sm:$0xff] }
 0x2f4   :  { %5334 = vmatprep.subr.bf16.mxu1 %v4672_v0  ;;  %v1810_v0 = vld [vmem:[#allocation7 + $0x5a8] sm:$0xff] }
 0x2f6   :  { %5294 = vmatpush2.bf16.msra.mxu0 %v4415_v39  ;;  %v2770_v39 = vunpack.c.h.s8.bf16 %v1682_v32 }
 0x2f7   :  { %5335 = vmatpush2.bf16.msra.mxu1 %v4671_v41  ;;  %5295 = vmatprep.subr.bf16.mxu0 %v4400_v37  ;;  %v1681_v41 = vld [vmem:[#allocation7 + $0x1a0] sm:$0xff]  ;;  %v3026_v37 = vunpack.c.h.s8.bf16 %v1810_v0 }
 0x2f8   :  { %5336 = vmatprep.subr.bf16.mxu1 %v4656_v40  ;;  %v2769_v40 = vunpack.c.h.s8.bf16 %v1681_v41 }
 0x2fa   :  { %5296 = vmatpush2.bf16.msra.mxu0 %v4399_v49  ;;  %v2754_v49 = vunpack.c.l.s8.bf16 %v1682_v32 }
 0x2fb   :  { %5337 = vmatpush2.bf16.msra.mxu1 %v4655_v50  ;;  %5297 = vmatprep.subr.bf16.mxu0 %v4384_v54  ;;  %v1666_v50 = vld [vmem:[#allocation7 + $0x128] sm:$0xff] }
 0x2fc   :  { %5338 = vmatprep.subr.bf16.mxu1 %v4640_v55  ;;  %v3010_v55 = vunpack.c.l.s8.bf16 %v1810_v0  ;;  %v2722_v21 = vunpack.c.l.s8.bf16 %v1666_v50  ;;  %v1649_v0 = vld [vmem:[#allocation7 + $0xa0] sm:$0xff] }
 0x2fe   :  { %5298 = vmatpush2.bf16.msra.mxu0 %v4383_v58  ;;  %v2753_v58 = vunpack.c.l.s8.bf16 %v1681_v41 }
 0x2ff   :  { %5339 = vmatpush2.bf16.msra.mxu1 %v4639_v59  ;;  %5299 = vmatprep.subr.bf16.mxu0 %v4368_v60 }
 0x300   :  { %5340 = vmatprep.subr.bf16.mxu1 %v4624_v52  ;;  %v2738_v52 = vunpack.c.h.s8.bf16 %v1666_v50 }
 0x302   :  { %5300 = vmatpush2.bf16.msra.mxu0 %v4367_v56 }
 0x303   :  { %5341 = vmatpush2.bf16.msra.mxu1 %v4623_v3  ;;  %5301 = vmatprep.subr.bf16.mxu0 %v4352_v6  ;;  %v2994_v3 = vunpack.c.h.s8.bf16 %v1794_v43  ;;  %v1793_v6 = vld [vmem:[#allocation7 + $0x520] sm:$0xff] }
 0x304   :  { %5342 = vmatprep.subr.bf16.mxu1 %v4608_v10 }
 0x306   :  { %5302 = vmatpush2.bf16.msra.mxu0 %v4351_v16  ;;  %v2737_v16 = vunpack.c.h.s8.bf16 %v1665_v62 }
 0x307   :  { %5343 = vmatpush2.bf16.msra.mxu1 %v4607_v17  ;;  %5303 = vmatprep.subr.bf16.mxu0 %v4336_v20  ;;  %v2993_v20 = vunpack.c.h.s8.bf16 %v1793_v6 }
 0x308   :  { %5344 = vmatprep.subr.bf16.mxu1 %v4592_v29 }
 0x30a   :  { %5304 = vmatpush2.bf16.msra.mxu0 %v4335_v23  ;;  %v1650_v23 = vld [vmem:[#allocation7 + $0xa8] sm:$0xff] }
 0x30b   :  { %5345 = vmatpush2.bf16.msra.mxu1 %v4591_v24  ;;  %5305 = vmatprep.subr.bf16.mxu0 %v4320_v26  ;;  %v1778_v24 = vld [vmem:[#allocation7 + $0x4a8] sm:$0xff]  ;;  %v2721_v26 = vunpack.c.l.s8.bf16 %v1665_v62  ;;  %v2706_v32 = vunpack.c.h.s8.bf16 %v1650_v23 }
 0x30c   :  { %5346 = vmatprep.subr.bf16.mxu1 %v4576_v30  ;;  %v2977_v30 = vunpack.c.l.s8.bf16 %v1793_v6  ;;  %v2946_v46 = vunpack.c.l.s8.bf16 %v1778_v24  ;;  %v1746_v62 = vld [vmem:[#allocation7 + $0x3a8] sm:$0xff] }
 0x30e   :  { %5306 = vmatpush2.bf16.msra.mxu0 %v4319_v31  ;;  %v2962_v31 = vunpack.c.h.s8.bf16 %v1778_v24  ;;  %v1858_v24 = vld [vmem:[#allocation7 + $0x728] sm:$0xff] }
 0x30f   :  { %5347 = vmatpush2.bf16.msra.mxu1 %v4575_v36  ;;  %5357 = vmatprep.subr.bf16.mxu0 %v2770_v39  ;;  %v1777_v36 = vld [vmem:[#allocation7 + $0x4a0] sm:$0xff]  ;;  %v2705_v39 = vunpack.c.h.s8.bf16 %v1649_v0 }
 0x310   :  { %5398 = vmatprep.subr.bf16.mxu1 %v3026_v37  ;;  %v2961_v41 = vunpack.c.h.s8.bf16 %v1777_v36  ;;  %v2690_v37 = vunpack.c.l.s8.bf16 %v1650_v23  ;;  %v2945_v50 = vunpack.c.l.s8.bf16 %v1777_v36  ;;  %v1730_v23 = vld [vmem:[#allocation7 + $0x328] sm:$0xff]  ;;  %v1857_v36 = vld [vmem:[#allocation7 + $0x720] sm:$0xff] }
 0x311   :  { %v5063_v54 = vpop.f32.mrf.mxu0  ;;  %5308 = vmatmul.mubr.bf16.vlgmr.msra.gmra.mxu0 %v9973_v33 }
 0x312   :  { %v5104_v7 = vpop.f32.mrf.mxu1  ;;  %5349 = vmatmul.mubr.bf16.vlgmr.msra.gmra.mxu1 %v9975_v35  ;;  %5358 = vmatpush1.bf16.msra.mxu0 %v2769_v40  ;;  %v1634_v40 = vld [vmem:[#allocation7 + $0x28] sm:$0xff] }
 0x313   :  { %v10017_v59 = vadd.f32 %v5104_v7, %v5063_v54  ;;  %5389 = vmatprep.mubr.bf16.mxu0 %v9877_v45  ;;  %5399 = vmatpush1.bf16.msra.mxu1 %v3025_v51  ;;  %v5065_v60 = vpop.f32.mrf.mxu0  ;;  %v1762_v51 = vld [vmem:[#allocation7 + $0x428] sm:$0xff]  ;;  %v2674_v54 = vunpack.c.h.s8.bf16 %v1634_v40  ;;  %v1761_v7 = vld [vmem:[#allocation7 + $0x420] sm:$0xff] }
 0x314   :  { %5430 = vmatprep.mubr.bf16.mxu1 %v9881_v48  ;;  %v5106_v56 = vpop.f32.mrf.mxu1  ;;  %5359 = vmatprep.subr.bf16.mxu0 %v2754_v49  ;;  %v2689_v49 = vunpack.c.l.s8.bf16 %v1649_v0  ;;  %v2930_v43 = vunpack.c.h.s8.bf16 %v1762_v51  ;;  %v2913_v6 = vunpack.c.l.s8.bf16 %v1761_v7  ;;  %v1729_v0 = vld [vmem:[#allocation7 + $0x320] sm:$0xff] }
 0x315   :  { %v10021_v10 = vadd.f32 %v5106_v56, %v5065_v60  ;;  %v5067_v12 = vpop.f32.mrf.mxu0  ;;  %5400 = vmatprep.subr.bf16.mxu1 %v3010_v55  ;;  %v1633_v55 = vld [vmem:[#allocation7 + $0x20] sm:$0xff]  ;;  %v2929_v60 = vunpack.c.h.s8.bf16 %v1761_v7  ;;  %v1874_v56 = vld [vmem:[#allocation7 + $0x7a8] sm:$0xff] }
 0x316   :  { %v5108_v13 = vpop.f32.mrf.mxu1  ;;  %5360 = vmatpush1.bf16.msra.mxu0 %v2753_v58  ;;  %v2673_v58 = vunpack.c.h.s8.bf16 %v1633_v55  ;;  %v2898_v12 = vunpack.c.h.s8.bf16 %v1746_v62  ;;  %v1841_v7 = vld [vmem:[#allocation7 + $0x6a0] sm:$0xff] }
 0x317   :  { %5401 = vmatpush1.bf16.msra.mxu1 %v3009_v61  ;;  %v5068_v17 = vpop.f32.mrf.mxu0  ;;  %5361 = vmatprep.subr.bf16.mxu0 %v2738_v52  ;;  %v2658_v61 = vunpack.c.l.s8.bf16 %v1634_v40  ;;  %v2914_v52 = vunpack.c.l.s8.bf16 %v1762_v51  ;;  %v1745_v13 = vld [vmem:[#allocation7 + $0x3a0] sm:$0xff]  ;;  %v1714_v40 = vld [vmem:[#allocation7 + $0x2a8] sm:$0xff] }
 0x318   :  { %v5109_v29 = vpop.f32.mrf.mxu1  ;;  %5402 = vmatprep.subr.bf16.mxu1 %v2994_v3  ;;  %v2657_v3 = vunpack.c.l.s8.bf16 %v1633_v55  ;;  %v1873_v17 = vld [vmem:[#allocation7 + $0x7a0] sm:$0xff]  ;;  %v1842_v51 = vld [vmem:[#allocation7 + $0x6a8] sm:$0xff] }
 0x319   :  { %v2882_v29 = vunpack.c.l.s8.bf16 %v1746_v62  ;;  %v1713_v55 = vld [vmem:[#allocation7 + $0x2a0] sm:$0xff]  ;;  %v1698_v62 = vld [vmem:[#allocation7 + $0x228] sm:$0xff] }
 0x31a   :  { %5362 = vmatpush1.bf16.msra.mxu0 %v2737_v16  ;;  %v3154_v16 = vunpack.c.h.s8.bf16 %v1874_v56 }
 0x31b   :  { %5403 = vmatpush1.bf16.msra.mxu1 %v2993_v20  ;;  %5363 = vmatprep.subr.bf16.mxu0 %v2722_v21  ;;  %v2897_v20 = vunpack.c.h.s8.bf16 %v1745_v13  ;;  %v3153_v21 = vunpack.c.h.s8.bf16 %v1873_v17 }
 0x31c   :  { %5404 = vmatprep.subr.bf16.mxu1 %v2978_v22  ;;  %v3138_v22 = vunpack.c.l.s8.bf16 %v1874_v56  ;;  %v1826_v56 = vld [vmem:[#allocation7 + $0x628] sm:$0xff] }
 0x31e   :  { %5364 = vmatpush1.bf16.msra.mxu0 %v2721_v26  ;;  %v2881_v26 = vunpack.c.l.s8.bf16 %v1745_v13  ;;  %v1697_v13 = vld [vmem:[#allocation7 + $0x220] sm:$0xff] }
 0x31f   :  { %5405 = vmatpush1.bf16.msra.mxu1 %v2977_v30  ;;  %5365 = vmatprep.subr.bf16.mxu0 %v2706_v32  ;;  %v3137_v30 = vunpack.c.l.s8.bf16 %v1873_v17  ;;  %v2866_v32 = vunpack.c.h.s8.bf16 %v1730_v23  ;;  %v1825_v17 = vld [vmem:[#allocation7 + $0x620] sm:$0xff] }
 0x320   :  { %5406 = vmatprep.subr.bf16.mxu1 %v2962_v31  ;;  %v3122_v31 = vunpack.c.h.s8.bf16 %v1858_v24 }
 0x322   :  { %5366 = vmatpush1.bf16.msra.mxu0 %v2705_v39  ;;  %v2865_v39 = vunpack.c.h.s8.bf16 %v1729_v0 }
 0x323   :  { %5407 = vmatpush1.bf16.msra.mxu1 %v2961_v41  ;;  %5367 = vmatprep.subr.bf16.mxu0 %v2690_v37  ;;  %v3121_v41 = vunpack.c.h.s8.bf16 %v1857_v36  ;;  %v2850_v37 = vunpack.c.l.s8.bf16 %v1730_v23  ;;  %v1938_v23 = vld [vmem:[#allocation7 + $0x9a8] sm:$0xff] }
 0x324   :  { %5408 = vmatprep.subr.bf16.mxu1 %v2946_v46  ;;  %v3106_v46 = vunpack.c.l.s8.bf16 %v1858_v24  ;;  %v2066_v24 = vld [vmem:[#allocation7 + $0xda8] sm:$0xff] }
 0x326   :  { %5368 = vmatpush1.bf16.msra.mxu0 %v2689_v49  ;;  %v2849_v49 = vunpack.c.l.s8.bf16 %v1729_v0  ;;  %v1937_v0 = vld [vmem:[#allocation7 + $0x9a0] sm:$0xff] }
 0x327   :  { %5409 = vmatpush1.bf16.msra.mxu1 %v2945_v50  ;;  %5369 = vmatprep.subr.bf16.mxu0 %v2674_v54  ;;  %v3105_v50 = vunpack.c.l.s8.bf16 %v1857_v36  ;;  %v2834_v54 = vunpack.c.h.s8.bf16 %v1714_v40  ;;  %v2065_v36 = vld [vmem:[#allocation7 + $0xda0] sm:$0xff] }
 0x328   :  { %5410 = vmatprep.subr.bf16.mxu1 %v2930_v43  ;;  %v3090_v43 = vunpack.c.h.s8.bf16 %v1842_v51 }
 0x32a   :  { %5370 = vmatpush1.bf16.msra.mxu0 %v2673_v58  ;;  %v2833_v58 = vunpack.c.h.s8.bf16 %v1713_v55 }
 0x32b   :  { %5411 = vmatpush1.bf16.msra.mxu1 %v2929_v60  ;;  %5371 = vmatprep.subr.bf16.mxu0 %v2658_v61  ;;  %v3089_v60 = vunpack.c.h.s8.bf16 %v1841_v7  ;;  %v2818_v61 = vunpack.c.l.s8.bf16 %v1714_v40 }
 0x32c   :  { %5412 = vmatprep.subr.bf16.mxu1 %v2914_v52  ;;  %v3074_v52 = vunpack.c.l.s8.bf16 %v1842_v51  ;;  %v3522_v51 = vunpack.c.l.s8.bf16 %v2066_v24 }
 0x32e   :  { %5372 = vmatpush1.bf16.msra.mxu0 %v2657_v3  ;;  %v2817_v3 = vunpack.c.l.s8.bf16 %v1713_v55  ;;  %v3265_v55 = vunpack.c.l.s8.bf16 %v1937_v0 }
 0x32f   :  { %5413 = vmatpush1.bf16.msra.mxu1 %v2913_v6  ;;  %5373 = vmatprep.subr.bf16.mxu0 %v2898_v12  ;;  %v3073_v6 = vunpack.c.l.s8.bf16 %v1841_v7  ;;  %v2802_v12 = vunpack.c.h.s8.bf16 %v1698_v62  ;;  %v3521_v7 = vunpack.c.l.s8.bf16 %v2065_v36 }
 0x330   :  { %5414 = vmatprep.subr.bf16.mxu1 %v3154_v16  ;;  %v3058_v16 = vunpack.c.h.s8.bf16 %v1826_v56 }
 0x332   :  { %5374 = vmatpush2.bf16.msra.mxu0 %v2897_v20  ;;  %v2801_v20 = vunpack.c.h.s8.bf16 %v1697_v13 }
 0x333   :  { %5415 = vmatpush2.bf16.msra.mxu1 %v3153_v21  ;;  %5375 = vmatprep.subr.bf16.mxu0 %v2882_v29  ;;  %v3057_v21 = vunpack.c.h.s8.bf16 %v1825_v17  ;;  %v2786_v29 = vunpack.c.l.s8.bf16 %v1698_v62 }
 0x334   :  { %5416 = vmatprep.subr.bf16.mxu1 %v3138_v22  ;;  %v3042_v22 = vunpack.c.l.s8.bf16 %v1826_v56  ;;  %v2049_v56 = vld [vmem:[#allocation7 + $0xd20] sm:$0xff] }
 0x336   :  { %5376 = vmatpush2.bf16.msra.mxu0 %v2881_v26  ;;  %v2785_v26 = vunpack.c.l.s8.bf16 %v1697_v13 }
 0x337   :  { %5417 = vmatpush2.bf16.msra.mxu1 %v3137_v30  ;;  %5377 = vmatprep.subr.bf16.mxu0 %v2866_v32  ;;  %v3041_v30 = vunpack.c.l.s8.bf16 %v1825_v17  ;;  %v3282_v32 = vunpack.c.h.s8.bf16 %v1938_v23  ;;  %v3505_v17 = vunpack.c.h.s8.bf16 %v2049_v56 }
 0x338   :  { %5418 = vmatprep.subr.bf16.mxu1 %v3122_v31  ;;  %v3538_v31 = vunpack.c.h.s8.bf16 %v2066_v24  ;;  %v3489_v24 = vunpack.c.l.s8.bf16 %v2049_v56 }
 0x33a   :  { %5378 = vmatpush2.bf16.msra.mxu0 %v2865_v39  ;;  %v3281_v39 = vunpack.c.h.s8.bf16 %v1937_v0  ;;  %v2033_v0 = vld [vmem:[#allocation7 + $0xca0] sm:$0xff] }
 0x33b   :  { %5419 = vmatpush2.bf16.msra.mxu1 %v3121_v41  ;;  %5379 = vmatprep.subr.bf16.mxu0 %v2850_v37  ;;  %v3537_v41 = vunpack.c.h.s8.bf16 %v2065_v36  ;;  %v3266_v37 = vunpack.c.l.s8.bf16 %v1938_v23  ;;  %v3473_v36 = vunpack.c.h.s8.bf16 %v2033_v0 }
 0x33c   :  { %5420 = vmatprep.subr.bf16.mxu1 %v3106_v46  ;;  %v1922_v46 = vld [vmem:[#allocation7 + $0x928] sm:$0xff] }
 0x33e   :  { %5380 = vmatpush2.bf16.msra.mxu0 %v2849_v49  ;;  %v2050_v49 = vld [vmem:[#allocation7 + $0xd28] sm:$0xff] }
 0x33f   :  { %5421 = vmatpush2.bf16.msra.mxu1 %v3105_v50  ;;  %5381 = vmatprep.subr.bf16.mxu0 %v2834_v54 }
 0x340   :  { %5422 = vmatprep.subr.bf16.mxu1 %v3090_v43 }
 0x342   :  { %5382 = vmatpush2.bf16.msra.mxu0 %v2833_v58  ;;  %v3250_v58 = vunpack.c.h.s8.bf16 %v1922_v46 }
 0x343   :  { %5423 = vmatpush2.bf16.msra.mxu1 %v3089_v60  ;;  %5383 = vmatprep.subr.bf16.mxu0 %v2818_v61  ;;  %v1921_v60 = vld [vmem:[#allocation7 + $0x920] sm:$0xff] }
 0x344   :  { %5424 = vmatprep.subr.bf16.mxu1 %v3074_v52  ;;  %v3249_v13 = vunpack.c.h.s8.bf16 %v1921_v60  ;;  %v3233_v23 = vunpack.c.l.s8.bf16 %v1921_v60 }
 0x346   :  { %5384 = vmatpush2.bf16.msra.mxu0 %v2817_v3 }
 0x347   :  { %5425 = vmatpush2.bf16.msra.mxu1 %v3073_v6  ;;  %5385 = vmatprep.subr.bf16.mxu0 %v2802_v12 }
 0x348   :  { %5426 = vmatprep.subr.bf16.mxu1 %v3058_v16 }
 0x34a   :  { %5386 = vmatpush2.bf16.msra.mxu0 %v2801_v20  ;;  %v3234_v20 = vunpack.c.l.s8.bf16 %v1922_v46  ;;  %v2018_v46 = vld [vmem:[#allocation7 + $0xc28] sm:$0xff] }
 0x34b   :  { %5427 = vmatpush2.bf16.msra.mxu1 %v3057_v21  ;;  %5387 = vmatprep.subr.bf16.mxu0 %v2786_v29  ;;  %v3490_v29 = vunpack.c.l.s8.bf16 %v2050_v49  ;;  %v3426_v60 = vunpack.c.l.s8.bf16 %v2018_v46 }
 0x34c   :  { %5428 = vmatprep.subr.bf16.mxu1 %v3042_v22  ;;  %v2034_v22 = vld [vmem:[#allocation7 + $0xca8] sm:$0xff] }
 0x34e   :  { %5388 = vmatpush2.bf16.msra.mxu0 %v2785_v26 }
 0x34f   :  { %5429 = vmatpush2.bf16.msra.mxu1 %v3041_v30  ;;  %5439 = vmatprep.subr.bf16.mxu0 %v3282_v32  ;;  %v1905_v30 = vld [vmem:[#allocation7 + $0x8a0] sm:$0xff]  ;;  %v3474_v32 = vunpack.c.h.s8.bf16 %v2034_v22 }
 0x350   :  { %5480 = vmatprep.subr.bf16.mxu1 %v3538_v31  ;;  %v3217_v31 = vunpack.c.h.s8.bf16 %v1905_v30 }
 0x351   :  { %v5145_v40 = vpop.f32.mrf.mxu0  ;;  %5390 = vmatmul.mubr.bf16.vlgmr.msra.gmra.mxu0 %v9879_v47 }
 0x352   :  { %v5146_v50 = vadd.f32 %v5145_v40, %v10017_v59  ;;  %v5186_v54 = vpop.f32.mrf.mxu1  ;;  %5431 = vmatmul.mubr.bf16.vlgmr.msra.gmra.mxu1 %v9875_v44  ;;  %5440 = vmatpush1.bf16.msra.mxu0 %v3281_v39  ;;  %v3506_v59 = vunpack.c.h.s8.bf16 %v2050_v49  ;;  %v3201_v40 = vunpack.c.l.s8.bf16 %v1905_v30  ;;  %v1985_v30 = vld [vmem:[#allocation7 + $0xb20] sm:$0xff] }
 0x353   :  { %5471 = vmatprep.mubr.bf16.mxu0 %v9901_v15  ;;  %5481 = vmatpush1.bf16.msra.mxu1 %v3537_v41  ;;  %v5147_v43 = vpop.f32.mrf.mxu0  ;;  %v3458_v41 = vunpack.c.l.s8.bf16 %v2034_v22  ;;  %v2114_v22 = vld [vmem:[#allocation7 + $0xf28] sm:$0xff] }
 0x354   :  { %v10027_v61 = vadd.f32 %v5186_v54, %v5146_v50  ;;  %5512 = vmatprep.mubr.bf16.mxu1 %v9903_v18  ;;  %v5148_v52 = vadd.f32 %v5147_v43, %v10021_v10  ;;  %v5188_v62 = vpop.f32.mrf.mxu1  ;;  %5441 = vmatprep.subr.bf16.mxu0 %v3266_v37  ;;  %v1906_v10 = vld [vmem:[#allocation7 + $0x8a8] sm:$0xff]  ;;  %v1889_v50 = vld [vmem:[#allocation7 + $0x820] sm:$0xff]  ;;  %v3442_v54 = vunpack.c.h.s8.bf16 %v2018_v46 }
 0x355   :  { %v5149_v3 = vpop.f32.mrf.mxu0  ;;  %5482 = vmatprep.subr.bf16.mxu1 %v3522_v51  ;;  %v3218_v26 = vunpack.c.h.s8.bf16 %v1906_v10  ;;  %v3202_v39 = vunpack.c.l.s8.bf16 %v1906_v10  ;;  %v1890_v37 = vld [vmem:[#allocation7 + $0x828] sm:$0xff]  ;;  %v3457_v51 = vunpack.c.l.s8.bf16 %v2033_v0  ;;  %v3185_v43 = vunpack.c.h.s8.bf16 %v1889_v50  ;;  %v2113_v0 = vld [vmem:[#allocation7 + $0xf20] sm:$0xff] }
 0x356   :  { %v10031_v6 = vadd.f32 %v5188_v62, %v5148_v52  ;;  %v5190_v12 = vpop.f32.mrf.mxu1  ;;  %5442 = vmatpush1.bf16.msra.mxu0 %v3265_v55  ;;  %v3186_v49 = vunpack.c.h.s8.bf16 %v1890_v37  ;;  %v2017_v55 = vld [vmem:[#allocation7 + $0xc20] sm:$0xff]  ;;  %v2002_v52 = vld [vmem:[#allocation7 + $0xba8] sm:$0xff] }
 0x357   :  { %5483 = vmatpush1.bf16.msra.mxu1 %v3521_v7  ;;  %v5150_v16 = vpop.f32.mrf.mxu0  ;;  %5443 = vmatprep.subr.bf16.mxu0 %v3250_v58  ;;  %v3441_v7 = vunpack.c.h.s8.bf16 %v2017_v55  ;;  %v3170_v58 = vunpack.c.l.s8.bf16 %v1890_v37  ;;  %v2130_v62 = vld [vmem:[#allocation7 + $0xfa8] sm:$0xff]  ;;  %v3425_v56 = vunpack.c.l.s8.bf16 %v2017_v55  ;;  %v3410_v3 = vunpack.c.h.s8.bf16 %v2002_v52  ;;  %v2001_v12 = vld [vmem:[#allocation7 + $0xba0] sm:$0xff] }
 0x358   :  { %v5191_v21 = vpop.f32.mrf.mxu1  ;;  %5484 = vmatprep.subr.bf16.mxu1 %v3506_v59  ;;  %v3169_v59 = vunpack.c.l.s8.bf16 %v1889_v50  ;;  %v2129_v16 = vld [vmem:[#allocation7 + $0xfa0] sm:$0xff]  ;;  %v1986_v10 = vld [vmem:[#allocation7 + $0xb28] sm:$0xff] }
 0x359   :  { %v3394_v21 = vunpack.c.l.s8.bf16 %v2002_v52  ;;  %v1970_v37 = vld [vmem:[#allocation7 + $0xaa8] sm:$0xff]  ;;  %v1969_v50 = vld [vmem:[#allocation7 + $0xaa0] sm:$0xff] }
 0x35a   :  { %5444 = vmatpush1.bf16.msra.mxu0 %v3249_v13  ;;  %v3666_v13 = vunpack.c.h.s8.bf16 %v2130_v62  ;;  %v2098_v46 = vld [vmem:[#allocation7 + $0xea8] sm:$0xff]  ;;  %v2097_v55 = vld [vmem:[#allocation7 + $0xea0] sm:$0xff] }
 0x35b   :  { %5485 = vmatpush1.bf16.msra.mxu1 %v3505_v17  ;;  %5445 = vmatprep.subr.bf16.mxu0 %v3234_v20  ;;  %v3409_v17 = vunpack.c.h.s8.bf16 %v2001_v12  ;;  %v3665_v20 = vunpack.c.h.s8.bf16 %v2129_v16  ;;  %v1954_v52 = vld [vmem:[#allocation7 + $0xa28] sm:$0xff] }
 0x35c   :  { %5486 = vmatprep.subr.bf16.mxu1 %v3490_v29  ;;  %v3650_v29 = vunpack.c.l.s8.bf16 %v2130_v62  ;;  %v2082_v62 = vld [vmem:[#allocation7 + $0xe28] sm:$0xff] }
 0x35e   :  { %5446 = vmatpush1.bf16.msra.mxu0 %v3233_v23  ;;  %v3393_v23 = vunpack.c.l.s8.bf16 %v2001_v12  ;;  %v1953_v12 = vld [vmem:[#allocation7 + $0xa20] sm:$0xff] }
 0x35f   :  { %5487 = vmatpush1.bf16.msra.mxu1 %v3489_v24  ;;  %5447 = vmatprep.subr.bf16.mxu0 %v3218_v26  ;;  %v3649_v24 = vunpack.c.l.s8.bf16 %v2129_v16  ;;  %v3378_v26 = vunpack.c.h.s8.bf16 %v1986_v10  ;;  %v2081_v16 = vld [vmem:[#allocation7 + $0xe20] sm:$0xff] }
 0x360   :  { %5488 = vmatprep.subr.bf16.mxu1 %v3474_v32  ;;  %v3634_v32 = vunpack.c.h.s8.bf16 %v2114_v22 }
 0x362   :  { %5448 = vmatpush1.bf16.msra.mxu0 %v3217_v31  ;;  %v3377_v31 = vunpack.c.h.s8.bf16 %v1985_v30 }
 0x363   :  { %5489 = vmatpush1.bf16.msra.mxu1 %v3473_v36  ;;  %5449 = vmatprep.subr.bf16.mxu0 %v3202_v39  ;;  %v3633_v36 = vunpack.c.h.s8.bf16 %v2113_v0  ;;  %v3362_v39 = vunpack.c.l.s8.bf16 %v1986_v10  ;;  %v2194_v10 = vld [vmem:[#allocation7 + $0x11a8] sm:$0xff] }
 0x364   :  { %5490 = vmatprep.subr.bf16.mxu1 %v3458_v41  ;;  %v3618_v41 = vunpack.c.l.s8.bf16 %v2114_v22  ;;  %v2322_v22 = vld [vmem:[#allocation7 + $0x15a8] sm:$0xff] }
 0x366   :  { %5450 = vmatpush1.bf16.msra.mxu0 %v3201_v40  ;;  %v3361_v40 = vunpack.c.l.s8.bf16 %v1985_v30  ;;  %v2193_v30 = vld [vmem:[#allocation7 + $0x11a0] sm:$0xff] }
 0x367   :  { %5491 = vmatpush1.bf16.msra.mxu1 %v3457_v51  ;;  %5451 = vmatprep.subr.bf16.mxu0 %v3186_v49  ;;  %v3617_v51 = vunpack.c.l.s8.bf16 %v2113_v0  ;;  %v3346_v49 = vunpack.c.h.s8.bf16 %v1970_v37  ;;  %v2321_v0 = vld [vmem:[#allocation7 + $0x15a0] sm:$0xff] }
 0x368   :  { %5492 = vmatprep.subr.bf16.mxu1 %v3442_v54  ;;  %v3602_v54 = vunpack.c.h.s8.bf16 %v2098_v46 }
 0x36a   :  { %5452 = vmatpush1.bf16.msra.mxu0 %v3185_v43  ;;  %v3345_v43 = vunpack.c.h.s8.bf16 %v1969_v50 }
 0x36b   :  { %5493 = vmatpush1.bf16.msra.mxu1 %v3441_v7  ;;  %5453 = vmatprep.subr.bf16.mxu0 %v3170_v58  ;;  %v3601_v7 = vunpack.c.h.s8.bf16 %v2097_v55  ;;  %v3330_v58 = vunpack.c.l.s8.bf16 %v1970_v37 }
 0x36c   :  { %5494 = vmatprep.subr.bf16.mxu1 %v3426_v60  ;;  %v3586_v60 = vunpack.c.l.s8.bf16 %v2098_v46  ;;  %v4034_v46 = vunpack.c.l.s8.bf16 %v2322_v22 }
 0x36e   :  { %5454 = vmatpush1.bf16.msra.mxu0 %v3169_v59  ;;  %v3329_v59 = vunpack.c.l.s8.bf16 %v1969_v50  ;;  %v3777_v50 = vunpack.c.l.s8.bf16 %v2193_v30 }
 0x36f   :  { %5495 = vmatpush1.bf16.msra.mxu1 %v3425_v56  ;;  %5455 = vmatprep.subr.bf16.mxu0 %v3410_v3  ;;  %v3585_v56 = vunpack.c.l.s8.bf16 %v2097_v55  ;;  %v3314_v3 = vunpack.c.h.s8.bf16 %v1954_v52  ;;  %v4033_v55 = vunpack.c.l.s8.bf16 %v2321_v0 }
 0x370   :  { %5496 = vmatprep.subr.bf16.mxu1 %v3666_v13  ;;  %v3570_v13 = vunpack.c.h.s8.bf16 %v2082_v62 }
 0x372   :  { %5456 = vmatpush2.bf16.msra.mxu0 %v3409_v17  ;;  %v3313_v17 = vunpack.c.h.s8.bf16 %v1953_v12 }
 0x373   :  { %5497 = vmatpush2.bf16.msra.mxu1 %v3665_v20  ;;  %5457 = vmatprep.subr.bf16.mxu0 %v3394_v21  ;;  %v3569_v20 = vunpack.c.h.s8.bf16 %v2081_v16  ;;  %v3298_v21 = vunpack.c.l.s8.bf16 %v1954_v52 }
 0x374   :  { %5498 = vmatprep.subr.bf16.mxu1 %v3650_v29  ;;  %v3554_v29 = vunpack.c.l.s8.bf16 %v2082_v62  ;;  %v2305_v62 = vld [vmem:[#allocation7 + $0x1520] sm:$0xff] }
 0x376   :  { %5458 = vmatpush2.bf16.msra.mxu0 %v3393_v23  ;;  %v3297_v23 = vunpack.c.l.s8.bf16 %v1953_v12 }
 0x377   :  { %5499 = vmatpush2.bf16.msra.mxu1 %v3649_v24  ;;  %5459 = vmatprep.subr.bf16.mxu0 %v3378_v26  ;;  %v3553_v24 = vunpack.c.l.s8.bf16 %v2081_v16  ;;  %v3794_v26 = vunpack.c.h.s8.bf16 %v2194_v10  ;;  %v4017_v16 = vunpack.c.h.s8.bf16 %v2305_v62 }
 0x378   :  { %5500 = vmatprep.subr.bf16.mxu1 %v3634_v32  ;;  %v4050_v32 = vunpack.c.h.s8.bf16 %v2322_v22  ;;  %v4001_v22 = vunpack.c.l.s8.bf16 %v2305_v62 }
 0x37a   :  { %5460 = vmatpush2.bf16.msra.mxu0 %v3377_v31  ;;  %v3793_v31 = vunpack.c.h.s8.bf16 %v2193_v30  ;;  %v2289_v30 = vld [vmem:[#allocation7 + $0x14a0] sm:$0xff] }
 0x37b   :  { %5501 = vmatpush2.bf16.msra.mxu1 %v3633_v36  ;;  %5461 = vmatprep.subr.bf16.mxu0 %v3362_v39  ;;  %v4049_v36 = vunpack.c.h.s8.bf16 %v2321_v0  ;;  %v3778_v39 = vunpack.c.l.s8.bf16 %v2194_v10  ;;  %v3985_v0 = vunpack.c.h.s8.bf16 %v2289_v30 }
 0x37c   :  { %5502 = vmatprep.subr.bf16.mxu1 %v3618_v41  ;;  %v2178_v41 = vld [vmem:[#allocation7 + $0x1128] sm:$0xff] }
 0x37e   :  { %5462 = vmatpush2.bf16.msra.mxu0 %v3361_v40  ;;  %v2306_v40 = vld [vmem:[#allocation7 + $0x1528] sm:$0xff] }
 0x37f   :  { %5503 = vmatpush2.bf16.msra.mxu1 %v3617_v51  ;;  %5463 = vmatprep.subr.bf16.mxu0 %v3346_v49 }
 0x380   :  { %5504 = vmatprep.subr.bf16.mxu1 %v3602_v54 }
 0x382   :  { %5464 = vmatpush2.bf16.msra.mxu0 %v3345_v43  ;;  %v3762_v43 = vunpack.c.h.s8.bf16 %v2178_v41 }
 0x383   :  { %5505 = vmatpush2.bf16.msra.mxu1 %v3601_v7  ;;  %5465 = vmatprep.subr.bf16.mxu0 %v3330_v58  ;;  %v2177_v7 = vld [vmem:[#allocation7 + $0x1120] sm:$0xff] }
 0x384   :  { %5506 = vmatprep.subr.bf16.mxu1 %v3586_v60  ;;  %v3761_v12 = vunpack.c.h.s8.bf16 %v2177_v7  ;;  %v3745_v10 = vunpack.c.l.s8.bf16 %v2177_v7 }
 0x386   :  { %5466 = vmatpush2.bf16.msra.mxu0 %v3329_v59 }
 0x387   :  { %5507 = vmatpush2.bf16.msra.mxu1 %v3585_v56  ;;  %5467 = vmatprep.subr.bf16.mxu0 %v3314_v3 }
 0x388   :  { %5508 = vmatprep.subr.bf16.mxu1 %v3570_v13 }
 0x38a   :  { %5468 = vmatpush2.bf16.msra.mxu0 %v3313_v17  ;;  %v3746_v17 = vunpack.c.l.s8.bf16 %v2178_v41  ;;  %v2274_v41 = vld [vmem:[#allocation7 + $0x1428] sm:$0xff] }
 0x38b   :  { %5509 = vmatpush2.bf16.msra.mxu1 %v3569_v20  ;;  %5469 = vmatprep.subr.bf16.mxu0 %v3298_v21  ;;  %v4002_v21 = vunpack.c.l.s8.bf16 %v2306_v40  ;;  %v3938_v7 = vunpack.c.l.s8.bf16 %v2274_v41 }
 0x38c   :  { %5510 = vmatprep.subr.bf16.mxu1 %v3554_v29  ;;  %v2290_v29 = vld [vmem:[#allocation7 + $0x14a8] sm:$0xff] }
 0x38e   :  { %5470 = vmatpush2.bf16.msra.mxu0 %v3297_v23 }
 0x38f   :  { %5511 = vmatpush2.bf16.msra.mxu1 %v3553_v24  ;;  %5521 = vmatprep.subr.bf16.mxu0 %v3794_v26  ;;  %v2161_v24 = vld [vmem:[#allocation7 + $0x10a0] sm:$0xff]  ;;  %v3986_v26 = vunpack.c.h.s8.bf16 %v2290_v29 }
 0x390   :  { %5562 = vmatprep.subr.bf16.mxu1 %v4050_v32  ;;  %v3729_v32 = vunpack.c.h.s8.bf16 %v2161_v24 }
 0x391   :  { %v5227_v37 = vpop.f32.mrf.mxu0  ;;  %5472 = vmatmul.mubr.bf16.vlgmr.msra.gmra.mxu0 %v9919_v63 }
 0x392   :  { %v5228_v51 = vadd.f32 %v5227_v37, %v10027_v61  ;;  %v5268_v49 = vpop.f32.mrf.mxu1  ;;  %5513 = vmatmul.mubr.bf16.vlgmr.msra.gmra.mxu1 %v9921_v1  ;;  %5522 = vmatpush1.bf16.msra.mxu0 %v3793_v31  ;;  %v4018_v61 = vunpack.c.h.s8.bf16 %v2306_v40  ;;  %v3713_v37 = vunpack.c.l.s8.bf16 %v2161_v24  ;;  %v2241_v24 = vld [vmem:[#allocation7 + $0x1320] sm:$0xff] }
 0x393   :  { %5553 = vmatprep.mubr.bf16.mxu0 %v9935_v34  ;;  %5563 = vmatpush1.bf16.msra.mxu1 %v4049_v36  ;;  %v5229_v54 = vpop.f32.mrf.mxu0  ;;  %v3970_v36 = vunpack.c.l.s8.bf16 %v2290_v29  ;;  %v2370_v29 = vld [vmem:[#allocation7 + $0x1728] sm:$0xff] }
 0x394   :  { %v10037_v58 = vadd.f32 %v5268_v49, %v5228_v51  ;;  %5594 = vmatprep.mubr.bf16.mxu1 %v9937_v4  ;;  %v5230_v60 = vadd.f32 %v5229_v54, %v10031_v6  ;;  %v5270_v52 = vpop.f32.mrf.mxu1  ;;  %5523 = vmatprep.subr.bf16.mxu0 %v3778_v39  ;;  %v2162_v6 = vld [vmem:[#allocation7 + $0x10a8] sm:$0xff]  ;;  %v2145_v51 = vld [vmem:[#allocation7 + $0x1020] sm:$0xff]  ;;  %v3954_v49 = vunpack.c.h.s8.bf16 %v2274_v41 }
 0x395   :  { %v5231_v59 = vpop.f32.mrf.mxu0  ;;  %5564 = vmatprep.subr.bf16.mxu1 %v4034_v46  ;;  %v3730_v23 = vunpack.c.h.s8.bf16 %v2162_v6  ;;  %v3714_v31 = vunpack.c.l.s8.bf16 %v2162_v6  ;;  %v2146_v39 = vld [vmem:[#allocation7 + $0x1028] sm:$0xff]  ;;  %v3969_v46 = vunpack.c.l.s8.bf16 %v2289_v30  ;;  %v3697_v54 = vunpack.c.h.s8.bf16 %v2145_v51  ;;  %v2369_v30 = vld [vmem:[#allocation7 + $0x1720] sm:$0xff] }
 0x396   :  { %v10041_v56 = vadd.f32 %v5270_v52, %v5230_v60  ;;  %v5272_v3 = vpop.f32.mrf.mxu1  ;;  %5524 = vmatpush1.bf16.msra.mxu0 %v3777_v50  ;;  %v3698_v40 = vunpack.c.h.s8.bf16 %v2146_v39  ;;  %v2273_v50 = vld [vmem:[#allocation7 + $0x1420] sm:$0xff]  ;;  %v2258_v60 = vld [vmem:[#allocation7 + $0x13a8] sm:$0xff] }
 0x397   :  { %5565 = vmatpush1.bf16.msra.mxu1 %v4033_v55  ;;  %v5232_v13 = vpop.f32.mrf.mxu0  ;;  %5525 = vmatprep.subr.bf16.mxu0 %v3762_v43  ;;  %v3953_v55 = vunpack.c.h.s8.bf16 %v2273_v50  ;;  %v3682_v43 = vunpack.c.l.s8.bf16 %v2146_v39  ;;  %v2386_v52 = vld [vmem:[#allocation7 + $0x17a8] sm:$0xff]  ;;  %v3937_v62 = vunpack.c.l.s8.bf16 %v2273_v50  ;;  %v3922_v59 = vunpack.c.h.s8.bf16 %v2258_v60  ;;  %v2257_v3 = vld [vmem:[#allocation7 + $0x13a0] sm:$0xff] }
 0x398   :  { %v5273_v20 = vpop.f32.mrf.mxu1  ;;  %5566 = vmatprep.subr.bf16.mxu1 %v4018_v61  ;;  %v3681_v61 = vunpack.c.l.s8.bf16 %v2145_v51  ;;  %v2385_v13 = vld [vmem:[#allocation7 + $0x17a0] sm:$0xff]  ;;  %v2242_v6 = vld [vmem:[#allocation7 + $0x1328] sm:$0xff] }
 0x399   :  { %v3906_v20 = vunpack.c.l.s8.bf16 %v2258_v60  ;;  %v2226_v39 = vld [vmem:[#allocation7 + $0x12a8] sm:$0xff]  ;;  %v2225_v51 = vld [vmem:[#allocation7 + $0x12a0] sm:$0xff] }
 0x39a   :  { %5526 = vmatpush1.bf16.msra.mxu0 %v3761_v12  ;;  %v4178_v12 = vunpack.c.h.s8.bf16 %v2386_v52  ;;  %v2354_v41 = vld [vmem:[#allocation7 + $0x16a8] sm:$0xff]  ;;  %v2353_v50 = vld [vmem:[#allocation7 + $0x16a0] sm:$0xff] }
 0x39b   :  { %5567 = vmatpush1.bf16.msra.mxu1 %v4017_v16  ;;  %5527 = vmatprep.subr.bf16.mxu0 %v3746_v17  ;;  %v3921_v16 = vunpack.c.h.s8.bf16 %v2257_v3  ;;  %v4177_v17 = vunpack.c.h.s8.bf16 %v2385_v13  ;;  %v2210_v60 = vld [vmem:[#allocation7 + $0x1228] sm:$0xff] }
 0x39c   :  { %5568 = vmatprep.subr.bf16.mxu1 %v4002_v21  ;;  %v4162_v21 = vunpack.c.l.s8.bf16 %v2386_v52  ;;  %v2338_v52 = vld [vmem:[#allocation7 + $0x1628] sm:$0xff] }
 0x39e   :  { %5528 = vmatpush1.bf16.msra.mxu0 %v3745_v10  ;;  %v3905_v10 = vunpack.c.l.s8.bf16 %v2257_v3  ;;  %v2209_v3 = vld [vmem:[#allocation7 + $0x1220] sm:$0xff] }
 0x39f   :  { %5569 = vmatpush1.bf16.msra.mxu1 %v4001_v22  ;;  %5529 = vmatprep.subr.bf16.mxu0 %v3730_v23  ;;  %v4161_v22 = vunpack.c.l.s8.bf16 %v2385_v13  ;;  %v3890_v23 = vunpack.c.h.s8.bf16 %v2242_v6  ;;  %v2337_v13 = vld [vmem:[#allocation7 + $0x1620] sm:$0xff] }
 0x3a0   :  { %5570 = vmatprep.subr.bf16.mxu1 %v3986_v26  ;;  %v4146_v26 = vunpack.c.h.s8.bf16 %v2370_v29 }
 0x3a2   :  { %5530 = vmatpush1.bf16.msra.mxu0 %v3729_v32  ;;  %v3889_v32 = vunpack.c.h.s8.bf16 %v2241_v24 }
 0x3a3   :  { %5571 = vmatpush1.bf16.msra.mxu1 %v3985_v0  ;;  %5531 = vmatprep.subr.bf16.mxu0 %v3714_v31  ;;  %v4145_v0 = vunpack.c.h.s8.bf16 %v2369_v30  ;;  %v3874_v31 = vunpack.c.l.s8.bf16 %v2242_v6  ;;  %v2450_v6 = vld [vmem:[#allocation7 + $0x19a8] sm:$0xff] }
 0x3a4   :  { %5572 = vmatprep.subr.bf16.mxu1 %v3970_v36  ;;  %v4130_v36 = vunpack.c.l.s8.bf16 %v2370_v29  ;;  %v2578_v29 = vld [vmem:[#allocation7 + $0x1da8] sm:$0xff] }
 0x3a6   :  { %5532 = vmatpush1.bf16.msra.mxu0 %v3713_v37  ;;  %v3873_v37 = vunpack.c.l.s8.bf16 %v2241_v24  ;;  %v2449_v24 = vld [vmem:[#allocation7 + $0x19a0] sm:$0xff] }
 0x3a7   :  { %5573 = vmatpush1.bf16.msra.mxu1 %v3969_v46  ;;  %5533 = vmatprep.subr.bf16.mxu0 %v3698_v40  ;;  %v4129_v46 = vunpack.c.l.s8.bf16 %v2369_v30  ;;  %v3858_v40 = vunpack.c.h.s8.bf16 %v2226_v39  ;;  %v2577_v30 = vld [vmem:[#allocation7 + $0x1da0] sm:$0xff] }
 0x3a8   :  { %5574 = vmatprep.subr.bf16.mxu1 %v3954_v49  ;;  %v4114_v49 = vunpack.c.h.s8.bf16 %v2354_v41 }
 0x3aa   :  { %5534 = vmatpush1.bf16.msra.mxu0 %v3697_v54  ;;  %v3857_v54 = vunpack.c.h.s8.bf16 %v2225_v51 }
 0x3ab   :  { %5575 = vmatpush1.bf16.msra.mxu1 %v3953_v55  ;;  %5535 = vmatprep.subr.bf16.mxu0 %v3682_v43  ;;  %v4113_v55 = vunpack.c.h.s8.bf16 %v2353_v50  ;;  %v3842_v43 = vunpack.c.l.s8.bf16 %v2226_v39 }
 0x3ac   :  { %5576 = vmatprep.subr.bf16.mxu1 %v3938_v7  ;;  %v4098_v7 = vunpack.c.l.s8.bf16 %v2354_v41  ;;  %v4546_v41 = vunpack.c.l.s8.bf16 %v2578_v29 }
 0x3ae   :  { %5536 = vmatpush1.bf16.msra.mxu0 %v3681_v61  ;;  %v3841_v61 = vunpack.c.l.s8.bf16 %v2225_v51  ;;  %v4289_v51 = vunpack.c.l.s8.bf16 %v2449_v24 }
 0x3af   :  { %5577 = vmatpush1.bf16.msra.mxu1 %v3937_v62  ;;  %5537 = vmatprep.subr.bf16.mxu0 %v3922_v59  ;;  %v4097_v62 = vunpack.c.l.s8.bf16 %v2353_v50  ;;  %v3826_v59 = vunpack.c.h.s8.bf16 %v2210_v60  ;;  %v4545_v50 = vunpack.c.l.s8.bf16 %v2577_v30 }
 0x3b0   :  { %5578 = vmatprep.subr.bf16.mxu1 %v4178_v12  ;;  %v4082_v12 = vunpack.c.h.s8.bf16 %v2338_v52 }
 0x3b2   :  { %5538 = vmatpush2.bf16.msra.mxu0 %v3921_v16  ;;  %v3825_v16 = vunpack.c.h.s8.bf16 %v2209_v3 }
 0x3b3   :  { %5579 = vmatpush2.bf16.msra.mxu1 %v4177_v17  ;;  %5539 = vmatprep.subr.bf16.mxu0 %v3906_v20  ;;  %v4081_v17 = vunpack.c.h.s8.bf16 %v2337_v13  ;;  %v3810_v20 = vunpack.c.l.s8.bf16 %v2210_v60 }
 0x3b4   :  { %5580 = vmatprep.subr.bf16.mxu1 %v4162_v21  ;;  %v4066_v21 = vunpack.c.l.s8.bf16 %v2338_v52  ;;  %v2561_v52 = vld [vmem:[#allocation7 + $0x1d20] sm:$0xff] }
 0x3b6   :  { %5540 = vmatpush2.bf16.msra.mxu0 %v3905_v10  ;;  %v3809_v10 = vunpack.c.l.s8.bf16 %v2209_v3 }
 0x3b7   :  { %5581 = vmatpush2.bf16.msra.mxu1 %v4161_v22  ;;  %5541 = vmatprep.subr.bf16.mxu0 %v3890_v23  ;;  %v4065_v22 = vunpack.c.l.s8.bf16 %v2337_v13  ;;  %v4306_v23 = vunpack.c.h.s8.bf16 %v2450_v6  ;;  %v4529_v13 = vunpack.c.h.s8.bf16 %v2561_v52 }
 0x3b8   :  { %5582 = vmatprep.subr.bf16.mxu1 %v4146_v26  ;;  %v4562_v26 = vunpack.c.h.s8.bf16 %v2578_v29  ;;  %v4513_v29 = vunpack.c.l.s8.bf16 %v2561_v52 }
 0x3ba   :  { %5542 = vmatpush2.bf16.msra.mxu0 %v3889_v32  ;;  %v4305_v32 = vunpack.c.h.s8.bf16 %v2449_v24  ;;  %v2545_v24 = vld [vmem:[#allocation7 + $0x1ca0] sm:$0xff] }
 0x3bb   :  { %5583 = vmatpush2.bf16.msra.mxu1 %v4145_v0  ;;  %5543 = vmatprep.subr.bf16.mxu0 %v3874_v31  ;;  %v4561_v0 = vunpack.c.h.s8.bf16 %v2577_v30  ;;  %v4290_v31 = vunpack.c.l.s8.bf16 %v2450_v6  ;;  %v4497_v30 = vunpack.c.h.s8.bf16 %v2545_v24 }
 0x3bc   :  { %5584 = vmatprep.subr.bf16.mxu1 %v4130_v36  ;;  %v2434_v36 = vld [vmem:[#allocation7 + $0x1928] sm:$0xff] }
 0x3be   :  { %5544 = vmatpush2.bf16.msra.mxu0 %v3873_v37  ;;  %v2562_v37 = vld [vmem:[#allocation7 + $0x1d28] sm:$0xff] }
 0x3bf   :  { %5585 = vmatpush2.bf16.msra.mxu1 %v4129_v46  ;;  %5545 = vmatprep.subr.bf16.mxu0 %v3858_v40 }
 0x3c0   :  { %5586 = vmatprep.subr.bf16.mxu1 %v4114_v49 }
 0x3c2   :  { %5546 = vmatpush2.bf16.msra.mxu0 %v3857_v54  ;;  %v4274_v54 = vunpack.c.h.s8.bf16 %v2434_v36 }
 0x3c3   :  { %5587 = vmatpush2.bf16.msra.mxu1 %v4113_v55  ;;  %5547 = vmatprep.subr.bf16.mxu0 %v3842_v43  ;;  %v2433_v55 = vld [vmem:[#allocation7 + $0x1920] sm:$0xff] }
 0x3c4   :  { %5588 = vmatprep.subr.bf16.mxu1 %v4098_v7  ;;  %v4273_v3 = vunpack.c.h.s8.bf16 %v2433_v55  ;;  %v4257_v6 = vunpack.c.l.s8.bf16 %v2433_v55 }
 0x3c6   :  { %5548 = vmatpush2.bf16.msra.mxu0 %v3841_v61 }
 0x3c7   :  { %5589 = vmatpush2.bf16.msra.mxu1 %v4097_v62  ;;  %5549 = vmatprep.subr.bf16.mxu0 %v3826_v59 }
 0x3c8   :  { %5590 = vmatprep.subr.bf16.mxu1 %v4082_v12 }
 0x3ca   :  { %5550 = vmatpush2.bf16.msra.mxu0 %v3825_v16  ;;  %v4258_v16 = vunpack.c.l.s8.bf16 %v2434_v36  ;;  %v2530_v36 = vld [vmem:[#allocation7 + $0x1c28] sm:$0xff] }
 0x3cb   :  { %5591 = vmatpush2.bf16.msra.mxu1 %v4081_v17  ;;  %5551 = vmatprep.subr.bf16.mxu0 %v3810_v20  ;;  %v4514_v20 = vunpack.c.l.s8.bf16 %v2562_v37  ;;  %v4450_v55 = vunpack.c.l.s8.bf16 %v2530_v36 }
 0x3cc   :  { %5592 = vmatprep.subr.bf16.mxu1 %v4066_v21  ;;  %v2546_v21 = vld [vmem:[#allocation7 + $0x1ca8] sm:$0xff] }
 0x3ce   :  { %5552 = vmatpush2.bf16.msra.mxu0 %v3809_v10 }
 0x3cf   :  { %5593 = vmatpush2.bf16.msra.mxu1 %v4065_v22  ;;  %5603 = vmatprep.subr.bf16.mxu0 %v4306_v23  ;;  %v2417_v22 = vld [vmem:[#allocation7 + $0x18a0] sm:$0xff]  ;;  %v4498_v23 = vunpack.c.h.s8.bf16 %v2546_v21 }
 0x3d0   :  { %5644 = vmatprep.subr.bf16.mxu1 %v4562_v26  ;;  %v4241_v26 = vunpack.c.h.s8.bf16 %v2417_v22 }
 0x3d1   :  { %v5309_v39 = vpop.f32.mrf.mxu0  ;;  %5554 = vmatmul.mubr.bf16.vlgmr.msra.gmra.mxu0 %v9955_v53 }
 0x3d2   :  { %v5310_v46 = vadd.f32 %v5309_v39, %v10037_v58  ;;  %v5350_v40 = vpop.f32.mrf.mxu1  ;;  %5595 = vmatmul.mubr.bf16.vlgmr.msra.gmra.mxu1 %v9957_v57  ;;  %5604 = vmatpush1.bf16.msra.mxu0 %v4305_v32  ;;  %v4530_v58 = vunpack.c.h.s8.bf16 %v2562_v37  ;;  %v4225_v39 = vunpack.c.l.s8.bf16 %v2417_v22  ;;  %v2497_v22 = vld [vmem:[#allocation7 + $0x1b20] sm:$0xff] }
 0x3d3   :  { %5635 = vmatprep.mubr.bf16.mxu0 %v9960_v2  ;;  %5645 = vmatpush1.bf16.msra.mxu1 %v4561_v0  ;;  %v5311_v49 = vpop.f32.mrf.mxu0  ;;  %v4482_v0 = vunpack.c.l.s8.bf16 %v2546_v21  ;;  %v2626_v21 = vld [vmem:[#allocation7 + $0x1f28] sm:$0xff] }
 0x3d4   :  { %v10047_v43 = vadd.f32 %v5350_v40, %v5310_v46  ;;  %5676 = vmatprep.mubr.bf16.mxu1 %v9963_v9  ;;  %v5312_v7 = vadd.f32 %v5311_v49, %v10041_v56  ;;  %v5352_v60 = vpop.f32.mrf.mxu1  ;;  %5605 = vmatprep.subr.bf16.mxu0 %v4290_v31  ;;  %v2418_v56 = vld [vmem:[#allocation7 + $0x18a8] sm:$0xff]  ;;  %v2401_v46 = vld [vmem:[#allocation7 + $0x1820] sm:$0xff]  ;;  %v4466_v40 = vunpack.c.h.s8.bf16 %v2530_v36 }
 0x3d5   :  { %v5313_v61 = vpop.f32.mrf.mxu0  ;;  %5646 = vmatprep.subr.bf16.mxu1 %v4546_v41  ;;  %v4242_v10 = vunpack.c.h.s8.bf16 %v2418_v56  ;;  %v4226_v32 = vunpack.c.l.s8.bf16 %v2418_v56  ;;  %v2402_v31 = vld [vmem:[#allocation7 + $0x1828] sm:$0xff]  ;;  %v4481_v41 = vunpack.c.l.s8.bf16 %v2545_v24  ;;  %v4209_v49 = vunpack.c.h.s8.bf16 %v2401_v46  ;;  %v2625_v24 = vld [vmem:[#allocation7 + $0x1f20] sm:$0xff] }
 0x3d6   :  { %v10051_v62 = vadd.f32 %v5352_v60, %v5312_v7  ;;  %v5354_v59 = vpop.f32.mrf.mxu1  ;;  %5606 = vmatpush1.bf16.msra.mxu0 %v4289_v51  ;;  %v4210_v37 = vunpack.c.h.s8.bf16 %v2402_v31  ;;  %v2529_v51 = vld [vmem:[#allocation7 + $0x1c20] sm:$0xff]  ;;  %v2514_v7 = vld [vmem:[#allocation7 + $0x1ba8] sm:$0xff] }
 0x3d7   :  { %5647 = vmatpush1.bf16.msra.mxu1 %v4545_v50  ;;  %v5314_v12 = vpop.f32.mrf.mxu0  ;;  %5607 = vmatprep.subr.bf16.mxu0 %v4274_v54  ;;  %v4465_v50 = vunpack.c.h.s8.bf16 %v2529_v51  ;;  %v4194_v54 = vunpack.c.l.s8.bf16 %v2402_v31  ;;  %v2642_v60 = vld [vmem:[#allocation7 + $0x1fa8] sm:$0xff]  ;;  %v4449_v52 = vunpack.c.l.s8.bf16 %v2529_v51  ;;  %v4434_v61 = vunpack.c.h.s8.bf16 %v2514_v7  ;;  %v2513_v59 = vld [vmem:[#allocation7 + $0x1ba0] sm:$0xff] }
 0x3d8   :  { %v5355_v17 = vpop.f32.mrf.mxu1  ;;  %5648 = vmatprep.subr.bf16.mxu1 %v4530_v58  ;;  %v4193_v58 = vunpack.c.l.s8.bf16 %v2401_v46  ;;  %v2641_v12 = vld [vmem:[#allocation7 + $0x1fa0] sm:$0xff]  ;;  %v2498_v56 = vld [vmem:[#allocation7 + $0x1b28] sm:$0xff] }
 0x3d9   :  { %v4418_v17 = vunpack.c.l.s8.bf16 %v2514_v7  ;;  %v2482_v31 = vld [vmem:[#allocation7 + $0x1aa8] sm:$0xff]  ;;  %v2481_v46 = vld [vmem:[#allocation7 + $0x1aa0] sm:$0xff] }
 0x3da   :  { %5608 = vmatpush1.bf16.msra.mxu0 %v4273_v3  ;;  %v4690_v3 = vunpack.c.h.s8.bf16 %v2642_v60  ;;  %v2610_v36 = vld [vmem:[#allocation7 + $0x1ea8] sm:$0xff]  ;;  %v2609_v51 = vld [vmem:[#allocation7 + $0x1ea0] sm:$0xff] }
 0x3db   :  { %5649 = vmatpush1.bf16.msra.mxu1 %v4529_v13  ;;  %5609 = vmatprep.subr.bf16.mxu0 %v4258_v16  ;;  %v4433_v13 = vunpack.c.h.s8.bf16 %v2513_v59  ;;  %v4689_v16 = vunpack.c.h.s8.bf16 %v2641_v12  ;;  %v2466_v7 = vld [vmem:[#allocation7 + $0x1a28] sm:$0xff] }
 0x3dc   :  { %5650 = vmatprep.subr.bf16.mxu1 %v4514_v20  ;;  %v4674_v20 = vunpack.c.l.s8.bf16 %v2642_v60  ;;  %v2594_v60 = vld [vmem:[#allocation7 + $0x1e28] sm:$0xff] }
 0x3de   :  { %5610 = vmatpush1.bf16.msra.mxu0 %v4257_v6  ;;  %v4417_v6 = vunpack.c.l.s8.bf16 %v2513_v59  ;;  %v2465_v59 = vld [vmem:[#allocation7 + $0x1a20] sm:$0xff] }
 0x3df   :  { %5651 = vmatpush1.bf16.msra.mxu1 %v4513_v29  ;;  %5611 = vmatprep.subr.bf16.mxu0 %v4242_v10  ;;  %v4673_v29 = vunpack.c.l.s8.bf16 %v2641_v12  ;;  %v4402_v10 = vunpack.c.h.s8.bf16 %v2498_v56  ;;  %v2593_v12 = vld [vmem:[#allocation7 + $0x1e20] sm:$0xff] }
 0x3e0   :  { %5652 = vmatprep.subr.bf16.mxu1 %v4498_v23  ;;  %v4658_v23 = vunpack.c.h.s8.bf16 %v2626_v21 }
 0x3e2   :  { %5612 = vmatpush1.bf16.msra.mxu0 %v4241_v26  ;;  %v4401_v26 = vunpack.c.h.s8.bf16 %v2497_v22 }
 0x3e3   :  { %5653 = vmatpush1.bf16.msra.mxu1 %v4497_v30  ;;  %5613 = vmatprep.subr.bf16.mxu0 %v4226_v32  ;;  %v4657_v30 = vunpack.c.h.s8.bf16 %v2625_v24  ;;  %v4386_v32 = vunpack.c.l.s8.bf16 %v2498_v56  ;;  %v1684_v56 = vld [vmem:[#allocation7 + $0x1b8] sm:$0xff] }
 0x3e4   :  { %5654 = vmatprep.subr.bf16.mxu1 %v4482_v0  ;;  %v4642_v0 = vunpack.c.l.s8.bf16 %v2626_v21  ;;  %v1812_v21 = vld [vmem:[#allocation7 + $0x5b8] sm:$0xff] }
 0x3e6   :  { %5614 = vmatpush1.bf16.msra.mxu0 %v4225_v39  ;;  %v4385_v39 = vunpack.c.l.s8.bf16 %v2497_v22  ;;  %v1683_v22 = vld [vmem:[#allocation7 + $0x1b0] sm:$0xff] }
 0x3e7   :  { %5655 = vmatpush1.bf16.msra.mxu1 %v4481_v41  ;;  %5615 = vmatprep.subr.bf16.mxu0 %v4210_v37  ;;  %v4641_v41 = vunpack.c.l.s8.bf16 %v2625_v24  ;;  %v4370_v37 = vunpack.c.h.s8.bf16 %v2482_v31  ;;  %v1811_v24 = vld [vmem:[#allocation7 + $0x5b0] sm:$0xff] }
 0x3e8   :  { %5656 = vmatprep.subr.bf16.mxu1 %v4466_v40  ;;  %v4626_v40 = vunpack.c.h.s8.bf16 %v2610_v36 }
 0x3ea   :  { %5616 = vmatpush1.bf16.msra.mxu0 %v4209_v49  ;;  %v4369_v49 = vunpack.c.h.s8.bf16 %v2481_v46 }
 0x3eb   :  { %5657 = vmatpush1.bf16.msra.mxu1 %v4465_v50  ;;  %5617 = vmatprep.subr.bf16.mxu0 %v4194_v54  ;;  %v4625_v50 = vunpack.c.h.s8.bf16 %v2609_v51  ;;  %v4354_v54 = vunpack.c.l.s8.bf16 %v2482_v31 }
 0x3ec   :  { %5658 = vmatprep.subr.bf16.mxu1 %v4450_v55  ;;  %v4610_v55 = vunpack.c.l.s8.bf16 %v2610_v36  ;;  %v3012_v36 = vunpack.c.l.s8.bf16 %v1812_v21 }
 0x3ee   :  { %5618 = vmatpush1.bf16.msra.mxu0 %v4193_v58  ;;  %v4353_v58 = vunpack.c.l.s8.bf16 %v2481_v46 }
 0x3ef   :  { %5659 = vmatpush1.bf16.msra.mxu1 %v4449_v52  ;;  %5619 = vmatprep.subr.bf16.mxu0 %v4434_v61  ;;  %v4609_v52 = vunpack.c.l.s8.bf16 %v2609_v51  ;;  %v4338_v61 = vunpack.c.h.s8.bf16 %v2466_v7  ;;  %v3011_v51 = vunpack.c.l.s8.bf16 %v1811_v24 }
 0x3f0   :  { %5660 = vmatprep.subr.bf16.mxu1 %v4690_v3  ;;  %v4594_v3 = vunpack.c.h.s8.bf16 %v2594_v60 }
 0x3f2   :  { %5620 = vmatpush2.bf16.msra.mxu0 %v4433_v13  ;;  %v4337_v13 = vunpack.c.h.s8.bf16 %v2465_v59 }
 0x3f3   :  { %5661 = vmatpush2.bf16.msra.mxu1 %v4689_v16  ;;  %5621 = vmatprep.subr.bf16.mxu0 %v4418_v17  ;;  %v4593_v16 = vunpack.c.h.s8.bf16 %v2593_v12  ;;  %v4322_v17 = vunpack.c.l.s8.bf16 %v2466_v7  ;;  %v1795_v7 = vld [vmem:[#allocation7 + $0x530] sm:$0xff] }
 0x3f4   :  { %5662 = vmatprep.subr.bf16.mxu1 %v4674_v20  ;;  %v4578_v20 = vunpack.c.l.s8.bf16 %v2594_v60 }
 0x3f6   :  { %5622 = vmatpush2.bf16.msra.mxu0 %v4417_v6  ;;  %v4321_v6 = vunpack.c.l.s8.bf16 %v2465_v59 }
 0x3f7   :  { %5663 = vmatpush2.bf16.msra.mxu1 %v4673_v29  ;;  %5623 = vmatprep.subr.bf16.mxu0 %v4402_v10  ;;  %v4577_v29 = vunpack.c.l.s8.bf16 %v2593_v12  ;;  %v2772_v10 = vunpack.c.h.s8.bf16 %v1684_v56 }
 0x3f8   :  { %5664 = vmatprep.subr.bf16.mxu1 %v4658_v23  ;;  %v3028_v23 = vunpack.c.h.s8.bf16 %v1812_v21  ;;  %v2979_v21 = vunpack.c.l.s8.bf16 %v1795_v7 }
 0x3fa   :  { %5624 = vmatpush2.bf16.msra.mxu0 %v4401_v26  ;;  %v2771_v26 = vunpack.c.h.s8.bf16 %v1683_v22 }
 0x3fb   :  { %5665 = vmatpush2.bf16.msra.mxu1 %v4657_v30  ;;  %5625 = vmatprep.subr.bf16.mxu0 %v4386_v32  ;;  %v3027_v30 = vunpack.c.h.s8.bf16 %v1811_v24  ;;  %v2756_v32 = vunpack.c.l.s8.bf16 %v1684_v56 }
 0x3fc   :  { %5666 = vmatprep.subr.bf16.mxu1 %v4642_v0  ;;  %v1668_v0 = vld [vmem:[#allocation7 + $0x138] sm:$0xff] }
 0x3fd   :  { %v2724_v12 = vunpack.c.l.s8.bf16 %v1668_v0 }
 0x3fe   :  { %5626 = vmatpush2.bf16.msra.mxu0 %v4385_v39  ;;  %v1796_v39 = vld [vmem:[#allocation7 + $0x538] sm:$0xff] }
 0x3ff   :  { %5667 = vmatpush2.bf16.msra.mxu1 %v4641_v41  ;;  %5627 = vmatprep.subr.bf16.mxu0 %v4370_v37  ;;  %v2755_v37 = vunpack.c.l.s8.bf16 %v1683_v22  ;;  %v1779_v22 = vld [vmem:[#allocation7 + $0x4b0] sm:$0xff] }
 0x400   :  { %5668 = vmatprep.subr.bf16.mxu1 %v4626_v40  ;;  %v2963_v24 = vunpack.c.h.s8.bf16 %v1779_v22 }
 0x402   :  { %5628 = vmatpush2.bf16.msra.mxu0 %v4369_v49  ;;  %v2740_v49 = vunpack.c.h.s8.bf16 %v1668_v0  ;;  %v1764_v0 = vld [vmem:[#allocation7 + $0x438] sm:$0xff] }
 0x403   :  { %5669 = vmatpush2.bf16.msra.mxu1 %v4625_v50  ;;  %5629 = vmatprep.subr.bf16.mxu0 %v4354_v54  ;;  %v1667_v50 = vld [vmem:[#allocation7 + $0x130] sm:$0xff] }
 0x404   :  { %5670 = vmatprep.subr.bf16.mxu1 %v4610_v55  ;;  %v2996_v55 = vunpack.c.h.s8.bf16 %v1796_v39  ;;  %v2723_v56 = vunpack.c.l.s8.bf16 %v1667_v50 }
 0x406   :  { %5630 = vmatpush2.bf16.msra.mxu0 %v4353_v58 }
 0x407   :  { %5671 = vmatpush2.bf16.msra.mxu1 %v4609_v52  ;;  %5631 = vmatprep.subr.bf16.mxu0 %v4338_v61  ;;  %v2739_v61 = vunpack.c.h.s8.bf16 %v1667_v50 }
 0x408   :  { %5672 = vmatprep.subr.bf16.mxu1 %v4594_v3  ;;  %v2995_v3 = vunpack.c.h.s8.bf16 %v1795_v7  ;;  %v1876_v7 = vld [vmem:[#allocation7 + $0x7b8] sm:$0xff] }
 0x40a   :  { %5632 = vmatpush2.bf16.msra.mxu0 %v4337_v13 }
 0x40b   :  { %5673 = vmatpush2.bf16.msra.mxu1 %v4593_v16  ;;  %5633 = vmatprep.subr.bf16.mxu0 %v4322_v17  ;;  %v2980_v16 = vunpack.c.l.s8.bf16 %v1796_v39  ;;  %v1652_v17 = vld [vmem:[#allocation7 + $0xb8] sm:$0xff] }
 0x40c   :  { %5674 = vmatprep.subr.bf16.mxu1 %v4578_v20  ;;  %v1780_v20 = vld [vmem:[#allocation7 + $0x4b8] sm:$0xff] }
 0x40e   :  { %5634 = vmatpush2.bf16.msra.mxu0 %v4321_v6  ;;  %v2708_v6 = vunpack.c.h.s8.bf16 %v1652_v17 }
 0x40f   :  { %5675 = vmatpush2.bf16.msra.mxu1 %v4577_v29  ;;  %5685 = vmatprep.subr.bf16.mxu0 %v2772_v10  ;;  %v1651_v29 = vld [vmem:[#allocation7 + $0xb0] sm:$0xff]  ;;  %v2964_v10 = vunpack.c.h.s8.bf16 %v1780_v20 }
 0x410   :  { %5726 = vmatprep.subr.bf16.mxu1 %v3028_v23  ;;  %v2707_v23 = vunpack.c.h.s8.bf16 %v1651_v29 }
 0x411   :  { %v5391_v31 = vpop.f32.mrf.mxu0  ;;  %5636 = vmatmul.mubr.bf16.vlgmr.msra.gmra.mxu0 %v9973_v33 }
 0x412   :  { %v5432_v41 = vpop.f32.mrf.mxu1  ;;  %5677 = vmatmul.mubr.bf16.vlgmr.msra.gmra.mxu1 %v9975_v35  ;;  %5686 = vmatpush1.bf16.msra.mxu0 %v2771_v26  ;;  %v2692_v26 = vunpack.c.l.s8.bf16 %v1652_v17 }
 0x413   :  { %v10055_v46 = vadd.f32 %v5432_v41, %v5391_v31  ;;  %5717 = vmatprep.mubr.bf16.mxu0 %v9877_v45  ;;  %5727 = vmatpush1.bf16.msra.mxu1 %v3027_v30  ;;  %v5393_v40 = vpop.f32.mrf.mxu0  ;;  %v2948_v30 = vunpack.c.l.s8.bf16 %v1780_v20  ;;  %v2691_v31 = vunpack.c.l.s8.bf16 %v1651_v29  ;;  %v1635_v41 = vld [vmem:[#allocation7 + $0x30] sm:$0xff]  ;;  %v3140_v20 = vunpack.c.l.s8.bf16 %v1876_v7 }
 0x414   :  { %5758 = vmatprep.mubr.bf16.mxu1 %v9881_v48  ;;  %v5434_v54 = vpop.f32.mrf.mxu1  ;;  %5687 = vmatprep.subr.bf16.mxu0 %v2756_v32  ;;  %v1636_v32 = vld [vmem:[#allocation7 + $0x38] sm:$0xff] }
 0x415   :  { %v10059_v60 = vadd.f32 %v5434_v54, %v5393_v40  ;;  %v5395_v58 = vpop.f32.mrf.mxu0  ;;  %5728 = vmatprep.subr.bf16.mxu1 %v3012_v36  ;;  %v2947_v36 = vunpack.c.l.s8.bf16 %v1779_v22  ;;  %v2676_v39 = vunpack.c.h.s8.bf16 %v1636_v32  ;;  %v1763_v40 = vld [vmem:[#allocation7 + $0x430] sm:$0xff]  ;;  %v2660_v50 = vunpack.c.l.s8.bf16 %v1636_v32 }
 0x416   :  { %v5436_v52 = vpop.f32.mrf.mxu1  ;;  %5688 = vmatpush1.bf16.msra.mxu0 %v2755_v37  ;;  %v2932_v37 = vunpack.c.h.s8.bf16 %v1764_v0  ;;  %v2916_v54 = vunpack.c.l.s8.bf16 %v1764_v0  ;;  %v2659_v58 = vunpack.c.l.s8.bf16 %v1635_v41  ;;  %v1731_v22 = vld [vmem:[#allocation7 + $0x330] sm:$0xff] }
 0x417   :  { %5729 = vmatpush1.bf16.msra.mxu1 %v3011_v51  ;;  %v5396_v59 = vpop.f32.mrf.mxu0  ;;  %5689 = vmatprep.subr.bf16.mxu0 %v2740_v49  ;;  %v2675_v51 = vunpack.c.h.s8.bf16 %v1635_v41  ;;  %v2931_v49 = vunpack.c.h.s8.bf16 %v1763_v40  ;;  %v2915_v52 = vunpack.c.l.s8.bf16 %v1763_v40  ;;  %v1715_v40 = vld [vmem:[#allocation7 + $0x2b0] sm:$0xff] }
 0x418   :  { %v5437_v13 = vpop.f32.mrf.mxu1  ;;  %5730 = vmatprep.subr.bf16.mxu1 %v2996_v55  ;;  %v1748_v55 = vld [vmem:[#allocation7 + $0x3b8] sm:$0xff]  ;;  %v1747_v59 = vld [vmem:[#allocation7 + $0x3b0] sm:$0xff] }
 0x419   :  { %v2899_v13 = vunpack.c.h.s8.bf16 %v1747_v59  ;;  %v2884_v17 = vunpack.c.l.s8.bf16 %v1748_v55 }
 0x41a   :  { %5690 = vmatpush1.bf16.msra.mxu0 %v2739_v61  ;;  %v2900_v61 = vunpack.c.h.s8.bf16 %v1748_v55 }
 0x41b   :  { %5731 = vmatpush1.bf16.msra.mxu1 %v2995_v3  ;;  %5691 = vmatprep.subr.bf16.mxu0 %v2724_v12  ;;  %v3156_v3 = vunpack.c.h.s8.bf16 %v1876_v7  ;;  %v1875_v12 = vld [vmem:[#allocation7 + $0x7b0] sm:$0xff] }
 0x41c   :  { %5732 = vmatprep.subr.bf16.mxu1 %v2980_v16  ;;  %v3155_v16 = vunpack.c.h.s8.bf16 %v1875_v12  ;;  %v3139_v29 = vunpack.c.l.s8.bf16 %v1875_v12  ;;  %v1699_v12 = vld [vmem:[#allocation7 + $0x230] sm:$0xff] }
 0x41e   :  { %5692 = vmatpush1.bf16.msra.mxu0 %v2723_v56  ;;  %v1732_v56 = vld [vmem:[#allocation7 + $0x338] sm:$0xff] }
 0x41f   :  { %5733 = vmatpush1.bf16.msra.mxu1 %v2979_v21  ;;  %5693 = vmatprep.subr.bf16.mxu0 %v2708_v6  ;;  %v1860_v21 = vld [vmem:[#allocation7 + $0x738] sm:$0xff]  ;;  %v2883_v6 = vunpack.c.l.s8.bf16 %v1747_v59  ;;  %v2852_v32 = vunpack.c.l.s8.bf16 %v1732_v56 }
 0x420   :  { %5734 = vmatprep.subr.bf16.mxu1 %v2964_v10  ;;  %v2868_v10 = vunpack.c.h.s8.bf16 %v1732_v56  ;;  %v3108_v0 = vunpack.c.l.s8.bf16 %v1860_v21 }
 0x422   :  { %5694 = vmatpush1.bf16.msra.mxu0 %v2707_v23  ;;  %v3124_v23 = vunpack.c.h.s8.bf16 %v1860_v21 }
 0x423   :  { %5735 = vmatpush1.bf16.msra.mxu1 %v2963_v24  ;;  %5695 = vmatprep.subr.bf16.mxu0 %v2692_v26  ;;  %v1859_v24 = vld [vmem:[#allocation7 + $0x730] sm:$0xff]  ;;  %v2867_v26 = vunpack.c.h.s8.bf16 %v1731_v22 }
 0x424   :  { %5736 = vmatprep.subr.bf16.mxu1 %v2948_v30  ;;  %v3123_v30 = vunpack.c.h.s8.bf16 %v1859_v24  ;;  %v3107_v41 = vunpack.c.l.s8.bf16 %v1859_v24  ;;  %v1939_v24 = vld [vmem:[#allocation7 + $0x9b0] sm:$0xff] }
 0x426   :  { %5696 = vmatpush1.bf16.msra.mxu0 %v2691_v31  ;;  %v1716_v31 = vld [vmem:[#allocation7 + $0x2b8] sm:$0xff] }
 0x427   :  { %5737 = vmatpush1.bf16.msra.mxu1 %v2947_v36  ;;  %5697 = vmatprep.subr.bf16.mxu0 %v2676_v39  ;;  %v1844_v36 = vld [vmem:[#allocation7 + $0x6b8] sm:$0xff]  ;;  %v2851_v39 = vunpack.c.l.s8.bf16 %v1731_v22  ;;  %v2820_v55 = vunpack.c.l.s8.bf16 %v1716_v31 }
 0x428   :  { %5738 = vmatprep.subr.bf16.mxu1 %v2932_v37  ;;  %v2836_v37 = vunpack.c.h.s8.bf16 %v1716_v31  ;;  %v3076_v7 = vunpack.c.l.s8.bf16 %v1844_v36 }
 0x42a   :  { %5698 = vmatpush1.bf16.msra.mxu0 %v2675_v51  ;;  %v3092_v51 = vunpack.c.h.s8.bf16 %v1844_v36  ;;  %v1924_v36 = vld [vmem:[#allocation7 + $0x938] sm:$0xff] }
 0x42b   :  { %5739 = vmatpush1.bf16.msra.mxu1 %v2931_v49  ;;  %5699 = vmatprep.subr.bf16.mxu0 %v2660_v50  ;;  %v1843_v49 = vld [vmem:[#allocation7 + $0x6b0] sm:$0xff]  ;;  %v2835_v50 = vunpack.c.h.s8.bf16 %v1715_v40 }
 0x42c   :  { %5740 = vmatprep.subr.bf16.mxu1 %v2916_v54  ;;  %v3091_v54 = vunpack.c.h.s8.bf16 %v1843_v49  ;;  %v3075_v59 = vunpack.c.l.s8.bf16 %v1843_v49  ;;  %v3267_v49 = vunpack.c.l.s8.bf16 %v1939_v24 }
 0x42e   :  { %5700 = vmatpush1.bf16.msra.mxu0 %v2659_v58  ;;  %v1700_v58 = vld [vmem:[#allocation7 + $0x238] sm:$0xff] }
 0x42f   :  { %5741 = vmatpush1.bf16.msra.mxu1 %v2915_v52  ;;  %5701 = vmatprep.subr.bf16.mxu0 %v2900_v61  ;;  %v1828_v52 = vld [vmem:[#allocation7 + $0x638] sm:$0xff]  ;;  %v2819_v61 = vunpack.c.l.s8.bf16 %v1715_v40  ;;  %v2788_v56 = vunpack.c.l.s8.bf16 %v1700_v58 }
 0x430   :  { %5742 = vmatprep.subr.bf16.mxu1 %v3156_v3  ;;  %v2804_v3 = vunpack.c.h.s8.bf16 %v1700_v58  ;;  %v3044_v21 = vunpack.c.l.s8.bf16 %v1828_v52 }
 0x432   :  { %5702 = vmatpush2.bf16.msra.mxu0 %v2899_v13  ;;  %v3060_v13 = vunpack.c.h.s8.bf16 %v1828_v52 }
 0x433   :  { %5743 = vmatpush2.bf16.msra.mxu1 %v3155_v16  ;;  %5703 = vmatprep.subr.bf16.mxu0 %v2884_v17  ;;  %v1827_v16 = vld [vmem:[#allocation7 + $0x630] sm:$0xff]  ;;  %v2803_v17 = vunpack.c.h.s8.bf16 %v1699_v12 }
 0x434   :  { %5744 = vmatprep.subr.bf16.mxu1 %v3140_v20  ;;  %v3059_v20 = vunpack.c.h.s8.bf16 %v1827_v16  ;;  %v3043_v22 = vunpack.c.l.s8.bf16 %v1827_v16 }
 0x436   :  { %5704 = vmatpush2.bf16.msra.mxu0 %v2883_v6  ;;  %v1940_v6 = vld [vmem:[#allocation7 + $0x9b8] sm:$0xff] }
 0x437   :  { %5745 = vmatpush2.bf16.msra.mxu1 %v3139_v29  ;;  %5705 = vmatprep.subr.bf16.mxu0 %v2868_v10  ;;  %v2068_v29 = vld [vmem:[#allocation7 + $0xdb8] sm:$0xff]  ;;  %v2787_v10 = vunpack.c.l.s8.bf16 %v1699_v12  ;;  %v3268_v31 = vunpack.c.l.s8.bf16 %v1940_v6 }
 0x438   :  { %5746 = vmatprep.subr.bf16.mxu1 %v3124_v23  ;;  %v3284_v23 = vunpack.c.h.s8.bf16 %v1940_v6 }
 0x43a   :  { %5706 = vmatpush2.bf16.msra.mxu0 %v2867_v26  ;;  %v3540_v26 = vunpack.c.h.s8.bf16 %v2068_v29 }
 0x43b   :  { %5747 = vmatpush2.bf16.msra.mxu1 %v3123_v30  ;;  %5707 = vmatprep.subr.bf16.mxu0 %v2852_v32  ;;  %v2067_v30 = vld [vmem:[#allocation7 + $0xdb0] sm:$0xff]  ;;  %v3283_v32 = vunpack.c.h.s8.bf16 %v1939_v24 }
 0x43c   :  { %5748 = vmatprep.subr.bf16.mxu1 %v3108_v0  ;;  %v3539_v0 = vunpack.c.h.s8.bf16 %v2067_v30  ;;  %v1907_v24 = vld [vmem:[#allocation7 + $0x8b0] sm:$0xff] }
 0x43e   :  { %5708 = vmatpush2.bf16.msra.mxu0 %v2851_v39 }
 0x43f   :  { %5749 = vmatpush2.bf16.msra.mxu1 %v3107_v41  ;;  %5709 = vmatprep.subr.bf16.mxu0 %v2836_v37  ;;  %v3524_v41 = vunpack.c.l.s8.bf16 %v2068_v29  ;;  %v2052_v37 = vld [vmem:[#allocation7 + $0xd38] sm:$0xff] }
 0x440   :  { %5750 = vmatprep.subr.bf16.mxu1 %v3092_v51  ;;  %v3492_v6 = vunpack.c.l.s8.bf16 %v2052_v37  ;;  %v2036_v29 = vld [vmem:[#allocation7 + $0xcb8] sm:$0xff] }
 0x442   :  { %5710 = vmatpush2.bf16.msra.mxu0 %v2835_v50 }
 0x443   :  { %5751 = vmatpush2.bf16.msra.mxu1 %v3091_v54  ;;  %5711 = vmatprep.subr.bf16.mxu0 %v2820_v55  ;;  %v3523_v54 = vunpack.c.l.s8.bf16 %v2067_v30  ;;  %v3252_v55 = vunpack.c.h.s8.bf16 %v1924_v36  ;;  %v2035_v30 = vld [vmem:[#allocation7 + $0xcb0] sm:$0xff] }
 0x444   :  { %5752 = vmatprep.subr.bf16.mxu1 %v3076_v7  ;;  %v1923_v7 = vld [vmem:[#allocation7 + $0x930] sm:$0xff] }
 0x445   :  { %v3251_v16 = vunpack.c.h.s8.bf16 %v1923_v7 }
 0x446   :  { %5712 = vmatpush2.bf16.msra.mxu0 %v2819_v61 }
 0x447   :  { %5753 = vmatpush2.bf16.msra.mxu1 %v3075_v59  ;;  %5713 = vmatprep.subr.bf16.mxu0 %v2804_v3  ;;  %v2051_v59 = vld [vmem:[#allocation7 + $0xd30] sm:$0xff] }
 0x448   :  { %5754 = vmatprep.subr.bf16.mxu1 %v3060_v13 }
 0x44a   :  { %5714 = vmatpush2.bf16.msra.mxu0 %v2803_v17 }
 0x44b   :  { %5755 = vmatpush2.bf16.msra.mxu1 %v3059_v20  ;;  %5715 = vmatprep.subr.bf16.mxu0 %v2788_v56  ;;  %v3507_v20 = vunpack.c.h.s8.bf16 %v2051_v59  ;;  %v3236_v56 = vunpack.c.l.s8.bf16 %v1924_v36  ;;  %v3460_v36 = vunpack.c.l.s8.bf16 %v2036_v29 }
 0x44c   :  { %5756 = vmatprep.subr.bf16.mxu1 %v3044_v21 }
 0x44e   :  { %5716 = vmatpush2.bf16.msra.mxu0 %v2787_v10  ;;  %v3235_v10 = vunpack.c.l.s8.bf16 %v1923_v7 }
 0x44f   :  { %5757 = vmatpush2.bf16.msra.mxu1 %v3043_v22  ;;  %5767 = vmatprep.subr.bf16.mxu0 %v3284_v23  ;;  %v3491_v22 = vunpack.c.l.s8.bf16 %v2051_v59  ;;  %v2132_v59 = vld [vmem:[#allocation7 + $0xfb8] sm:$0xff] }
 0x450   :  { %5808 = vmatprep.subr.bf16.mxu1 %v3540_v26  ;;  %v3476_v26 = vunpack.c.h.s8.bf16 %v2036_v29  ;;  %v3652_v29 = vunpack.c.l.s8.bf16 %v2132_v59 }
 0x451   :  { %v5473_v39 = vpop.f32.mrf.mxu0  ;;  %5718 = vmatmul.mubr.bf16.vlgmr.msra.gmra.mxu0 %v9879_v47 }
 0x452   :  { %v5474_v40 = vadd.f32 %v5473_v39, %v10055_v46  ;;  %v5514_v51 = vpop.f32.mrf.mxu1  ;;  %5759 = vmatmul.mubr.bf16.vlgmr.msra.gmra.mxu1 %v9875_v44  ;;  %5768 = vmatpush1.bf16.msra.mxu0 %v3283_v32  ;;  %v3508_v46 = vunpack.c.h.s8.bf16 %v2052_v37  ;;  %v3219_v32 = vunpack.c.h.s8.bf16 %v1907_v24  ;;  %v1892_v39 = vld [vmem:[#allocation7 + $0x838] sm:$0xff]  ;;  %v3203_v37 = vunpack.c.l.s8.bf16 %v1907_v24 }
 0x453   :  { %5799 = vmatprep.mubr.bf16.mxu0 %v9901_v15  ;;  %5809 = vmatpush1.bf16.msra.mxu1 %v3539_v0  ;;  %v5475_v50 = vpop.f32.mrf.mxu0  ;;  %v3475_v0 = vunpack.c.h.s8.bf16 %v2035_v30 }
 0x454   :  { %v10065_v58 = vadd.f32 %v5514_v51, %v5474_v40  ;;  %5840 = vmatprep.mubr.bf16.mxu1 %v9903_v18  ;;  %v5476_v52 = vadd.f32 %v5475_v50, %v10059_v60  ;;  %v5516_v61 = vpop.f32.mrf.mxu1  ;;  %5769 = vmatprep.subr.bf16.mxu0 %v3268_v31  ;;  %v1908_v60 = vld [vmem:[#allocation7 + $0x8b8] sm:$0xff]  ;;  %v3459_v40 = vunpack.c.l.s8.bf16 %v2035_v30  ;;  %v3188_v51 = vunpack.c.h.s8.bf16 %v1892_v39  ;;  %v1987_v30 = vld [vmem:[#allocation7 + $0xb30] sm:$0xff] }
 0x455   :  { %v5477_v3 = vpop.f32.mrf.mxu0  ;;  %5810 = vmatprep.subr.bf16.mxu1 %v3524_v41  ;;  %v3220_v23 = vunpack.c.h.s8.bf16 %v1908_v60  ;;  %v3204_v31 = vunpack.c.l.s8.bf16 %v1908_v60  ;;  %v2020_v41 = vld [vmem:[#allocation7 + $0xc38] sm:$0xff] }
 0x456   :  { %v10069_v12 = vadd.f32 %v5516_v61, %v5476_v52  ;;  %v5518_v13 = vpop.f32.mrf.mxu1  ;;  %5770 = vmatpush1.bf16.msra.mxu0 %v3267_v49  ;;  %v1891_v49 = vld [vmem:[#allocation7 + $0x830] sm:$0xff]  ;;  %v3444_v50 = vunpack.c.h.s8.bf16 %v2020_v41  ;;  %v3172_v52 = vunpack.c.l.s8.bf16 %v1892_v39  ;;  %v3428_v61 = vunpack.c.l.s8.bf16 %v2020_v41 }
 0x457   :  { %5811 = vmatpush1.bf16.msra.mxu1 %v3523_v54  ;;  %v5478_v17 = vpop.f32.mrf.mxu0  ;;  %5771 = vmatprep.subr.bf16.mxu0 %v3252_v55  ;;  %v2019_v54 = vld [vmem:[#allocation7 + $0xc30] sm:$0xff]  ;;  %v3187_v55 = vunpack.c.h.s8.bf16 %v1891_v49  ;;  %v3171_v3 = vunpack.c.l.s8.bf16 %v1891_v49 }
 0x458   :  { %v5519_v21 = vpop.f32.mrf.mxu1  ;;  %5812 = vmatprep.subr.bf16.mxu1 %v3508_v46  ;;  %v3443_v7 = vunpack.c.h.s8.bf16 %v2019_v54  ;;  %v2004_v46 = vld [vmem:[#allocation7 + $0xbb8] sm:$0xff]  ;;  %v3427_v13 = vunpack.c.l.s8.bf16 %v2019_v54  ;;  %v2003_v17 = vld [vmem:[#allocation7 + $0xbb0] sm:$0xff] }
 0x459   :  { %v3411_v21 = vunpack.c.h.s8.bf16 %v2003_v17  ;;  %v3396_v60 = vunpack.c.l.s8.bf16 %v2004_v46  ;;  %v1971_v54 = vld [vmem:[#allocation7 + $0xab0] sm:$0xff] }
 0x45a   :  { %5772 = vmatpush1.bf16.msra.mxu0 %v3251_v16  ;;  %v3412_v16 = vunpack.c.h.s8.bf16 %v2004_v46 }
 0x45b   :  { %5813 = vmatpush1.bf16.msra.mxu1 %v3507_v20  ;;  %5773 = vmatprep.subr.bf16.mxu0 %v3236_v56  ;;  %v3668_v20 = vunpack.c.h.s8.bf16 %v2132_v59  ;;  %v2131_v56 = vld [vmem:[#allocation7 + $0xfb0] sm:$0xff] }
 0x45c   :  { %5814 = vmatprep.subr.bf16.mxu1 %v3492_v6  ;;  %v3667_v6 = vunpack.c.h.s8.bf16 %v2131_v56  ;;  %v3651_v24 = vunpack.c.l.s8.bf16 %v2131_v56  ;;  %v1955_v56 = vld [vmem:[#allocation7 + $0xa30] sm:$0xff] }
 0x45e   :  { %5774 = vmatpush1.bf16.msra.mxu0 %v3235_v10  ;;  %v1988_v10 = vld [vmem:[#allocation7 + $0xb38] sm:$0xff] }
 0x45f   :  { %5815 = vmatpush1.bf16.msra.mxu1 %v3491_v22  ;;  %5775 = vmatprep.subr.bf16.mxu0 %v3220_v23  ;;  %v2116_v22 = vld [vmem:[#allocation7 + $0xf38] sm:$0xff]  ;;  %v3395_v23 = vunpack.c.l.s8.bf16 %v2003_v17  ;;  %v3364_v39 = vunpack.c.l.s8.bf16 %v1988_v10 }
 0x460   :  { %5816 = vmatprep.subr.bf16.mxu1 %v3476_v26  ;;  %v3380_v26 = vunpack.c.h.s8.bf16 %v1988_v10  ;;  %v3620_v41 = vunpack.c.l.s8.bf16 %v2116_v22 }
 0x462   :  { %5776 = vmatpush1.bf16.msra.mxu0 %v3219_v32  ;;  %v3636_v32 = vunpack.c.h.s8.bf16 %v2116_v22 }
 0x463   :  { %5817 = vmatpush1.bf16.msra.mxu1 %v3475_v0  ;;  %5777 = vmatprep.subr.bf16.mxu0 %v3204_v31  ;;  %v2115_v0 = vld [vmem:[#allocation7 + $0xf30] sm:$0xff]  ;;  %v3379_v31 = vunpack.c.h.s8.bf16 %v1987_v30 }
 0x464   :  { %5818 = vmatprep.subr.bf16.mxu1 %v3460_v36  ;;  %v3635_v36 = vunpack.c.h.s8.bf16 %v2115_v0  ;;  %v3619_v49 = vunpack.c.l.s8.bf16 %v2115_v0  ;;  %v2195_v0 = vld [vmem:[#allocation7 + $0x11b0] sm:$0xff] }
 0x466   :  { %5778 = vmatpush1.bf16.msra.mxu0 %v3203_v37  ;;  %v1972_v37 = vld [vmem:[#allocation7 + $0xab8] sm:$0xff] }
 0x467   :  { %5819 = vmatpush1.bf16.msra.mxu1 %v3459_v40  ;;  %5779 = vmatprep.subr.bf16.mxu0 %v3188_v51  ;;  %v2100_v40 = vld [vmem:[#allocation7 + $0xeb8] sm:$0xff]  ;;  %v3363_v51 = vunpack.c.l.s8.bf16 %v1987_v30  ;;  %v3332_v46 = vunpack.c.l.s8.bf16 %v1972_v37 }
 0x468   :  { %5820 = vmatprep.subr.bf16.mxu1 %v3444_v50  ;;  %v3348_v50 = vunpack.c.h.s8.bf16 %v1972_v37  ;;  %v3588_v59 = vunpack.c.l.s8.bf16 %v2100_v40 }
 0x46a   :  { %5780 = vmatpush1.bf16.msra.mxu0 %v3187_v55  ;;  %v3604_v55 = vunpack.c.h.s8.bf16 %v2100_v40  ;;  %v2180_v40 = vld [vmem:[#allocation7 + $0x1138] sm:$0xff] }
 0x46b   :  { %5821 = vmatpush1.bf16.msra.mxu1 %v3443_v7  ;;  %5781 = vmatprep.subr.bf16.mxu0 %v3172_v52  ;;  %v2099_v7 = vld [vmem:[#allocation7 + $0xeb0] sm:$0xff]  ;;  %v3347_v52 = vunpack.c.h.s8.bf16 %v1971_v54 }
 0x46c   :  { %5822 = vmatprep.subr.bf16.mxu1 %v3428_v61  ;;  %v3603_v61 = vunpack.c.h.s8.bf16 %v2099_v7  ;;  %v3587_v17 = vunpack.c.l.s8.bf16 %v2099_v7  ;;  %v3779_v7 = vunpack.c.l.s8.bf16 %v2195_v0 }
 0x46e   :  { %5782 = vmatpush1.bf16.msra.mxu0 %v3171_v3  ;;  %v1956_v3 = vld [vmem:[#allocation7 + $0xa38] sm:$0xff] }
 0x46f   :  { %5823 = vmatpush1.bf16.msra.mxu1 %v3427_v13  ;;  %5783 = vmatprep.subr.bf16.mxu0 %v3412_v16  ;;  %v2084_v13 = vld [vmem:[#allocation7 + $0xe38] sm:$0xff]  ;;  %v3331_v16 = vunpack.c.l.s8.bf16 %v1971_v54  ;;  %v3300_v10 = vunpack.c.l.s8.bf16 %v1956_v3 }
 0x470   :  { %5824 = vmatprep.subr.bf16.mxu1 %v3668_v20  ;;  %v3316_v20 = vunpack.c.h.s8.bf16 %v1956_v3  ;;  %v3556_v22 = vunpack.c.l.s8.bf16 %v2084_v13 }
 0x472   :  { %5784 = vmatpush2.bf16.msra.mxu0 %v3411_v21  ;;  %v3572_v21 = vunpack.c.h.s8.bf16 %v2084_v13 }
 0x473   :  { %5825 = vmatpush2.bf16.msra.mxu1 %v3667_v6  ;;  %5785 = vmatprep.subr.bf16.mxu0 %v3396_v60  ;;  %v2083_v6 = vld [vmem:[#allocation7 + $0xe30] sm:$0xff]  ;;  %v3315_v60 = vunpack.c.h.s8.bf16 %v1955_v56 }
 0x474   :  { %5826 = vmatprep.subr.bf16.mxu1 %v3652_v29  ;;  %v3571_v29 = vunpack.c.h.s8.bf16 %v2083_v6  ;;  %v3555_v30 = vunpack.c.l.s8.bf16 %v2083_v6 }
 0x476   :  { %5786 = vmatpush2.bf16.msra.mxu0 %v3395_v23  ;;  %v2196_v23 = vld [vmem:[#allocation7 + $0x11b8] sm:$0xff] }
 0x477   :  { %5827 = vmatpush2.bf16.msra.mxu1 %v3651_v24  ;;  %5787 = vmatprep.subr.bf16.mxu0 %v3380_v26  ;;  %v2324_v24 = vld [vmem:[#allocation7 + $0x15b8] sm:$0xff]  ;;  %v3299_v26 = vunpack.c.l.s8.bf16 %v1955_v56  ;;  %v3780_v37 = vunpack.c.l.s8.bf16 %v2196_v23 }
 0x478   :  { %5828 = vmatprep.subr.bf16.mxu1 %v3636_v32  ;;  %v3796_v32 = vunpack.c.h.s8.bf16 %v2196_v23 }
 0x47a   :  { %5788 = vmatpush2.bf16.msra.mxu0 %v3379_v31  ;;  %v4052_v31 = vunpack.c.h.s8.bf16 %v2324_v24 }
 0x47b   :  { %5829 = vmatpush2.bf16.msra.mxu1 %v3635_v36  ;;  %5789 = vmatprep.subr.bf16.mxu0 %v3364_v39  ;;  %v2323_v36 = vld [vmem:[#allocation7 + $0x15b0] sm:$0xff]  ;;  %v3795_v39 = vunpack.c.h.s8.bf16 %v2195_v0 }
 0x47c   :  { %5830 = vmatprep.subr.bf16.mxu1 %v3620_v41  ;;  %v4051_v41 = vunpack.c.h.s8.bf16 %v2323_v36  ;;  %v2163_v0 = vld [vmem:[#allocation7 + $0x10b0] sm:$0xff] }
 0x47e   :  { %5790 = vmatpush2.bf16.msra.mxu0 %v3363_v51 }
 0x47f   :  { %5831 = vmatpush2.bf16.msra.mxu1 %v3619_v49  ;;  %5791 = vmatprep.subr.bf16.mxu0 %v3348_v50  ;;  %v4036_v49 = vunpack.c.l.s8.bf16 %v2324_v24  ;;  %v2308_v50 = vld [vmem:[#allocation7 + $0x1538] sm:$0xff] }
 0x480   :  { %5832 = vmatprep.subr.bf16.mxu1 %v3604_v55  ;;  %v4004_v23 = vunpack.c.l.s8.bf16 %v2308_v50  ;;  %v2292_v24 = vld [vmem:[#allocation7 + $0x14b8] sm:$0xff] }
 0x482   :  { %5792 = vmatpush2.bf16.msra.mxu0 %v3347_v52 }
 0x483   :  { %5833 = vmatpush2.bf16.msra.mxu1 %v3603_v61  ;;  %5793 = vmatprep.subr.bf16.mxu0 %v3332_v46  ;;  %v4035_v61 = vunpack.c.l.s8.bf16 %v2323_v36  ;;  %v3764_v46 = vunpack.c.h.s8.bf16 %v2180_v40  ;;  %v2291_v36 = vld [vmem:[#allocation7 + $0x14b0] sm:$0xff] }
 0x484   :  { %5834 = vmatprep.subr.bf16.mxu1 %v3588_v59  ;;  %v2179_v59 = vld [vmem:[#allocation7 + $0x1130] sm:$0xff] }
 0x485   :  { %v3763_v6 = vunpack.c.h.s8.bf16 %v2179_v59 }
 0x486   :  { %5794 = vmatpush2.bf16.msra.mxu0 %v3331_v16 }
 0x487   :  { %5835 = vmatpush2.bf16.msra.mxu1 %v3587_v17  ;;  %5795 = vmatprep.subr.bf16.mxu0 %v3316_v20  ;;  %v2307_v17 = vld [vmem:[#allocation7 + $0x1530] sm:$0xff] }
 0x488   :  { %5836 = vmatprep.subr.bf16.mxu1 %v3572_v21 }
 0x48a   :  { %5796 = vmatpush2.bf16.msra.mxu0 %v3315_v60 }
 0x48b   :  { %5837 = vmatpush2.bf16.msra.mxu1 %v3571_v29  ;;  %5797 = vmatprep.subr.bf16.mxu0 %v3300_v10  ;;  %v4019_v29 = vunpack.c.h.s8.bf16 %v2307_v17  ;;  %v3748_v10 = vunpack.c.l.s8.bf16 %v2180_v40  ;;  %v3972_v40 = vunpack.c.l.s8.bf16 %v2292_v24 }
 0x48c   :  { %5838 = vmatprep.subr.bf16.mxu1 %v3556_v22 }
 0x48e   :  { %5798 = vmatpush2.bf16.msra.mxu0 %v3299_v26  ;;  %v3747_v26 = vunpack.c.l.s8.bf16 %v2179_v59 }
 0x48f   :  { %5839 = vmatpush2.bf16.msra.mxu1 %v3555_v30  ;;  %5849 = vmatprep.subr.bf16.mxu0 %v3796_v32  ;;  %v4003_v30 = vunpack.c.l.s8.bf16 %v2307_v17  ;;  %v2388_v17 = vld [vmem:[#allocation7 + $0x17b8] sm:$0xff] }
 0x490   :  { %5890 = vmatprep.subr.bf16.mxu1 %v4052_v31  ;;  %v3988_v31 = vunpack.c.h.s8.bf16 %v2292_v24  ;;  %v4164_v24 = vunpack.c.l.s8.bf16 %v2388_v17 }
 0x491   :  { %v5555_v51 = vpop.f32.mrf.mxu0  ;;  %5800 = vmatmul.mubr.bf16.vlgmr.msra.gmra.mxu0 %v9919_v63 }
 0x492   :  { %v5556_v54 = vadd.f32 %v5555_v51, %v10065_v58  ;;  %v5596_v55 = vpop.f32.mrf.mxu1  ;;  %5841 = vmatmul.mubr.bf16.vlgmr.msra.gmra.mxu1 %v9921_v1  ;;  %5850 = vmatpush1.bf16.msra.mxu0 %v3795_v39  ;;  %v4020_v58 = vunpack.c.h.s8.bf16 %v2308_v50  ;;  %v3731_v39 = vunpack.c.h.s8.bf16 %v2163_v0  ;;  %v2148_v51 = vld [vmem:[#allocation7 + $0x1038] sm:$0xff]  ;;  %v3715_v50 = vunpack.c.l.s8.bf16 %v2163_v0 }
 0x493   :  { %5881 = vmatprep.mubr.bf16.mxu0 %v9935_v34  ;;  %5891 = vmatpush1.bf16.msra.mxu1 %v4051_v41  ;;  %v5557_v52 = vpop.f32.mrf.mxu0  ;;  %v3987_v41 = vunpack.c.h.s8.bf16 %v2291_v36 }
 0x494   :  { %v10075_v3 = vadd.f32 %v5596_v55, %v5556_v54  ;;  %5922 = vmatprep.mubr.bf16.mxu1 %v9937_v4  ;;  %v5558_v13 = vadd.f32 %v5557_v52, %v10069_v12  ;;  %v5598_v16 = vpop.f32.mrf.mxu1  ;;  %5851 = vmatprep.subr.bf16.mxu0 %v3780_v37  ;;  %v2164_v12 = vld [vmem:[#allocation7 + $0x10b8] sm:$0xff]  ;;  %v3971_v54 = vunpack.c.l.s8.bf16 %v2291_v36  ;;  %v3700_v55 = vunpack.c.h.s8.bf16 %v2148_v51  ;;  %v2243_v36 = vld [vmem:[#allocation7 + $0x1330] sm:$0xff] }
 0x495   :  { %v5559_v20 = vpop.f32.mrf.mxu0  ;;  %5892 = vmatprep.subr.bf16.mxu1 %v4036_v49  ;;  %v3732_v32 = vunpack.c.h.s8.bf16 %v2164_v12  ;;  %v3716_v37 = vunpack.c.l.s8.bf16 %v2164_v12  ;;  %v2276_v49 = vld [vmem:[#allocation7 + $0x1438] sm:$0xff] }
 0x496   :  { %v10079_v56 = vadd.f32 %v5598_v16, %v5558_v13  ;;  %v5600_v21 = vpop.f32.mrf.mxu1  ;;  %5852 = vmatpush1.bf16.msra.mxu0 %v3779_v7  ;;  %v2147_v7 = vld [vmem:[#allocation7 + $0x1030] sm:$0xff]  ;;  %v3956_v52 = vunpack.c.h.s8.bf16 %v2276_v49  ;;  %v3684_v13 = vunpack.c.l.s8.bf16 %v2148_v51  ;;  %v3940_v16 = vunpack.c.l.s8.bf16 %v2276_v49 }
 0x497   :  { %5893 = vmatpush1.bf16.msra.mxu1 %v4035_v61  ;;  %v5560_v60 = vpop.f32.mrf.mxu0  ;;  %5853 = vmatprep.subr.bf16.mxu0 %v3764_v46  ;;  %v2275_v61 = vld [vmem:[#allocation7 + $0x1430] sm:$0xff]  ;;  %v3699_v46 = vunpack.c.h.s8.bf16 %v2147_v7  ;;  %v3683_v20 = vunpack.c.l.s8.bf16 %v2147_v7 }
 0x498   :  { %v5601_v22 = vpop.f32.mrf.mxu1  ;;  %5894 = vmatprep.subr.bf16.mxu1 %v4020_v58  ;;  %v3955_v59 = vunpack.c.h.s8.bf16 %v2275_v61  ;;  %v2260_v58 = vld [vmem:[#allocation7 + $0x13b8] sm:$0xff]  ;;  %v3939_v21 = vunpack.c.l.s8.bf16 %v2275_v61  ;;  %v2259_v60 = vld [vmem:[#allocation7 + $0x13b0] sm:$0xff] }
 0x499   :  { %v3923_v22 = vunpack.c.h.s8.bf16 %v2259_v60  ;;  %v3908_v12 = vunpack.c.l.s8.bf16 %v2260_v58  ;;  %v2227_v61 = vld [vmem:[#allocation7 + $0x12b0] sm:$0xff] }
 0x49a   :  { %5854 = vmatpush1.bf16.msra.mxu0 %v3763_v6  ;;  %v3924_v6 = vunpack.c.h.s8.bf16 %v2260_v58 }
 0x49b   :  { %5895 = vmatpush1.bf16.msra.mxu1 %v4019_v29  ;;  %5855 = vmatprep.subr.bf16.mxu0 %v3748_v10  ;;  %v4180_v29 = vunpack.c.h.s8.bf16 %v2388_v17  ;;  %v2387_v10 = vld [vmem:[#allocation7 + $0x17b0] sm:$0xff] }
 0x49c   :  { %5896 = vmatprep.subr.bf16.mxu1 %v4004_v23  ;;  %v4179_v23 = vunpack.c.h.s8.bf16 %v2387_v10  ;;  %v4163_v0 = vunpack.c.l.s8.bf16 %v2387_v10  ;;  %v2211_v10 = vld [vmem:[#allocation7 + $0x1230] sm:$0xff] }
 0x49e   :  { %5856 = vmatpush1.bf16.msra.mxu0 %v3747_v26  ;;  %v2244_v26 = vld [vmem:[#allocation7 + $0x1338] sm:$0xff] }
 0x49f   :  { %5897 = vmatpush1.bf16.msra.mxu1 %v4003_v30  ;;  %5857 = vmatprep.subr.bf16.mxu0 %v3732_v32  ;;  %v2372_v30 = vld [vmem:[#allocation7 + $0x1738] sm:$0xff]  ;;  %v3907_v32 = vunpack.c.l.s8.bf16 %v2259_v60  ;;  %v3876_v51 = vunpack.c.l.s8.bf16 %v2244_v26 }
 0x4a0   :  { %5898 = vmatprep.subr.bf16.mxu1 %v3988_v31  ;;  %v3892_v31 = vunpack.c.h.s8.bf16 %v2244_v26  ;;  %v4132_v49 = vunpack.c.l.s8.bf16 %v2372_v30 }
 0x4a2   :  { %5858 = vmatpush1.bf16.msra.mxu0 %v3731_v39  ;;  %v4148_v39 = vunpack.c.h.s8.bf16 %v2372_v30 }
 0x4a3   :  { %5899 = vmatpush1.bf16.msra.mxu1 %v3987_v41  ;;  %5859 = vmatprep.subr.bf16.mxu0 %v3716_v37  ;;  %v2371_v41 = vld [vmem:[#allocation7 + $0x1730] sm:$0xff]  ;;  %v3891_v37 = vunpack.c.h.s8.bf16 %v2243_v36 }
 0x4a4   :  { %5900 = vmatprep.subr.bf16.mxu1 %v3972_v40  ;;  %v4147_v40 = vunpack.c.h.s8.bf16 %v2371_v41  ;;  %v4131_v7 = vunpack.c.l.s8.bf16 %v2371_v41  ;;  %v2451_v41 = vld [vmem:[#allocation7 + $0x19b0] sm:$0xff] }
 0x4a6   :  { %5860 = vmatpush1.bf16.msra.mxu0 %v3715_v50  ;;  %v2228_v50 = vld [vmem:[#allocation7 + $0x12b8] sm:$0xff] }
 0x4a7   :  { %5901 = vmatpush1.bf16.msra.mxu1 %v3971_v54  ;;  %5861 = vmatprep.subr.bf16.mxu0 %v3700_v55  ;;  %v2356_v54 = vld [vmem:[#allocation7 + $0x16b8] sm:$0xff]  ;;  %v3875_v55 = vunpack.c.l.s8.bf16 %v2243_v36  ;;  %v3844_v58 = vunpack.c.l.s8.bf16 %v2228_v50 }
 0x4a8   :  { %5902 = vmatprep.subr.bf16.mxu1 %v3956_v52  ;;  %v3860_v52 = vunpack.c.h.s8.bf16 %v2228_v50  ;;  %v4100_v17 = vunpack.c.l.s8.bf16 %v2356_v54 }
 0x4aa   :  { %5862 = vmatpush1.bf16.msra.mxu0 %v3699_v46  ;;  %v4116_v46 = vunpack.c.h.s8.bf16 %v2356_v54  ;;  %v2436_v54 = vld [vmem:[#allocation7 + $0x1938] sm:$0xff] }
 0x4ab   :  { %5903 = vmatpush1.bf16.msra.mxu1 %v3955_v59  ;;  %5863 = vmatprep.subr.bf16.mxu0 %v3684_v13  ;;  %v2355_v59 = vld [vmem:[#allocation7 + $0x16b0] sm:$0xff]  ;;  %v3859_v13 = vunpack.c.h.s8.bf16 %v2227_v61 }
 0x4ac   :  { %5904 = vmatprep.subr.bf16.mxu1 %v3940_v16  ;;  %v4115_v16 = vunpack.c.h.s8.bf16 %v2355_v59  ;;  %v4099_v60 = vunpack.c.l.s8.bf16 %v2355_v59  ;;  %v4291_v59 = vunpack.c.l.s8.bf16 %v2451_v41 }
 0x4ae   :  { %5864 = vmatpush1.bf16.msra.mxu0 %v3683_v20  ;;  %v2212_v20 = vld [vmem:[#allocation7 + $0x1238] sm:$0xff] }
 0x4af   :  { %5905 = vmatpush1.bf16.msra.mxu1 %v3939_v21  ;;  %5865 = vmatprep.subr.bf16.mxu0 %v3924_v6  ;;  %v2340_v21 = vld [vmem:[#allocation7 + $0x1638] sm:$0xff]  ;;  %v3843_v6 = vunpack.c.l.s8.bf16 %v2227_v61  ;;  %v3812_v26 = vunpack.c.l.s8.bf16 %v2212_v20 }
 0x4b0   :  { %5906 = vmatprep.subr.bf16.mxu1 %v4180_v29  ;;  %v3828_v29 = vunpack.c.h.s8.bf16 %v2212_v20  ;;  %v4068_v30 = vunpack.c.l.s8.bf16 %v2340_v21 }
 0x4b2   :  { %5866 = vmatpush2.bf16.msra.mxu0 %v3923_v22  ;;  %v4084_v22 = vunpack.c.h.s8.bf16 %v2340_v21 }
 0x4b3   :  { %5907 = vmatpush2.bf16.msra.mxu1 %v4179_v23  ;;  %5867 = vmatprep.subr.bf16.mxu0 %v3908_v12  ;;  %v2339_v23 = vld [vmem:[#allocation7 + $0x1630] sm:$0xff]  ;;  %v3827_v12 = vunpack.c.h.s8.bf16 %v2211_v10 }
 0x4b4   :  { %5908 = vmatprep.subr.bf16.mxu1 %v4164_v24  ;;  %v4083_v24 = vunpack.c.h.s8.bf16 %v2339_v23  ;;  %v4067_v36 = vunpack.c.l.s8.bf16 %v2339_v23 }
 0x4b6   :  { %5868 = vmatpush2.bf16.msra.mxu0 %v3907_v32  ;;  %v2452_v32 = vld [vmem:[#allocation7 + $0x19b8] sm:$0xff] }
 0x4b7   :  { %5909 = vmatpush2.bf16.msra.mxu1 %v4163_v0  ;;  %5869 = vmatprep.subr.bf16.mxu0 %v3892_v31  ;;  %v2580_v0 = vld [vmem:[#allocation7 + $0x1db8] sm:$0xff]  ;;  %v3811_v31 = vunpack.c.l.s8.bf16 %v2211_v10  ;;  %v4292_v50 = vunpack.c.l.s8.bf16 %v2452_v32 }
 0x4b8   :  { %5910 = vmatprep.subr.bf16.mxu1 %v4148_v39  ;;  %v4308_v39 = vunpack.c.h.s8.bf16 %v2452_v32 }
 0x4ba   :  { %5870 = vmatpush2.bf16.msra.mxu0 %v3891_v37  ;;  %v4564_v37 = vunpack.c.h.s8.bf16 %v2580_v0 }
 0x4bb   :  { %5911 = vmatpush2.bf16.msra.mxu1 %v4147_v40  ;;  %5871 = vmatprep.subr.bf16.mxu0 %v3876_v51  ;;  %v2579_v40 = vld [vmem:[#allocation7 + $0x1db0] sm:$0xff]  ;;  %v4307_v51 = vunpack.c.h.s8.bf16 %v2451_v41 }
 0x4bc   :  { %5912 = vmatprep.subr.bf16.mxu1 %v4132_v49  ;;  %v4563_v49 = vunpack.c.h.s8.bf16 %v2579_v40  ;;  %v2419_v41 = vld [vmem:[#allocation7 + $0x18b0] sm:$0xff] }
 0x4be   :  { %5872 = vmatpush2.bf16.msra.mxu0 %v3875_v55 }
 0x4bf   :  { %5913 = vmatpush2.bf16.msra.mxu1 %v4131_v7  ;;  %5873 = vmatprep.subr.bf16.mxu0 %v3860_v52  ;;  %v4548_v7 = vunpack.c.l.s8.bf16 %v2580_v0  ;;  %v2564_v52 = vld [vmem:[#allocation7 + $0x1d38] sm:$0xff] }
 0x4c0   :  { %5914 = vmatprep.subr.bf16.mxu1 %v4116_v46  ;;  %v4516_v32 = vunpack.c.l.s8.bf16 %v2564_v52  ;;  %v2548_v0 = vld [vmem:[#allocation7 + $0x1cb8] sm:$0xff] }
 0x4c2   :  { %5874 = vmatpush2.bf16.msra.mxu0 %v3859_v13 }
 0x4c3   :  { %5915 = vmatpush2.bf16.msra.mxu1 %v4115_v16  ;;  %5875 = vmatprep.subr.bf16.mxu0 %v3844_v58  ;;  %v4547_v16 = vunpack.c.l.s8.bf16 %v2579_v40  ;;  %v4276_v58 = vunpack.c.h.s8.bf16 %v2436_v54  ;;  %v2547_v40 = vld [vmem:[#allocation7 + $0x1cb0] sm:$0xff] }
 0x4c4   :  { %5916 = vmatprep.subr.bf16.mxu1 %v4100_v17  ;;  %v2435_v17 = vld [vmem:[#allocation7 + $0x1930] sm:$0xff] }
 0x4c5   :  { %v4275_v23 = vunpack.c.h.s8.bf16 %v2435_v17 }
 0x4c6   :  { %5876 = vmatpush2.bf16.msra.mxu0 %v3843_v6 }
 0x4c7   :  { %5917 = vmatpush2.bf16.msra.mxu1 %v4099_v60  ;;  %5877 = vmatprep.subr.bf16.mxu0 %v3828_v29  ;;  %v2563_v60 = vld [vmem:[#allocation7 + $0x1d30] sm:$0xff] }
 0x4c8   :  { %5918 = vmatprep.subr.bf16.mxu1 %v4084_v22 }
 0x4ca   :  { %5878 = vmatpush2.bf16.msra.mxu0 %v3827_v12 }
 0x4cb   :  { %5919 = vmatpush2.bf16.msra.mxu1 %v4083_v24  ;;  %5879 = vmatprep.subr.bf16.mxu0 %v3812_v26  ;;  %v4531_v24 = vunpack.c.h.s8.bf16 %v2563_v60  ;;  %v4260_v26 = vunpack.c.l.s8.bf16 %v2436_v54  ;;  %v4484_v54 = vunpack.c.l.s8.bf16 %v2548_v0 }
 0x4cc   :  { %5920 = vmatprep.subr.bf16.mxu1 %v4068_v30 }
 0x4ce   :  { %5880 = vmatpush2.bf16.msra.mxu0 %v3811_v31  ;;  %v4259_v31 = vunpack.c.l.s8.bf16 %v2435_v17 }
 0x4cf   :  { %5921 = vmatpush2.bf16.msra.mxu1 %v4067_v36  ;;  %5931 = vmatprep.subr.bf16.mxu0 %v4308_v39  ;;  %v4515_v36 = vunpack.c.l.s8.bf16 %v2563_v60  ;;  %v2644_v60 = vld [vmem:[#allocation7 + $0x1fb8] sm:$0xff] }
 0x4d0   :  { %5972 = vmatprep.subr.bf16.mxu1 %v4564_v37  ;;  %v4500_v37 = vunpack.c.h.s8.bf16 %v2548_v0  ;;  %v4676_v0 = vunpack.c.l.s8.bf16 %v2644_v60 }
 0x4d1   :  { %v5637_v55 = vpop.f32.mrf.mxu0  ;;  %5882 = vmatmul.mubr.bf16.vlgmr.msra.gmra.mxu0 %v9955_v53 }
 0x4d2   :  { %v5638_v61 = vadd.f32 %v5637_v55, %v10075_v3  ;;  %v5678_v46 = vpop.f32.mrf.mxu1  ;;  %5923 = vmatmul.mubr.bf16.vlgmr.msra.gmra.mxu1 %v9957_v57  ;;  %5932 = vmatpush1.bf16.msra.mxu0 %v4307_v51  ;;  %v4532_v3 = vunpack.c.h.s8.bf16 %v2564_v52  ;;  %v4243_v51 = vunpack.c.h.s8.bf16 %v2419_v41  ;;  %v2404_v55 = vld [vmem:[#allocation7 + $0x1838] sm:$0xff]  ;;  %v4227_v52 = vunpack.c.l.s8.bf16 %v2419_v41 }
 0x4d3   :  { %5963 = vmatprep.mubr.bf16.mxu0 %v9960_v2  ;;  %5973 = vmatpush1.bf16.msra.mxu1 %v4563_v49  ;;  %v5639_v13 = vpop.f32.mrf.mxu0  ;;  %v4499_v49 = vunpack.c.h.s8.bf16 %v2547_v40 }
 0x4d4   :  { %v10085_v20 = vadd.f32 %v5678_v46, %v5638_v61  ;;  %6004 = vmatprep.mubr.bf16.mxu1 %v9963_v9  ;;  %v5640_v21 = vadd.f32 %v5639_v13, %v10079_v56  ;;  %v5680_v6 = vpop.f32.mrf.mxu1  ;;  %5933 = vmatprep.subr.bf16.mxu0 %v4292_v50  ;;  %v2420_v56 = vld [vmem:[#allocation7 + $0x18b8] sm:$0xff]  ;;  %v4483_v61 = vunpack.c.l.s8.bf16 %v2547_v40  ;;  %v4212_v46 = vunpack.c.h.s8.bf16 %v2404_v55  ;;  %v2499_v40 = vld [vmem:[#allocation7 + $0x1b30] sm:$0xff] }
 0x4d5   :  { %v5641_v29 = vpop.f32.mrf.mxu0  ;;  %5974 = vmatprep.subr.bf16.mxu1 %v4548_v7  ;;  %v4244_v39 = vunpack.c.h.s8.bf16 %v2420_v56  ;;  %v4228_v50 = vunpack.c.l.s8.bf16 %v2420_v56  ;;  %v2532_v7 = vld [vmem:[#allocation7 + $0x1c38] sm:$0xff] }
 0x4d6   :  { %v10089_v10 = vadd.f32 %v5680_v6, %v5640_v21  ;;  %v5682_v22 = vpop.f32.mrf.mxu1  ;;  %5934 = vmatpush1.bf16.msra.mxu0 %v4291_v59  ;;  %v2403_v59 = vld [vmem:[#allocation7 + $0x1830] sm:$0xff]  ;;  %v4468_v13 = vunpack.c.h.s8.bf16 %v2532_v7  ;;  %v4196_v21 = vunpack.c.l.s8.bf16 %v2404_v55  ;;  %v4452_v6 = vunpack.c.l.s8.bf16 %v2532_v7 }
 0x4d7   :  { %5975 = vmatpush1.bf16.msra.mxu1 %v4547_v16  ;;  %v5642_v12 = vpop.f32.mrf.mxu0  ;;  %5935 = vmatprep.subr.bf16.mxu0 %v4276_v58  ;;  %v2531_v16 = vld [vmem:[#allocation7 + $0x1c30] sm:$0xff]  ;;  %v4211_v58 = vunpack.c.h.s8.bf16 %v2403_v59  ;;  %v4195_v29 = vunpack.c.l.s8.bf16 %v2403_v59 }
 0x4d8   :  { %v5683_v30 = vpop.f32.mrf.mxu1  ;;  %5976 = vmatprep.subr.bf16.mxu1 %v4532_v3  ;;  %v4467_v17 = vunpack.c.h.s8.bf16 %v2531_v16  ;;  %v2516_v3 = vld [vmem:[#allocation7 + $0x1bb8] sm:$0xff]  ;;  %v4451_v22 = vunpack.c.l.s8.bf16 %v2531_v16  ;;  %v2515_v12 = vld [vmem:[#allocation7 + $0x1bb0] sm:$0xff] }
 0x4d9   :  { %v4435_v30 = vunpack.c.h.s8.bf16 %v2515_v12  ;;  %v4420_v56 = vunpack.c.l.s8.bf16 %v2516_v3  ;;  %v2483_v16 = vld [vmem:[#allocation7 + $0x1ab0] sm:$0xff] }
 0x4da   :  { %5936 = vmatpush1.bf16.msra.mxu0 %v4275_v23  ;;  %v4436_v23 = vunpack.c.h.s8.bf16 %v2516_v3 }
 0x4db   :  { %5977 = vmatpush1.bf16.msra.mxu1 %v4531_v24  ;;  %5937 = vmatprep.subr.bf16.mxu0 %v4260_v26  ;;  %v4692_v24 = vunpack.c.h.s8.bf16 %v2644_v60  ;;  %v2643_v26 = vld [vmem:[#allocation7 + $0x1fb0] sm:$0xff] }
 0x4dc   :  { %5978 = vmatprep.subr.bf16.mxu1 %v4516_v32  ;;  %v4691_v32 = vunpack.c.h.s8.bf16 %v2643_v26  ;;  %v4675_v41 = vunpack.c.l.s8.bf16 %v2643_v26  ;;  %v2467_v26 = vld [vmem:[#allocation7 + $0x1a30] sm:$0xff] }
 0x4de   :  { %5938 = vmatpush1.bf16.msra.mxu0 %v4259_v31  ;;  %v2500_v31 = vld [vmem:[#allocation7 + $0x1b38] sm:$0xff] }
 0x4df   :  { %5979 = vmatpush1.bf16.msra.mxu1 %v4515_v36  ;;  %5939 = vmatprep.subr.bf16.mxu0 %v4244_v39  ;;  %v2628_v36 = vld [vmem:[#allocation7 + $0x1f38] sm:$0xff]  ;;  %v4419_v39 = vunpack.c.l.s8.bf16 %v2515_v12  ;;  %v4388_v55 = vunpack.c.l.s8.bf16 %v2500_v31 }
 0x4e0   :  { %5980 = vmatprep.subr.bf16.mxu1 %v4500_v37  ;;  %v4404_v37 = vunpack.c.h.s8.bf16 %v2500_v31  ;;  %v4644_v7 = vunpack.c.l.s8.bf16 %v2628_v36 }
 0x4e2   :  { %5940 = vmatpush1.bf16.msra.mxu0 %v4243_v51  ;;  %v4660_v51 = vunpack.c.h.s8.bf16 %v2628_v36 }
 0x4e3   :  { %5981 = vmatpush1.bf16.msra.mxu1 %v4499_v49  ;;  %5941 = vmatprep.subr.bf16.mxu0 %v4228_v50  ;;  %v2627_v49 = vld [vmem:[#allocation7 + $0x1f30] sm:$0xff]  ;;  %v4403_v50 = vunpack.c.h.s8.bf16 %v2499_v40 }
 0x4e4   :  { %5982 = vmatprep.subr.bf16.mxu1 %v4484_v54  ;;  %v4659_v54 = vunpack.c.h.s8.bf16 %v2627_v49  ;;  %v4643_v59 = vunpack.c.l.s8.bf16 %v2627_v49  ;;  %v1685_v49 = vld [vmem:[#allocation7 + $0x1c0] sm:$0xff] }
 0x4e6   :  { %5942 = vmatpush1.bf16.msra.mxu0 %v4227_v52  ;;  %v2484_v52 = vld [vmem:[#allocation7 + $0x1ab8] sm:$0xff] }
 0x4e7   :  { %5983 = vmatpush1.bf16.msra.mxu1 %v4483_v61  ;;  %5943 = vmatprep.subr.bf16.mxu0 %v4212_v46  ;;  %v2612_v61 = vld [vmem:[#allocation7 + $0x1eb8] sm:$0xff]  ;;  %v4387_v46 = vunpack.c.l.s8.bf16 %v2499_v40  ;;  %v4356_v3 = vunpack.c.l.s8.bf16 %v2484_v52 }
 0x4e8   :  { %5984 = vmatprep.subr.bf16.mxu1 %v4468_v13  ;;  %v4372_v13 = vunpack.c.h.s8.bf16 %v2484_v52  ;;  %v4612_v60 = vunpack.c.l.s8.bf16 %v2612_v61 }
 0x4ea   :  { %5944 = vmatpush1.bf16.msra.mxu0 %v4211_v58  ;;  %v4628_v58 = vunpack.c.h.s8.bf16 %v2612_v61  ;;  %v1670_v61 = vld [vmem:[#allocation7 + $0x148] sm:$0xff] }
 0x4eb   :  { %5985 = vmatpush1.bf16.msra.mxu1 %v4467_v17  ;;  %5945 = vmatprep.subr.bf16.mxu0 %v4196_v21  ;;  %v2611_v17 = vld [vmem:[#allocation7 + $0x1eb0] sm:$0xff]  ;;  %v4371_v21 = vunpack.c.h.s8.bf16 %v2483_v16 }
 0x4ec   :  { %5986 = vmatprep.subr.bf16.mxu1 %v4452_v6  ;;  %v4627_v6 = vunpack.c.h.s8.bf16 %v2611_v17  ;;  %v4611_v12 = vunpack.c.l.s8.bf16 %v2611_v17 }
 0x4ee   :  { %5946 = vmatpush1.bf16.msra.mxu0 %v4195_v29  ;;  %v2468_v29 = vld [vmem:[#allocation7 + $0x1a38] sm:$0xff] }
 0x4ef   :  { %5987 = vmatpush1.bf16.msra.mxu1 %v4451_v22  ;;  %5947 = vmatprep.subr.bf16.mxu0 %v4436_v23  ;;  %v2596_v22 = vld [vmem:[#allocation7 + $0x1e38] sm:$0xff]  ;;  %v4355_v23 = vunpack.c.l.s8.bf16 %v2483_v16  ;;  %v4324_v31 = vunpack.c.l.s8.bf16 %v2468_v29 }
 0x4f0   :  { %5988 = vmatprep.subr.bf16.mxu1 %v4692_v24  ;;  %v4340_v24 = vunpack.c.h.s8.bf16 %v2468_v29  ;;  %v4580_v36 = vunpack.c.l.s8.bf16 %v2596_v22 }
 0x4f2   :  { %5948 = vmatpush2.bf16.msra.mxu0 %v4435_v30  ;;  %v4596_v30 = vunpack.c.h.s8.bf16 %v2596_v22 }
 0x4f3   :  { %5989 = vmatpush2.bf16.msra.mxu1 %v4691_v32  ;;  %5949 = vmatprep.subr.bf16.mxu0 %v4420_v56  ;;  %v2595_v32 = vld [vmem:[#allocation7 + $0x1e30] sm:$0xff]  ;;  %v4339_v56 = vunpack.c.h.s8.bf16 %v2467_v26 }
 0x4f4   :  { %5990 = vmatprep.subr.bf16.mxu1 %v4676_v0  ;;  %v4595_v0 = vunpack.c.h.s8.bf16 %v2595_v32  ;;  %v4579_v40 = vunpack.c.l.s8.bf16 %v2595_v32 }
 0x4f6   :  { %5950 = vmatpush2.bf16.msra.mxu0 %v4419_v39  ;;  %v1686_v39 = vld [vmem:[#allocation7 + $0x1c8] sm:$0xff] }
 0x4f7   :  { %5991 = vmatpush2.bf16.msra.mxu1 %v4675_v41  ;;  %5951 = vmatprep.subr.bf16.mxu0 %v4404_v37  ;;  %v1814_v41 = vld [vmem:[#allocation7 + $0x5c8] sm:$0xff]  ;;  %v4323_v37 = vunpack.c.l.s8.bf16 %v2467_v26  ;;  %v2758_v52 = vunpack.c.l.s8.bf16 %v1686_v39 }
 0x4f8   :  { %5992 = vmatprep.subr.bf16.mxu1 %v4660_v51  ;;  %v2774_v51 = vunpack.c.h.s8.bf16 %v1686_v39  ;;  %v1654_v39 = vld [vmem:[#allocation7 + $0xc8] sm:$0xff] }
 0x4fa   :  { %5952 = vmatpush2.bf16.msra.mxu0 %v4403_v50  ;;  %v3030_v50 = vunpack.c.h.s8.bf16 %v1814_v41 }
 0x4fb   :  { %5993 = vmatpush2.bf16.msra.mxu1 %v4659_v54  ;;  %5953 = vmatprep.subr.bf16.mxu0 %v4388_v55  ;;  %v1813_v54 = vld [vmem:[#allocation7 + $0x5c0] sm:$0xff]  ;;  %v2773_v55 = vunpack.c.h.s8.bf16 %v1685_v49 }
 0x4fc   :  { %5994 = vmatprep.subr.bf16.mxu1 %v4644_v7  ;;  %v3029_v7 = vunpack.c.h.s8.bf16 %v1813_v54 }
 0x4fe   :  { %5954 = vmatpush2.bf16.msra.mxu0 %v4387_v46 }
 0x4ff   :  { %5995 = vmatpush2.bf16.msra.mxu1 %v4643_v59  ;;  %5955 = vmatprep.subr.bf16.mxu0 %v4372_v13  ;;  %v3014_v59 = vunpack.c.l.s8.bf16 %v1814_v41  ;;  %v1798_v13 = vld [vmem:[#allocation7 + $0x548] sm:$0xff] }
 0x500   :  { %5996 = vmatprep.subr.bf16.mxu1 %v4628_v58  ;;  %v2757_v58 = vunpack.c.l.s8.bf16 %v1685_v49  ;;  %v2998_v22 = vunpack.c.h.s8.bf16 %v1798_v13  ;;  %v1782_v41 = vld [vmem:[#allocation7 + $0x4c8] sm:$0xff]  ;;  %v1653_v49 = vld [vmem:[#allocation7 + $0xc0] sm:$0xff] }
 0x502   :  { %5956 = vmatpush2.bf16.msra.mxu0 %v4371_v21 }
 0x503   :  { %5997 = vmatpush2.bf16.msra.mxu1 %v4627_v6  ;;  %5957 = vmatprep.subr.bf16.mxu0 %v4356_v3  ;;  %v3013_v6 = vunpack.c.l.s8.bf16 %v1813_v54  ;;  %v2742_v3 = vunpack.c.h.s8.bf16 %v1670_v61  ;;  %v1781_v54 = vld [vmem:[#allocation7 + $0x4c0] sm:$0xff] }
 0x504   :  { %5998 = vmatprep.subr.bf16.mxu1 %v4612_v60  ;;  %v1669_v60 = vld [vmem:[#allocation7 + $0x140] sm:$0xff] }
 0x506   :  { %5958 = vmatpush2.bf16.msra.mxu0 %v4355_v23  ;;  %v1797_v23 = vld [vmem:[#allocation7 + $0x540] sm:$0xff] }
 0x507   :  { %5999 = vmatpush2.bf16.msra.mxu1 %v4611_v12  ;;  %5959 = vmatprep.subr.bf16.mxu0 %v4340_v24 }
 0x508   :  { %6000 = vmatprep.subr.bf16.mxu1 %v4596_v30  ;;  %v2741_v30 = vunpack.c.h.s8.bf16 %v1669_v60 }
 0x50a   :  { %5960 = vmatpush2.bf16.msra.mxu0 %v4339_v56  ;;  %v2997_v56 = vunpack.c.h.s8.bf16 %v1797_v23 }
 0x50b   :  { %6001 = vmatpush2.bf16.msra.mxu1 %v4595_v0  ;;  %5961 = vmatprep.subr.bf16.mxu0 %v4324_v31  ;;  %v2726_v0 = vunpack.c.l.s8.bf16 %v1670_v61  ;;  %v2950_v61 = vunpack.c.l.s8.bf16 %v1782_v41 }
 0x50c   :  { %6002 = vmatprep.subr.bf16.mxu1 %v4580_v36  ;;  %v2982_v36 = vunpack.c.l.s8.bf16 %v1798_v13  ;;  %v2693_v13 = vunpack.c.l.s8.bf16 %v1653_v49 }
 0x50e   :  { %5962 = vmatpush2.bf16.msra.mxu0 %v4323_v37  ;;  %v2725_v37 = vunpack.c.l.s8.bf16 %v1669_v60 }
 0x50f   :  { %6003 = vmatpush2.bf16.msra.mxu1 %v4579_v40  ;;  %6013 = vmatprep.subr.bf16.mxu0 %v2774_v51  ;;  %v2981_v40 = vunpack.c.l.s8.bf16 %v1797_v23  ;;  %v2710_v51 = vunpack.c.h.s8.bf16 %v1654_v39 }
 0x510   :  { %6054 = vmatprep.subr.bf16.mxu1 %v3030_v50  ;;  %v2966_v50 = vunpack.c.h.s8.bf16 %v1782_v41 }
 0x511   :  { %v5719_v46 = vpop.f32.mrf.mxu0  ;;  %5964 = vmatmul.mubr.bf16.vlgmr.msra.gmra.mxu0 %v9973_v33 }
 0x512   :  { %v5760_v16 = vpop.f32.mrf.mxu1  ;;  %6005 = vmatmul.mubr.bf16.vlgmr.msra.gmra.mxu1 %v9975_v35  ;;  %6014 = vmatpush1.bf16.msra.mxu0 %v2773_v55  ;;  %v2709_v55 = vunpack.c.h.s8.bf16 %v1653_v49  ;;  %v1862_v49 = vld [vmem:[#allocation7 + $0x748] sm:$0xff] }
 0x513   :  { %v10093_v17 = vadd.f32 %v5760_v16, %v5719_v46  ;;  %6045 = vmatprep.mubr.bf16.mxu0 %v9877_v45  ;;  %6055 = vmatpush1.bf16.msra.mxu1 %v3029_v7  ;;  %v5721_v21 = vpop.f32.mrf.mxu0  ;;  %v2965_v7 = vunpack.c.h.s8.bf16 %v1781_v54  ;;  %v1638_v46 = vld [vmem:[#allocation7 + $0x48] sm:$0xff]  ;;  %v2949_v16 = vunpack.c.l.s8.bf16 %v1781_v54 }
 0x514   :  { %6086 = vmatprep.mubr.bf16.mxu1 %v9881_v48  ;;  %v5762_v29 = vpop.f32.mrf.mxu1  ;;  %6015 = vmatprep.subr.bf16.mxu0 %v2758_v52  ;;  %v2694_v52 = vunpack.c.l.s8.bf16 %v1654_v39 }
 0x515   :  { %v10097_v12 = vadd.f32 %v5762_v29, %v5721_v21  ;;  %v5723_v24 = vpop.f32.mrf.mxu0  ;;  %6056 = vmatprep.subr.bf16.mxu1 %v3014_v59  ;;  %v1766_v59 = vld [vmem:[#allocation7 + $0x448] sm:$0xff]  ;;  %v1637_v21 = vld [vmem:[#allocation7 + $0x40] sm:$0xff] }
 0x516   :  { %v5764_v26 = vpop.f32.mrf.mxu1  ;;  %6016 = vmatpush1.bf16.msra.mxu0 %v2757_v58  ;;  %v2678_v58 = vunpack.c.h.s8.bf16 %v1638_v46  ;;  %v2677_v60 = vunpack.c.h.s8.bf16 %v1637_v21  ;;  %v2918_v23 = vunpack.c.l.s8.bf16 %v1766_v59  ;;  %v1750_v24 = vld [vmem:[#allocation7 + $0x3c8] sm:$0xff] }
 0x517   :  { %6057 = vmatpush1.bf16.msra.mxu1 %v3013_v6  ;;  %v5724_v32 = vpop.f32.mrf.mxu0  ;;  %6017 = vmatprep.subr.bf16.mxu0 %v2742_v3  ;;  %v2934_v6 = vunpack.c.h.s8.bf16 %v1766_v59  ;;  %v1765_v3 = vld [vmem:[#allocation7 + $0x440] sm:$0xff]  ;;  %v1878_v26 = vld [vmem:[#allocation7 + $0x7c8] sm:$0xff] }
 0x518   :  { %v5765_v31 = vpop.f32.mrf.mxu1  ;;  %6058 = vmatprep.subr.bf16.mxu1 %v2998_v22  ;;  %v2933_v29 = vunpack.c.h.s8.bf16 %v1765_v3  ;;  %v2662_v22 = vunpack.c.l.s8.bf16 %v1638_v46  ;;  %v2917_v32 = vunpack.c.l.s8.bf16 %v1765_v3 }
 0x519   :  { %v3158_v31 = vunpack.c.h.s8.bf16 %v1878_v26 }
 0x51a   :  { %6018 = vmatpush1.bf16.msra.mxu0 %v2741_v30  ;;  %v2661_v30 = vunpack.c.l.s8.bf16 %v1637_v21  ;;  %v1846_v21 = vld [vmem:[#allocation7 + $0x6c8] sm:$0xff] }
 0x51b   :  { %6059 = vmatpush1.bf16.msra.mxu1 %v2997_v56  ;;  %6019 = vmatprep.subr.bf16.mxu0 %v2726_v0  ;;  %v2902_v56 = vunpack.c.h.s8.bf16 %v1750_v24  ;;  %v1749_v0 = vld [vmem:[#allocation7 + $0x3c0] sm:$0xff] }
 0x51c   :  { %6060 = vmatprep.subr.bf16.mxu1 %v2982_v36  ;;  %v1877_v36 = vld [vmem:[#allocation7 + $0x7c0] sm:$0xff]  ;;  %v2901_v39 = vunpack.c.h.s8.bf16 %v1749_v0 }
 0x51d   :  { %v3157_v41 = vunpack.c.h.s8.bf16 %v1877_v36  ;;  %v3141_v54 = vunpack.c.l.s8.bf16 %v1877_v36 }
 0x51e   :  { %6020 = vmatpush1.bf16.msra.mxu0 %v2725_v37  ;;  %v2886_v37 = vunpack.c.l.s8.bf16 %v1750_v24 }
 0x51f   :  { %6061 = vmatpush1.bf16.msra.mxu1 %v2981_v40  ;;  %6021 = vmatprep.subr.bf16.mxu0 %v2710_v51  ;;  %v3142_v40 = vunpack.c.l.s8.bf16 %v1878_v26  ;;  %v1734_v51 = vld [vmem:[#allocation7 + $0x348] sm:$0xff] }
 0x520   :  { %6062 = vmatprep.subr.bf16.mxu1 %v2966_v50  ;;  %v2885_v50 = vunpack.c.l.s8.bf16 %v1749_v0  ;;  %v1830_v0 = vld [vmem:[#allocation7 + $0x648] sm:$0xff] }
 0x522   :  { %6022 = vmatpush1.bf16.msra.mxu0 %v2709_v55  ;;  %v2870_v55 = vunpack.c.h.s8.bf16 %v1734_v51 }
 0x523   :  { %6063 = vmatpush1.bf16.msra.mxu1 %v2965_v7  ;;  %6023 = vmatprep.subr.bf16.mxu0 %v2694_v52  ;;  %v1733_v7 = vld [vmem:[#allocation7 + $0x340] sm:$0xff]  ;;  %v3126_v52 = vunpack.c.h.s8.bf16 %v1862_v49 }
 0x524   :  { %6064 = vmatprep.subr.bf16.mxu1 %v2950_v61  ;;  %v1861_v61 = vld [vmem:[#allocation7 + $0x740] sm:$0xff]  ;;  %v2869_v46 = vunpack.c.h.s8.bf16 %v1733_v7 }
 0x525   :  { %v3125_v59 = vunpack.c.h.s8.bf16 %v1861_v61  ;;  %v3109_v3 = vunpack.c.l.s8.bf16 %v1861_v61 }
 0x526   :  { %6024 = vmatpush1.bf16.msra.mxu0 %v2693_v13  ;;  %v2854_v13 = vunpack.c.l.s8.bf16 %v1734_v51 }
 0x527   :  { %6065 = vmatpush1.bf16.msra.mxu1 %v2949_v16  ;;  %6025 = vmatprep.subr.bf16.mxu0 %v2678_v58  ;;  %v3110_v16 = vunpack.c.l.s8.bf16 %v1862_v49  ;;  %v1718_v58 = vld [vmem:[#allocation7 + $0x2c8] sm:$0xff] }
 0x528   :  { %6066 = vmatprep.subr.bf16.mxu1 %v2934_v6  ;;  %v2853_v6 = vunpack.c.l.s8.bf16 %v1733_v7  ;;  %v2070_v7 = vld [vmem:[#allocation7 + $0xdc8] sm:$0xff] }
 0x52a   :  { %6026 = vmatpush1.bf16.msra.mxu0 %v2677_v60  ;;  %v2838_v60 = vunpack.c.h.s8.bf16 %v1718_v58 }
 0x52b   :  { %6067 = vmatpush1.bf16.msra.mxu1 %v2933_v29  ;;  %6027 = vmatprep.subr.bf16.mxu0 %v2662_v22  ;;  %v1717_v29 = vld [vmem:[#allocation7 + $0x2c0] sm:$0xff]  ;;  %v3094_v22 = vunpack.c.h.s8.bf16 %v1846_v21 }
 0x52c   :  { %6068 = vmatprep.subr.bf16.mxu1 %v2918_v23  ;;  %v1845_v23 = vld [vmem:[#allocation7 + $0x6c0] sm:$0xff]  ;;  %v2837_v24 = vunpack.c.h.s8.bf16 %v1717_v29 }
 0x52d   :  { %v3093_v26 = vunpack.c.h.s8.bf16 %v1845_v23  ;;  %v3077_v36 = vunpack.c.l.s8.bf16 %v1845_v23 }
 0x52e   :  { %6028 = vmatpush1.bf16.msra.mxu0 %v2661_v30  ;;  %v2822_v30 = vunpack.c.l.s8.bf16 %v1718_v58 }
 0x52f   :  { %6069 = vmatpush1.bf16.msra.mxu1 %v2917_v32  ;;  %6029 = vmatprep.subr.bf16.mxu0 %v2902_v56  ;;  %v3078_v32 = vunpack.c.l.s8.bf16 %v1846_v21  ;;  %v1702_v56 = vld [vmem:[#allocation7 + $0x248] sm:$0xff] }
 0x530   :  { %6070 = vmatprep.subr.bf16.mxu1 %v3158_v31  ;;  %v2821_v31 = vunpack.c.l.s8.bf16 %v1717_v29  ;;  %v3526_v29 = vunpack.c.l.s8.bf16 %v2070_v7 }
 0x532   :  { %6030 = vmatpush2.bf16.msra.mxu0 %v2901_v39  ;;  %v2806_v39 = vunpack.c.h.s8.bf16 %v1702_v56 }
 0x533   :  { %6071 = vmatpush2.bf16.msra.mxu1 %v3157_v41  ;;  %6031 = vmatprep.subr.bf16.mxu0 %v2886_v37  ;;  %v1701_v41 = vld [vmem:[#allocation7 + $0x240] sm:$0xff]  ;;  %v3062_v37 = vunpack.c.h.s8.bf16 %v1830_v0 }
 0x534   :  { %6072 = vmatprep.subr.bf16.mxu1 %v3142_v40  ;;  %v1829_v40 = vld [vmem:[#allocation7 + $0x640] sm:$0xff]  ;;  %v2805_v51 = vunpack.c.h.s8.bf16 %v1701_v41 }
 0x535   :  { %v3061_v49 = vunpack.c.h.s8.bf16 %v1829_v40  ;;  %v3045_v61 = vunpack.c.l.s8.bf16 %v1829_v40 }
 0x536   :  { %6032 = vmatpush2.bf16.msra.mxu0 %v2885_v50  ;;  %v2790_v50 = vunpack.c.l.s8.bf16 %v1702_v56 }
 0x537   :  { %6073 = vmatpush2.bf16.msra.mxu1 %v3141_v54  ;;  %6033 = vmatprep.subr.bf16.mxu0 %v2870_v55  ;;  %v3046_v54 = vunpack.c.l.s8.bf16 %v1830_v0  ;;  %v1942_v55 = vld [vmem:[#allocation7 + $0x9c8] sm:$0xff]  ;;  %v1925_v0 = vld [vmem:[#allocation7 + $0x940] sm:$0xff] }
 0x538   :  { %6074 = vmatprep.subr.bf16.mxu1 %v3126_v52  ;;  %v2789_v52 = vunpack.c.l.s8.bf16 %v1701_v41  ;;  %v2053_v41 = vld [vmem:[#allocation7 + $0xd40] sm:$0xff] }
 0x53a   :  { %6034 = vmatpush2.bf16.msra.mxu0 %v2869_v46  ;;  %v3286_v46 = vunpack.c.h.s8.bf16 %v1942_v55 }
 0x53b   :  { %6075 = vmatpush2.bf16.msra.mxu1 %v3125_v59  ;;  %6035 = vmatprep.subr.bf16.mxu0 %v2854_v13  ;;  %v1941_v59 = vld [vmem:[#allocation7 + $0x9c0] sm:$0xff]  ;;  %v3542_v13 = vunpack.c.h.s8.bf16 %v2070_v7 }
 0x53c   :  { %6076 = vmatprep.subr.bf16.mxu1 %v3110_v16  ;;  %v2069_v16 = vld [vmem:[#allocation7 + $0xdc0] sm:$0xff]  ;;  %v3285_v58 = vunpack.c.h.s8.bf16 %v1941_v59 }
 0x53d   :  { %v3541_v21 = vunpack.c.h.s8.bf16 %v2069_v16 }
 0x53e   :  { %6036 = vmatpush2.bf16.msra.mxu0 %v2853_v6  ;;  %v3270_v6 = vunpack.c.l.s8.bf16 %v1942_v55 }
 0x53f   :  { %6077 = vmatpush2.bf16.msra.mxu1 %v3109_v3  ;;  %6037 = vmatprep.subr.bf16.mxu0 %v2838_v60  ;;  %v1926_v3 = vld [vmem:[#allocation7 + $0x948] sm:$0xff] }
 0x540   :  { %6078 = vmatprep.subr.bf16.mxu1 %v3094_v22  ;;  %v2054_v22 = vld [vmem:[#allocation7 + $0xd48] sm:$0xff]  ;;  %v3254_v56 = vunpack.c.h.s8.bf16 %v1926_v3  ;;  %v3238_v55 = vunpack.c.l.s8.bf16 %v1926_v3 }
 0x542   :  { %6038 = vmatpush2.bf16.msra.mxu0 %v2837_v24 }
 0x543   :  { %6079 = vmatpush2.bf16.msra.mxu1 %v3093_v26  ;;  %6039 = vmatprep.subr.bf16.mxu0 %v2822_v30  ;;  %v3269_v26 = vunpack.c.l.s8.bf16 %v1941_v59  ;;  %v3493_v59 = vunpack.c.l.s8.bf16 %v2053_v41 }
 0x544   :  { %6080 = vmatprep.subr.bf16.mxu1 %v3078_v32  ;;  %v3525_v32 = vunpack.c.l.s8.bf16 %v2069_v16  ;;  %v1909_v16 = vld [vmem:[#allocation7 + $0x8c0] sm:$0xff] }
 0x546   :  { %6040 = vmatpush2.bf16.msra.mxu0 %v2821_v31 }
 0x547   :  { %6081 = vmatpush2.bf16.msra.mxu1 %v3077_v36  ;;  %6041 = vmatprep.subr.bf16.mxu0 %v2806_v39 }
 0x548   :  { %6082 = vmatprep.subr.bf16.mxu1 %v3062_v37 }
 0x54a   :  { %6042 = vmatpush2.bf16.msra.mxu0 %v2805_v51 }
 0x54b   :  { %6083 = vmatpush2.bf16.msra.mxu1 %v3061_v49  ;;  %6043 = vmatprep.subr.bf16.mxu0 %v2790_v50  ;;  %v3253_v49 = vunpack.c.h.s8.bf16 %v1925_v0 }
 0x54c   :  { %6084 = vmatprep.subr.bf16.mxu1 %v3046_v54  ;;  %v3509_v54 = vunpack.c.h.s8.bf16 %v2053_v41 }
 0x54e   :  { %6044 = vmatpush2.bf16.msra.mxu0 %v2789_v52  ;;  %v3494_v52 = vunpack.c.l.s8.bf16 %v2054_v22 }
 0x54f   :  { %6085 = vmatpush2.bf16.msra.mxu1 %v3045_v61  ;;  %6095 = vmatprep.subr.bf16.mxu0 %v3286_v46  ;;  %v2038_v61 = vld [vmem:[#allocation7 + $0xcc8] sm:$0xff]  ;;  %v3237_v46 = vunpack.c.l.s8.bf16 %v1925_v0  ;;  %v2021_v0 = vld [vmem:[#allocation7 + $0xc40] sm:$0xff] }
 0x550   :  { %6136 = vmatprep.subr.bf16.mxu1 %v3542_v13 }
 0x551   :  { %v5801_v60 = vpop.f32.mrf.mxu0  ;;  %6046 = vmatmul.mubr.bf16.vlgmr.msra.gmra.mxu0 %v9879_v47 }
 0x552   :  { %v5802_v23 = vadd.f32 %v5801_v60, %v10093_v17  ;;  %v5842_v24 = vpop.f32.mrf.mxu1  ;;  %6087 = vmatmul.mubr.bf16.vlgmr.msra.gmra.mxu1 %v9875_v44  ;;  %6096 = vmatpush1.bf16.msra.mxu0 %v3285_v58  ;;  %v3510_v17 = vunpack.c.h.s8.bf16 %v2054_v22  ;;  %v3478_v58 = vunpack.c.h.s8.bf16 %v2038_v61  ;;  %v1894_v22 = vld [vmem:[#allocation7 + $0x848] sm:$0xff] }
 0x553   :  { %6127 = vmatprep.mubr.bf16.mxu0 %v9901_v15  ;;  %6137 = vmatpush1.bf16.msra.mxu1 %v3541_v21  ;;  %v5803_v30 = vpop.f32.mrf.mxu0  ;;  %v2037_v21 = vld [vmem:[#allocation7 + $0xcc0] sm:$0xff] }
 0x554   :  { %v10103_v31 = vadd.f32 %v5842_v24, %v5802_v23  ;;  %6168 = vmatprep.mubr.bf16.mxu1 %v9903_v18  ;;  %v5804_v36 = vadd.f32 %v5803_v30, %v10097_v12  ;;  %v5844_v39 = vpop.f32.mrf.mxu1  ;;  %6097 = vmatprep.subr.bf16.mxu0 %v3270_v6  ;;  %v1910_v12 = vld [vmem:[#allocation7 + $0x8c8] sm:$0xff]  ;;  %v3221_v6 = vunpack.c.h.s8.bf16 %v1909_v16  ;;  %v3477_v3 = vunpack.c.h.s8.bf16 %v2037_v21 }
 0x555   :  { %v5805_v37 = vpop.f32.mrf.mxu0  ;;  %6138 = vmatprep.subr.bf16.mxu1 %v3526_v29  ;;  %v3222_v13 = vunpack.c.h.s8.bf16 %v1910_v12  ;;  %v3206_v60 = vunpack.c.l.s8.bf16 %v1910_v12  ;;  %v3462_v29 = vunpack.c.l.s8.bf16 %v2038_v61  ;;  %v2022_v23 = vld [vmem:[#allocation7 + $0xc48] sm:$0xff]  ;;  %v3205_v24 = vunpack.c.l.s8.bf16 %v1909_v16 }
 0x556   :  { %v10107_v40 = vadd.f32 %v5844_v39, %v5804_v36  ;;  %v5846_v51 = vpop.f32.mrf.mxu1  ;;  %6098 = vmatpush1.bf16.msra.mxu0 %v3269_v26  ;;  %v3461_v26 = vunpack.c.l.s8.bf16 %v2037_v21  ;;  %v3190_v30 = vunpack.c.h.s8.bf16 %v1894_v22  ;;  %v3445_v39 = vunpack.c.h.s8.bf16 %v2021_v0  ;;  %v2006_v37 = vld [vmem:[#allocation7 + $0xbc8] sm:$0xff] }
 0x557   :  { %6139 = vmatpush1.bf16.msra.mxu1 %v3525_v32  ;;  %v5806_v50 = vpop.f32.mrf.mxu0  ;;  %6099 = vmatprep.subr.bf16.mxu0 %v3254_v56  ;;  %v1893_v32 = vld [vmem:[#allocation7 + $0x840] sm:$0xff]  ;;  %v3446_v56 = vunpack.c.h.s8.bf16 %v2022_v23  ;;  %v3430_v41 = vunpack.c.l.s8.bf16 %v2022_v23  ;;  %v2134_v51 = vld [vmem:[#allocation7 + $0xfc8] sm:$0xff] }
 0x558   :  { %v5847_v7 = vpop.f32.mrf.mxu1  ;;  %6140 = vmatprep.subr.bf16.mxu1 %v3510_v17  ;;  %v3189_v36 = vunpack.c.h.s8.bf16 %v1893_v32  ;;  %v3174_v17 = vunpack.c.l.s8.bf16 %v1894_v22  ;;  %v3429_v50 = vunpack.c.l.s8.bf16 %v2021_v0  ;;  %v2118_v16 = vld [vmem:[#allocation7 + $0xf48] sm:$0xff] }
 0x559   :  { %v3670_v7 = vunpack.c.h.s8.bf16 %v2134_v51 }
 0x55a   :  { %6100 = vmatpush1.bf16.msra.mxu0 %v3253_v49  ;;  %v3173_v49 = vunpack.c.l.s8.bf16 %v1893_v32  ;;  %v2102_v32 = vld [vmem:[#allocation7 + $0xec8] sm:$0xff] }
 0x55b   :  { %6141 = vmatpush1.bf16.msra.mxu1 %v3509_v54  ;;  %6101 = vmatprep.subr.bf16.mxu0 %v3238_v55  ;;  %v3414_v54 = vunpack.c.h.s8.bf16 %v2006_v37  ;;  %v2005_v55 = vld [vmem:[#allocation7 + $0xbc0] sm:$0xff] }
 0x55c   :  { %6142 = vmatprep.subr.bf16.mxu1 %v3494_v52  ;;  %v2133_v52 = vld [vmem:[#allocation7 + $0xfc0] sm:$0xff]  ;;  %v3413_v12 = vunpack.c.h.s8.bf16 %v2005_v55 }
 0x55d   :  { %v3669_v61 = vunpack.c.h.s8.bf16 %v2133_v52  ;;  %v3653_v21 = vunpack.c.l.s8.bf16 %v2133_v52 }
 0x55e   :  { %6102 = vmatpush1.bf16.msra.mxu0 %v3237_v46  ;;  %v3398_v46 = vunpack.c.l.s8.bf16 %v2006_v37 }
 0x55f   :  { %6143 = vmatpush1.bf16.msra.mxu1 %v3493_v59  ;;  %6103 = vmatprep.subr.bf16.mxu0 %v3222_v13  ;;  %v3654_v59 = vunpack.c.l.s8.bf16 %v2134_v51  ;;  %v1990_v13 = vld [vmem:[#allocation7 + $0xb48] sm:$0xff] }
 0x560   :  { %6144 = vmatprep.subr.bf16.mxu1 %v3478_v58  ;;  %v3397_v58 = vunpack.c.l.s8.bf16 %v2005_v55  ;;  %v2086_v55 = vld [vmem:[#allocation7 + $0xe48] sm:$0xff] }
 0x562   :  { %6104 = vmatpush1.bf16.msra.mxu0 %v3221_v6  ;;  %v3382_v6 = vunpack.c.h.s8.bf16 %v1990_v13 }
 0x563   :  { %6145 = vmatpush1.bf16.msra.mxu1 %v3477_v3  ;;  %6105 = vmatprep.subr.bf16.mxu0 %v3206_v60  ;;  %v1989_v3 = vld [vmem:[#allocation7 + $0xb40] sm:$0xff]  ;;  %v3638_v60 = vunpack.c.h.s8.bf16 %v2118_v16 }
 0x564   :  { %6146 = vmatprep.subr.bf16.mxu1 %v3462_v29  ;;  %v2117_v29 = vld [vmem:[#allocation7 + $0xf40] sm:$0xff]  ;;  %v3381_v22 = vunpack.c.h.s8.bf16 %v1989_v3 }
 0x565   :  { %v3637_v23 = vunpack.c.h.s8.bf16 %v2117_v29  ;;  %v3621_v0 = vunpack.c.l.s8.bf16 %v2117_v29 }
 0x566   :  { %6106 = vmatpush1.bf16.msra.mxu0 %v3205_v24  ;;  %v3366_v24 = vunpack.c.l.s8.bf16 %v1990_v13 }
 0x567   :  { %6147 = vmatpush1.bf16.msra.mxu1 %v3461_v26  ;;  %6107 = vmatprep.subr.bf16.mxu0 %v3190_v30  ;;  %v3622_v26 = vunpack.c.l.s8.bf16 %v2118_v16  ;;  %v1974_v30 = vld [vmem:[#allocation7 + $0xac8] sm:$0xff] }
 0x568   :  { %6148 = vmatprep.subr.bf16.mxu1 %v3446_v56  ;;  %v3365_v56 = vunpack.c.l.s8.bf16 %v1989_v3  ;;  %v2326_v3 = vld [vmem:[#allocation7 + $0x15c8] sm:$0xff] }
 0x56a   :  { %6108 = vmatpush1.bf16.msra.mxu0 %v3189_v36  ;;  %v3350_v36 = vunpack.c.h.s8.bf16 %v1974_v30 }
 0x56b   :  { %6149 = vmatpush1.bf16.msra.mxu1 %v3445_v39  ;;  %6109 = vmatprep.subr.bf16.mxu0 %v3174_v17  ;;  %v1973_v39 = vld [vmem:[#allocation7 + $0xac0] sm:$0xff]  ;;  %v3606_v17 = vunpack.c.h.s8.bf16 %v2102_v32 }
 0x56c   :  { %6150 = vmatprep.subr.bf16.mxu1 %v3430_v41  ;;  %v2101_v41 = vld [vmem:[#allocation7 + $0xec0] sm:$0xff]  ;;  %v3349_v37 = vunpack.c.h.s8.bf16 %v1973_v39 }
 0x56d   :  { %v3605_v51 = vunpack.c.h.s8.bf16 %v2101_v41  ;;  %v3589_v52 = vunpack.c.l.s8.bf16 %v2101_v41 }
 0x56e   :  { %6110 = vmatpush1.bf16.msra.mxu0 %v3173_v49  ;;  %v3334_v49 = vunpack.c.l.s8.bf16 %v1974_v30 }
 0x56f   :  { %6151 = vmatpush1.bf16.msra.mxu1 %v3429_v50  ;;  %6111 = vmatprep.subr.bf16.mxu0 %v3414_v54  ;;  %v3590_v50 = vunpack.c.l.s8.bf16 %v2102_v32  ;;  %v1958_v54 = vld [vmem:[#allocation7 + $0xa48] sm:$0xff] }
 0x570   :  { %6152 = vmatprep.subr.bf16.mxu1 %v3670_v7  ;;  %v3333_v7 = vunpack.c.l.s8.bf16 %v1973_v39  ;;  %v4038_v39 = vunpack.c.l.s8.bf16 %v2326_v3 }
 0x572   :  { %6112 = vmatpush2.bf16.msra.mxu0 %v3413_v12  ;;  %v3318_v12 = vunpack.c.h.s8.bf16 %v1958_v54 }
 0x573   :  { %6153 = vmatpush2.bf16.msra.mxu1 %v3669_v61  ;;  %6113 = vmatprep.subr.bf16.mxu0 %v3398_v46  ;;  %v1957_v61 = vld [vmem:[#allocation7 + $0xa40] sm:$0xff]  ;;  %v3574_v46 = vunpack.c.h.s8.bf16 %v2086_v55 }
 0x574   :  { %6154 = vmatprep.subr.bf16.mxu1 %v3654_v59  ;;  %v2085_v59 = vld [vmem:[#allocation7 + $0xe40] sm:$0xff]  ;;  %v3317_v13 = vunpack.c.h.s8.bf16 %v1957_v61 }
 0x575   :  { %v3573_v16 = vunpack.c.h.s8.bf16 %v2085_v59  ;;  %v3557_v29 = vunpack.c.l.s8.bf16 %v2085_v59 }
 0x576   :  { %6114 = vmatpush2.bf16.msra.mxu0 %v3397_v58  ;;  %v3302_v58 = vunpack.c.l.s8.bf16 %v1958_v54 }
 0x577   :  { %6155 = vmatpush2.bf16.msra.mxu1 %v3653_v21  ;;  %6115 = vmatprep.subr.bf16.mxu0 %v3382_v6  ;;  %v3558_v21 = vunpack.c.l.s8.bf16 %v2086_v55  ;;  %v2198_v6 = vld [vmem:[#allocation7 + $0x11c8] sm:$0xff]  ;;  %v2181_v55 = vld [vmem:[#allocation7 + $0x1140] sm:$0xff] }
 0x578   :  { %6156 = vmatprep.subr.bf16.mxu1 %v3638_v60  ;;  %v3301_v60 = vunpack.c.l.s8.bf16 %v1957_v61  ;;  %v2309_v61 = vld [vmem:[#allocation7 + $0x1540] sm:$0xff] }
 0x57a   :  { %6116 = vmatpush2.bf16.msra.mxu0 %v3381_v22  ;;  %v3798_v22 = vunpack.c.h.s8.bf16 %v2198_v6 }
 0x57b   :  { %6157 = vmatpush2.bf16.msra.mxu1 %v3637_v23  ;;  %6117 = vmatprep.subr.bf16.mxu0 %v3366_v24  ;;  %v2197_v23 = vld [vmem:[#allocation7 + $0x11c0] sm:$0xff]  ;;  %v4054_v24 = vunpack.c.h.s8.bf16 %v2326_v3 }
 0x57c   :  { %6158 = vmatprep.subr.bf16.mxu1 %v3622_v26  ;;  %v2325_v26 = vld [vmem:[#allocation7 + $0x15c0] sm:$0xff]  ;;  %v3797_v30 = vunpack.c.h.s8.bf16 %v2197_v23 }
 0x57d   :  { %v4053_v32 = vunpack.c.h.s8.bf16 %v2325_v26 }
 0x57e   :  { %6118 = vmatpush2.bf16.msra.mxu0 %v3365_v56  ;;  %v3782_v56 = vunpack.c.l.s8.bf16 %v2198_v6 }
 0x57f   :  { %6159 = vmatpush2.bf16.msra.mxu1 %v3621_v0  ;;  %6119 = vmatprep.subr.bf16.mxu0 %v3350_v36  ;;  %v2182_v0 = vld [vmem:[#allocation7 + $0x1148] sm:$0xff] }
 0x580   :  { %6160 = vmatprep.subr.bf16.mxu1 %v3606_v17  ;;  %v2310_v17 = vld [vmem:[#allocation7 + $0x1548] sm:$0xff]  ;;  %v3766_v54 = vunpack.c.h.s8.bf16 %v2182_v0  ;;  %v3750_v6 = vunpack.c.l.s8.bf16 %v2182_v0 }
 0x582   :  { %6120 = vmatpush2.bf16.msra.mxu0 %v3349_v37 }
 0x583   :  { %6161 = vmatpush2.bf16.msra.mxu1 %v3605_v51  ;;  %6121 = vmatprep.subr.bf16.mxu0 %v3334_v49  ;;  %v3781_v51 = vunpack.c.l.s8.bf16 %v2197_v23  ;;  %v4005_v23 = vunpack.c.l.s8.bf16 %v2309_v61 }
 0x584   :  { %6162 = vmatprep.subr.bf16.mxu1 %v3590_v50  ;;  %v4037_v50 = vunpack.c.l.s8.bf16 %v2325_v26  ;;  %v2165_v26 = vld [vmem:[#allocation7 + $0x10c0] sm:$0xff] }
 0x586   :  { %6122 = vmatpush2.bf16.msra.mxu0 %v3333_v7 }
 0x587   :  { %6163 = vmatpush2.bf16.msra.mxu1 %v3589_v52  ;;  %6123 = vmatprep.subr.bf16.mxu0 %v3318_v12 }
 0x588   :  { %6164 = vmatprep.subr.bf16.mxu1 %v3574_v46 }
 0x58a   :  { %6124 = vmatpush2.bf16.msra.mxu0 %v3317_v13 }
 0x58b   :  { %6165 = vmatpush2.bf16.msra.mxu1 %v3573_v16  ;;  %6125 = vmatprep.subr.bf16.mxu0 %v3302_v58  ;;  %v3765_v16 = vunpack.c.h.s8.bf16 %v2181_v55 }
 0x58c   :  { %6166 = vmatprep.subr.bf16.mxu1 %v3558_v21  ;;  %v4021_v21 = vunpack.c.h.s8.bf16 %v2309_v61 }
 0x58e   :  { %6126 = vmatpush2.bf16.msra.mxu0 %v3301_v60  ;;  %v4006_v60 = vunpack.c.l.s8.bf16 %v2310_v17 }
 0x58f   :  { %6167 = vmatpush2.bf16.msra.mxu1 %v3557_v29  ;;  %6177 = vmatprep.subr.bf16.mxu0 %v3798_v22  ;;  %v2294_v29 = vld [vmem:[#allocation7 + $0x14c8] sm:$0xff]  ;;  %v3749_v22 = vunpack.c.l.s8.bf16 %v2181_v55  ;;  %v2277_v55 = vld [vmem:[#allocation7 + $0x1440] sm:$0xff] }
 0x590   :  { %6218 = vmatprep.subr.bf16.mxu1 %v4054_v24 }
 0x591   :  { %v5883_v36 = vpop.f32.mrf.mxu0  ;;  %6128 = vmatmul.mubr.bf16.vlgmr.msra.gmra.mxu0 %v9919_v63 }
 0x592   :  { %v5884_v41 = vadd.f32 %v5883_v36, %v10103_v31  ;;  %v5924_v37 = vpop.f32.mrf.mxu1  ;;  %6169 = vmatmul.mubr.bf16.vlgmr.msra.gmra.mxu1 %v9921_v1  ;;  %6178 = vmatpush1.bf16.msra.mxu0 %v3797_v30  ;;  %v4022_v31 = vunpack.c.h.s8.bf16 %v2310_v17  ;;  %v3990_v30 = vunpack.c.h.s8.bf16 %v2294_v29  ;;  %v2150_v17 = vld [vmem:[#allocation7 + $0x1048] sm:$0xff] }
 0x593   :  { %6209 = vmatprep.mubr.bf16.mxu0 %v9935_v34  ;;  %6219 = vmatpush1.bf16.msra.mxu1 %v4053_v32  ;;  %v5885_v49 = vpop.f32.mrf.mxu0  ;;  %v2293_v32 = vld [vmem:[#allocation7 + $0x14c0] sm:$0xff] }
 0x594   :  { %v10113_v7 = vadd.f32 %v5924_v37, %v5884_v41  ;;  %6250 = vmatprep.mubr.bf16.mxu1 %v9937_v4  ;;  %v5886_v52 = vadd.f32 %v5885_v49, %v10107_v40  ;;  %v5926_v12 = vpop.f32.mrf.mxu1  ;;  %6179 = vmatprep.subr.bf16.mxu0 %v3782_v56  ;;  %v2166_v40 = vld [vmem:[#allocation7 + $0x10c8] sm:$0xff]  ;;  %v3733_v56 = vunpack.c.h.s8.bf16 %v2165_v26  ;;  %v3989_v0 = vunpack.c.h.s8.bf16 %v2293_v32 }
 0x595   :  { %v5887_v46 = vpop.f32.mrf.mxu0  ;;  %6220 = vmatprep.subr.bf16.mxu1 %v4038_v39  ;;  %v3734_v24 = vunpack.c.h.s8.bf16 %v2166_v40  ;;  %v3718_v36 = vunpack.c.l.s8.bf16 %v2166_v40  ;;  %v3974_v39 = vunpack.c.l.s8.bf16 %v2294_v29  ;;  %v2278_v41 = vld [vmem:[#allocation7 + $0x1448] sm:$0xff]  ;;  %v3717_v37 = vunpack.c.l.s8.bf16 %v2165_v26 }
 0x596   :  { %v10117_v59 = vadd.f32 %v5926_v12, %v5886_v52  ;;  %v5928_v13 = vpop.f32.mrf.mxu1  ;;  %6180 = vmatpush1.bf16.msra.mxu0 %v3781_v51  ;;  %v3973_v51 = vunpack.c.l.s8.bf16 %v2293_v32  ;;  %v3702_v49 = vunpack.c.h.s8.bf16 %v2150_v17  ;;  %v3957_v12 = vunpack.c.h.s8.bf16 %v2277_v55  ;;  %v2262_v46 = vld [vmem:[#allocation7 + $0x13c8] sm:$0xff] }
 0x597   :  { %6221 = vmatpush1.bf16.msra.mxu1 %v4037_v50  ;;  %v5888_v58 = vpop.f32.mrf.mxu0  ;;  %6181 = vmatprep.subr.bf16.mxu0 %v3766_v54  ;;  %v2149_v50 = vld [vmem:[#allocation7 + $0x1040] sm:$0xff]  ;;  %v3958_v54 = vunpack.c.h.s8.bf16 %v2278_v41  ;;  %v3942_v61 = vunpack.c.l.s8.bf16 %v2278_v41  ;;  %v2390_v13 = vld [vmem:[#allocation7 + $0x17c8] sm:$0xff] }
 0x598   :  { %v5929_v3 = vpop.f32.mrf.mxu1  ;;  %6222 = vmatprep.subr.bf16.mxu1 %v4022_v31  ;;  %v3701_v52 = vunpack.c.h.s8.bf16 %v2149_v50  ;;  %v3686_v31 = vunpack.c.l.s8.bf16 %v2150_v17  ;;  %v3941_v58 = vunpack.c.l.s8.bf16 %v2277_v55  ;;  %v2374_v26 = vld [vmem:[#allocation7 + $0x1748] sm:$0xff] }
 0x599   :  { %v4182_v3 = vunpack.c.h.s8.bf16 %v2390_v13 }
 0x59a   :  { %6182 = vmatpush1.bf16.msra.mxu0 %v3765_v16  ;;  %v3685_v16 = vunpack.c.l.s8.bf16 %v2149_v50  ;;  %v2358_v50 = vld [vmem:[#allocation7 + $0x16c8] sm:$0xff] }
 0x59b   :  { %6223 = vmatpush1.bf16.msra.mxu1 %v4021_v21  ;;  %6183 = vmatprep.subr.bf16.mxu0 %v3750_v6  ;;  %v3926_v21 = vunpack.c.h.s8.bf16 %v2262_v46  ;;  %v2261_v6 = vld [vmem:[#allocation7 + $0x13c0] sm:$0xff] }
 0x59c   :  { %6224 = vmatprep.subr.bf16.mxu1 %v4006_v60  ;;  %v2389_v60 = vld [vmem:[#allocation7 + $0x17c0] sm:$0xff]  ;;  %v3925_v40 = vunpack.c.h.s8.bf16 %v2261_v6 }
 0x59d   :  { %v4181_v29 = vunpack.c.h.s8.bf16 %v2389_v60  ;;  %v4165_v32 = vunpack.c.l.s8.bf16 %v2389_v60 }
 0x59e   :  { %6184 = vmatpush1.bf16.msra.mxu0 %v3749_v22  ;;  %v3910_v22 = vunpack.c.l.s8.bf16 %v2262_v46 }
 0x59f   :  { %6225 = vmatpush1.bf16.msra.mxu1 %v4005_v23  ;;  %6185 = vmatprep.subr.bf16.mxu0 %v3734_v24  ;;  %v4166_v23 = vunpack.c.l.s8.bf16 %v2390_v13  ;;  %v2246_v24 = vld [vmem:[#allocation7 + $0x1348] sm:$0xff] }
 0x5a0   :  { %6226 = vmatprep.subr.bf16.mxu1 %v3990_v30  ;;  %v3909_v30 = vunpack.c.l.s8.bf16 %v2261_v6  ;;  %v2342_v6 = vld [vmem:[#allocation7 + $0x1648] sm:$0xff] }
 0x5a2   :  { %6186 = vmatpush1.bf16.msra.mxu0 %v3733_v56  ;;  %v3894_v56 = vunpack.c.h.s8.bf16 %v2246_v24 }
 0x5a3   :  { %6227 = vmatpush1.bf16.msra.mxu1 %v3989_v0  ;;  %6187 = vmatprep.subr.bf16.mxu0 %v3718_v36  ;;  %v2245_v0 = vld [vmem:[#allocation7 + $0x1340] sm:$0xff]  ;;  %v4150_v36 = vunpack.c.h.s8.bf16 %v2374_v26 }
 0x5a4   :  { %6228 = vmatprep.subr.bf16.mxu1 %v3974_v39  ;;  %v2373_v39 = vld [vmem:[#allocation7 + $0x1740] sm:$0xff]  ;;  %v3893_v17 = vunpack.c.h.s8.bf16 %v2245_v0 }
 0x5a5   :  { %v4149_v41 = vunpack.c.h.s8.bf16 %v2373_v39  ;;  %v4133_v55 = vunpack.c.l.s8.bf16 %v2373_v39 }
 0x5a6   :  { %6188 = vmatpush1.bf16.msra.mxu0 %v3717_v37  ;;  %v3878_v37 = vunpack.c.l.s8.bf16 %v2246_v24 }
 0x5a7   :  { %6229 = vmatpush1.bf16.msra.mxu1 %v3973_v51  ;;  %6189 = vmatprep.subr.bf16.mxu0 %v3702_v49  ;;  %v4134_v51 = vunpack.c.l.s8.bf16 %v2374_v26  ;;  %v2230_v49 = vld [vmem:[#allocation7 + $0x12c8] sm:$0xff] }
 0x5a8   :  { %6230 = vmatprep.subr.bf16.mxu1 %v3958_v54  ;;  %v3877_v54 = vunpack.c.l.s8.bf16 %v2245_v0  ;;  %v2582_v0 = vld [vmem:[#allocation7 + $0x1dc8] sm:$0xff] }
 0x5aa   :  { %6190 = vmatpush1.bf16.msra.mxu0 %v3701_v52  ;;  %v3862_v52 = vunpack.c.h.s8.bf16 %v2230_v49 }
 0x5ab   :  { %6231 = vmatpush1.bf16.msra.mxu1 %v3957_v12  ;;  %6191 = vmatprep.subr.bf16.mxu0 %v3686_v31  ;;  %v2229_v12 = vld [vmem:[#allocation7 + $0x12c0] sm:$0xff]  ;;  %v4118_v31 = vunpack.c.h.s8.bf16 %v2358_v50 }
 0x5ac   :  { %6232 = vmatprep.subr.bf16.mxu1 %v3942_v61  ;;  %v2357_v61 = vld [vmem:[#allocation7 + $0x16c0] sm:$0xff]  ;;  %v3861_v46 = vunpack.c.h.s8.bf16 %v2229_v12 }
 0x5ad   :  { %v4117_v13 = vunpack.c.h.s8.bf16 %v2357_v61  ;;  %v4101_v60 = vunpack.c.l.s8.bf16 %v2357_v61 }
 0x5ae   :  { %6192 = vmatpush1.bf16.msra.mxu0 %v3685_v16  ;;  %v3846_v16 = vunpack.c.l.s8.bf16 %v2230_v49 }
 0x5af   :  { %6233 = vmatpush1.bf16.msra.mxu1 %v3941_v58  ;;  %6193 = vmatprep.subr.bf16.mxu0 %v3926_v21  ;;  %v4102_v58 = vunpack.c.l.s8.bf16 %v2358_v50  ;;  %v2214_v21 = vld [vmem:[#allocation7 + $0x1248] sm:$0xff] }
 0x5b0   :  { %6234 = vmatprep.subr.bf16.mxu1 %v4182_v3  ;;  %v3845_v3 = vunpack.c.l.s8.bf16 %v2229_v12  ;;  %v4550_v12 = vunpack.c.l.s8.bf16 %v2582_v0 }
 0x5b2   :  { %6194 = vmatpush2.bf16.msra.mxu0 %v3925_v40  ;;  %v3830_v40 = vunpack.c.h.s8.bf16 %v2214_v21 }
 0x5b3   :  { %6235 = vmatpush2.bf16.msra.mxu1 %v4181_v29  ;;  %6195 = vmatprep.subr.bf16.mxu0 %v3910_v22  ;;  %v2213_v29 = vld [vmem:[#allocation7 + $0x1240] sm:$0xff]  ;;  %v4086_v22 = vunpack.c.h.s8.bf16 %v2342_v6 }
 0x5b4   :  { %6236 = vmatprep.subr.bf16.mxu1 %v4166_v23  ;;  %v2341_v23 = vld [vmem:[#allocation7 + $0x1640] sm:$0xff]  ;;  %v3829_v24 = vunpack.c.h.s8.bf16 %v2213_v29 }
 0x5b5   :  { %v4085_v26 = vunpack.c.h.s8.bf16 %v2341_v23  ;;  %v4069_v39 = vunpack.c.l.s8.bf16 %v2341_v23 }
 0x5b6   :  { %6196 = vmatpush2.bf16.msra.mxu0 %v3909_v30  ;;  %v3814_v30 = vunpack.c.l.s8.bf16 %v2214_v21 }
 0x5b7   :  { %6237 = vmatpush2.bf16.msra.mxu1 %v4165_v32  ;;  %6197 = vmatprep.subr.bf16.mxu0 %v3894_v56  ;;  %v4070_v32 = vunpack.c.l.s8.bf16 %v2342_v6  ;;  %v2454_v56 = vld [vmem:[#allocation7 + $0x19c8] sm:$0xff]  ;;  %v2437_v6 = vld [vmem:[#allocation7 + $0x1940] sm:$0xff] }
 0x5b8   :  { %6238 = vmatprep.subr.bf16.mxu1 %v4150_v36  ;;  %v3813_v36 = vunpack.c.l.s8.bf16 %v2213_v29  ;;  %v2565_v29 = vld [vmem:[#allocation7 + $0x1d40] sm:$0xff] }
 0x5ba   :  { %6198 = vmatpush2.bf16.msra.mxu0 %v3893_v17  ;;  %v4310_v17 = vunpack.c.h.s8.bf16 %v2454_v56 }
 0x5bb   :  { %6239 = vmatpush2.bf16.msra.mxu1 %v4149_v41  ;;  %6199 = vmatprep.subr.bf16.mxu0 %v3878_v37  ;;  %v2453_v41 = vld [vmem:[#allocation7 + $0x19c0] sm:$0xff]  ;;  %v4566_v37 = vunpack.c.h.s8.bf16 %v2582_v0 }
 0x5bc   :  { %6240 = vmatprep.subr.bf16.mxu1 %v4134_v51  ;;  %v2581_v51 = vld [vmem:[#allocation7 + $0x1dc0] sm:$0xff]  ;;  %v4309_v49 = vunpack.c.h.s8.bf16 %v2453_v41 }
 0x5bd   :  { %v4565_v50 = vunpack.c.h.s8.bf16 %v2581_v51 }
 0x5be   :  { %6200 = vmatpush2.bf16.msra.mxu0 %v3877_v54  ;;  %v4294_v54 = vunpack.c.l.s8.bf16 %v2454_v56 }
 0x5bf   :  { %6241 = vmatpush2.bf16.msra.mxu1 %v4133_v55  ;;  %6201 = vmatprep.subr.bf16.mxu0 %v3862_v52  ;;  %v2438_v55 = vld [vmem:[#allocation7 + $0x1948] sm:$0xff] }
 0x5c0   :  { %6242 = vmatprep.subr.bf16.mxu1 %v4118_v31  ;;  %v2566_v31 = vld [vmem:[#allocation7 + $0x1d48] sm:$0xff]  ;;  %v4278_v21 = vunpack.c.h.s8.bf16 %v2438_v55  ;;  %v4262_v56 = vunpack.c.l.s8.bf16 %v2438_v55 }
 0x5c2   :  { %6202 = vmatpush2.bf16.msra.mxu0 %v3861_v46 }
 0x5c3   :  { %6243 = vmatpush2.bf16.msra.mxu1 %v4117_v13  ;;  %6203 = vmatprep.subr.bf16.mxu0 %v3846_v16  ;;  %v4293_v13 = vunpack.c.l.s8.bf16 %v2453_v41  ;;  %v4517_v41 = vunpack.c.l.s8.bf16 %v2565_v29 }
 0x5c4   :  { %6244 = vmatprep.subr.bf16.mxu1 %v4102_v58  ;;  %v4549_v58 = vunpack.c.l.s8.bf16 %v2581_v51  ;;  %v2421_v51 = vld [vmem:[#allocation7 + $0x18c0] sm:$0xff] }
 0x5c6   :  { %6204 = vmatpush2.bf16.msra.mxu0 %v3845_v3 }
 0x5c7   :  { %6245 = vmatpush2.bf16.msra.mxu1 %v4101_v60  ;;  %6205 = vmatprep.subr.bf16.mxu0 %v3830_v40 }
 0x5c8   :  { %6246 = vmatprep.subr.bf16.mxu1 %v4086_v22 }
 0x5ca   :  { %6206 = vmatpush2.bf16.msra.mxu0 %v3829_v24 }
 0x5cb   :  { %6247 = vmatpush2.bf16.msra.mxu1 %v4085_v26  ;;  %6207 = vmatprep.subr.bf16.mxu0 %v3814_v30  ;;  %v4277_v26 = vunpack.c.h.s8.bf16 %v2437_v6 }
 0x5cc   :  { %6248 = vmatprep.subr.bf16.mxu1 %v4070_v32  ;;  %v4533_v32 = vunpack.c.h.s8.bf16 %v2565_v29 }
 0x5ce   :  { %6208 = vmatpush2.bf16.msra.mxu0 %v3813_v36  ;;  %v4518_v36 = vunpack.c.l.s8.bf16 %v2566_v31 }
 0x5cf   :  { %6249 = vmatpush2.bf16.msra.mxu1 %v4069_v39  ;;  %6259 = vmatprep.subr.bf16.mxu0 %v4310_v17  ;;  %v2550_v39 = vld [vmem:[#allocation7 + $0x1cc8] sm:$0xff]  ;;  %v4261_v17 = vunpack.c.l.s8.bf16 %v2437_v6  ;;  %v2533_v6 = vld [vmem:[#allocation7 + $0x1c40] sm:$0xff] }
 0x5d0   :  { %6300 = vmatprep.subr.bf16.mxu1 %v4566_v37 }
 0x5d1   :  { %v5965_v52 = vpop.f32.mrf.mxu0  ;;  %6210 = vmatmul.mubr.bf16.vlgmr.msra.gmra.mxu0 %v9955_v53 }
 0x5d2   :  { %v5966_v61 = vadd.f32 %v5965_v52, %v10113_v7  ;;  %v6006_v46 = vpop.f32.mrf.mxu1  ;;  %6251 = vmatmul.mubr.bf16.vlgmr.msra.gmra.mxu1 %v9957_v57  ;;  %6260 = vmatpush1.bf16.msra.mxu0 %v4309_v49  ;;  %v4534_v7 = vunpack.c.h.s8.bf16 %v2566_v31  ;;  %v4502_v49 = vunpack.c.h.s8.bf16 %v2550_v39  ;;  %v2406_v31 = vld [vmem:[#allocation7 + $0x1848] sm:$0xff] }
 0x5d3   :  { %6291 = vmatprep.mubr.bf16.mxu0 %v9960_v2  ;;  %6301 = vmatpush1.bf16.msra.mxu1 %v4565_v50  ;;  %v5967_v16 = vpop.f32.mrf.mxu0  ;;  %v2549_v50 = vld [vmem:[#allocation7 + $0x1cc0] sm:$0xff] }
 0x5d4   :  { %v10123_v3 = vadd.f32 %v6006_v46, %v5966_v61  ;;  %6332 = vmatprep.mubr.bf16.mxu1 %v9963_v9  ;;  %v5968_v60 = vadd.f32 %v5967_v16, %v10117_v59  ;;  %v6008_v40 = vpop.f32.mrf.mxu1  ;;  %6261 = vmatprep.subr.bf16.mxu0 %v4294_v54  ;;  %v2422_v59 = vld [vmem:[#allocation7 + $0x18c8] sm:$0xff]  ;;  %v4245_v54 = vunpack.c.h.s8.bf16 %v2421_v51  ;;  %v4501_v55 = vunpack.c.h.s8.bf16 %v2549_v50 }
 0x5d5   :  { %v5969_v22 = vpop.f32.mrf.mxu0  ;;  %6302 = vmatprep.subr.bf16.mxu1 %v4550_v12  ;;  %v4246_v37 = vunpack.c.h.s8.bf16 %v2422_v59  ;;  %v4230_v52 = vunpack.c.l.s8.bf16 %v2422_v59  ;;  %v4486_v12 = vunpack.c.l.s8.bf16 %v2550_v39  ;;  %v2534_v61 = vld [vmem:[#allocation7 + $0x1c48] sm:$0xff]  ;;  %v4229_v46 = vunpack.c.l.s8.bf16 %v2421_v51 }
 0x5d6   :  { %v10127_v23 = vadd.f32 %v6008_v40, %v5968_v60  ;;  %v6010_v24 = vpop.f32.mrf.mxu1  ;;  %6262 = vmatpush1.bf16.msra.mxu0 %v4293_v13  ;;  %v4485_v13 = vunpack.c.l.s8.bf16 %v2549_v50  ;;  %v4214_v16 = vunpack.c.h.s8.bf16 %v2406_v31  ;;  %v4469_v40 = vunpack.c.h.s8.bf16 %v2533_v6  ;;  %v2518_v22 = vld [vmem:[#allocation7 + $0x1bc8] sm:$0xff] }
 0x5d7   :  { %6303 = vmatpush1.bf16.msra.mxu1 %v4549_v58  ;;  %v5970_v30 = vpop.f32.mrf.mxu0  ;;  %6263 = vmatprep.subr.bf16.mxu0 %v4278_v21  ;;  %v2405_v58 = vld [vmem:[#allocation7 + $0x1840] sm:$0xff]  ;;  %v4470_v21 = vunpack.c.h.s8.bf16 %v2534_v61  ;;  %v4454_v29 = vunpack.c.l.s8.bf16 %v2534_v61  ;;  %v2646_v24 = vld [vmem:[#allocation7 + $0x1fc8] sm:$0xff] }
 0x5d8   :  { %v6011_v0 = vpop.f32.mrf.mxu1  ;;  %6304 = vmatprep.subr.bf16.mxu1 %v4534_v7  ;;  %v4213_v60 = vunpack.c.h.s8.bf16 %v2405_v58  ;;  %v4198_v7 = vunpack.c.l.s8.bf16 %v2406_v31  ;;  %v4453_v30 = vunpack.c.l.s8.bf16 %v2533_v6  ;;  %v2630_v51 = vld [vmem:[#allocation7 + $0x1f48] sm:$0xff] }
 0x5d9   :  { %v4694_v0 = vunpack.c.h.s8.bf16 %v2646_v24 }
 0x5da   :  { %6264 = vmatpush1.bf16.msra.mxu0 %v4277_v26  ;;  %v4197_v26 = vunpack.c.l.s8.bf16 %v2405_v58  ;;  %v2614_v58 = vld [vmem:[#allocation7 + $0x1ec8] sm:$0xff] }
 0x5db   :  { %6305 = vmatpush1.bf16.msra.mxu1 %v4533_v32  ;;  %6265 = vmatprep.subr.bf16.mxu0 %v4262_v56  ;;  %v4438_v32 = vunpack.c.h.s8.bf16 %v2518_v22  ;;  %v2517_v56 = vld [vmem:[#allocation7 + $0x1bc0] sm:$0xff] }
 0x5dc   :  { %6306 = vmatprep.subr.bf16.mxu1 %v4518_v36  ;;  %v2645_v36 = vld [vmem:[#allocation7 + $0x1fc0] sm:$0xff]  ;;  %v4437_v59 = vunpack.c.h.s8.bf16 %v2517_v56 }
 0x5dd   :  { %v4693_v39 = vunpack.c.h.s8.bf16 %v2645_v36  ;;  %v4677_v50 = vunpack.c.l.s8.bf16 %v2645_v36 }
 0x5de   :  { %6266 = vmatpush1.bf16.msra.mxu0 %v4261_v17  ;;  %v4422_v17 = vunpack.c.l.s8.bf16 %v2518_v22 }
 0x5df   :  { %6307 = vmatpush1.bf16.msra.mxu1 %v4517_v41  ;;  %6267 = vmatprep.subr.bf16.mxu0 %v4246_v37  ;;  %v4678_v41 = vunpack.c.l.s8.bf16 %v2646_v24  ;;  %v2502_v37 = vld [vmem:[#allocation7 + $0x1b48] sm:$0xff] }
 0x5e0   :  { %6308 = vmatprep.subr.bf16.mxu1 %v4502_v49  ;;  %v4421_v49 = vunpack.c.l.s8.bf16 %v2517_v56  ;;  %v2598_v56 = vld [vmem:[#allocation7 + $0x1e48] sm:$0xff] }
 0x5e2   :  { %6268 = vmatpush1.bf16.msra.mxu0 %v4245_v54  ;;  %v4406_v54 = vunpack.c.h.s8.bf16 %v2502_v37 }
 0x5e3   :  { %6309 = vmatpush1.bf16.msra.mxu1 %v4501_v55  ;;  %6269 = vmatprep.subr.bf16.mxu0 %v4230_v52  ;;  %v2501_v55 = vld [vmem:[#allocation7 + $0x1b40] sm:$0xff]  ;;  %v4662_v52 = vunpack.c.h.s8.bf16 %v2630_v51 }
 0x5e4   :  { %6310 = vmatprep.subr.bf16.mxu1 %v4486_v12  ;;  %v2629_v12 = vld [vmem:[#allocation7 + $0x1f40] sm:$0xff]  ;;  %v4405_v31 = vunpack.c.h.s8.bf16 %v2501_v55 }
 0x5e5   :  { %v4661_v61 = vunpack.c.h.s8.bf16 %v2629_v12  ;;  %v4645_v6 = vunpack.c.l.s8.bf16 %v2629_v12 }
 0x5e6   :  { %6270 = vmatpush1.bf16.msra.mxu0 %v4229_v46  ;;  %v4390_v46 = vunpack.c.l.s8.bf16 %v2502_v37 }
 0x5e7   :  { %6311 = vmatpush1.bf16.msra.mxu1 %v4485_v13  ;;  %6271 = vmatprep.subr.bf16.mxu0 %v4214_v16  ;;  %v4646_v13 = vunpack.c.l.s8.bf16 %v2630_v51  ;;  %v2486_v16 = vld [vmem:[#allocation7 + $0x1ac8] sm:$0xff] }
 0x5e8   :  { %6312 = vmatprep.subr.bf16.mxu1 %v4470_v21  ;;  %v4389_v21 = vunpack.c.l.s8.bf16 %v2501_v55  ;;  %v1816_v55 = vld [vmem:[#allocation7 + $0x5d8] sm:$0xff] }
 0x5ea   :  { %6272 = vmatpush1.bf16.msra.mxu0 %v4213_v60  ;;  %v4374_v60 = vunpack.c.h.s8.bf16 %v2486_v16 }
 0x5eb   :  { %6313 = vmatpush1.bf16.msra.mxu1 %v4469_v40  ;;  %6273 = vmatprep.subr.bf16.mxu0 %v4198_v7  ;;  %v2485_v40 = vld [vmem:[#allocation7 + $0x1ac0] sm:$0xff]  ;;  %v4630_v7 = vunpack.c.h.s8.bf16 %v2614_v58 }
 0x5ec   :  { %6314 = vmatprep.subr.bf16.mxu1 %v4454_v29  ;;  %v2613_v29 = vld [vmem:[#allocation7 + $0x1ec0] sm:$0xff]  ;;  %v4373_v22 = vunpack.c.h.s8.bf16 %v2485_v40 }
 0x5ed   :  { %v4629_v24 = vunpack.c.h.s8.bf16 %v2613_v29  ;;  %v4613_v36 = vunpack.c.l.s8.bf16 %v2613_v29 }
 0x5ee   :  { %6274 = vmatpush1.bf16.msra.mxu0 %v4197_v26  ;;  %v4358_v26 = vunpack.c.l.s8.bf16 %v2486_v16 }
 0x5ef   :  { %6315 = vmatpush1.bf16.msra.mxu1 %v4453_v30  ;;  %6275 = vmatprep.subr.bf16.mxu0 %v4438_v32  ;;  %v4614_v30 = vunpack.c.l.s8.bf16 %v2614_v58  ;;  %v2470_v32 = vld [vmem:[#allocation7 + $0x1a48] sm:$0xff] }
 0x5f0   :  { %6316 = vmatprep.subr.bf16.mxu1 %v4694_v0  ;;  %v4357_v0 = vunpack.c.l.s8.bf16 %v2485_v40  ;;  %v3016_v40 = vunpack.c.l.s8.bf16 %v1816_v55 }
 0x5f2   :  { %6276 = vmatpush2.bf16.msra.mxu0 %v4437_v59  ;;  %v4342_v59 = vunpack.c.h.s8.bf16 %v2470_v32 }
 0x5f3   :  { %6317 = vmatpush2.bf16.msra.mxu1 %v4693_v39  ;;  %6277 = vmatprep.subr.bf16.mxu0 %v4422_v17  ;;  %v2469_v39 = vld [vmem:[#allocation7 + $0x1a40] sm:$0xff]  ;;  %v4598_v17 = vunpack.c.h.s8.bf16 %v2598_v56 }
 0x5f4   :  { %6318 = vmatprep.subr.bf16.mxu1 %v4678_v41  ;;  %v2597_v41 = vld [vmem:[#allocation7 + $0x1e40] sm:$0xff]  ;;  %v4341_v37 = vunpack.c.h.s8.bf16 %v2469_v39 }
 0x5f5   :  { %v4597_v51 = vunpack.c.h.s8.bf16 %v2597_v41  ;;  %v4581_v12 = vunpack.c.l.s8.bf16 %v2597_v41 }
 0x5f6   :  { %6278 = vmatpush2.bf16.msra.mxu0 %v4421_v49  ;;  %v4326_v49 = vunpack.c.l.s8.bf16 %v2470_v32 }
 0x5f7   :  { %6319 = vmatpush2.bf16.msra.mxu1 %v4677_v50  ;;  %6279 = vmatprep.subr.bf16.mxu0 %v4406_v54  ;;  %v4582_v50 = vunpack.c.l.s8.bf16 %v2598_v56  ;;  %v1688_v54 = vld [vmem:[#allocation7 + $0x1d8] sm:$0xff]  ;;  %v1671_v56 = vld [vmem:[#allocation7 + $0x150] sm:$0xff] }
 0x5f8   :  { %6320 = vmatprep.subr.bf16.mxu1 %v4662_v52  ;;  %v4325_v52 = vunpack.c.l.s8.bf16 %v2469_v39 }
 0x5fa   :  { %6280 = vmatpush2.bf16.msra.mxu0 %v4405_v31  ;;  %v2776_v31 = vunpack.c.h.s8.bf16 %v1688_v54 }
 0x5fb   :  { %6321 = vmatpush2.bf16.msra.mxu1 %v4661_v61  ;;  %6281 = vmatprep.subr.bf16.mxu0 %v4390_v46  ;;  %v1687_v61 = vld [vmem:[#allocation7 + $0x1d0] sm:$0xff]  ;;  %v3032_v46 = vunpack.c.h.s8.bf16 %v1816_v55 }
 0x5fc   :  { %6322 = vmatprep.subr.bf16.mxu1 %v4646_v13  ;;  %v1815_v13 = vld [vmem:[#allocation7 + $0x5d0] sm:$0xff]  ;;  %v2775_v16 = vunpack.c.h.s8.bf16 %v1687_v61 }
 0x5fd   :  { %v3031_v58 = vunpack.c.h.s8.bf16 %v1815_v13 }
 0x5fe   :  { %6282 = vmatpush2.bf16.msra.mxu0 %v4389_v21  ;;  %v2760_v21 = vunpack.c.l.s8.bf16 %v1688_v54 }
 0x5ff   :  { %6323 = vmatpush2.bf16.msra.mxu1 %v4645_v6  ;;  %6283 = vmatprep.subr.bf16.mxu0 %v4374_v60  ;;  %v1672_v6 = vld [vmem:[#allocation7 + $0x158] sm:$0xff] }
 0x600   :  { %6324 = vmatprep.subr.bf16.mxu1 %v4630_v7  ;;  %v1800_v7 = vld [vmem:[#allocation7 + $0x558] sm:$0xff]  ;;  %v2744_v32 = vunpack.c.h.s8.bf16 %v1672_v6 }
 0x601   :  { %v2984_v55 = vunpack.c.l.s8.bf16 %v1800_v7 }
 0x602   :  { %6284 = vmatpush2.bf16.msra.mxu0 %v4373_v22  ;;  %v2759_v22 = vunpack.c.l.s8.bf16 %v1687_v61 }
 0x603   :  { %6325 = vmatpush2.bf16.msra.mxu1 %v4629_v24  ;;  %6285 = vmatprep.subr.bf16.mxu0 %v4358_v26 }
 0x604   :  { %6326 = vmatprep.subr.bf16.mxu1 %v4614_v30  ;;  %v3015_v30 = vunpack.c.l.s8.bf16 %v1815_v13  ;;  %v1655_v13 = vld [vmem:[#allocation7 + $0xd0] sm:$0xff] }
 0x606   :  { %6286 = vmatpush2.bf16.msra.mxu0 %v4357_v0 }
 0x607   :  { %6327 = vmatpush2.bf16.msra.mxu1 %v4613_v36  ;;  %6287 = vmatprep.subr.bf16.mxu0 %v4342_v59  ;;  %v3000_v36 = vunpack.c.h.s8.bf16 %v1800_v7  ;;  %v1799_v59 = vld [vmem:[#allocation7 + $0x550] sm:$0xff]  ;;  %v1640_v7 = vld [vmem:[#allocation7 + $0x58] sm:$0xff] }
 0x608   :  { %6328 = vmatprep.subr.bf16.mxu1 %v4598_v17  ;;  %v2983_v61 = vunpack.c.l.s8.bf16 %v1799_v59 }
 0x60a   :  { %6288 = vmatpush2.bf16.msra.mxu0 %v4341_v37  ;;  %v2743_v37 = vunpack.c.h.s8.bf16 %v1671_v56 }
 0x60b   :  { %6329 = vmatpush2.bf16.msra.mxu1 %v4597_v51  ;;  %6289 = vmatprep.subr.bf16.mxu0 %v4326_v49  ;;  %v2999_v49 = vunpack.c.h.s8.bf16 %v1799_v59 }
 0x60c   :  { %6330 = vmatprep.subr.bf16.mxu1 %v4582_v50  ;;  %v2728_v50 = vunpack.c.l.s8.bf16 %v1672_v6 }
 0x60e   :  { %6290 = vmatpush2.bf16.msra.mxu0 %v4325_v52  ;;  %v1656_v52 = vld [vmem:[#allocation7 + $0xd8] sm:$0xff] }
 0x60f   :  { %6331 = vmatpush2.bf16.msra.mxu1 %v4581_v12  ;;  %6341 = vmatprep.subr.bf16.mxu0 %v2776_v31  ;;  %v1784_v12 = vld [vmem:[#allocation7 + $0x4d8] sm:$0xff]  ;;  %v2727_v31 = vunpack.c.l.s8.bf16 %v1671_v56 }
 0x610   :  { %6382 = vmatprep.subr.bf16.mxu1 %v3032_v46  ;;  %v2712_v46 = vunpack.c.h.s8.bf16 %v1656_v52 }
 0x611   :  { %v6047_v60 = vpop.f32.mrf.mxu0  ;;  %6292 = vmatmul.mubr.bf16.vlgmr.msra.gmra.mxu0 %v9973_v33 }
 0x612   :  { %v6088_v29 = vpop.f32.mrf.mxu1  ;;  %6333 = vmatmul.mubr.bf16.vlgmr.msra.gmra.mxu1 %v9975_v35  ;;  %6342 = vmatpush1.bf16.msra.mxu0 %v2775_v16  ;;  %v2968_v16 = vunpack.c.h.s8.bf16 %v1784_v12 }
 0x613   :  { %v10131_v24 = vadd.f32 %v6088_v29, %v6047_v60  ;;  %6373 = vmatprep.mubr.bf16.mxu0 %v9877_v45  ;;  %6383 = vmatpush1.bf16.msra.mxu1 %v3031_v58  ;;  %v6049_v26 = vpop.f32.mrf.mxu0  ;;  %v1783_v58 = vld [vmem:[#allocation7 + $0x4d0] sm:$0xff]  ;;  %v2696_v60 = vunpack.c.l.s8.bf16 %v1656_v52  ;;  %v1768_v29 = vld [vmem:[#allocation7 + $0x458] sm:$0xff] }
 0x614   :  { %6414 = vmatprep.mubr.bf16.mxu1 %v9881_v48  ;;  %v6090_v0 = vpop.f32.mrf.mxu1  ;;  %6343 = vmatprep.subr.bf16.mxu0 %v2760_v21  ;;  %v2711_v21 = vunpack.c.h.s8.bf16 %v1655_v13  ;;  %v2967_v6 = vunpack.c.h.s8.bf16 %v1783_v58  ;;  %v2936_v56 = vunpack.c.h.s8.bf16 %v1768_v29 }
 0x615   :  { %v10135_v39 = vadd.f32 %v6090_v0, %v6049_v26  ;;  %v6051_v17 = vpop.f32.mrf.mxu0  ;;  %6384 = vmatprep.subr.bf16.mxu1 %v3016_v40  ;;  %v2952_v40 = vunpack.c.l.s8.bf16 %v1784_v12  ;;  %v2951_v26 = vunpack.c.l.s8.bf16 %v1783_v58  ;;  %v1767_v0 = vld [vmem:[#allocation7 + $0x450] sm:$0xff]  ;;  %v1864_v58 = vld [vmem:[#allocation7 + $0x758] sm:$0xff] }
 0x616   :  { %v6092_v41 = vpop.f32.mrf.mxu1  ;;  %6344 = vmatpush1.bf16.msra.mxu0 %v2759_v22  ;;  %v2695_v22 = vunpack.c.l.s8.bf16 %v1655_v13  ;;  %v2935_v59 = vunpack.c.h.s8.bf16 %v1767_v0  ;;  %v2664_v17 = vunpack.c.l.s8.bf16 %v1640_v7  ;;  %v1879_v12 = vld [vmem:[#allocation7 + $0x7d0] sm:$0xff] }
 0x617   :  { %6385 = vmatpush1.bf16.msra.mxu1 %v3015_v30  ;;  %v6052_v51 = vpop.f32.mrf.mxu0  ;;  %6345 = vmatprep.subr.bf16.mxu0 %v2744_v32  ;;  %v2680_v30 = vunpack.c.h.s8.bf16 %v1640_v7  ;;  %v1639_v32 = vld [vmem:[#allocation7 + $0x50] sm:$0xff]  ;;  %v2920_v41 = vunpack.c.l.s8.bf16 %v1768_v29  ;;  %v3128_v7 = vunpack.c.h.s8.bf16 %v1864_v58 }
 0x618   :  { %v6093_v54 = vpop.f32.mrf.mxu1  ;;  %6386 = vmatprep.subr.bf16.mxu1 %v3000_v36  ;;  %v2679_v36 = vunpack.c.h.s8.bf16 %v1639_v32  ;;  %v1880_v51 = vld [vmem:[#allocation7 + $0x7d8] sm:$0xff]  ;;  %v1863_v29 = vld [vmem:[#allocation7 + $0x750] sm:$0xff] }
 0x619   :  { %v3160_v52 = vunpack.c.h.s8.bf16 %v1880_v51  ;;  %v3144_v13 = vunpack.c.l.s8.bf16 %v1880_v51  ;;  %v1847_v51 = vld [vmem:[#allocation7 + $0x6d0] sm:$0xff] }
 0x61a   :  { %6346 = vmatpush1.bf16.msra.mxu0 %v2743_v37  ;;  %v1752_v37 = vld [vmem:[#allocation7 + $0x3d8] sm:$0xff] }
 0x61b   :  { %6387 = vmatpush1.bf16.msra.mxu1 %v2999_v49  ;;  %6347 = vmatprep.subr.bf16.mxu0 %v2728_v50  ;;  %v2663_v49 = vunpack.c.l.s8.bf16 %v1639_v32  ;;  %v2919_v50 = vunpack.c.l.s8.bf16 %v1767_v0  ;;  %v2904_v54 = vunpack.c.h.s8.bf16 %v1752_v37  ;;  %v3112_v32 = vunpack.c.l.s8.bf16 %v1864_v58  ;;  %v1848_v0 = vld [vmem:[#allocation7 + $0x6d8] sm:$0xff]  ;;  %v1831_v58 = vld [vmem:[#allocation7 + $0x650] sm:$0xff] }
 0x61c   :  { %6388 = vmatprep.subr.bf16.mxu1 %v2984_v55  ;;  %v1751_v55 = vld [vmem:[#allocation7 + $0x3d0] sm:$0xff] }
 0x61e   :  { %6348 = vmatpush1.bf16.msra.mxu0 %v2727_v31  ;;  %v2903_v31 = vunpack.c.h.s8.bf16 %v1751_v55 }
 0x61f   :  { %6389 = vmatpush1.bf16.msra.mxu1 %v2983_v61  ;;  %6349 = vmatprep.subr.bf16.mxu0 %v2712_v46  ;;  %v3159_v61 = vunpack.c.h.s8.bf16 %v1879_v12  ;;  %v2888_v46 = vunpack.c.l.s8.bf16 %v1752_v37  ;;  %v3096_v37 = vunpack.c.h.s8.bf16 %v1848_v0 }
 0x620   :  { %6390 = vmatprep.subr.bf16.mxu1 %v2968_v16  ;;  %v1736_v16 = vld [vmem:[#allocation7 + $0x358] sm:$0xff] }
 0x622   :  { %6350 = vmatpush1.bf16.msra.mxu0 %v2711_v21  ;;  %v2887_v21 = vunpack.c.l.s8.bf16 %v1751_v55  ;;  %v3080_v55 = vunpack.c.l.s8.bf16 %v1848_v0  ;;  %v2071_v0 = vld [vmem:[#allocation7 + $0xdd0] sm:$0xff] }
 0x623   :  { %6391 = vmatpush1.bf16.msra.mxu1 %v2967_v6  ;;  %6351 = vmatprep.subr.bf16.mxu0 %v2696_v60  ;;  %v3143_v6 = vunpack.c.l.s8.bf16 %v1879_v12  ;;  %v2872_v60 = vunpack.c.h.s8.bf16 %v1736_v16  ;;  %v1832_v12 = vld [vmem:[#allocation7 + $0x658] sm:$0xff] }
 0x624   :  { %6392 = vmatprep.subr.bf16.mxu1 %v2952_v40  ;;  %v1735_v40 = vld [vmem:[#allocation7 + $0x350] sm:$0xff] }
 0x626   :  { %6352 = vmatpush1.bf16.msra.mxu0 %v2695_v22  ;;  %v2871_v22 = vunpack.c.h.s8.bf16 %v1735_v40 }
 0x627   :  { %6393 = vmatpush1.bf16.msra.mxu1 %v2951_v26  ;;  %6353 = vmatprep.subr.bf16.mxu0 %v2680_v30  ;;  %v3127_v26 = vunpack.c.h.s8.bf16 %v1863_v29  ;;  %v2856_v30 = vunpack.c.l.s8.bf16 %v1736_v16  ;;  %v3064_v16 = vunpack.c.h.s8.bf16 %v1832_v12 }
 0x628   :  { %6394 = vmatprep.subr.bf16.mxu1 %v2936_v56  ;;  %v1720_v56 = vld [vmem:[#allocation7 + $0x2d8] sm:$0xff] }
 0x62a   :  { %6354 = vmatpush1.bf16.msra.mxu0 %v2679_v36  ;;  %v2855_v36 = vunpack.c.l.s8.bf16 %v1735_v40  ;;  %v3048_v40 = vunpack.c.l.s8.bf16 %v1832_v12  ;;  %v3527_v12 = vunpack.c.l.s8.bf16 %v2071_v0 }
 0x62b   :  { %6395 = vmatpush1.bf16.msra.mxu1 %v2935_v59  ;;  %6355 = vmatprep.subr.bf16.mxu0 %v2664_v17  ;;  %v3111_v59 = vunpack.c.l.s8.bf16 %v1863_v29  ;;  %v2840_v17 = vunpack.c.h.s8.bf16 %v1720_v56  ;;  %v2072_v29 = vld [vmem:[#allocation7 + $0xdd8] sm:$0xff] }
 0x62c   :  { %6396 = vmatprep.subr.bf16.mxu1 %v2920_v41  ;;  %v1719_v41 = vld [vmem:[#allocation7 + $0x2d0] sm:$0xff] }
 0x62e   :  { %6356 = vmatpush1.bf16.msra.mxu0 %v2663_v49  ;;  %v2839_v49 = vunpack.c.h.s8.bf16 %v1719_v41 }
 0x62f   :  { %6397 = vmatpush1.bf16.msra.mxu1 %v2919_v50  ;;  %6357 = vmatprep.subr.bf16.mxu0 %v2904_v54  ;;  %v3095_v50 = vunpack.c.h.s8.bf16 %v1847_v51  ;;  %v2824_v54 = vunpack.c.l.s8.bf16 %v1720_v56  ;;  %v3544_v56 = vunpack.c.h.s8.bf16 %v2072_v29 }
 0x630   :  { %6398 = vmatprep.subr.bf16.mxu1 %v3160_v52  ;;  %v1704_v52 = vld [vmem:[#allocation7 + $0x258] sm:$0xff] }
 0x632   :  { %6358 = vmatpush2.bf16.msra.mxu0 %v2903_v31  ;;  %v2823_v31 = vunpack.c.l.s8.bf16 %v1719_v41  ;;  %v1928_v41 = vld [vmem:[#allocation7 + $0x958] sm:$0xff] }
 0x633   :  { %6399 = vmatpush2.bf16.msra.mxu1 %v3159_v61  ;;  %6359 = vmatprep.subr.bf16.mxu0 %v2888_v46  ;;  %v3079_v61 = vunpack.c.l.s8.bf16 %v1847_v51  ;;  %v2808_v46 = vunpack.c.h.s8.bf16 %v1704_v52  ;;  %v3528_v51 = vunpack.c.l.s8.bf16 %v2072_v29 }
 0x634   :  { %6400 = vmatprep.subr.bf16.mxu1 %v3144_v13  ;;  %v1703_v13 = vld [vmem:[#allocation7 + $0x250] sm:$0xff] }
 0x636   :  { %6360 = vmatpush2.bf16.msra.mxu0 %v2887_v21  ;;  %v2807_v21 = vunpack.c.h.s8.bf16 %v1703_v13 }
 0x637   :  { %6401 = vmatpush2.bf16.msra.mxu1 %v3143_v6  ;;  %6361 = vmatprep.subr.bf16.mxu0 %v2872_v60  ;;  %v3063_v6 = vunpack.c.h.s8.bf16 %v1831_v58  ;;  %v2792_v60 = vunpack.c.l.s8.bf16 %v1704_v52 }
 0x638   :  { %6402 = vmatprep.subr.bf16.mxu1 %v3128_v7  ;;  %v1944_v7 = vld [vmem:[#allocation7 + $0x9d8] sm:$0xff] }
 0x63a   :  { %6362 = vmatpush2.bf16.msra.mxu0 %v2871_v22  ;;  %v2791_v22 = vunpack.c.l.s8.bf16 %v1703_v13 }
 0x63b   :  { %6403 = vmatpush2.bf16.msra.mxu1 %v3127_v26  ;;  %6363 = vmatprep.subr.bf16.mxu0 %v2856_v30  ;;  %v3047_v26 = vunpack.c.l.s8.bf16 %v1831_v58  ;;  %v3288_v30 = vunpack.c.h.s8.bf16 %v1944_v7  ;;  %v2055_v58 = vld [vmem:[#allocation7 + $0xd50] sm:$0xff] }
 0x63c   :  { %6404 = vmatprep.subr.bf16.mxu1 %v3112_v32  ;;  %v1943_v32 = vld [vmem:[#allocation7 + $0x9d0] sm:$0xff]  ;;  %v3511_v29 = vunpack.c.h.s8.bf16 %v2055_v58 }
 0x63e   :  { %6364 = vmatpush2.bf16.msra.mxu0 %v2855_v36  ;;  %v3287_v36 = vunpack.c.h.s8.bf16 %v1943_v32 }
 0x63f   :  { %6405 = vmatpush2.bf16.msra.mxu1 %v3111_v59  ;;  %6365 = vmatprep.subr.bf16.mxu0 %v2840_v17  ;;  %v3543_v59 = vunpack.c.h.s8.bf16 %v2071_v0  ;;  %v3272_v17 = vunpack.c.l.s8.bf16 %v1944_v7  ;;  %v3495_v0 = vunpack.c.l.s8.bf16 %v2055_v58 }
 0x640   :  { %6406 = vmatprep.subr.bf16.mxu1 %v3096_v37 }
 0x642   :  { %6366 = vmatpush2.bf16.msra.mxu0 %v2839_v49  ;;  %v2056_v49 = vld [vmem:[#allocation7 + $0xd58] sm:$0xff] }
 0x643   :  { %6407 = vmatpush2.bf16.msra.mxu1 %v3095_v50  ;;  %6367 = vmatprep.subr.bf16.mxu0 %v2824_v54 }
 0x644   :  { %6408 = vmatprep.subr.bf16.mxu1 %v3080_v55  ;;  %v3271_v55 = vunpack.c.l.s8.bf16 %v1943_v32  ;;  %v2040_v32 = vld [vmem:[#allocation7 + $0xcd8] sm:$0xff] }
 0x646   :  { %6368 = vmatpush2.bf16.msra.mxu0 %v2823_v31  ;;  %v3256_v31 = vunpack.c.h.s8.bf16 %v1928_v41 }
 0x647   :  { %6409 = vmatpush2.bf16.msra.mxu1 %v3079_v61  ;;  %6369 = vmatprep.subr.bf16.mxu0 %v2808_v46  ;;  %v1927_v61 = vld [vmem:[#allocation7 + $0x950] sm:$0xff] }
 0x648   :  { %6410 = vmatprep.subr.bf16.mxu1 %v3064_v16 }
 0x64a   :  { %6370 = vmatpush2.bf16.msra.mxu0 %v2807_v21 }
 0x64b   :  { %6411 = vmatpush2.bf16.msra.mxu1 %v3063_v6  ;;  %6371 = vmatprep.subr.bf16.mxu0 %v2792_v60 }
 0x64c   :  { %6412 = vmatprep.subr.bf16.mxu1 %v3048_v40  ;;  %v3255_v40 = vunpack.c.h.s8.bf16 %v1927_v61 }
 0x64e   :  { %6372 = vmatpush2.bf16.msra.mxu0 %v2791_v22  ;;  %v3240_v22 = vunpack.c.l.s8.bf16 %v1928_v41 }
 0x64f   :  { %6413 = vmatpush2.bf16.msra.mxu1 %v3047_v26  ;;  %6423 = vmatprep.subr.bf16.mxu0 %v3288_v30  ;;  %v3496_v30 = vunpack.c.l.s8.bf16 %v2056_v49 }
 0x650   :  { %6464 = vmatprep.subr.bf16.mxu1 %v3544_v56  ;;  %v3239_v56 = vunpack.c.l.s8.bf16 %v1927_v61  ;;  %v1895_v61 = vld [vmem:[#allocation7 + $0x850] sm:$0xff] }
 0x651   :  { %v6129_v37 = vpop.f32.mrf.mxu0  ;;  %6374 = vmatmul.mubr.bf16.vlgmr.msra.gmra.mxu0 %v9879_v47 }
 0x652   :  { %v6130_v50 = vadd.f32 %v6129_v37, %v10131_v24  ;;  %v6170_v54 = vpop.f32.mrf.mxu1  ;;  %6415 = vmatmul.mubr.bf16.vlgmr.msra.gmra.mxu1 %v9875_v44  ;;  %6424 = vmatpush1.bf16.msra.mxu0 %v3287_v36  ;;  %v3512_v24 = vunpack.c.h.s8.bf16 %v2056_v49  ;;  %v2039_v37 = vld [vmem:[#allocation7 + $0xcd0] sm:$0xff]  ;;  %v3464_v49 = vunpack.c.l.s8.bf16 %v2040_v32 }
 0x653   :  { %6455 = vmatprep.mubr.bf16.mxu0 %v9901_v15  ;;  %6465 = vmatpush1.bf16.msra.mxu1 %v3543_v59  ;;  %v6131_v52 = vpop.f32.mrf.mxu0  ;;  %v1911_v59 = vld [vmem:[#allocation7 + $0x8d0] sm:$0xff]  ;;  %v3479_v41 = vunpack.c.h.s8.bf16 %v2039_v37 }
 0x654   :  { %v10141_v46 = vadd.f32 %v6170_v54, %v6130_v50  ;;  %6496 = vmatprep.mubr.bf16.mxu1 %v9903_v18  ;;  %v6132_v13 = vadd.f32 %v6131_v52, %v10135_v39  ;;  %v6172_v16 = vpop.f32.mrf.mxu1  ;;  %6425 = vmatprep.subr.bf16.mxu0 %v3272_v17  ;;  %v1912_v39 = vld [vmem:[#allocation7 + $0x8d8] sm:$0xff]  ;;  %v3480_v17 = vunpack.c.h.s8.bf16 %v2040_v32  ;;  %v3207_v52 = vunpack.c.l.s8.bf16 %v1911_v59  ;;  %v2135_v32 = vld [vmem:[#allocation7 + $0xfd0] sm:$0xff] }
 0x655   :  { %v6133_v21 = vpop.f32.mrf.mxu0  ;;  %6466 = vmatprep.subr.bf16.mxu1 %v3528_v51  ;;  %v3224_v36 = vunpack.c.h.s8.bf16 %v1912_v39  ;;  %v3223_v51 = vunpack.c.h.s8.bf16 %v1911_v59  ;;  %v3208_v50 = vunpack.c.l.s8.bf16 %v1912_v39  ;;  %v1896_v54 = vld [vmem:[#allocation7 + $0x858] sm:$0xff] }
 0x656   :  { %v10145_v6 = vadd.f32 %v6172_v16, %v6132_v13  ;;  %v6174_v60 = vpop.f32.mrf.mxu1  ;;  %6426 = vmatpush1.bf16.msra.mxu0 %v3271_v55  ;;  %v2024_v55 = vld [vmem:[#allocation7 + $0xc58] sm:$0xff]  ;;  %v2023_v16 = vld [vmem:[#allocation7 + $0xc50] sm:$0xff]  ;;  %v3176_v21 = vunpack.c.l.s8.bf16 %v1896_v54 }
 0x657   :  { %6467 = vmatpush1.bf16.msra.mxu1 %v3527_v12  ;;  %v6134_v7 = vpop.f32.mrf.mxu0  ;;  %6427 = vmatprep.subr.bf16.mxu0 %v3256_v31  ;;  %v3463_v12 = vunpack.c.l.s8.bf16 %v2039_v37  ;;  %v3192_v31 = vunpack.c.h.s8.bf16 %v1896_v54  ;;  %v3448_v13 = vunpack.c.h.s8.bf16 %v2024_v55  ;;  %v3447_v58 = vunpack.c.h.s8.bf16 %v2023_v16  ;;  %v2120_v37 = vld [vmem:[#allocation7 + $0xf58] sm:$0xff] }
 0x658   :  { %v6175_v26 = vpop.f32.mrf.mxu1  ;;  %6468 = vmatprep.subr.bf16.mxu1 %v3512_v24  ;;  %v3191_v24 = vunpack.c.h.s8.bf16 %v1895_v61  ;;  %v3432_v60 = vunpack.c.l.s8.bf16 %v2024_v55  ;;  %v2136_v7 = vld [vmem:[#allocation7 + $0xfd8] sm:$0xff]  ;;  %v3640_v54 = vunpack.c.h.s8.bf16 %v2120_v37  ;;  %v2119_v55 = vld [vmem:[#allocation7 + $0xf50] sm:$0xff] }
 0x659   :  { %v3672_v39 = vunpack.c.h.s8.bf16 %v2136_v7  ;;  %v3656_v59 = vunpack.c.l.s8.bf16 %v2136_v7  ;;  %v2103_v7 = vld [vmem:[#allocation7 + $0xed0] sm:$0xff] }
 0x65a   :  { %6428 = vmatpush1.bf16.msra.mxu0 %v3255_v40  ;;  %v2008_v40 = vld [vmem:[#allocation7 + $0xbd8] sm:$0xff] }
 0x65b   :  { %6469 = vmatpush1.bf16.msra.mxu1 %v3511_v29  ;;  %6429 = vmatprep.subr.bf16.mxu0 %v3240_v22  ;;  %v3175_v29 = vunpack.c.l.s8.bf16 %v1895_v61  ;;  %v3431_v22 = vunpack.c.l.s8.bf16 %v2023_v16  ;;  %v3416_v26 = vunpack.c.h.s8.bf16 %v2008_v40  ;;  %v3624_v61 = vunpack.c.l.s8.bf16 %v2120_v37  ;;  %v2104_v16 = vld [vmem:[#allocation7 + $0xed8] sm:$0xff]  ;;  %v2087_v37 = vld [vmem:[#allocation7 + $0xe50] sm:$0xff] }
 0x65c   :  { %6470 = vmatprep.subr.bf16.mxu1 %v3496_v30  ;;  %v2007_v30 = vld [vmem:[#allocation7 + $0xbd0] sm:$0xff] }
 0x65e   :  { %6430 = vmatpush1.bf16.msra.mxu0 %v3239_v56  ;;  %v3415_v56 = vunpack.c.h.s8.bf16 %v2007_v30 }
 0x65f   :  { %6471 = vmatpush1.bf16.msra.mxu1 %v3495_v0  ;;  %6431 = vmatprep.subr.bf16.mxu0 %v3224_v36  ;;  %v3671_v0 = vunpack.c.h.s8.bf16 %v2135_v32  ;;  %v3400_v36 = vunpack.c.l.s8.bf16 %v2008_v40  ;;  %v3608_v40 = vunpack.c.h.s8.bf16 %v2104_v16 }
 0x660   :  { %6472 = vmatprep.subr.bf16.mxu1 %v3480_v17  ;;  %v1992_v17 = vld [vmem:[#allocation7 + $0xb58] sm:$0xff] }
 0x662   :  { %6432 = vmatpush1.bf16.msra.mxu0 %v3223_v51  ;;  %v3399_v51 = vunpack.c.l.s8.bf16 %v2007_v30  ;;  %v3592_v30 = vunpack.c.l.s8.bf16 %v2104_v16  ;;  %v2327_v16 = vld [vmem:[#allocation7 + $0x15d0] sm:$0xff] }
 0x663   :  { %6473 = vmatpush1.bf16.msra.mxu1 %v3479_v41  ;;  %6433 = vmatprep.subr.bf16.mxu0 %v3208_v50  ;;  %v3655_v41 = vunpack.c.l.s8.bf16 %v2135_v32  ;;  %v3384_v50 = vunpack.c.h.s8.bf16 %v1992_v17  ;;  %v2088_v32 = vld [vmem:[#allocation7 + $0xe58] sm:$0xff] }
 0x664   :  { %6474 = vmatprep.subr.bf16.mxu1 %v3464_v49  ;;  %v1991_v49 = vld [vmem:[#allocation7 + $0xb50] sm:$0xff] }
 0x666   :  { %6434 = vmatpush1.bf16.msra.mxu0 %v3207_v52  ;;  %v3383_v52 = vunpack.c.h.s8.bf16 %v1991_v49 }
 0x667   :  { %6475 = vmatpush1.bf16.msra.mxu1 %v3463_v12  ;;  %6435 = vmatprep.subr.bf16.mxu0 %v3192_v31  ;;  %v3639_v12 = vunpack.c.h.s8.bf16 %v2119_v55  ;;  %v3368_v31 = vunpack.c.l.s8.bf16 %v1992_v17  ;;  %v3576_v17 = vunpack.c.h.s8.bf16 %v2088_v32 }
 0x668   :  { %6476 = vmatprep.subr.bf16.mxu1 %v3448_v13  ;;  %v1976_v13 = vld [vmem:[#allocation7 + $0xad8] sm:$0xff] }
 0x66a   :  { %6436 = vmatpush1.bf16.msra.mxu0 %v3191_v24  ;;  %v3367_v24 = vunpack.c.l.s8.bf16 %v1991_v49  ;;  %v3560_v49 = vunpack.c.l.s8.bf16 %v2088_v32  ;;  %v4039_v32 = vunpack.c.l.s8.bf16 %v2327_v16 }
 0x66b   :  { %6477 = vmatpush1.bf16.msra.mxu1 %v3447_v58  ;;  %6437 = vmatprep.subr.bf16.mxu0 %v3176_v21  ;;  %v3623_v58 = vunpack.c.l.s8.bf16 %v2119_v55  ;;  %v3352_v21 = vunpack.c.h.s8.bf16 %v1976_v13  ;;  %v2328_v55 = vld [vmem:[#allocation7 + $0x15d8] sm:$0xff] }
 0x66c   :  { %6478 = vmatprep.subr.bf16.mxu1 %v3432_v60  ;;  %v1975_v60 = vld [vmem:[#allocation7 + $0xad0] sm:$0xff] }
 0x66e   :  { %6438 = vmatpush1.bf16.msra.mxu0 %v3175_v29  ;;  %v3351_v29 = vunpack.c.h.s8.bf16 %v1975_v60 }
 0x66f   :  { %6479 = vmatpush1.bf16.msra.mxu1 %v3431_v22  ;;  %6439 = vmatprep.subr.bf16.mxu0 %v3416_v26  ;;  %v3607_v22 = vunpack.c.h.s8.bf16 %v2103_v7  ;;  %v3336_v26 = vunpack.c.l.s8.bf16 %v1976_v13  ;;  %v4056_v13 = vunpack.c.h.s8.bf16 %v2328_v55 }
 0x670   :  { %6480 = vmatprep.subr.bf16.mxu1 %v3672_v39  ;;  %v1960_v39 = vld [vmem:[#allocation7 + $0xa58] sm:$0xff] }
 0x672   :  { %6440 = vmatpush2.bf16.msra.mxu0 %v3415_v56  ;;  %v3335_v56 = vunpack.c.l.s8.bf16 %v1975_v60  ;;  %v2184_v60 = vld [vmem:[#allocation7 + $0x1158] sm:$0xff] }
 0x673   :  { %6481 = vmatpush2.bf16.msra.mxu1 %v3671_v0  ;;  %6441 = vmatprep.subr.bf16.mxu0 %v3400_v36  ;;  %v3591_v0 = vunpack.c.l.s8.bf16 %v2103_v7  ;;  %v3320_v36 = vunpack.c.h.s8.bf16 %v1960_v39  ;;  %v4040_v7 = vunpack.c.l.s8.bf16 %v2328_v55 }
 0x674   :  { %6482 = vmatprep.subr.bf16.mxu1 %v3656_v59  ;;  %v1959_v59 = vld [vmem:[#allocation7 + $0xa50] sm:$0xff] }
 0x676   :  { %6442 = vmatpush2.bf16.msra.mxu0 %v3399_v51  ;;  %v3319_v51 = vunpack.c.h.s8.bf16 %v1959_v59 }
 0x677   :  { %6483 = vmatpush2.bf16.msra.mxu1 %v3655_v41  ;;  %6443 = vmatprep.subr.bf16.mxu0 %v3384_v50  ;;  %v3575_v41 = vunpack.c.h.s8.bf16 %v2087_v37  ;;  %v3304_v50 = vunpack.c.l.s8.bf16 %v1960_v39 }
 0x678   :  { %6484 = vmatprep.subr.bf16.mxu1 %v3640_v54  ;;  %v2200_v54 = vld [vmem:[#allocation7 + $0x11d8] sm:$0xff] }
 0x67a   :  { %6444 = vmatpush2.bf16.msra.mxu0 %v3383_v52  ;;  %v3303_v52 = vunpack.c.l.s8.bf16 %v1959_v59 }
 0x67b   :  { %6485 = vmatpush2.bf16.msra.mxu1 %v3639_v12  ;;  %6445 = vmatprep.subr.bf16.mxu0 %v3368_v31  ;;  %v3559_v12 = vunpack.c.l.s8.bf16 %v2087_v37  ;;  %v3800_v31 = vunpack.c.h.s8.bf16 %v2200_v54  ;;  %v2311_v37 = vld [vmem:[#allocation7 + $0x1550] sm:$0xff] }
 0x67c   :  { %6486 = vmatprep.subr.bf16.mxu1 %v3624_v61  ;;  %v2199_v61 = vld [vmem:[#allocation7 + $0x11d0] sm:$0xff]  ;;  %v4023_v55 = vunpack.c.h.s8.bf16 %v2311_v37 }
 0x67e   :  { %6446 = vmatpush2.bf16.msra.mxu0 %v3367_v24  ;;  %v3799_v24 = vunpack.c.h.s8.bf16 %v2199_v61 }
 0x67f   :  { %6487 = vmatpush2.bf16.msra.mxu1 %v3623_v58  ;;  %6447 = vmatprep.subr.bf16.mxu0 %v3352_v21  ;;  %v4055_v58 = vunpack.c.h.s8.bf16 %v2327_v16  ;;  %v3784_v21 = vunpack.c.l.s8.bf16 %v2200_v54  ;;  %v4007_v16 = vunpack.c.l.s8.bf16 %v2311_v37 }
 0x680   :  { %6488 = vmatprep.subr.bf16.mxu1 %v3608_v40 }
 0x682   :  { %6448 = vmatpush2.bf16.msra.mxu0 %v3351_v29  ;;  %v2312_v29 = vld [vmem:[#allocation7 + $0x1558] sm:$0xff] }
 0x683   :  { %6489 = vmatpush2.bf16.msra.mxu1 %v3607_v22  ;;  %6449 = vmatprep.subr.bf16.mxu0 %v3336_v26 }
 0x684   :  { %6490 = vmatprep.subr.bf16.mxu1 %v3592_v30  ;;  %v3783_v30 = vunpack.c.l.s8.bf16 %v2199_v61  ;;  %v2296_v61 = vld [vmem:[#allocation7 + $0x14d8] sm:$0xff] }
 0x686   :  { %6450 = vmatpush2.bf16.msra.mxu0 %v3335_v56  ;;  %v3768_v56 = vunpack.c.h.s8.bf16 %v2184_v60 }
 0x687   :  { %6491 = vmatpush2.bf16.msra.mxu1 %v3591_v0  ;;  %6451 = vmatprep.subr.bf16.mxu0 %v3320_v36  ;;  %v2183_v0 = vld [vmem:[#allocation7 + $0x1150] sm:$0xff] }
 0x688   :  { %6492 = vmatprep.subr.bf16.mxu1 %v3576_v17 }
 0x68a   :  { %6452 = vmatpush2.bf16.msra.mxu0 %v3319_v51 }
 0x68b   :  { %6493 = vmatpush2.bf16.msra.mxu1 %v3575_v41  ;;  %6453 = vmatprep.subr.bf16.mxu0 %v3304_v50 }
 0x68c   :  { %6494 = vmatprep.subr.bf16.mxu1 %v3560_v49  ;;  %v3767_v49 = vunpack.c.h.s8.bf16 %v2183_v0 }
 0x68e   :  { %6454 = vmatpush2.bf16.msra.mxu0 %v3303_v52  ;;  %v3752_v52 = vunpack.c.l.s8.bf16 %v2184_v60 }
 0x68f   :  { %6495 = vmatpush2.bf16.msra.mxu1 %v3559_v12  ;;  %6505 = vmatprep.subr.bf16.mxu0 %v3800_v31  ;;  %v4008_v31 = vunpack.c.l.s8.bf16 %v2312_v29 }
 0x690   :  { %6546 = vmatprep.subr.bf16.mxu1 %v4056_v13  ;;  %v3751_v13 = vunpack.c.l.s8.bf16 %v2183_v0  ;;  %v2151_v0 = vld [vmem:[#allocation7 + $0x1050] sm:$0xff] }
 0x691   :  { %v6211_v40 = vpop.f32.mrf.mxu0  ;;  %6456 = vmatmul.mubr.bf16.vlgmr.msra.gmra.mxu0 %v9919_v63 }
 0x692   :  { %v6212_v22 = vadd.f32 %v6211_v40, %v10141_v46  ;;  %v6252_v26 = vpop.f32.mrf.mxu1  ;;  %6497 = vmatmul.mubr.bf16.vlgmr.msra.gmra.mxu1 %v9921_v1  ;;  %6506 = vmatpush1.bf16.msra.mxu0 %v3799_v24  ;;  %v4024_v46 = vunpack.c.h.s8.bf16 %v2312_v29  ;;  %v2295_v40 = vld [vmem:[#allocation7 + $0x14d0] sm:$0xff]  ;;  %v3976_v29 = vunpack.c.l.s8.bf16 %v2296_v61 }
 0x693   :  { %6537 = vmatprep.mubr.bf16.mxu0 %v9935_v34  ;;  %6547 = vmatpush1.bf16.msra.mxu1 %v4055_v58  ;;  %v6213_v39 = vpop.f32.mrf.mxu0  ;;  %v2167_v58 = vld [vmem:[#allocation7 + $0x10d0] sm:$0xff]  ;;  %v3991_v60 = vunpack.c.h.s8.bf16 %v2295_v40 }
 0x694   :  { %v10151_v36 = vadd.f32 %v6252_v26, %v6212_v22  ;;  %6578 = vmatprep.mubr.bf16.mxu1 %v9937_v4  ;;  %v6214_v59 = vadd.f32 %v6213_v39, %v10145_v6  ;;  %v6254_v17 = vpop.f32.mrf.mxu1  ;;  %6507 = vmatprep.subr.bf16.mxu0 %v3784_v21  ;;  %v2168_v6 = vld [vmem:[#allocation7 + $0x10d8] sm:$0xff]  ;;  %v3992_v21 = vunpack.c.h.s8.bf16 %v2296_v61  ;;  %v3719_v39 = vunpack.c.l.s8.bf16 %v2167_v58  ;;  %v2391_v61 = vld [vmem:[#allocation7 + $0x17d0] sm:$0xff] }
 0x695   :  { %v6215_v51 = vpop.f32.mrf.mxu0  ;;  %6548 = vmatprep.subr.bf16.mxu1 %v4040_v7  ;;  %v3736_v24 = vunpack.c.h.s8.bf16 %v2168_v6  ;;  %v3735_v7 = vunpack.c.h.s8.bf16 %v2167_v58  ;;  %v3720_v22 = vunpack.c.l.s8.bf16 %v2168_v6  ;;  %v2152_v26 = vld [vmem:[#allocation7 + $0x1058] sm:$0xff] }
 0x696   :  { %v10155_v41 = vadd.f32 %v6254_v17, %v6214_v59  ;;  %v6256_v50 = vpop.f32.mrf.mxu1  ;;  %6508 = vmatpush1.bf16.msra.mxu0 %v3783_v30  ;;  %v2280_v30 = vld [vmem:[#allocation7 + $0x1458] sm:$0xff]  ;;  %v2279_v17 = vld [vmem:[#allocation7 + $0x1450] sm:$0xff]  ;;  %v3688_v51 = vunpack.c.l.s8.bf16 %v2152_v26 }
 0x697   :  { %6549 = vmatpush1.bf16.msra.mxu1 %v4039_v32  ;;  %v6216_v54 = vpop.f32.mrf.mxu0  ;;  %6509 = vmatprep.subr.bf16.mxu0 %v3768_v56  ;;  %v3975_v32 = vunpack.c.l.s8.bf16 %v2295_v40  ;;  %v3704_v56 = vunpack.c.h.s8.bf16 %v2152_v26  ;;  %v3960_v59 = vunpack.c.h.s8.bf16 %v2280_v30  ;;  %v3959_v37 = vunpack.c.h.s8.bf16 %v2279_v17  ;;  %v2376_v40 = vld [vmem:[#allocation7 + $0x1758] sm:$0xff] }
 0x698   :  { %v6257_v12 = vpop.f32.mrf.mxu1  ;;  %6550 = vmatprep.subr.bf16.mxu1 %v4024_v46  ;;  %v3703_v46 = vunpack.c.h.s8.bf16 %v2151_v0  ;;  %v3944_v50 = vunpack.c.l.s8.bf16 %v2280_v30  ;;  %v2392_v54 = vld [vmem:[#allocation7 + $0x17d8] sm:$0xff]  ;;  %v4152_v26 = vunpack.c.h.s8.bf16 %v2376_v40  ;;  %v2375_v30 = vld [vmem:[#allocation7 + $0x1750] sm:$0xff] }
 0x699   :  { %v4184_v6 = vunpack.c.h.s8.bf16 %v2392_v54  ;;  %v4168_v58 = vunpack.c.l.s8.bf16 %v2392_v54  ;;  %v2359_v54 = vld [vmem:[#allocation7 + $0x16d0] sm:$0xff] }
 0x69a   :  { %6510 = vmatpush1.bf16.msra.mxu0 %v3767_v49  ;;  %v2264_v49 = vld [vmem:[#allocation7 + $0x13d8] sm:$0xff] }
 0x69b   :  { %6551 = vmatpush1.bf16.msra.mxu1 %v4023_v55  ;;  %6511 = vmatprep.subr.bf16.mxu0 %v3752_v52  ;;  %v3687_v55 = vunpack.c.l.s8.bf16 %v2151_v0  ;;  %v3943_v52 = vunpack.c.l.s8.bf16 %v2279_v17  ;;  %v3928_v12 = vunpack.c.h.s8.bf16 %v2264_v49  ;;  %v4136_v0 = vunpack.c.l.s8.bf16 %v2376_v40  ;;  %v2360_v17 = vld [vmem:[#allocation7 + $0x16d8] sm:$0xff]  ;;  %v2343_v40 = vld [vmem:[#allocation7 + $0x1650] sm:$0xff] }
 0x69c   :  { %6552 = vmatprep.subr.bf16.mxu1 %v4008_v31  ;;  %v2263_v31 = vld [vmem:[#allocation7 + $0x13d0] sm:$0xff] }
 0x69e   :  { %6512 = vmatpush1.bf16.msra.mxu0 %v3751_v13  ;;  %v3927_v13 = vunpack.c.h.s8.bf16 %v2263_v31 }
 0x69f   :  { %6553 = vmatpush1.bf16.msra.mxu1 %v4007_v16  ;;  %6513 = vmatprep.subr.bf16.mxu0 %v3736_v24  ;;  %v4183_v16 = vunpack.c.h.s8.bf16 %v2391_v61  ;;  %v3912_v24 = vunpack.c.l.s8.bf16 %v2264_v49  ;;  %v4120_v49 = vunpack.c.h.s8.bf16 %v2360_v17 }
 0x6a0   :  { %6554 = vmatprep.subr.bf16.mxu1 %v3992_v21  ;;  %v2248_v21 = vld [vmem:[#allocation7 + $0x1358] sm:$0xff] }
 0x6a2   :  { %6514 = vmatpush1.bf16.msra.mxu0 %v3735_v7  ;;  %v3911_v7 = vunpack.c.l.s8.bf16 %v2263_v31  ;;  %v4104_v31 = vunpack.c.l.s8.bf16 %v2360_v17  ;;  %v2583_v17 = vld [vmem:[#allocation7 + $0x1dd0] sm:$0xff] }
 0x6a3   :  { %6555 = vmatpush1.bf16.msra.mxu1 %v3991_v60  ;;  %6515 = vmatprep.subr.bf16.mxu0 %v3720_v22  ;;  %v4167_v60 = vunpack.c.l.s8.bf16 %v2391_v61  ;;  %v3896_v22 = vunpack.c.h.s8.bf16 %v2248_v21  ;;  %v2344_v61 = vld [vmem:[#allocation7 + $0x1658] sm:$0xff] }
 0x6a4   :  { %6556 = vmatprep.subr.bf16.mxu1 %v3976_v29  ;;  %v2247_v29 = vld [vmem:[#allocation7 + $0x1350] sm:$0xff] }
 0x6a6   :  { %6516 = vmatpush1.bf16.msra.mxu0 %v3719_v39  ;;  %v3895_v39 = vunpack.c.h.s8.bf16 %v2247_v29 }
 0x6a7   :  { %6557 = vmatpush1.bf16.msra.mxu1 %v3975_v32  ;;  %6517 = vmatprep.subr.bf16.mxu0 %v3704_v56  ;;  %v4151_v32 = vunpack.c.h.s8.bf16 %v2375_v30  ;;  %v3880_v56 = vunpack.c.l.s8.bf16 %v2248_v21  ;;  %v4088_v21 = vunpack.c.h.s8.bf16 %v2344_v61 }
 0x6a8   :  { %6558 = vmatprep.subr.bf16.mxu1 %v3960_v59  ;;  %v2232_v59 = vld [vmem:[#allocation7 + $0x12d8] sm:$0xff] }
 0x6aa   :  { %6518 = vmatpush1.bf16.msra.mxu0 %v3703_v46  ;;  %v3879_v46 = vunpack.c.l.s8.bf16 %v2247_v29  ;;  %v4072_v29 = vunpack.c.l.s8.bf16 %v2344_v61  ;;  %v4551_v61 = vunpack.c.l.s8.bf16 %v2583_v17 }
 0x6ab   :  { %6559 = vmatpush1.bf16.msra.mxu1 %v3959_v37  ;;  %6519 = vmatprep.subr.bf16.mxu0 %v3688_v51  ;;  %v4135_v37 = vunpack.c.l.s8.bf16 %v2375_v30  ;;  %v3864_v51 = vunpack.c.h.s8.bf16 %v2232_v59  ;;  %v2584_v30 = vld [vmem:[#allocation7 + $0x1dd8] sm:$0xff] }
 0x6ac   :  { %6560 = vmatprep.subr.bf16.mxu1 %v3944_v50  ;;  %v2231_v50 = vld [vmem:[#allocation7 + $0x12d0] sm:$0xff] }
 0x6ae   :  { %6520 = vmatpush1.bf16.msra.mxu0 %v3687_v55  ;;  %v3863_v55 = vunpack.c.h.s8.bf16 %v2231_v50 }
 0x6af   :  { %6561 = vmatpush1.bf16.msra.mxu1 %v3943_v52  ;;  %6521 = vmatprep.subr.bf16.mxu0 %v3928_v12  ;;  %v4119_v52 = vunpack.c.h.s8.bf16 %v2359_v54  ;;  %v3848_v12 = vunpack.c.l.s8.bf16 %v2232_v59  ;;  %v4568_v59 = vunpack.c.h.s8.bf16 %v2584_v30 }
 0x6b0   :  { %6562 = vmatprep.subr.bf16.mxu1 %v4184_v6  ;;  %v2216_v6 = vld [vmem:[#allocation7 + $0x1258] sm:$0xff] }
 0x6b2   :  { %6522 = vmatpush2.bf16.msra.mxu0 %v3927_v13  ;;  %v3847_v13 = vunpack.c.l.s8.bf16 %v2231_v50  ;;  %v2440_v50 = vld [vmem:[#allocation7 + $0x1958] sm:$0xff] }
 0x6b3   :  { %6563 = vmatpush2.bf16.msra.mxu1 %v4183_v16  ;;  %6523 = vmatprep.subr.bf16.mxu0 %v3912_v24  ;;  %v4103_v16 = vunpack.c.l.s8.bf16 %v2359_v54  ;;  %v3832_v24 = vunpack.c.h.s8.bf16 %v2216_v6  ;;  %v4552_v54 = vunpack.c.l.s8.bf16 %v2584_v30 }
 0x6b4   :  { %6564 = vmatprep.subr.bf16.mxu1 %v4168_v58  ;;  %v2215_v58 = vld [vmem:[#allocation7 + $0x1250] sm:$0xff] }
 0x6b6   :  { %6524 = vmatpush2.bf16.msra.mxu0 %v3911_v7  ;;  %v3831_v7 = vunpack.c.h.s8.bf16 %v2215_v58 }
 0x6b7   :  { %6565 = vmatpush2.bf16.msra.mxu1 %v4167_v60  ;;  %6525 = vmatprep.subr.bf16.mxu0 %v3896_v22  ;;  %v4087_v60 = vunpack.c.h.s8.bf16 %v2343_v40  ;;  %v3816_v22 = vunpack.c.l.s8.bf16 %v2216_v6 }
 0x6b8   :  { %6566 = vmatprep.subr.bf16.mxu1 %v4152_v26  ;;  %v2456_v26 = vld [vmem:[#allocation7 + $0x19d8] sm:$0xff] }
 0x6ba   :  { %6526 = vmatpush2.bf16.msra.mxu0 %v3895_v39  ;;  %v3815_v39 = vunpack.c.l.s8.bf16 %v2215_v58 }
 0x6bb   :  { %6567 = vmatpush2.bf16.msra.mxu1 %v4151_v32  ;;  %6527 = vmatprep.subr.bf16.mxu0 %v3880_v56  ;;  %v4071_v32 = vunpack.c.l.s8.bf16 %v2343_v40  ;;  %v4312_v56 = vunpack.c.h.s8.bf16 %v2456_v26  ;;  %v2567_v40 = vld [vmem:[#allocation7 + $0x1d50] sm:$0xff] }
 0x6bc   :  { %6568 = vmatprep.subr.bf16.mxu1 %v4136_v0  ;;  %v2455_v0 = vld [vmem:[#allocation7 + $0x19d0] sm:$0xff]  ;;  %v4535_v30 = vunpack.c.h.s8.bf16 %v2567_v40 }
 0x6be   :  { %6528 = vmatpush2.bf16.msra.mxu0 %v3879_v46  ;;  %v4311_v46 = vunpack.c.h.s8.bf16 %v2455_v0 }
 0x6bf   :  { %6569 = vmatpush2.bf16.msra.mxu1 %v4135_v37  ;;  %6529 = vmatprep.subr.bf16.mxu0 %v3864_v51  ;;  %v4567_v37 = vunpack.c.h.s8.bf16 %v2583_v17  ;;  %v4296_v51 = vunpack.c.l.s8.bf16 %v2456_v26  ;;  %v4519_v17 = vunpack.c.l.s8.bf16 %v2567_v40 }
 0x6c0   :  { %6570 = vmatprep.subr.bf16.mxu1 %v4120_v49 }
 0x6c2   :  { %6530 = vmatpush2.bf16.msra.mxu0 %v3863_v55  ;;  %v2568_v55 = vld [vmem:[#allocation7 + $0x1d58] sm:$0xff] }
 0x6c3   :  { %6571 = vmatpush2.bf16.msra.mxu1 %v4119_v52  ;;  %6531 = vmatprep.subr.bf16.mxu0 %v3848_v12 }
 0x6c4   :  { %6572 = vmatprep.subr.bf16.mxu1 %v4104_v31  ;;  %v4295_v31 = vunpack.c.l.s8.bf16 %v2455_v0  ;;  %v2552_v0 = vld [vmem:[#allocation7 + $0x1cd8] sm:$0xff] }
 0x6c6   :  { %6532 = vmatpush2.bf16.msra.mxu0 %v3847_v13  ;;  %v4280_v13 = vunpack.c.h.s8.bf16 %v2440_v50 }
 0x6c7   :  { %6573 = vmatpush2.bf16.msra.mxu1 %v4103_v16  ;;  %6533 = vmatprep.subr.bf16.mxu0 %v3832_v24  ;;  %v2439_v16 = vld [vmem:[#allocation7 + $0x1950] sm:$0xff] }
 0x6c8   :  { %6574 = vmatprep.subr.bf16.mxu1 %v4088_v21 }
 0x6ca   :  { %6534 = vmatpush2.bf16.msra.mxu0 %v3831_v7 }
 0x6cb   :  { %6575 = vmatpush2.bf16.msra.mxu1 %v4087_v60  ;;  %6535 = vmatprep.subr.bf16.mxu0 %v3816_v22 }
 0x6cc   :  { %6576 = vmatprep.subr.bf16.mxu1 %v4072_v29  ;;  %v4279_v29 = vunpack.c.h.s8.bf16 %v2439_v16 }
 0x6ce   :  { %6536 = vmatpush2.bf16.msra.mxu0 %v3815_v39  ;;  %v4264_v39 = vunpack.c.l.s8.bf16 %v2440_v50 }
 0x6cf   :  { %6577 = vmatpush2.bf16.msra.mxu1 %v4071_v32  ;;  %6587 = vmatprep.subr.bf16.mxu0 %v4312_v56  ;;  %v4520_v56 = vunpack.c.l.s8.bf16 %v2568_v55 }
 0x6d0   :  { %6628 = vmatprep.subr.bf16.mxu1 %v4568_v59  ;;  %v4263_v59 = vunpack.c.l.s8.bf16 %v2439_v16  ;;  %v2407_v16 = vld [vmem:[#allocation7 + $0x1850] sm:$0xff] }
 0x6d1   :  { %v6293_v49 = vpop.f32.mrf.mxu0  ;;  %6538 = vmatmul.mubr.bf16.vlgmr.msra.gmra.mxu0 %v9955_v53 }
 0x6d2   :  { %v6294_v52 = vadd.f32 %v6293_v49, %v10151_v36  ;;  %v6334_v12 = vpop.f32.mrf.mxu1  ;;  %6579 = vmatmul.mubr.bf16.vlgmr.msra.gmra.mxu1 %v9957_v57  ;;  %6588 = vmatpush1.bf16.msra.mxu0 %v4311_v46  ;;  %v4536_v36 = vunpack.c.h.s8.bf16 %v2568_v55  ;;  %v2551_v49 = vld [vmem:[#allocation7 + $0x1cd0] sm:$0xff]  ;;  %v4488_v55 = vunpack.c.l.s8.bf16 %v2552_v0 }
 0x6d3   :  { %6619 = vmatprep.mubr.bf16.mxu0 %v9960_v2  ;;  %6629 = vmatpush1.bf16.msra.mxu1 %v4567_v37  ;;  %v6295_v6 = vpop.f32.mrf.mxu0  ;;  %v2423_v37 = vld [vmem:[#allocation7 + $0x18d0] sm:$0xff]  ;;  %v4503_v50 = vunpack.c.h.s8.bf16 %v2551_v49 }
 0x6d4   :  { %v10161_v24 = vadd.f32 %v6334_v12, %v6294_v52  ;;  %6660 = vmatprep.mubr.bf16.mxu1 %v9963_v9  ;;  %v6296_v58 = vadd.f32 %v6295_v6, %v10155_v41  ;;  %v6336_v21 = vpop.f32.mrf.mxu1  ;;  %6589 = vmatprep.subr.bf16.mxu0 %v4296_v51  ;;  %v2424_v41 = vld [vmem:[#allocation7 + $0x18d8] sm:$0xff]  ;;  %v4504_v51 = vunpack.c.h.s8.bf16 %v2552_v0  ;;  %v4231_v6 = vunpack.c.l.s8.bf16 %v2423_v37  ;;  %v2647_v0 = vld [vmem:[#allocation7 + $0x1fd0] sm:$0xff] }
 0x6d5   :  { %v6297_v7 = vpop.f32.mrf.mxu0  ;;  %6630 = vmatprep.subr.bf16.mxu1 %v4552_v54  ;;  %v4248_v46 = vunpack.c.h.s8.bf16 %v2424_v41  ;;  %v4247_v54 = vunpack.c.h.s8.bf16 %v2423_v37  ;;  %v4232_v52 = vunpack.c.l.s8.bf16 %v2424_v41  ;;  %v2408_v12 = vld [vmem:[#allocation7 + $0x1858] sm:$0xff] }
 0x6d6   :  { %v10165_v60 = vadd.f32 %v6336_v21, %v6296_v58  ;;  %v6338_v22 = vpop.f32.mrf.mxu1  ;;  %6590 = vmatpush1.bf16.msra.mxu0 %v4295_v31  ;;  %v2536_v31 = vld [vmem:[#allocation7 + $0x1c58] sm:$0xff]  ;;  %v2535_v21 = vld [vmem:[#allocation7 + $0x1c50] sm:$0xff]  ;;  %v4200_v7 = vunpack.c.l.s8.bf16 %v2408_v12 }
 0x6d7   :  { %6631 = vmatpush1.bf16.msra.mxu1 %v4551_v61  ;;  %v6298_v26 = vpop.f32.mrf.mxu0  ;;  %6591 = vmatprep.subr.bf16.mxu0 %v4280_v13  ;;  %v4487_v61 = vunpack.c.l.s8.bf16 %v2551_v49  ;;  %v4216_v13 = vunpack.c.h.s8.bf16 %v2408_v12  ;;  %v4472_v58 = vunpack.c.h.s8.bf16 %v2536_v31  ;;  %v4471_v40 = vunpack.c.h.s8.bf16 %v2535_v21  ;;  %v2632_v49 = vld [vmem:[#allocation7 + $0x1f58] sm:$0xff] }
 0x6d8   :  { %v6339_v32 = vpop.f32.mrf.mxu1  ;;  %6632 = vmatprep.subr.bf16.mxu1 %v4536_v36  ;;  %v4215_v36 = vunpack.c.h.s8.bf16 %v2407_v16  ;;  %v4456_v22 = vunpack.c.l.s8.bf16 %v2536_v31  ;;  %v2648_v26 = vld [vmem:[#allocation7 + $0x1fd8] sm:$0xff]  ;;  %v4664_v12 = vunpack.c.h.s8.bf16 %v2632_v49  ;;  %v2631_v31 = vld [vmem:[#allocation7 + $0x1f50] sm:$0xff] }
 0x6d9   :  { %v4696_v41 = vunpack.c.h.s8.bf16 %v2648_v26  ;;  %v4680_v37 = vunpack.c.l.s8.bf16 %v2648_v26  ;;  %v2615_v26 = vld [vmem:[#allocation7 + $0x1ed0] sm:$0xff] }
 0x6da   :  { %6592 = vmatpush1.bf16.msra.mxu0 %v4279_v29  ;;  %v2520_v29 = vld [vmem:[#allocation7 + $0x1bd8] sm:$0xff] }
 0x6db   :  { %6633 = vmatpush1.bf16.msra.mxu1 %v4535_v30  ;;  %6593 = vmatprep.subr.bf16.mxu0 %v4264_v39  ;;  %v4199_v30 = vunpack.c.l.s8.bf16 %v2407_v16  ;;  %v4455_v39 = vunpack.c.l.s8.bf16 %v2535_v21  ;;  %v4440_v32 = vunpack.c.h.s8.bf16 %v2520_v29  ;;  %v4648_v16 = vunpack.c.l.s8.bf16 %v2632_v49  ;;  %v2616_v21 = vld [vmem:[#allocation7 + $0x1ed8] sm:$0xff]  ;;  %v2599_v49 = vld [vmem:[#allocation7 + $0x1e50] sm:$0xff] }
 0x6dc   :  { %6634 = vmatprep.subr.bf16.mxu1 %v4520_v56  ;;  %v2519_v56 = vld [vmem:[#allocation7 + $0x1bd0] sm:$0xff] }
 0x6de   :  { %6594 = vmatpush1.bf16.msra.mxu0 %v4263_v59  ;;  %v4439_v59 = vunpack.c.h.s8.bf16 %v2519_v56 }
 0x6df   :  { %6635 = vmatpush1.bf16.msra.mxu1 %v4519_v17  ;;  %6595 = vmatprep.subr.bf16.mxu0 %v4248_v46  ;;  %v4695_v17 = vunpack.c.h.s8.bf16 %v2647_v0  ;;  %v4424_v46 = vunpack.c.l.s8.bf16 %v2520_v29  ;;  %v4632_v29 = vunpack.c.h.s8.bf16 %v2616_v21 }
 0x6e0   :  { %6636 = vmatprep.subr.bf16.mxu1 %v4504_v51  ;;  %v2504_v51 = vld [vmem:[#allocation7 + $0x1b58] sm:$0xff] }
 0x6e2   :  { %6596 = vmatpush1.bf16.msra.mxu0 %v4247_v54  ;;  %v4423_v54 = vunpack.c.l.s8.bf16 %v2519_v56  ;;  %v4616_v56 = vunpack.c.l.s8.bf16 %v2616_v21  ;;  %v1817_v21 = vld [vmem:[#allocation7 + $0x5e0] sm:$0xff] }
 0x6e3   :  { %6637 = vmatpush1.bf16.msra.mxu1 %v4503_v50  ;;  %6597 = vmatprep.subr.bf16.mxu0 %v4232_v52  ;;  %v4679_v50 = vunpack.c.l.s8.bf16 %v2647_v0  ;;  %v4408_v52 = vunpack.c.h.s8.bf16 %v2504_v51  ;;  %v2600_v0 = vld [vmem:[#allocation7 + $0x1e58] sm:$0xff] }
 0x6e4   :  { %6638 = vmatprep.subr.bf16.mxu1 %v4488_v55  ;;  %v2503_v55 = vld [vmem:[#allocation7 + $0x1b50] sm:$0xff] }
 0x6e6   :  { %6598 = vmatpush1.bf16.msra.mxu0 %v4231_v6  ;;  %v4407_v6 = vunpack.c.h.s8.bf16 %v2503_v55 }
 0x6e7   :  { %6639 = vmatpush1.bf16.msra.mxu1 %v4487_v61  ;;  %6599 = vmatprep.subr.bf16.mxu0 %v4216_v13  ;;  %v4663_v61 = vunpack.c.h.s8.bf16 %v2631_v31  ;;  %v4392_v13 = vunpack.c.l.s8.bf16 %v2504_v51  ;;  %v4600_v51 = vunpack.c.h.s8.bf16 %v2600_v0 }
 0x6e8   :  { %6640 = vmatprep.subr.bf16.mxu1 %v4472_v58  ;;  %v2488_v58 = vld [vmem:[#allocation7 + $0x1ad8] sm:$0xff] }
 0x6ea   :  { %6600 = vmatpush1.bf16.msra.mxu0 %v4215_v36  ;;  %v4391_v36 = vunpack.c.l.s8.bf16 %v2503_v55  ;;  %v4584_v55 = vunpack.c.l.s8.bf16 %v2600_v0  ;;  %v3017_v0 = vunpack.c.l.s8.bf16 %v1817_v21 }
 0x6eb   :  { %6641 = vmatpush1.bf16.msra.mxu1 %v4471_v40  ;;  %6601 = vmatprep.subr.bf16.mxu0 %v4200_v7  ;;  %v4647_v40 = vunpack.c.l.s8.bf16 %v2631_v31  ;;  %v4376_v7 = vunpack.c.h.s8.bf16 %v2488_v58  ;;  %v1818_v31 = vld [vmem:[#allocation7 + $0x5e8] sm:$0xff] }
 0x6ec   :  { %6642 = vmatprep.subr.bf16.mxu1 %v4456_v22  ;;  %v2487_v22 = vld [vmem:[#allocation7 + $0x1ad0] sm:$0xff] }
 0x6ee   :  { %6602 = vmatpush1.bf16.msra.mxu0 %v4199_v30  ;;  %v4375_v30 = vunpack.c.h.s8.bf16 %v2487_v22 }
 0x6ef   :  { %6643 = vmatpush1.bf16.msra.mxu1 %v4455_v39  ;;  %6603 = vmatprep.subr.bf16.mxu0 %v4440_v32  ;;  %v4631_v39 = vunpack.c.h.s8.bf16 %v2615_v26  ;;  %v4360_v32 = vunpack.c.l.s8.bf16 %v2488_v58  ;;  %v3034_v58 = vunpack.c.h.s8.bf16 %v1818_v31 }
 0x6f0   :  { %6644 = vmatprep.subr.bf16.mxu1 %v4696_v41  ;;  %v2472_v41 = vld [vmem:[#allocation7 + $0x1a58] sm:$0xff] }
 0x6f2   :  { %6604 = vmatpush2.bf16.msra.mxu0 %v4439_v59  ;;  %v4359_v59 = vunpack.c.l.s8.bf16 %v2487_v22  ;;  %v1674_v22 = vld [vmem:[#allocation7 + $0x168] sm:$0xff] }
 0x6f3   :  { %6645 = vmatpush2.bf16.msra.mxu1 %v4695_v17  ;;  %6605 = vmatprep.subr.bf16.mxu0 %v4424_v46  ;;  %v4615_v17 = vunpack.c.l.s8.bf16 %v2615_v26  ;;  %v4344_v46 = vunpack.c.h.s8.bf16 %v2472_v41  ;;  %v3018_v26 = vunpack.c.l.s8.bf16 %v1818_v31  ;;  %v2730_v31 = vunpack.c.l.s8.bf16 %v1674_v22 }
 0x6f4   :  { %6646 = vmatprep.subr.bf16.mxu1 %v4680_v37  ;;  %v2471_v37 = vld [vmem:[#allocation7 + $0x1a50] sm:$0xff] }
 0x6f6   :  { %6606 = vmatpush2.bf16.msra.mxu0 %v4423_v54  ;;  %v4343_v54 = vunpack.c.h.s8.bf16 %v2471_v37 }
 0x6f7   :  { %6647 = vmatpush2.bf16.msra.mxu1 %v4679_v50  ;;  %6607 = vmatprep.subr.bf16.mxu0 %v4408_v52  ;;  %v4599_v50 = vunpack.c.h.s8.bf16 %v2599_v49  ;;  %v4328_v52 = vunpack.c.l.s8.bf16 %v2472_v41 }
 0x6f8   :  { %6648 = vmatprep.subr.bf16.mxu1 %v4664_v12  ;;  %v1690_v12 = vld [vmem:[#allocation7 + $0x1e8] sm:$0xff] }
 0x6fa   :  { %6608 = vmatpush2.bf16.msra.mxu0 %v4407_v6  ;;  %v4327_v6 = vunpack.c.l.s8.bf16 %v2471_v37 }
 0x6fb   :  { %6649 = vmatpush2.bf16.msra.mxu1 %v4663_v61  ;;  %6609 = vmatprep.subr.bf16.mxu0 %v4392_v13  ;;  %v4583_v61 = vunpack.c.l.s8.bf16 %v2599_v49  ;;  %v2778_v13 = vunpack.c.h.s8.bf16 %v1690_v12 }
 0x6fc   :  { %6650 = vmatprep.subr.bf16.mxu1 %v4648_v16  ;;  %v1689_v16 = vld [vmem:[#allocation7 + $0x1e0] sm:$0xff] }
 0x6fe   :  { %6610 = vmatpush2.bf16.msra.mxu0 %v4391_v36  ;;  %v2777_v36 = vunpack.c.h.s8.bf16 %v1689_v16 }
 0x6ff   :  { %6651 = vmatpush2.bf16.msra.mxu1 %v4647_v40  ;;  %6611 = vmatprep.subr.bf16.mxu0 %v4376_v7  ;;  %v3033_v40 = vunpack.c.h.s8.bf16 %v1817_v21  ;;  %v2762_v7 = vunpack.c.l.s8.bf16 %v1690_v12 }
 0x700   :  { %6652 = vmatprep.subr.bf16.mxu1 %v4632_v29 }
 0x702   :  { %6612 = vmatpush2.bf16.msra.mxu0 %v4375_v30  ;;  %v1802_v30 = vld [vmem:[#allocation7 + $0x568] sm:$0xff] }
 0x703   :  { %6653 = vmatpush2.bf16.msra.mxu1 %v4631_v39  ;;  %6613 = vmatprep.subr.bf16.mxu0 %v4360_v32  ;;  %v2761_v32 = vunpack.c.l.s8.bf16 %v1689_v16  ;;  %v3002_v37 = vunpack.c.h.s8.bf16 %v1802_v30  ;;  %v1786_v16 = vld [vmem:[#allocation7 + $0x4e8] sm:$0xff] }
 0x704   :  { %6654 = vmatprep.subr.bf16.mxu1 %v4616_v56 }
 0x706   :  { %6614 = vmatpush2.bf16.msra.mxu0 %v4359_v59  ;;  %v2746_v59 = vunpack.c.h.s8.bf16 %v1674_v22 }
 0x707   :  { %6655 = vmatpush2.bf16.msra.mxu1 %v4615_v17  ;;  %6615 = vmatprep.subr.bf16.mxu0 %v4344_v46  ;;  %v1673_v17 = vld [vmem:[#allocation7 + $0x160] sm:$0xff] }
 0x708   :  { %6656 = vmatprep.subr.bf16.mxu1 %v4600_v51  ;;  %v1801_v51 = vld [vmem:[#allocation7 + $0x560] sm:$0xff] }
 0x709   :  { %v3001_v12 = vunpack.c.h.s8.bf16 %v1801_v51  ;;  %v2985_v21 = vunpack.c.l.s8.bf16 %v1801_v51  ;;  %v1769_v51 = vld [vmem:[#allocation7 + $0x460] sm:$0xff] }
 0x70a   :  { %6616 = vmatpush2.bf16.msra.mxu0 %v4343_v54 }
 0x70b   :  { %6657 = vmatpush2.bf16.msra.mxu1 %v4599_v50  ;;  %6617 = vmatprep.subr.bf16.mxu0 %v4328_v52  ;;  %v2745_v52 = vunpack.c.h.s8.bf16 %v1673_v17 }
 0x70c   :  { %6658 = vmatprep.subr.bf16.mxu1 %v4584_v55 }
 0x70e   :  { %6618 = vmatpush2.bf16.msra.mxu0 %v4327_v6 }
 0x70f   :  { %6659 = vmatpush2.bf16.msra.mxu1 %v4583_v61  ;;  %6669 = vmatprep.subr.bf16.mxu0 %v2778_v13  ;;  %v2986_v61 = vunpack.c.l.s8.bf16 %v1802_v30  ;;  %v1658_v13 = vld [vmem:[#allocation7 + $0xe8] sm:$0xff]  ;;  %v2954_v30 = vunpack.c.l.s8.bf16 %v1786_v16 }
 0x710   :  { %6710 = vmatprep.subr.bf16.mxu1 %v3034_v58  ;;  %v2729_v58 = vunpack.c.l.s8.bf16 %v1673_v17 }
 0x711   :  { %v6375_v29 = vpop.f32.mrf.mxu0  ;;  %6620 = vmatmul.mubr.bf16.vlgmr.msra.gmra.mxu0 %v9973_v33 }
 0x712   :  { %v6416_v39 = vpop.f32.mrf.mxu1  ;;  %6661 = vmatmul.mubr.bf16.vlgmr.msra.gmra.mxu1 %v9975_v35  ;;  %6670 = vmatpush1.bf16.msra.mxu0 %v2777_v36  ;;  %v2714_v36 = vunpack.c.h.s8.bf16 %v1658_v13 }
 0x713   :  { %v10169_v56 = vadd.f32 %v6416_v39, %v6375_v29  ;;  %6701 = vmatprep.mubr.bf16.mxu0 %v9877_v45  ;;  %6711 = vmatpush1.bf16.msra.mxu1 %v3033_v40  ;;  %v6377_v41 = vpop.f32.mrf.mxu0  ;;  %v1657_v40 = vld [vmem:[#allocation7 + $0xe0] sm:$0xff]  ;;  %v2698_v39 = vunpack.c.l.s8.bf16 %v1658_v13 }
 0x714   :  { %6742 = vmatprep.mubr.bf16.mxu1 %v9881_v48  ;;  %v6418_v46 = vpop.f32.mrf.mxu1  ;;  %6671 = vmatprep.subr.bf16.mxu0 %v2762_v7  ;;  %v2970_v7 = vunpack.c.h.s8.bf16 %v1786_v16  ;;  %v1785_v29 = vld [vmem:[#allocation7 + $0x4e0] sm:$0xff] }
 0x715   :  { %v10173_v49 = vadd.f32 %v6418_v46, %v6377_v41  ;;  %v6379_v54 = vpop.f32.mrf.mxu0  ;;  %6712 = vmatprep.subr.bf16.mxu1 %v3018_v26  ;;  %v2713_v26 = vunpack.c.h.s8.bf16 %v1657_v40  ;;  %v2969_v22 = vunpack.c.h.s8.bf16 %v1785_v29  ;;  %v1770_v41 = vld [vmem:[#allocation7 + $0x468] sm:$0xff]  ;;  %v1641_v46 = vld [vmem:[#allocation7 + $0x60] sm:$0xff] }
 0x716   :  { %v6420_v50 = vpop.f32.mrf.mxu1  ;;  %6672 = vmatpush1.bf16.msra.mxu0 %v2761_v32  ;;  %v1642_v32 = vld [vmem:[#allocation7 + $0x68] sm:$0xff]  ;;  %v2681_v54 = vunpack.c.h.s8.bf16 %v1641_v46  ;;  %v1753_v16 = vld [vmem:[#allocation7 + $0x3e0] sm:$0xff] }
 0x717   :  { %6713 = vmatpush1.bf16.msra.mxu1 %v3017_v0  ;;  %v6380_v55 = vpop.f32.mrf.mxu0  ;;  %6673 = vmatprep.subr.bf16.mxu0 %v2746_v59  ;;  %v2697_v0 = vunpack.c.l.s8.bf16 %v1657_v40  ;;  %v2953_v59 = vunpack.c.l.s8.bf16 %v1785_v29  ;;  %v2682_v17 = vunpack.c.h.s8.bf16 %v1642_v32  ;;  %v2937_v50 = vunpack.c.h.s8.bf16 %v1769_v51 }
 0x718   :  { %v6421_v6 = vpop.f32.mrf.mxu1  ;;  %6714 = vmatprep.subr.bf16.mxu1 %v3002_v37  ;;  %v2938_v37 = vunpack.c.h.s8.bf16 %v1770_v41  ;;  %v2922_v55 = vunpack.c.l.s8.bf16 %v1770_v41  ;;  %v1737_v41 = vld [vmem:[#allocation7 + $0x360] sm:$0xff] }
 0x719   :  { %v2665_v6 = vunpack.c.l.s8.bf16 %v1641_v46 }
 0x71a   :  { %6674 = vmatpush1.bf16.msra.mxu0 %v2745_v52  ;;  %v2666_v52 = vunpack.c.l.s8.bf16 %v1642_v32 }
 0x71b   :  { %6715 = vmatpush1.bf16.msra.mxu1 %v3001_v12  ;;  %6675 = vmatprep.subr.bf16.mxu0 %v2730_v31  ;;  %v1754_v12 = vld [vmem:[#allocation7 + $0x3e8] sm:$0xff] }
 0x71c   :  { %6716 = vmatprep.subr.bf16.mxu1 %v2986_v61  ;;  %v1882_v31 = vld [vmem:[#allocation7 + $0x7e8] sm:$0xff]  ;;  %v2921_v61 = vunpack.c.l.s8.bf16 %v1769_v51  ;;  %v2906_v13 = vunpack.c.h.s8.bf16 %v1754_v12 }
 0x71d   :  { %v3146_v29 = vunpack.c.l.s8.bf16 %v1882_v31 }
 0x71e   :  { %6676 = vmatpush1.bf16.msra.mxu0 %v2729_v58  ;;  %v3162_v58 = vunpack.c.h.s8.bf16 %v1882_v31  ;;  %v1721_v31 = vld [vmem:[#allocation7 + $0x2e0] sm:$0xff] }
 0x71f   :  { %6717 = vmatpush1.bf16.msra.mxu1 %v2985_v21  ;;  %6677 = vmatprep.subr.bf16.mxu0 %v2714_v36  ;;  %v1881_v21 = vld [vmem:[#allocation7 + $0x7e0] sm:$0xff]  ;;  %v2905_v36 = vunpack.c.h.s8.bf16 %v1753_v16 }
 0x720   :  { %6718 = vmatprep.subr.bf16.mxu1 %v2970_v7  ;;  %v3161_v40 = vunpack.c.h.s8.bf16 %v1881_v21  ;;  %v2890_v7 = vunpack.c.l.s8.bf16 %v1754_v12 }
 0x722   :  { %6678 = vmatpush1.bf16.msra.mxu0 %v2713_v26  ;;  %v1738_v26 = vld [vmem:[#allocation7 + $0x368] sm:$0xff] }
 0x723   :  { %6719 = vmatpush1.bf16.msra.mxu1 %v2969_v22  ;;  %6679 = vmatprep.subr.bf16.mxu0 %v2698_v39  ;;  %v1866_v22 = vld [vmem:[#allocation7 + $0x768] sm:$0xff]  ;;  %v2889_v39 = vunpack.c.l.s8.bf16 %v1753_v16  ;;  %v2874_v32 = vunpack.c.h.s8.bf16 %v1738_v26 }
 0x724   :  { %6720 = vmatprep.subr.bf16.mxu1 %v2954_v30  ;;  %v3145_v30 = vunpack.c.l.s8.bf16 %v1881_v21  ;;  %v3114_v51 = vunpack.c.l.s8.bf16 %v1866_v22 }
 0x726   :  { %6680 = vmatpush1.bf16.msra.mxu0 %v2697_v0  ;;  %v3130_v0 = vunpack.c.h.s8.bf16 %v1866_v22  ;;  %v1705_v22 = vld [vmem:[#allocation7 + $0x260] sm:$0xff] }
 0x727   :  { %6721 = vmatpush1.bf16.msra.mxu1 %v2953_v59  ;;  %6681 = vmatprep.subr.bf16.mxu0 %v2682_v17  ;;  %v1865_v59 = vld [vmem:[#allocation7 + $0x760] sm:$0xff]  ;;  %v2873_v17 = vunpack.c.h.s8.bf16 %v1737_v41 }
 0x728   :  { %6722 = vmatprep.subr.bf16.mxu1 %v2938_v37  ;;  %v3129_v46 = vunpack.c.h.s8.bf16 %v1865_v59  ;;  %v2858_v37 = vunpack.c.l.s8.bf16 %v1738_v26 }
 0x72a   :  { %6682 = vmatpush1.bf16.msra.mxu0 %v2681_v54  ;;  %v1722_v54 = vld [vmem:[#allocation7 + $0x2e8] sm:$0xff] }
 0x72b   :  { %6723 = vmatpush1.bf16.msra.mxu1 %v2937_v50  ;;  %6683 = vmatprep.subr.bf16.mxu0 %v2666_v52  ;;  %v1850_v50 = vld [vmem:[#allocation7 + $0x6e8] sm:$0xff]  ;;  %v2857_v52 = vunpack.c.l.s8.bf16 %v1737_v41  ;;  %v2842_v12 = vunpack.c.h.s8.bf16 %v1722_v54 }
 0x72c   :  { %6724 = vmatprep.subr.bf16.mxu1 %v2922_v55  ;;  %v3113_v55 = vunpack.c.l.s8.bf16 %v1865_v59  ;;  %v3082_v21 = vunpack.c.l.s8.bf16 %v1850_v50 }
 0x72e   :  { %6684 = vmatpush1.bf16.msra.mxu0 %v2665_v6  ;;  %v3098_v6 = vunpack.c.h.s8.bf16 %v1850_v50  ;;  %v1945_v50 = vld [vmem:[#allocation7 + $0x9e0] sm:$0xff] }
 0x72f   :  { %6725 = vmatpush1.bf16.msra.mxu1 %v2921_v61  ;;  %6685 = vmatprep.subr.bf16.mxu0 %v2906_v13  ;;  %v1849_v61 = vld [vmem:[#allocation7 + $0x6e0] sm:$0xff]  ;;  %v2841_v13 = vunpack.c.h.s8.bf16 %v1721_v31 }
 0x730   :  { %6726 = vmatprep.subr.bf16.mxu1 %v3162_v58  ;;  %v3097_v16 = vunpack.c.h.s8.bf16 %v1849_v61  ;;  %v2826_v58 = vunpack.c.l.s8.bf16 %v1722_v54 }
 0x732   :  { %6686 = vmatpush2.bf16.msra.mxu0 %v2905_v36  ;;  %v1706_v36 = vld [vmem:[#allocation7 + $0x268] sm:$0xff] }
 0x733   :  { %6727 = vmatpush2.bf16.msra.mxu1 %v3161_v40  ;;  %6687 = vmatprep.subr.bf16.mxu0 %v2890_v7  ;;  %v1834_v40 = vld [vmem:[#allocation7 + $0x668] sm:$0xff]  ;;  %v2825_v7 = vunpack.c.l.s8.bf16 %v1721_v31  ;;  %v2810_v26 = vunpack.c.h.s8.bf16 %v1706_v36 }
 0x734   :  { %6728 = vmatprep.subr.bf16.mxu1 %v3146_v29  ;;  %v3081_v29 = vunpack.c.l.s8.bf16 %v1849_v61  ;;  %v3050_v59 = vunpack.c.l.s8.bf16 %v1834_v40  ;;  %v1930_v61 = vld [vmem:[#allocation7 + $0x968] sm:$0xff] }
 0x736   :  { %6688 = vmatpush2.bf16.msra.mxu0 %v2889_v39  ;;  %v3066_v39 = vunpack.c.h.s8.bf16 %v1834_v40  ;;  %v3273_v40 = vunpack.c.l.s8.bf16 %v1945_v50 }
 0x737   :  { %6729 = vmatpush2.bf16.msra.mxu1 %v3145_v30  ;;  %6689 = vmatprep.subr.bf16.mxu0 %v2874_v32  ;;  %v1833_v30 = vld [vmem:[#allocation7 + $0x660] sm:$0xff]  ;;  %v2809_v32 = vunpack.c.h.s8.bf16 %v1705_v22 }
 0x738   :  { %6730 = vmatprep.subr.bf16.mxu1 %v3130_v0  ;;  %v3065_v41 = vunpack.c.h.s8.bf16 %v1833_v30  ;;  %v2794_v0 = vunpack.c.l.s8.bf16 %v1706_v36 }
 0x73a   :  { %6690 = vmatpush2.bf16.msra.mxu0 %v2873_v17  ;;  %v1946_v17 = vld [vmem:[#allocation7 + $0x9e8] sm:$0xff] }
 0x73b   :  { %6731 = vmatpush2.bf16.msra.mxu1 %v3129_v46  ;;  %6691 = vmatprep.subr.bf16.mxu0 %v2858_v37  ;;  %v2074_v46 = vld [vmem:[#allocation7 + $0xde8] sm:$0xff]  ;;  %v2793_v37 = vunpack.c.l.s8.bf16 %v1705_v22  ;;  %v3290_v54 = vunpack.c.h.s8.bf16 %v1946_v17  ;;  %v1929_v22 = vld [vmem:[#allocation7 + $0x960] sm:$0xff] }
 0x73c   :  { %6732 = vmatprep.subr.bf16.mxu1 %v3114_v51  ;;  %v3049_v51 = vunpack.c.l.s8.bf16 %v1833_v30 }
 0x73e   :  { %6692 = vmatpush2.bf16.msra.mxu0 %v2857_v52  ;;  %v3546_v52 = vunpack.c.h.s8.bf16 %v2074_v46 }
 0x73f   :  { %6733 = vmatpush2.bf16.msra.mxu1 %v3113_v55  ;;  %6693 = vmatprep.subr.bf16.mxu0 %v2842_v12  ;;  %v2073_v55 = vld [vmem:[#allocation7 + $0xde0] sm:$0xff]  ;;  %v3289_v12 = vunpack.c.h.s8.bf16 %v1945_v50 }
 0x740   :  { %6734 = vmatprep.subr.bf16.mxu1 %v3098_v6  ;;  %v3545_v31 = vunpack.c.h.s8.bf16 %v2073_v55  ;;  %v3274_v6 = vunpack.c.l.s8.bf16 %v1946_v17 }
 0x742   :  { %6694 = vmatpush2.bf16.msra.mxu0 %v2841_v13 }
 0x743   :  { %6735 = vmatpush2.bf16.msra.mxu1 %v3097_v16  ;;  %6695 = vmatprep.subr.bf16.mxu0 %v2826_v58  ;;  %v3530_v16 = vunpack.c.l.s8.bf16 %v2074_v46  ;;  %v2058_v58 = vld [vmem:[#allocation7 + $0xd68] sm:$0xff]  ;;  %v3257_v46 = vunpack.c.h.s8.bf16 %v1929_v22 }
 0x744   :  { %6736 = vmatprep.subr.bf16.mxu1 %v3082_v21 }
 0x746   :  { %6696 = vmatpush2.bf16.msra.mxu0 %v2825_v7 }
 0x747   :  { %6737 = vmatpush2.bf16.msra.mxu1 %v3081_v29  ;;  %6697 = vmatprep.subr.bf16.mxu0 %v2810_v26  ;;  %v3529_v29 = vunpack.c.l.s8.bf16 %v2073_v55  ;;  %v3258_v26 = vunpack.c.h.s8.bf16 %v1930_v61  ;;  %v2042_v55 = vld [vmem:[#allocation7 + $0xce8] sm:$0xff] }
 0x748   :  { %6738 = vmatprep.subr.bf16.mxu1 %v3066_v39 }
 0x74a   :  { %6698 = vmatpush2.bf16.msra.mxu0 %v2809_v32 }
 0x74b   :  { %6739 = vmatpush2.bf16.msra.mxu1 %v3065_v41  ;;  %6699 = vmatprep.subr.bf16.mxu0 %v2794_v0  ;;  %v2057_v41 = vld [vmem:[#allocation7 + $0xd60] sm:$0xff] }
 0x74c   :  { %6740 = vmatprep.subr.bf16.mxu1 %v3050_v59 }
 0x74e   :  { %6700 = vmatpush2.bf16.msra.mxu0 %v2793_v37 }
 0x74f   :  { %6741 = vmatpush2.bf16.msra.mxu1 %v3049_v51  ;;  %6751 = vmatprep.subr.bf16.mxu0 %v3290_v54  ;;  %v3513_v51 = vunpack.c.h.s8.bf16 %v2057_v41  ;;  %v3242_v54 = vunpack.c.l.s8.bf16 %v1930_v61 }
 0x750   :  { %6792 = vmatprep.subr.bf16.mxu1 %v3546_v52  ;;  %v3498_v52 = vunpack.c.l.s8.bf16 %v2058_v58 }
 0x751   :  { %v6457_v13 = vpop.f32.mrf.mxu0  ;;  %6702 = vmatmul.mubr.bf16.vlgmr.msra.gmra.mxu0 %v9879_v47 }
 0x752   :  { %v6458_v21 = vadd.f32 %v6457_v13, %v10169_v56  ;;  %v6498_v36 = vpop.f32.mrf.mxu1  ;;  %6743 = vmatmul.mubr.bf16.vlgmr.msra.gmra.mxu1 %v9875_v44  ;;  %6752 = vmatpush1.bf16.msra.mxu0 %v3289_v12  ;;  %v3514_v56 = vunpack.c.h.s8.bf16 %v2058_v58  ;;  %v3241_v12 = vunpack.c.l.s8.bf16 %v1929_v22  ;;  %v1913_v13 = vld [vmem:[#allocation7 + $0x8e0] sm:$0xff]  ;;  %v3466_v58 = vunpack.c.l.s8.bf16 %v2042_v55 }
 0x753   :  { %6783 = vmatprep.mubr.bf16.mxu0 %v9901_v15  ;;  %6793 = vmatpush1.bf16.msra.mxu1 %v3545_v31  ;;  %v6459_v7 = vpop.f32.mrf.mxu0  ;;  %v3497_v31 = vunpack.c.l.s8.bf16 %v2057_v41  ;;  %v2025_v41 = vld [vmem:[#allocation7 + $0xc60] sm:$0xff] }
 0x754   :  { %v10179_v39 = vadd.f32 %v6498_v36, %v6458_v21  ;;  %6824 = vmatprep.mubr.bf16.mxu1 %v9903_v18  ;;  %v6460_v30 = vadd.f32 %v6459_v7, %v10173_v49  ;;  %v6500_v32 = vpop.f32.mrf.mxu1  ;;  %6753 = vmatprep.subr.bf16.mxu0 %v3274_v6  ;;  %v1914_v49 = vld [vmem:[#allocation7 + $0x8e8] sm:$0xff]  ;;  %v2041_v21 = vld [vmem:[#allocation7 + $0xce0] sm:$0xff]  ;;  %v3225_v36 = vunpack.c.h.s8.bf16 %v1913_v13 }
 0x755   :  { %v6461_v0 = vpop.f32.mrf.mxu0  ;;  %6794 = vmatprep.subr.bf16.mxu1 %v3530_v16  ;;  %v3226_v6 = vunpack.c.h.s8.bf16 %v1914_v49  ;;  %v3482_v16 = vunpack.c.h.s8.bf16 %v2042_v55  ;;  %v3481_v61 = vunpack.c.h.s8.bf16 %v2041_v21  ;;  %v1898_v7 = vld [vmem:[#allocation7 + $0x868] sm:$0xff]  ;;  %v3465_v22 = vunpack.c.l.s8.bf16 %v2041_v21  ;;  %v2009_v55 = vld [vmem:[#allocation7 + $0xbe0] sm:$0xff] }
 0x756   :  { %v10183_v59 = vadd.f32 %v6500_v32, %v6460_v30  ;;  %v6502_v17 = vpop.f32.mrf.mxu1  ;;  %6754 = vmatpush1.bf16.msra.mxu0 %v3273_v40  ;;  %v3210_v40 = vunpack.c.l.s8.bf16 %v1914_v49  ;;  %v3194_v30 = vunpack.c.h.s8.bf16 %v1898_v7  ;;  %v1897_v32 = vld [vmem:[#allocation7 + $0x860] sm:$0xff] }
 0x757   :  { %6795 = vmatpush1.bf16.msra.mxu1 %v3529_v29  ;;  %v6462_v37 = vpop.f32.mrf.mxu0  ;;  %6755 = vmatprep.subr.bf16.mxu0 %v3258_v26  ;;  %v2026_v29 = vld [vmem:[#allocation7 + $0xc68] sm:$0xff]  ;;  %v3209_v26 = vunpack.c.l.s8.bf16 %v1913_v13  ;;  %v3193_v0 = vunpack.c.h.s8.bf16 %v1897_v32  ;;  %v3449_v17 = vunpack.c.h.s8.bf16 %v2025_v41 }
 0x758   :  { %v6503_v50 = vpop.f32.mrf.mxu1  ;;  %6796 = vmatprep.subr.bf16.mxu1 %v3514_v56  ;;  %v3450_v56 = vunpack.c.h.s8.bf16 %v2026_v29  ;;  %v3434_v37 = vunpack.c.l.s8.bf16 %v2026_v29  ;;  %v1993_v29 = vld [vmem:[#allocation7 + $0xb60] sm:$0xff] }
 0x759   :  { %v3177_v50 = vunpack.c.l.s8.bf16 %v1897_v32 }
 0x75a   :  { %6756 = vmatpush1.bf16.msra.mxu0 %v3257_v46  ;;  %v3178_v46 = vunpack.c.l.s8.bf16 %v1898_v7 }
 0x75b   :  { %6797 = vmatpush1.bf16.msra.mxu1 %v3513_v51  ;;  %6757 = vmatprep.subr.bf16.mxu0 %v3242_v54  ;;  %v2010_v51 = vld [vmem:[#allocation7 + $0xbe8] sm:$0xff] }
 0x75c   :  { %6798 = vmatprep.subr.bf16.mxu1 %v3498_v52  ;;  %v2138_v54 = vld [vmem:[#allocation7 + $0xfe8] sm:$0xff]  ;;  %v3433_v52 = vunpack.c.l.s8.bf16 %v2025_v41  ;;  %v3418_v49 = vunpack.c.h.s8.bf16 %v2010_v51 }
 0x75d   :  { %v3658_v21 = vunpack.c.l.s8.bf16 %v2138_v54 }
 0x75e   :  { %6758 = vmatpush1.bf16.msra.mxu0 %v3241_v12  ;;  %v3674_v12 = vunpack.c.h.s8.bf16 %v2138_v54  ;;  %v1977_v54 = vld [vmem:[#allocation7 + $0xae0] sm:$0xff] }
 0x75f   :  { %6799 = vmatpush1.bf16.msra.mxu1 %v3497_v31  ;;  %6759 = vmatprep.subr.bf16.mxu0 %v3226_v6  ;;  %v2137_v31 = vld [vmem:[#allocation7 + $0xfe0] sm:$0xff]  ;;  %v3417_v6 = vunpack.c.h.s8.bf16 %v2009_v55 }
 0x760   :  { %6800 = vmatprep.subr.bf16.mxu1 %v3482_v16  ;;  %v3673_v13 = vunpack.c.h.s8.bf16 %v2137_v31  ;;  %v3402_v16 = vunpack.c.l.s8.bf16 %v2010_v51 }
 0x762   :  { %6760 = vmatpush1.bf16.msra.mxu0 %v3225_v36  ;;  %v1994_v36 = vld [vmem:[#allocation7 + $0xb68] sm:$0xff] }
 0x763   :  { %6801 = vmatpush1.bf16.msra.mxu1 %v3481_v61  ;;  %6761 = vmatprep.subr.bf16.mxu0 %v3210_v40  ;;  %v2122_v61 = vld [vmem:[#allocation7 + $0xf68] sm:$0xff]  ;;  %v3401_v40 = vunpack.c.l.s8.bf16 %v2009_v55  ;;  %v3386_v7 = vunpack.c.h.s8.bf16 %v1994_v36 }
 0x764   :  { %6802 = vmatprep.subr.bf16.mxu1 %v3466_v58  ;;  %v3657_v58 = vunpack.c.l.s8.bf16 %v2137_v31  ;;  %v3626_v41 = vunpack.c.l.s8.bf16 %v2122_v61 }
 0x766   :  { %6762 = vmatpush1.bf16.msra.mxu0 %v3209_v26  ;;  %v3642_v26 = vunpack.c.h.s8.bf16 %v2122_v61  ;;  %v1961_v61 = vld [vmem:[#allocation7 + $0xa60] sm:$0xff] }
 0x767   :  { %6803 = vmatpush1.bf16.msra.mxu1 %v3465_v22  ;;  %6763 = vmatprep.subr.bf16.mxu0 %v3194_v30  ;;  %v2121_v22 = vld [vmem:[#allocation7 + $0xf60] sm:$0xff]  ;;  %v3385_v30 = vunpack.c.h.s8.bf16 %v1993_v29 }
 0x768   :  { %6804 = vmatprep.subr.bf16.mxu1 %v3450_v56  ;;  %v3641_v32 = vunpack.c.h.s8.bf16 %v2121_v22  ;;  %v3370_v56 = vunpack.c.l.s8.bf16 %v1994_v36 }
 0x76a   :  { %6764 = vmatpush1.bf16.msra.mxu0 %v3193_v0  ;;  %v1978_v0 = vld [vmem:[#allocation7 + $0xae8] sm:$0xff] }
 0x76b   :  { %6805 = vmatpush1.bf16.msra.mxu1 %v3449_v17  ;;  %6765 = vmatprep.subr.bf16.mxu0 %v3178_v46  ;;  %v2106_v17 = vld [vmem:[#allocation7 + $0xee8] sm:$0xff]  ;;  %v3369_v46 = vunpack.c.l.s8.bf16 %v1993_v29  ;;  %v3354_v51 = vunpack.c.h.s8.bf16 %v1978_v0 }
 0x76c   :  { %6806 = vmatprep.subr.bf16.mxu1 %v3434_v37  ;;  %v3625_v37 = vunpack.c.l.s8.bf16 %v2121_v22  ;;  %v3594_v31 = vunpack.c.l.s8.bf16 %v2106_v17 }
 0x76e   :  { %6766 = vmatpush1.bf16.msra.mxu0 %v3177_v50  ;;  %v3610_v50 = vunpack.c.h.s8.bf16 %v2106_v17  ;;  %v2201_v17 = vld [vmem:[#allocation7 + $0x11e0] sm:$0xff] }
 0x76f   :  { %6807 = vmatpush1.bf16.msra.mxu1 %v3433_v52  ;;  %6767 = vmatprep.subr.bf16.mxu0 %v3418_v49  ;;  %v2105_v52 = vld [vmem:[#allocation7 + $0xee0] sm:$0xff]  ;;  %v3353_v49 = vunpack.c.h.s8.bf16 %v1977_v54 }
 0x770   :  { %6808 = vmatprep.subr.bf16.mxu1 %v3674_v12  ;;  %v3609_v55 = vunpack.c.h.s8.bf16 %v2105_v52  ;;  %v3338_v12 = vunpack.c.l.s8.bf16 %v1978_v0 }
 0x772   :  { %6768 = vmatpush2.bf16.msra.mxu0 %v3417_v6  ;;  %v1962_v6 = vld [vmem:[#allocation7 + $0xa68] sm:$0xff] }
 0x773   :  { %6809 = vmatpush2.bf16.msra.mxu1 %v3673_v13  ;;  %6769 = vmatprep.subr.bf16.mxu0 %v3402_v16  ;;  %v2090_v13 = vld [vmem:[#allocation7 + $0xe68] sm:$0xff]  ;;  %v3337_v16 = vunpack.c.l.s8.bf16 %v1977_v54  ;;  %v3322_v36 = vunpack.c.h.s8.bf16 %v1962_v6 }
 0x774   :  { %6810 = vmatprep.subr.bf16.mxu1 %v3658_v21  ;;  %v3593_v21 = vunpack.c.l.s8.bf16 %v2105_v52  ;;  %v3562_v22 = vunpack.c.l.s8.bf16 %v2090_v13  ;;  %v2186_v52 = vld [vmem:[#allocation7 + $0x1168] sm:$0xff] }
 0x776   :  { %6770 = vmatpush2.bf16.msra.mxu0 %v3401_v40  ;;  %v3578_v40 = vunpack.c.h.s8.bf16 %v2090_v13  ;;  %v3785_v13 = vunpack.c.l.s8.bf16 %v2201_v17 }
 0x777   :  { %6811 = vmatpush2.bf16.msra.mxu1 %v3657_v58  ;;  %6771 = vmatprep.subr.bf16.mxu0 %v3386_v7  ;;  %v2089_v58 = vld [vmem:[#allocation7 + $0xe60] sm:$0xff]  ;;  %v3321_v7 = vunpack.c.h.s8.bf16 %v1961_v61 }
 0x778   :  { %6812 = vmatprep.subr.bf16.mxu1 %v3642_v26  ;;  %v3577_v29 = vunpack.c.h.s8.bf16 %v2089_v58  ;;  %v3306_v26 = vunpack.c.l.s8.bf16 %v1962_v6 }
 0x77a   :  { %6772 = vmatpush2.bf16.msra.mxu0 %v3385_v30  ;;  %v2202_v30 = vld [vmem:[#allocation7 + $0x11e8] sm:$0xff] }
 0x77b   :  { %6813 = vmatpush2.bf16.msra.mxu1 %v3641_v32  ;;  %6773 = vmatprep.subr.bf16.mxu0 %v3370_v56  ;;  %v2330_v32 = vld [vmem:[#allocation7 + $0x15e8] sm:$0xff]  ;;  %v3305_v56 = vunpack.c.l.s8.bf16 %v1961_v61  ;;  %v3802_v0 = vunpack.c.h.s8.bf16 %v2202_v30  ;;  %v2185_v61 = vld [vmem:[#allocation7 + $0x1160] sm:$0xff] }
 0x77c   :  { %6814 = vmatprep.subr.bf16.mxu1 %v3626_v41  ;;  %v3561_v41 = vunpack.c.l.s8.bf16 %v2089_v58 }
 0x77e   :  { %6774 = vmatpush2.bf16.msra.mxu0 %v3369_v46  ;;  %v4058_v46 = vunpack.c.h.s8.bf16 %v2330_v32 }
 0x77f   :  { %6815 = vmatpush2.bf16.msra.mxu1 %v3625_v37  ;;  %6775 = vmatprep.subr.bf16.mxu0 %v3354_v51  ;;  %v2329_v37 = vld [vmem:[#allocation7 + $0x15e0] sm:$0xff]  ;;  %v3801_v51 = vunpack.c.h.s8.bf16 %v2201_v17 }
 0x780   :  { %6816 = vmatprep.subr.bf16.mxu1 %v3610_v50  ;;  %v4057_v54 = vunpack.c.h.s8.bf16 %v2329_v37  ;;  %v3786_v50 = vunpack.c.l.s8.bf16 %v2202_v30 }
 0x782   :  { %6776 = vmatpush2.bf16.msra.mxu0 %v3353_v49 }
 0x783   :  { %6817 = vmatpush2.bf16.msra.mxu1 %v3609_v55  ;;  %6777 = vmatprep.subr.bf16.mxu0 %v3338_v12  ;;  %v4042_v55 = vunpack.c.l.s8.bf16 %v2330_v32  ;;  %v2314_v12 = vld [vmem:[#allocation7 + $0x1568] sm:$0xff]  ;;  %v3769_v32 = vunpack.c.h.s8.bf16 %v2185_v61 }
 0x784   :  { %6818 = vmatprep.subr.bf16.mxu1 %v3594_v31 }
 0x786   :  { %6778 = vmatpush2.bf16.msra.mxu0 %v3337_v16 }
 0x787   :  { %6819 = vmatpush2.bf16.msra.mxu1 %v3593_v21  ;;  %6779 = vmatprep.subr.bf16.mxu0 %v3322_v36  ;;  %v4041_v21 = vunpack.c.l.s8.bf16 %v2329_v37  ;;  %v3770_v36 = vunpack.c.h.s8.bf16 %v2186_v52  ;;  %v2298_v37 = vld [vmem:[#allocation7 + $0x14e8] sm:$0xff] }
 0x788   :  { %6820 = vmatprep.subr.bf16.mxu1 %v3578_v40 }
 0x78a   :  { %6780 = vmatpush2.bf16.msra.mxu0 %v3321_v7 }
 0x78b   :  { %6821 = vmatpush2.bf16.msra.mxu1 %v3577_v29  ;;  %6781 = vmatprep.subr.bf16.mxu0 %v3306_v26  ;;  %v2313_v29 = vld [vmem:[#allocation7 + $0x1560] sm:$0xff] }
 0x78c   :  { %6822 = vmatprep.subr.bf16.mxu1 %v3562_v22 }
 0x78e   :  { %6782 = vmatpush2.bf16.msra.mxu0 %v3305_v56 }
 0x78f   :  { %6823 = vmatpush2.bf16.msra.mxu1 %v3561_v41  ;;  %6833 = vmatprep.subr.bf16.mxu0 %v3802_v0  ;;  %v4025_v41 = vunpack.c.h.s8.bf16 %v2313_v29  ;;  %v3754_v0 = vunpack.c.l.s8.bf16 %v2186_v52 }
 0x790   :  { %6874 = vmatprep.subr.bf16.mxu1 %v4058_v46  ;;  %v4010_v46 = vunpack.c.l.s8.bf16 %v2314_v12 }
 0x791   :  { %v6539_v49 = vpop.f32.mrf.mxu0  ;;  %6784 = vmatmul.mubr.bf16.vlgmr.msra.gmra.mxu0 %v9919_v63 }
 0x792   :  { %v6540_v31 = vadd.f32 %v6539_v49, %v10179_v39  ;;  %v6580_v6 = vpop.f32.mrf.mxu1  ;;  %6825 = vmatmul.mubr.bf16.vlgmr.msra.gmra.mxu1 %v9921_v1  ;;  %6834 = vmatpush1.bf16.msra.mxu0 %v3801_v51  ;;  %v4026_v39 = vunpack.c.h.s8.bf16 %v2314_v12  ;;  %v3753_v51 = vunpack.c.l.s8.bf16 %v2185_v61  ;;  %v2169_v49 = vld [vmem:[#allocation7 + $0x10e0] sm:$0xff]  ;;  %v3978_v12 = vunpack.c.l.s8.bf16 %v2298_v37 }
 0x793   :  { %6865 = vmatprep.mubr.bf16.mxu0 %v9935_v34  ;;  %6875 = vmatpush1.bf16.msra.mxu1 %v4057_v54  ;;  %v6541_v16 = vpop.f32.mrf.mxu0  ;;  %v4009_v54 = vunpack.c.l.s8.bf16 %v2313_v29  ;;  %v2281_v29 = vld [vmem:[#allocation7 + $0x1460] sm:$0xff] }
 0x794   :  { %v10189_v40 = vadd.f32 %v6580_v6, %v6540_v31  ;;  %6906 = vmatprep.mubr.bf16.mxu1 %v9937_v4  ;;  %v6542_v58 = vadd.f32 %v6541_v16, %v10183_v59  ;;  %v6582_v7 = vpop.f32.mrf.mxu1  ;;  %6835 = vmatprep.subr.bf16.mxu0 %v3786_v50  ;;  %v2170_v59 = vld [vmem:[#allocation7 + $0x10e8] sm:$0xff]  ;;  %v2297_v31 = vld [vmem:[#allocation7 + $0x14e0] sm:$0xff]  ;;  %v3737_v6 = vunpack.c.h.s8.bf16 %v2169_v49 }
 0x795   :  { %v6543_v26 = vpop.f32.mrf.mxu0  ;;  %6876 = vmatprep.subr.bf16.mxu1 %v4042_v55  ;;  %v3738_v50 = vunpack.c.h.s8.bf16 %v2170_v59  ;;  %v3994_v55 = vunpack.c.h.s8.bf16 %v2298_v37  ;;  %v3993_v52 = vunpack.c.h.s8.bf16 %v2297_v31  ;;  %v2154_v16 = vld [vmem:[#allocation7 + $0x1068] sm:$0xff]  ;;  %v3977_v61 = vunpack.c.l.s8.bf16 %v2297_v31  ;;  %v2265_v37 = vld [vmem:[#allocation7 + $0x13e0] sm:$0xff] }
 0x796   :  { %v10193_v22 = vadd.f32 %v6582_v7, %v6542_v58  ;;  %v6584_v30 = vpop.f32.mrf.mxu1  ;;  %6836 = vmatpush1.bf16.msra.mxu0 %v3785_v13  ;;  %v3722_v13 = vunpack.c.l.s8.bf16 %v2170_v59  ;;  %v3706_v58 = vunpack.c.h.s8.bf16 %v2154_v16  ;;  %v2153_v7 = vld [vmem:[#allocation7 + $0x1060] sm:$0xff] }
 0x797   :  { %6877 = vmatpush1.bf16.msra.mxu1 %v4041_v21  ;;  %v6544_v56 = vpop.f32.mrf.mxu0  ;;  %6837 = vmatprep.subr.bf16.mxu0 %v3770_v36  ;;  %v2282_v21 = vld [vmem:[#allocation7 + $0x1468] sm:$0xff]  ;;  %v3721_v36 = vunpack.c.l.s8.bf16 %v2169_v49  ;;  %v3705_v26 = vunpack.c.h.s8.bf16 %v2153_v7  ;;  %v3961_v30 = vunpack.c.h.s8.bf16 %v2281_v29 }
 0x798   :  { %v6585_v17 = vpop.f32.mrf.mxu1  ;;  %6878 = vmatprep.subr.bf16.mxu1 %v4026_v39  ;;  %v3962_v39 = vunpack.c.h.s8.bf16 %v2282_v21  ;;  %v3946_v56 = vunpack.c.l.s8.bf16 %v2282_v21  ;;  %v2249_v21 = vld [vmem:[#allocation7 + $0x1360] sm:$0xff] }
 0x799   :  { %v3689_v17 = vunpack.c.l.s8.bf16 %v2153_v7 }
 0x79a   :  { %6838 = vmatpush1.bf16.msra.mxu0 %v3769_v32  ;;  %v3690_v32 = vunpack.c.l.s8.bf16 %v2154_v16 }
 0x79b   :  { %6879 = vmatpush1.bf16.msra.mxu1 %v4025_v41  ;;  %6839 = vmatprep.subr.bf16.mxu0 %v3754_v0  ;;  %v2266_v41 = vld [vmem:[#allocation7 + $0x13e8] sm:$0xff] }
 0x79c   :  { %6880 = vmatprep.subr.bf16.mxu1 %v4010_v46  ;;  %v2394_v0 = vld [vmem:[#allocation7 + $0x17e8] sm:$0xff]  ;;  %v3945_v46 = vunpack.c.l.s8.bf16 %v2281_v29  ;;  %v3930_v59 = vunpack.c.h.s8.bf16 %v2266_v41 }
 0x79d   :  { %v4170_v31 = vunpack.c.l.s8.bf16 %v2394_v0 }
 0x79e   :  { %6840 = vmatpush1.bf16.msra.mxu0 %v3753_v51  ;;  %v4186_v51 = vunpack.c.h.s8.bf16 %v2394_v0  ;;  %v2233_v0 = vld [vmem:[#allocation7 + $0x12e0] sm:$0xff] }
 0x79f   :  { %6881 = vmatpush1.bf16.msra.mxu1 %v4009_v54  ;;  %6841 = vmatprep.subr.bf16.mxu0 %v3738_v50  ;;  %v2393_v54 = vld [vmem:[#allocation7 + $0x17e0] sm:$0xff]  ;;  %v3929_v50 = vunpack.c.h.s8.bf16 %v2265_v37 }
 0x7a0   :  { %6882 = vmatprep.subr.bf16.mxu1 %v3994_v55  ;;  %v4185_v49 = vunpack.c.h.s8.bf16 %v2393_v54  ;;  %v3914_v55 = vunpack.c.l.s8.bf16 %v2266_v41 }
 0x7a2   :  { %6842 = vmatpush1.bf16.msra.mxu0 %v3737_v6  ;;  %v2250_v6 = vld [vmem:[#allocation7 + $0x1368] sm:$0xff] }
 0x7a3   :  { %6883 = vmatpush1.bf16.msra.mxu1 %v3993_v52  ;;  %6843 = vmatprep.subr.bf16.mxu0 %v3722_v13  ;;  %v2378_v52 = vld [vmem:[#allocation7 + $0x1768] sm:$0xff]  ;;  %v3913_v13 = vunpack.c.l.s8.bf16 %v2265_v37  ;;  %v3898_v16 = vunpack.c.h.s8.bf16 %v2250_v6 }
 0x7a4   :  { %6884 = vmatprep.subr.bf16.mxu1 %v3978_v12  ;;  %v4169_v12 = vunpack.c.l.s8.bf16 %v2393_v54  ;;  %v4138_v29 = vunpack.c.l.s8.bf16 %v2378_v52 }
 0x7a6   :  { %6844 = vmatpush1.bf16.msra.mxu0 %v3721_v36  ;;  %v4154_v36 = vunpack.c.h.s8.bf16 %v2378_v52  ;;  %v2217_v52 = vld [vmem:[#allocation7 + $0x1260] sm:$0xff] }
 0x7a7   :  { %6885 = vmatpush1.bf16.msra.mxu1 %v3977_v61  ;;  %6845 = vmatprep.subr.bf16.mxu0 %v3706_v58  ;;  %v2377_v61 = vld [vmem:[#allocation7 + $0x1760] sm:$0xff]  ;;  %v3897_v58 = vunpack.c.h.s8.bf16 %v2249_v21 }
 0x7a8   :  { %6886 = vmatprep.subr.bf16.mxu1 %v3962_v39  ;;  %v4153_v7 = vunpack.c.h.s8.bf16 %v2377_v61  ;;  %v3882_v39 = vunpack.c.l.s8.bf16 %v2250_v6 }
 0x7aa   :  { %6846 = vmatpush1.bf16.msra.mxu0 %v3705_v26  ;;  %v2234_v26 = vld [vmem:[#allocation7 + $0x12e8] sm:$0xff] }
 0x7ab   :  { %6887 = vmatpush1.bf16.msra.mxu1 %v3961_v30  ;;  %6847 = vmatprep.subr.bf16.mxu0 %v3690_v32  ;;  %v2362_v30 = vld [vmem:[#allocation7 + $0x16e8] sm:$0xff]  ;;  %v3881_v32 = vunpack.c.l.s8.bf16 %v2249_v21  ;;  %v3866_v41 = vunpack.c.h.s8.bf16 %v2234_v26 }
 0x7ac   :  { %6888 = vmatprep.subr.bf16.mxu1 %v3946_v56  ;;  %v4137_v56 = vunpack.c.l.s8.bf16 %v2377_v61  ;;  %v4106_v54 = vunpack.c.l.s8.bf16 %v2362_v30 }
 0x7ae   :  { %6848 = vmatpush1.bf16.msra.mxu0 %v3689_v17  ;;  %v4122_v17 = vunpack.c.h.s8.bf16 %v2362_v30  ;;  %v2457_v30 = vld [vmem:[#allocation7 + $0x19e0] sm:$0xff] }
 0x7af   :  { %6889 = vmatpush1.bf16.msra.mxu1 %v3945_v46  ;;  %6849 = vmatprep.subr.bf16.mxu0 %v3930_v59  ;;  %v2361_v46 = vld [vmem:[#allocation7 + $0x16e0] sm:$0xff]  ;;  %v3865_v59 = vunpack.c.h.s8.bf16 %v2233_v0 }
 0x7b0   :  { %6890 = vmatprep.subr.bf16.mxu1 %v4186_v51  ;;  %v4121_v37 = vunpack.c.h.s8.bf16 %v2361_v46  ;;  %v3850_v51 = vunpack.c.l.s8.bf16 %v2234_v26 }
 0x7b2   :  { %6850 = vmatpush2.bf16.msra.mxu0 %v3929_v50  ;;  %v2218_v50 = vld [vmem:[#allocation7 + $0x1268] sm:$0xff] }
 0x7b3   :  { %6891 = vmatpush2.bf16.msra.mxu1 %v4185_v49  ;;  %6851 = vmatprep.subr.bf16.mxu0 %v3914_v55  ;;  %v2346_v49 = vld [vmem:[#allocation7 + $0x1668] sm:$0xff]  ;;  %v3849_v55 = vunpack.c.l.s8.bf16 %v2233_v0  ;;  %v3834_v6 = vunpack.c.h.s8.bf16 %v2218_v50 }
 0x7b4   :  { %6892 = vmatprep.subr.bf16.mxu1 %v4170_v31  ;;  %v4105_v31 = vunpack.c.l.s8.bf16 %v2361_v46  ;;  %v4074_v61 = vunpack.c.l.s8.bf16 %v2346_v49  ;;  %v2442_v46 = vld [vmem:[#allocation7 + $0x1968] sm:$0xff] }
 0x7b6   :  { %6852 = vmatpush2.bf16.msra.mxu0 %v3913_v13  ;;  %v4090_v13 = vunpack.c.h.s8.bf16 %v2346_v49  ;;  %v4297_v49 = vunpack.c.l.s8.bf16 %v2457_v30 }
 0x7b7   :  { %6893 = vmatpush2.bf16.msra.mxu1 %v4169_v12  ;;  %6853 = vmatprep.subr.bf16.mxu0 %v3898_v16  ;;  %v2345_v12 = vld [vmem:[#allocation7 + $0x1660] sm:$0xff]  ;;  %v3833_v16 = vunpack.c.h.s8.bf16 %v2217_v52 }
 0x7b8   :  { %6894 = vmatprep.subr.bf16.mxu1 %v4154_v36  ;;  %v4089_v21 = vunpack.c.h.s8.bf16 %v2345_v12  ;;  %v3818_v36 = vunpack.c.l.s8.bf16 %v2218_v50 }
 0x7ba   :  { %6854 = vmatpush2.bf16.msra.mxu0 %v3897_v58  ;;  %v2458_v58 = vld [vmem:[#allocation7 + $0x19e8] sm:$0xff] }
 0x7bb   :  { %6895 = vmatpush2.bf16.msra.mxu1 %v4153_v7  ;;  %6855 = vmatprep.subr.bf16.mxu0 %v3882_v39  ;;  %v2586_v7 = vld [vmem:[#allocation7 + $0x1de8] sm:$0xff]  ;;  %v3817_v39 = vunpack.c.l.s8.bf16 %v2217_v52  ;;  %v4314_v26 = vunpack.c.h.s8.bf16 %v2458_v58  ;;  %v2441_v52 = vld [vmem:[#allocation7 + $0x1960] sm:$0xff] }
 0x7bc   :  { %6896 = vmatprep.subr.bf16.mxu1 %v4138_v29  ;;  %v4073_v29 = vunpack.c.l.s8.bf16 %v2345_v12 }
 0x7be   :  { %6856 = vmatpush2.bf16.msra.mxu0 %v3881_v32  ;;  %v4570_v32 = vunpack.c.h.s8.bf16 %v2586_v7 }
 0x7bf   :  { %6897 = vmatpush2.bf16.msra.mxu1 %v4137_v56  ;;  %6857 = vmatprep.subr.bf16.mxu0 %v3866_v41  ;;  %v2585_v56 = vld [vmem:[#allocation7 + $0x1de0] sm:$0xff]  ;;  %v4313_v41 = vunpack.c.h.s8.bf16 %v2457_v30 }
 0x7c0   :  { %6898 = vmatprep.subr.bf16.mxu1 %v4122_v17  ;;  %v4569_v0 = vunpack.c.h.s8.bf16 %v2585_v56  ;;  %v4298_v17 = vunpack.c.l.s8.bf16 %v2458_v58 }
 0x7c2   :  { %6858 = vmatpush2.bf16.msra.mxu0 %v3865_v59 }
 0x7c3   :  { %6899 = vmatpush2.bf16.msra.mxu1 %v4121_v37  ;;  %6859 = vmatprep.subr.bf16.mxu0 %v3850_v51  ;;  %v4554_v37 = vunpack.c.l.s8.bf16 %v2586_v7  ;;  %v2570_v51 = vld [vmem:[#allocation7 + $0x1d68] sm:$0xff]  ;;  %v4281_v7 = vunpack.c.h.s8.bf16 %v2441_v52 }
 0x7c4   :  { %6900 = vmatprep.subr.bf16.mxu1 %v4106_v54 }
 0x7c6   :  { %6860 = vmatpush2.bf16.msra.mxu0 %v3849_v55 }
 0x7c7   :  { %6901 = vmatpush2.bf16.msra.mxu1 %v4105_v31  ;;  %6861 = vmatprep.subr.bf16.mxu0 %v3834_v6  ;;  %v4553_v31 = vunpack.c.l.s8.bf16 %v2585_v56  ;;  %v4282_v6 = vunpack.c.h.s8.bf16 %v2442_v46  ;;  %v2554_v56 = vld [vmem:[#allocation7 + $0x1ce8] sm:$0xff] }
 0x7c8   :  { %6902 = vmatprep.subr.bf16.mxu1 %v4090_v13 }
 0x7ca   :  { %6862 = vmatpush2.bf16.msra.mxu0 %v3833_v16 }
 0x7cb   :  { %6903 = vmatpush2.bf16.msra.mxu1 %v4089_v21  ;;  %6863 = vmatprep.subr.bf16.mxu0 %v3818_v36  ;;  %v2569_v21 = vld [vmem:[#allocation7 + $0x1d60] sm:$0xff] }
 0x7cc   :  { %6904 = vmatprep.subr.bf16.mxu1 %v4074_v61 }
 0x7ce   :  { %6864 = vmatpush2.bf16.msra.mxu0 %v3817_v39 }
 0x7cf   :  { %6905 = vmatpush2.bf16.msra.mxu1 %v4073_v29  ;;  %6915 = vmatprep.subr.bf16.mxu0 %v4314_v26  ;;  %v4537_v29 = vunpack.c.h.s8.bf16 %v2569_v21  ;;  %v4266_v26 = vunpack.c.l.s8.bf16 %v2442_v46 }
 0x7d0   :  { %6956 = vmatprep.subr.bf16.mxu1 %v4570_v32  ;;  %v4522_v32 = vunpack.c.l.s8.bf16 %v2570_v51 }
 0x7d1   :  { %v6621_v59 = vpop.f32.mrf.mxu0  ;;  %6866 = vmatmul.mubr.bf16.vlgmr.msra.gmra.mxu0 %v9955_v53 }
 0x7d2   :  { %v6622_v54 = vadd.f32 %v6621_v59, %v10189_v40  ;;  %v6662_v50 = vpop.f32.mrf.mxu1  ;;  %6907 = vmatmul.mubr.bf16.vlgmr.msra.gmra.mxu1 %v9957_v57  ;;  %6916 = vmatpush1.bf16.msra.mxu0 %v4313_v41  ;;  %v4538_v40 = vunpack.c.h.s8.bf16 %v2570_v51  ;;  %v4265_v41 = vunpack.c.l.s8.bf16 %v2441_v52  ;;  %v2425_v59 = vld [vmem:[#allocation7 + $0x18e0] sm:$0xff]  ;;  %v4490_v51 = vunpack.c.l.s8.bf16 %v2554_v56 }
 0x7d3   :  { %6947 = vmatprep.mubr.bf16.mxu0 %v9960_v2  ;;  %6957 = vmatpush1.bf16.msra.mxu1 %v4569_v0  ;;  %v6623_v55 = vpop.f32.mrf.mxu0  ;;  %v4521_v0 = vunpack.c.l.s8.bf16 %v2569_v21  ;;  %v2537_v21 = vld [vmem:[#allocation7 + $0x1c60] sm:$0xff] }
 0x7d4   :  { %v10199_v13 = vadd.f32 %v6662_v50, %v6622_v54  ;;  %6988 = vmatprep.mubr.bf16.mxu1 %v9963_v9  ;;  %v6624_v12 = vadd.f32 %v6623_v55, %v10193_v22  ;;  %v6664_v16 = vpop.f32.mrf.mxu1  ;;  %6917 = vmatprep.subr.bf16.mxu0 %v4298_v17  ;;  %v2426_v22 = vld [vmem:[#allocation7 + $0x18e8] sm:$0xff]  ;;  %v2553_v54 = vld [vmem:[#allocation7 + $0x1ce0] sm:$0xff]  ;;  %v4249_v50 = vunpack.c.h.s8.bf16 %v2425_v59 }
 0x7d5   :  { %v6625_v36 = vpop.f32.mrf.mxu0  ;;  %6958 = vmatprep.subr.bf16.mxu1 %v4554_v37  ;;  %v4250_v17 = vunpack.c.h.s8.bf16 %v2426_v22  ;;  %v4506_v37 = vunpack.c.h.s8.bf16 %v2554_v56  ;;  %v4505_v46 = vunpack.c.h.s8.bf16 %v2553_v54  ;;  %v2410_v55 = vld [vmem:[#allocation7 + $0x1868] sm:$0xff]  ;;  %v4489_v52 = vunpack.c.l.s8.bf16 %v2553_v54  ;;  %v2521_v56 = vld [vmem:[#allocation7 + $0x1be0] sm:$0xff] }
 0x7d6   :  { %v10203_v61 = vadd.f32 %v6664_v16, %v6624_v12  ;;  %v6666_v58 = vpop.f32.mrf.mxu1  ;;  %6918 = vmatpush1.bf16.msra.mxu0 %v4297_v49  ;;  %v4234_v49 = vunpack.c.l.s8.bf16 %v2426_v22  ;;  %v4218_v12 = vunpack.c.h.s8.bf16 %v2410_v55  ;;  %v2409_v16 = vld [vmem:[#allocation7 + $0x1860] sm:$0xff] }
 0x7d7   :  { %6959 = vmatpush1.bf16.msra.mxu1 %v4553_v31  ;;  %v6626_v39 = vpop.f32.mrf.mxu0  ;;  %6919 = vmatprep.subr.bf16.mxu0 %v4282_v6  ;;  %v2538_v31 = vld [vmem:[#allocation7 + $0x1c68] sm:$0xff]  ;;  %v4233_v6 = vunpack.c.l.s8.bf16 %v2425_v59  ;;  %v4217_v36 = vunpack.c.h.s8.bf16 %v2409_v16  ;;  %v4473_v58 = vunpack.c.h.s8.bf16 %v2537_v21 }
 0x7d8   :  { %v6667_v30 = vpop.f32.mrf.mxu1  ;;  %6960 = vmatprep.subr.bf16.mxu1 %v4538_v40  ;;  %v4474_v40 = vunpack.c.h.s8.bf16 %v2538_v31  ;;  %v4458_v39 = vunpack.c.l.s8.bf16 %v2538_v31  ;;  %v2505_v31 = vld [vmem:[#allocation7 + $0x1b60] sm:$0xff] }
 0x7d9   :  { %v4201_v30 = vunpack.c.l.s8.bf16 %v2409_v16 }
 0x7da   :  { %6920 = vmatpush1.bf16.msra.mxu0 %v4281_v7  ;;  %v4202_v7 = vunpack.c.l.s8.bf16 %v2410_v55 }
 0x7db   :  { %6961 = vmatpush1.bf16.msra.mxu1 %v4537_v29  ;;  %6921 = vmatprep.subr.bf16.mxu0 %v4266_v26  ;;  %v2522_v29 = vld [vmem:[#allocation7 + $0x1be8] sm:$0xff] }
 0x7dc   :  { %6962 = vmatprep.subr.bf16.mxu1 %v4522_v32  ;;  %v2650_v26 = vld [vmem:[#allocation7 + $0x1fe8] sm:$0xff]  ;;  %v4457_v32 = vunpack.c.l.s8.bf16 %v2537_v21  ;;  %v4442_v22 = vunpack.c.h.s8.bf16 %v2522_v29 }
 0x7dd   :  { %v4682_v54 = vunpack.c.l.s8.bf16 %v2650_v26 }
 0x7de   :  { %6922 = vmatpush1.bf16.msra.mxu0 %v4265_v41  ;;  %v4698_v41 = vunpack.c.h.s8.bf16 %v2650_v26  ;;  %v2489_v26 = vld [vmem:[#allocation7 + $0x1ae0] sm:$0xff] }
 0x7df   :  { %6963 = vmatpush1.bf16.msra.mxu1 %v4521_v0  ;;  %6923 = vmatprep.subr.bf16.mxu0 %v4250_v17  ;;  %v2649_v0 = vld [vmem:[#allocation7 + $0x1fe0] sm:$0xff]  ;;  %v4441_v17 = vunpack.c.h.s8.bf16 %v2521_v56 }
 0x7e0   :  { %6964 = vmatprep.subr.bf16.mxu1 %v4506_v37  ;;  %v4697_v59 = vunpack.c.h.s8.bf16 %v2649_v0  ;;  %v4426_v37 = vunpack.c.l.s8.bf16 %v2522_v29 }
 0x7e2   :  { %6924 = vmatpush1.bf16.msra.mxu0 %v4249_v50  ;;  %v2506_v50 = vld [vmem:[#allocation7 + $0x1b68] sm:$0xff] }
 0x7e3   :  { %6965 = vmatpush1.bf16.msra.mxu1 %v4505_v46  ;;  %6925 = vmatprep.subr.bf16.mxu0 %v4234_v49  ;;  %v2634_v46 = vld [vmem:[#allocation7 + $0x1f68] sm:$0xff]  ;;  %v4425_v49 = vunpack.c.l.s8.bf16 %v2521_v56  ;;  %v4410_v55 = vunpack.c.h.s8.bf16 %v2506_v50 }
 0x7e4   :  { %6966 = vmatprep.subr.bf16.mxu1 %v4490_v51  ;;  %v4681_v51 = vunpack.c.l.s8.bf16 %v2649_v0  ;;  %v4650_v21 = vunpack.c.l.s8.bf16 %v2634_v46 }
 0x7e6   :  { %6926 = vmatpush1.bf16.msra.mxu0 %v4233_v6  ;;  %v4666_v6 = vunpack.c.h.s8.bf16 %v2634_v46  ;;  %v2473_v46 = vld [vmem:[#allocation7 + $0x1a60] sm:$0xff] }
 0x7e7   :  { %6967 = vmatpush1.bf16.msra.mxu1 %v4489_v52  ;;  %6927 = vmatprep.subr.bf16.mxu0 %v4218_v12  ;;  %v2633_v52 = vld [vmem:[#allocation7 + $0x1f60] sm:$0xff]  ;;  %v4409_v12 = vunpack.c.h.s8.bf16 %v2505_v31 }
 0x7e8   :  { %6968 = vmatprep.subr.bf16.mxu1 %v4474_v40  ;;  %v4665_v16 = vunpack.c.h.s8.bf16 %v2633_v52  ;;  %v4394_v40 = vunpack.c.l.s8.bf16 %v2506_v50 }
 0x7ea   :  { %6928 = vmatpush1.bf16.msra.mxu0 %v4217_v36  ;;  %v2490_v36 = vld [vmem:[#allocation7 + $0x1ae8] sm:$0xff] }
 0x7eb   :  { %6969 = vmatpush1.bf16.msra.mxu1 %v4473_v58  ;;  %6929 = vmatprep.subr.bf16.mxu0 %v4202_v7  ;;  %v2618_v58 = vld [vmem:[#allocation7 + $0x1ee8] sm:$0xff]  ;;  %v4393_v7 = vunpack.c.l.s8.bf16 %v2505_v31  ;;  %v4378_v29 = vunpack.c.h.s8.bf16 %v2490_v36 }
 0x7ec   :  { %6970 = vmatprep.subr.bf16.mxu1 %v4458_v39  ;;  %v4649_v39 = vunpack.c.l.s8.bf16 %v2633_v52  ;;  %v4618_v0 = vunpack.c.l.s8.bf16 %v2618_v58 }
 0x7ee   :  { %6930 = vmatpush1.bf16.msra.mxu0 %v4201_v30  ;;  %v4634_v30 = vunpack.c.h.s8.bf16 %v2618_v58  ;;  %v1691_v58 = vld [vmem:[#allocation7 + $0x1f0] sm:$0xff] }
 0x7ef   :  { %6971 = vmatpush1.bf16.msra.mxu1 %v4457_v32  ;;  %6931 = vmatprep.subr.bf16.mxu0 %v4442_v22  ;;  %v2617_v32 = vld [vmem:[#allocation7 + $0x1ee0] sm:$0xff]  ;;  %v4377_v22 = vunpack.c.h.s8.bf16 %v2489_v26 }
 0x7f0   :  { %6972 = vmatprep.subr.bf16.mxu1 %v4698_v41  ;;  %v4633_v56 = vunpack.c.h.s8.bf16 %v2617_v32  ;;  %v4362_v41 = vunpack.c.l.s8.bf16 %v2490_v36 }
 0x7f2   :  { %6932 = vmatpush2.bf16.msra.mxu0 %v4441_v17  ;;  %v2474_v17 = vld [vmem:[#allocation7 + $0x1a68] sm:$0xff] }
 0x7f3   :  { %6973 = vmatpush2.bf16.msra.mxu1 %v4697_v59  ;;  %6933 = vmatprep.subr.bf16.mxu0 %v4426_v37  ;;  %v2602_v59 = vld [vmem:[#allocation7 + $0x1e68] sm:$0xff]  ;;  %v4361_v37 = vunpack.c.l.s8.bf16 %v2489_v26  ;;  %v4346_v50 = vunpack.c.h.s8.bf16 %v2474_v17 }
 0x7f4   :  { %6974 = vmatprep.subr.bf16.mxu1 %v4682_v54  ;;  %v4617_v54 = vunpack.c.l.s8.bf16 %v2617_v32  ;;  %v4586_v52 = vunpack.c.l.s8.bf16 %v2602_v59  ;;  %v1676_v32 = vld [vmem:[#allocation7 + $0x178] sm:$0xff] }
 0x7f6   :  { %6934 = vmatpush2.bf16.msra.mxu0 %v4425_v49  ;;  %v4602_v49 = vunpack.c.h.s8.bf16 %v2602_v59 }
 0x7f7   :  { %6975 = vmatpush2.bf16.msra.mxu1 %v4681_v51  ;;  %6935 = vmatprep.subr.bf16.mxu0 %v4410_v55  ;;  %v2601_v51 = vld [vmem:[#allocation7 + $0x1e60] sm:$0xff]  ;;  %v4345_v55 = vunpack.c.h.s8.bf16 %v2473_v46 }
 0x7f8   :  { %6976 = vmatprep.subr.bf16.mxu1 %v4666_v6  ;;  %v4601_v31 = vunpack.c.h.s8.bf16 %v2601_v51  ;;  %v4330_v6 = vunpack.c.l.s8.bf16 %v2474_v17  ;;  %v2763_v17 = vunpack.c.l.s8.bf16 %v1691_v58 }
 0x7fa   :  { %6936 = vmatpush2.bf16.msra.mxu0 %v4409_v12  ;;  %v1692_v12 = vld [vmem:[#allocation7 + $0x1f8] sm:$0xff] }
 0x7fb   :  { %6977 = vmatpush2.bf16.msra.mxu1 %v4665_v16  ;;  %6937 = vmatprep.subr.bf16.mxu0 %v4394_v40  ;;  %v1820_v16 = vld [vmem:[#allocation7 + $0x5f8] sm:$0xff]  ;;  %v4329_v40 = vunpack.c.l.s8.bf16 %v2473_v46  ;;  %v2780_v36 = vunpack.c.h.s8.bf16 %v1692_v12  ;;  %v1675_v46 = vld [vmem:[#allocation7 + $0x170] sm:$0xff] }
 0x7fc   :  { %6978 = vmatprep.subr.bf16.mxu1 %v4650_v21  ;;  %v4585_v21 = vunpack.c.l.s8.bf16 %v2601_v51 }
 0x7fe   :  { %6938 = vmatpush2.bf16.msra.mxu0 %v4393_v7  ;;  %v3036_v7 = vunpack.c.h.s8.bf16 %v1820_v16 }
 0x7ff   :  { %6979 = vmatpush2.bf16.msra.mxu1 %v4649_v39  ;;  %6939 = vmatprep.subr.bf16.mxu0 %v4378_v29  ;;  %v1819_v39 = vld [vmem:[#allocation7 + $0x5f0] sm:$0xff]  ;;  %v2779_v29 = vunpack.c.h.s8.bf16 %v1691_v58  ;;  %v1788_v58 = vld [vmem:[#allocation7 + $0x4f8] sm:$0xff] }
 0x800   :  { %6980 = vmatprep.subr.bf16.mxu1 %v4634_v30  ;;  %v3035_v26 = vunpack.c.h.s8.bf16 %v1819_v39  ;;  %v2764_v30 = vunpack.c.l.s8.bf16 %v1692_v12  ;;  %v2747_v12 = vunpack.c.h.s8.bf16 %v1675_v46 }
 0x802   :  { %6940 = vmatpush2.bf16.msra.mxu0 %v4377_v22 }
 0x803   :  { %6981 = vmatpush2.bf16.msra.mxu1 %v4633_v56  ;;  %6941 = vmatprep.subr.bf16.mxu0 %v4362_v41  ;;  %v3020_v56 = vunpack.c.l.s8.bf16 %v1820_v16  ;;  %v1804_v41 = vld [vmem:[#allocation7 + $0x578] sm:$0xff] }
 0x804   :  { %6982 = vmatprep.subr.bf16.mxu1 %v4618_v0  ;;  %v3004_v51 = vunpack.c.h.s8.bf16 %v1804_v41 }
 0x806   :  { %6942 = vmatpush2.bf16.msra.mxu0 %v4361_v37 }
 0x807   :  { %6983 = vmatpush2.bf16.msra.mxu1 %v4617_v54  ;;  %6943 = vmatprep.subr.bf16.mxu0 %v4346_v50  ;;  %v3019_v54 = vunpack.c.l.s8.bf16 %v1819_v39  ;;  %v2748_v50 = vunpack.c.h.s8.bf16 %v1676_v32 }
 0x808   :  { %6984 = vmatprep.subr.bf16.mxu1 %v4602_v49 }
 0x80a   :  { %6944 = vmatpush2.bf16.msra.mxu0 %v4345_v55  ;;  %v1803_v55 = vld [vmem:[#allocation7 + $0x570] sm:$0xff] }
 0x80b   :  { %6985 = vmatpush2.bf16.msra.mxu1 %v4601_v31  ;;  %6945 = vmatprep.subr.bf16.mxu0 %v4330_v6  ;;  %v3003_v16 = vunpack.c.h.s8.bf16 %v1803_v55  ;;  %v2987_v39 = vunpack.c.l.s8.bf16 %v1803_v55  ;;  %v1771_v55 = vld [vmem:[#allocation7 + $0x470] sm:$0xff] }
 0x80c   :  { %6986 = vmatprep.subr.bf16.mxu1 %v4586_v52 }
 0x80e   :  { %6946 = vmatpush2.bf16.msra.mxu0 %v4329_v40  ;;  %v2732_v40 = vunpack.c.l.s8.bf16 %v1676_v32 }
 0x80f   :  { %6987 = vmatpush2.bf16.msra.mxu1 %v4585_v21  ;;  %6997 = vmatprep.subr.bf16.mxu0 %v2780_v36  ;;  %v2988_v36 = vunpack.c.l.s8.bf16 %v1804_v41  ;;  %v2956_v41 = vunpack.c.l.s8.bf16 %v1788_v58 }
 0x810   :  { %7038 = vmatprep.subr.bf16.mxu1 %v3036_v7  ;;  %v2731_v7 = vunpack.c.l.s8.bf16 %v1675_v46 }
 0x811   :  { %v6703_v22 = vpop.f32.mrf.mxu0  ;;  %6948 = vmatmul.mubr.bf16.vlgmr.msra.gmra.mxu0 %v9973_v33 }
 0x812   :  { %v6744_v0 = vpop.f32.mrf.mxu1  ;;  %6989 = vmatmul.mubr.bf16.vlgmr.msra.gmra.mxu1 %v9975_v35  ;;  %6998 = vmatpush1.bf16.msra.mxu0 %v2779_v29 }
 0x813   :  { %v10207_v59 = vadd.f32 %v6744_v0, %v6703_v22  ;;  %7029 = vmatprep.mubr.bf16.mxu0 %v9877_v45  ;;  %7039 = vmatpush1.bf16.msra.mxu1 %v3035_v26  ;;  %v6705_v37 = vpop.f32.mrf.mxu0  ;;  %v1659_v26 = vld [vmem:[#allocation7 + $0xf0] sm:$0xff] }
 0x814   :  { %7070 = vmatprep.mubr.bf16.mxu1 %v9881_v48  ;;  %v6746_v49 = vpop.f32.mrf.mxu1  ;;  %6999 = vmatprep.subr.bf16.mxu0 %v2764_v30  ;;  %v1660_v48 = vld [vmem:[#allocation7 + $0xf8] sm:$0xff]  ;;  %v2972_v30 = vunpack.c.h.s8.bf16 %v1788_v58  ;;  %v1787_v22 = vld [vmem:[#allocation7 + $0x4f0] sm:$0xff] }
 0x815   :  { %v10211_v31 = vadd.f32 %v6746_v49, %v6705_v37  ;;  %v6707_v6 = vpop.f32.mrf.mxu0  ;;  %7040 = vmatprep.subr.bf16.mxu1 %v3020_v56  ;;  %v2716_v29 = vunpack.c.h.s8.bf16 %v1660_v48  ;;  %v2715_v56 = vunpack.c.h.s8.bf16 %v1659_v26  ;;  %v2971_v32 = vunpack.c.h.s8.bf16 %v1787_v22  ;;  %v1772_v37 = vld [vmem:[#allocation7 + $0x478] sm:$0xff]  ;;  %v1643_v49 = vld [vmem:[#allocation7 + $0x70] sm:$0xff] }
 0x816   :  { %v6748_v52 = vpop.f32.mrf.mxu1  ;;  %7000 = vmatpush1.bf16.msra.mxu0 %v2763_v17  ;;  %v2700_v0 = vunpack.c.l.s8.bf16 %v1660_v48  ;;  %v1644_v17 = vld [vmem:[#allocation7 + $0x78] sm:$0xff]  ;;  %v2683_v6 = vunpack.c.h.s8.bf16 %v1643_v49  ;;  %v1755_v58 = vld [vmem:[#allocation7 + $0x3f0] sm:$0xff] }
 0x817   :  { %7041 = vmatpush1.bf16.msra.mxu1 %v3019_v54  ;;  %v6708_v45 = vpop.f32.mrf.mxu0  ;;  %7001 = vmatprep.subr.bf16.mxu0 %v2748_v50  ;;  %v2699_v54 = vunpack.c.l.s8.bf16 %v1659_v26  ;;  %v2955_v50 = vunpack.c.l.s8.bf16 %v1787_v22  ;;  %v2684_v46 = vunpack.c.h.s8.bf16 %v1644_v17  ;;  %v2939_v52 = vunpack.c.h.s8.bf16 %v1771_v55 }
 0x818   :  { %v6749_v21 = vpop.f32.mrf.mxu1  ;;  %7042 = vmatprep.subr.bf16.mxu1 %v3004_v51  ;;  %v2940_v51 = vunpack.c.h.s8.bf16 %v1772_v37  ;;  %v2924_v45 = vunpack.c.l.s8.bf16 %v1772_v37  ;;  %v1739_v37 = vld [vmem:[#allocation7 + $0x370] sm:$0xff] }
 0x819   :  { %v2667_v21 = vunpack.c.l.s8.bf16 %v1643_v49 }
 0x81a   :  { %7002 = vmatpush1.bf16.msra.mxu0 %v2747_v12  ;;  %v2668_v12 = vunpack.c.l.s8.bf16 %v1644_v17 }
 0x81b   :  { %7043 = vmatpush1.bf16.msra.mxu1 %v3003_v16  ;;  %7003 = vmatprep.subr.bf16.mxu0 %v2732_v40  ;;  %v1756_v16 = vld [vmem:[#allocation7 + $0x3f8] sm:$0xff] }
 0x81c   :  { %7044 = vmatprep.subr.bf16.mxu1 %v2988_v36  ;;  %v1884_v40 = vld [vmem:[#allocation7 + $0x7f8] sm:$0xff]  ;;  %v2923_v36 = vunpack.c.l.s8.bf16 %v1771_v55  ;;  %v2908_v48 = vunpack.c.h.s8.bf16 %v1756_v16 }
 0x81d   :  { %v3148_v22 = vunpack.c.l.s8.bf16 %v1884_v40 }
 0x81e   :  { %7004 = vmatpush1.bf16.msra.mxu0 %v2731_v7  ;;  %v3164_v7 = vunpack.c.h.s8.bf16 %v1884_v40  ;;  %v1723_v40 = vld [vmem:[#allocation7 + $0x2f0] sm:$0xff] }
 0x81f   :  { %7045 = vmatpush1.bf16.msra.mxu1 %v2987_v39  ;;  %7005 = vmatprep.subr.bf16.mxu0 %v2716_v29  ;;  %v1883_v39 = vld [vmem:[#allocation7 + $0x7f0] sm:$0xff]  ;;  %v2907_v29 = vunpack.c.h.s8.bf16 %v1755_v58 }
 0x820   :  { %7046 = vmatprep.subr.bf16.mxu1 %v2972_v30  ;;  %v3163_v26 = vunpack.c.h.s8.bf16 %v1883_v39  ;;  %v2892_v30 = vunpack.c.l.s8.bf16 %v1756_v16 }
 0x822   :  { %7006 = vmatpush1.bf16.msra.mxu0 %v2715_v56  ;;  %v1740_v56 = vld [vmem:[#allocation7 + $0x378] sm:$0xff] }
 0x823   :  { %7047 = vmatpush1.bf16.msra.mxu1 %v2971_v32  ;;  %7007 = vmatprep.subr.bf16.mxu0 %v2700_v0  ;;  %v1868_v32 = vld [vmem:[#allocation7 + $0x778] sm:$0xff]  ;;  %v2891_v0 = vunpack.c.l.s8.bf16 %v1755_v58  ;;  %v2876_v17 = vunpack.c.h.s8.bf16 %v1740_v56 }
 0x824   :  { %7048 = vmatprep.subr.bf16.mxu1 %v2956_v41  ;;  %v3147_v41 = vunpack.c.l.s8.bf16 %v1883_v39  ;;  %v3116_v55 = vunpack.c.l.s8.bf16 %v1868_v32 }
 0x826   :  { %7008 = vmatpush1.bf16.msra.mxu0 %v2699_v54  ;;  %v3132_v54 = vunpack.c.h.s8.bf16 %v1868_v32  ;;  %v1707_v32 = vld [vmem:[#allocation7 + $0x270] sm:$0xff] }
 0x827   :  { %7049 = vmatpush1.bf16.msra.mxu1 %v2955_v50  ;;  %7009 = vmatprep.subr.bf16.mxu0 %v2684_v46  ;;  %v1867_v50 = vld [vmem:[#allocation7 + $0x770] sm:$0xff]  ;;  %v2875_v46 = vunpack.c.h.s8.bf16 %v1739_v37 }
 0x828   :  { %7050 = vmatprep.subr.bf16.mxu1 %v2940_v51  ;;  %v3131_v49 = vunpack.c.h.s8.bf16 %v1867_v50  ;;  %v2860_v51 = vunpack.c.l.s8.bf16 %v1740_v56 }
 0x82a   :  { %7010 = vmatpush1.bf16.msra.mxu0 %v2683_v6  ;;  %v1724_v6 = vld [vmem:[#allocation7 + $0x2f8] sm:$0xff] }
 0x82b   :  { %7051 = vmatpush1.bf16.msra.mxu1 %v2939_v52  ;;  %7011 = vmatprep.subr.bf16.mxu0 %v2668_v12  ;;  %v1852_v52 = vld [vmem:[#allocation7 + $0x6f8] sm:$0xff]  ;;  %v2859_v12 = vunpack.c.l.s8.bf16 %v1739_v37  ;;  %v2844_v16 = vunpack.c.h.s8.bf16 %v1724_v6 }
 0x82c   :  { %7052 = vmatprep.subr.bf16.mxu1 %v2924_v45  ;;  %v3115_v45 = vunpack.c.l.s8.bf16 %v1867_v50  ;;  %v3084_v39 = vunpack.c.l.s8.bf16 %v1852_v52 }
 0x82e   :  { %7012 = vmatpush1.bf16.msra.mxu0 %v2667_v21  ;;  %v3100_v21 = vunpack.c.h.s8.bf16 %v1852_v52  ;;  %v1947_v52 = vld [vmem:[#allocation7 + $0x9f0] sm:$0xff] }
 0x82f   :  { %7053 = vmatpush1.bf16.msra.mxu1 %v2923_v36  ;;  %7013 = vmatprep.subr.bf16.mxu0 %v2908_v48  ;;  %v1851_v36 = vld [vmem:[#allocation7 + $0x6f0] sm:$0xff]  ;;  %v2843_v48 = vunpack.c.h.s8.bf16 %v1723_v40 }
 0x830   :  { %7054 = vmatprep.subr.bf16.mxu1 %v3164_v7  ;;  %v3099_v58 = vunpack.c.h.s8.bf16 %v1851_v36  ;;  %v2828_v7 = vunpack.c.l.s8.bf16 %v1724_v6 }
 0x832   :  { %7014 = vmatpush2.bf16.msra.mxu0 %v2907_v29  ;;  %v1708_v29 = vld [vmem:[#allocation7 + $0x278] sm:$0xff] }
 0x833   :  { %7055 = vmatpush2.bf16.msra.mxu1 %v3163_v26  ;;  %7015 = vmatprep.subr.bf16.mxu0 %v2892_v30  ;;  %v1836_v26 = vld [vmem:[#allocation7 + $0x678] sm:$0xff]  ;;  %v2827_v30 = vunpack.c.l.s8.bf16 %v1723_v40  ;;  %v2812_v56 = vunpack.c.h.s8.bf16 %v1708_v29 }
 0x834   :  { %7056 = vmatprep.subr.bf16.mxu1 %v3148_v22  ;;  %v3083_v22 = vunpack.c.l.s8.bf16 %v1851_v36  ;;  %v3052_v50 = vunpack.c.l.s8.bf16 %v1836_v26  ;;  %v1932_v36 = vld [vmem:[#allocation7 + $0x978] sm:$0xff] }
 0x836   :  { %7016 = vmatpush2.bf16.msra.mxu0 %v2891_v0  ;;  %v3068_v0 = vunpack.c.h.s8.bf16 %v1836_v26  ;;  %v3275_v26 = vunpack.c.l.s8.bf16 %v1947_v52 }
 0x837   :  { %7057 = vmatpush2.bf16.msra.mxu1 %v3147_v41  ;;  %7017 = vmatprep.subr.bf16.mxu0 %v2876_v17  ;;  %v1835_v41 = vld [vmem:[#allocation7 + $0x670] sm:$0xff]  ;;  %v2811_v17 = vunpack.c.h.s8.bf16 %v1707_v32 }
 0x838   :  { %7058 = vmatprep.subr.bf16.mxu1 %v3132_v54  ;;  %v3067_v37 = vunpack.c.h.s8.bf16 %v1835_v41  ;;  %v2796_v54 = vunpack.c.l.s8.bf16 %v1708_v29 }
 0x83a   :  { %7018 = vmatpush2.bf16.msra.mxu0 %v2875_v46  ;;  %v1948_v46 = vld [vmem:[#allocation7 + $0x9f8] sm:$0xff] }
 0x83b   :  { %7059 = vmatpush2.bf16.msra.mxu1 %v3131_v49  ;;  %7019 = vmatprep.subr.bf16.mxu0 %v2860_v51  ;;  %v2076_v49 = vld [vmem:[#allocation7 + $0xdf8] sm:$0xff]  ;;  %v2795_v51 = vunpack.c.l.s8.bf16 %v1707_v32  ;;  %v3292_v6 = vunpack.c.h.s8.bf16 %v1948_v46  ;;  %v1931_v32 = vld [vmem:[#allocation7 + $0x970] sm:$0xff] }
 0x83c   :  { %7060 = vmatprep.subr.bf16.mxu1 %v3116_v55  ;;  %v3051_v55 = vunpack.c.l.s8.bf16 %v1835_v41 }
 0x83e   :  { %7020 = vmatpush2.bf16.msra.mxu0 %v2859_v12  ;;  %v3548_v12 = vunpack.c.h.s8.bf16 %v2076_v49 }
 0x83f   :  { %7061 = vmatpush2.bf16.msra.mxu1 %v3115_v45  ;;  %7021 = vmatprep.subr.bf16.mxu0 %v2844_v16  ;;  %v2075_v45 = vld [vmem:[#allocation7 + $0xdf0] sm:$0xff]  ;;  %v3291_v16 = vunpack.c.h.s8.bf16 %v1947_v52 }
 0x840   :  { %7062 = vmatprep.subr.bf16.mxu1 %v3100_v21  ;;  %v3547_v40 = vunpack.c.h.s8.bf16 %v2075_v45  ;;  %v3276_v21 = vunpack.c.l.s8.bf16 %v1948_v46 }
 0x842   :  { %7022 = vmatpush2.bf16.msra.mxu0 %v2843_v48 }
 0x843   :  { %7063 = vmatpush2.bf16.msra.mxu1 %v3099_v58  ;;  %7023 = vmatprep.subr.bf16.mxu0 %v2828_v7  ;;  %v3532_v58 = vunpack.c.l.s8.bf16 %v2076_v49  ;;  %v2060_v7 = vld [vmem:[#allocation7 + $0xd78] sm:$0xff]  ;;  %v3244_v49 = vunpack.c.l.s8.bf16 %v1932_v36 }
 0x844   :  { %7064 = vmatprep.subr.bf16.mxu1 %v3084_v39 }
 0x846   :  { %7024 = vmatpush2.bf16.msra.mxu0 %v2827_v30 }
 0x847   :  { %7065 = vmatpush2.bf16.msra.mxu1 %v3083_v22  ;;  %7025 = vmatprep.subr.bf16.mxu0 %v2812_v56  ;;  %v3531_v22 = vunpack.c.l.s8.bf16 %v2075_v45  ;;  %v3260_v56 = vunpack.c.h.s8.bf16 %v1932_v36  ;;  %v1915_v45 = vld [vmem:[#allocation7 + $0x8f0] sm:$0xff] }
 0x848   :  { %7066 = vmatprep.subr.bf16.mxu1 %v3068_v0 }
 0x84a   :  { %7026 = vmatpush2.bf16.msra.mxu0 %v2811_v17  ;;  %v2059_v17 = vld [vmem:[#allocation7 + $0xd70] sm:$0xff] }
 0x84b   :  { %7067 = vmatpush2.bf16.msra.mxu1 %v3067_v37  ;;  %7027 = vmatprep.subr.bf16.mxu0 %v2796_v54  ;;  %v3259_v54 = vunpack.c.h.s8.bf16 %v1931_v32  ;;  %v3515_v46 = vunpack.c.h.s8.bf16 %v2059_v17  ;;  %v3499_v52 = vunpack.c.l.s8.bf16 %v2059_v17 }
 0x84c   :  { %7068 = vmatprep.subr.bf16.mxu1 %v3052_v50 }
 0x84e   :  { %7028 = vmatpush2.bf16.msra.mxu0 %v2795_v51 }
 0x84f   :  { %7069 = vmatpush2.bf16.msra.mxu1 %v3051_v55  ;;  %7079 = vmatprep.subr.bf16.mxu0 %v3292_v6  ;;  %v2044_v55 = vld [vmem:[#allocation7 + $0xcf8] sm:$0xff]  ;;  %v3243_v6 = vunpack.c.l.s8.bf16 %v1931_v32  ;;  %v2027_v32 = vld [vmem:[#allocation7 + $0xc70] sm:$0xff] }
 0x850   :  { %7120 = vmatprep.subr.bf16.mxu1 %v3548_v12 }
 0x851   :  { %v6785_v48 = vpop.f32.mrf.mxu0  ;;  %7030 = vmatmul.mubr.bf16.vlgmr.msra.gmra.mxu0 %v9879_v47 }
 0x852   :  { %v6786_v39 = vadd.f32 %v6785_v48, %v10207_v59  ;;  %v6826_v29 = vpop.f32.mrf.mxu1  ;;  %7071 = vmatmul.mubr.bf16.vlgmr.msra.gmra.mxu1 %v9875_v44  ;;  %7080 = vmatpush1.bf16.msra.mxu0 %v3291_v16  ;;  %v3516_v59 = vunpack.c.h.s8.bf16 %v2060_v7  ;;  %v3484_v16 = vunpack.c.h.s8.bf16 %v2044_v55 }
 0x853   :  { %7111 = vmatprep.mubr.bf16.mxu0 %v9901_v15  ;;  %7121 = vmatpush1.bf16.msra.mxu1 %v3547_v40  ;;  %v6787_v30 = vpop.f32.mrf.mxu0  ;;  %v2043_v40 = vld [vmem:[#allocation7 + $0xcf0] sm:$0xff] }
 0x854   :  { %v10217_v0 = vadd.f32 %v6826_v29, %v6786_v39  ;;  %7152 = vmatprep.mubr.bf16.mxu1 %v9903_v18  ;;  %v6788_v47 = vadd.f32 %v6787_v30, %v10211_v31  ;;  %v6828_v41 = vpop.f32.mrf.mxu1  ;;  %7081 = vmatprep.subr.bf16.mxu0 %v3276_v21  ;;  %v3500_v18 = vunpack.c.l.s8.bf16 %v2060_v7  ;;  %v1916_v31 = vld [vmem:[#allocation7 + $0x8f8] sm:$0xff]  ;;  %v3227_v21 = vunpack.c.h.s8.bf16 %v1915_v45 }
 0x855   :  { %v6789_v44 = vpop.f32.mrf.mxu0  ;;  %7122 = vmatprep.subr.bf16.mxu1 %v3532_v58  ;;  %v3228_v12 = vunpack.c.h.s8.bf16 %v1916_v31  ;;  %v3483_v36 = vunpack.c.h.s8.bf16 %v2043_v40  ;;  %v3212_v48 = vunpack.c.l.s8.bf16 %v1916_v31  ;;  %v3468_v58 = vunpack.c.l.s8.bf16 %v2044_v55  ;;  %v1900_v7 = vld [vmem:[#allocation7 + $0x878] sm:$0xff] }
 0x856   :  { %v10221_v37 = vadd.f32 %v6828_v41, %v6788_v47  ;;  %v6830_v15 = vpop.f32.mrf.mxu1  ;;  %7082 = vmatpush1.bf16.msra.mxu0 %v3275_v26  ;;  %v2028_v39 = vld [vmem:[#allocation7 + $0xc78] sm:$0xff]  ;;  %v3211_v29 = vunpack.c.l.s8.bf16 %v1915_v45  ;;  %v3467_v26 = vunpack.c.l.s8.bf16 %v2043_v40  ;;  %v3196_v30 = vunpack.c.h.s8.bf16 %v1900_v7 }
 0x857   :  { %7123 = vmatpush1.bf16.msra.mxu1 %v3531_v22  ;;  %v6790_v50 = vpop.f32.mrf.mxu0  ;;  %7083 = vmatprep.subr.bf16.mxu0 %v3260_v56  ;;  %v1899_v22 = vld [vmem:[#allocation7 + $0x870] sm:$0xff]  ;;  %v3452_v56 = vunpack.c.h.s8.bf16 %v2028_v39  ;;  %v3451_v41 = vunpack.c.h.s8.bf16 %v2027_v32  ;;  %v3436_v17 = vunpack.c.l.s8.bf16 %v2028_v39  ;;  %v2012_v44 = vld [vmem:[#allocation7 + $0xbf8] sm:$0xff] }
 0x858   :  { %v6831_v51 = vpop.f32.mrf.mxu1  ;;  %7124 = vmatprep.subr.bf16.mxu1 %v3516_v59  ;;  %v3195_v47 = vunpack.c.h.s8.bf16 %v1899_v22  ;;  %v3180_v59 = vunpack.c.l.s8.bf16 %v1900_v7  ;;  %v2140_v15 = vld [vmem:[#allocation7 + $0xff8] sm:$0xff]  ;;  %v3435_v50 = vunpack.c.l.s8.bf16 %v2027_v32 }
 0x859   :  { %v3676_v51 = vunpack.c.h.s8.bf16 %v2140_v15  ;;  %v2124_v45 = vld [vmem:[#allocation7 + $0xf78] sm:$0xff] }
 0x85a   :  { %7084 = vmatpush1.bf16.msra.mxu0 %v3259_v54  ;;  %v3179_v54 = vunpack.c.l.s8.bf16 %v1899_v22  ;;  %v2108_v22 = vld [vmem:[#allocation7 + $0xef8] sm:$0xff] }
 0x85b   :  { %7125 = vmatpush1.bf16.msra.mxu1 %v3515_v46  ;;  %7085 = vmatprep.subr.bf16.mxu0 %v3244_v49  ;;  %v3420_v46 = vunpack.c.h.s8.bf16 %v2012_v44  ;;  %v2011_v49 = vld [vmem:[#allocation7 + $0xbf0] sm:$0xff] }
 0x85c   :  { %7126 = vmatprep.subr.bf16.mxu1 %v3500_v18  ;;  %v2139_v18 = vld [vmem:[#allocation7 + $0xff0] sm:$0xff]  ;;  %v3419_v31 = vunpack.c.h.s8.bf16 %v2011_v49 }
 0x85d   :  { %v3675_v55 = vunpack.c.h.s8.bf16 %v2139_v18  ;;  %v3659_v40 = vunpack.c.l.s8.bf16 %v2139_v18 }
 0x85e   :  { %7086 = vmatpush1.bf16.msra.mxu0 %v3243_v6  ;;  %v3404_v6 = vunpack.c.l.s8.bf16 %v2012_v44 }
 0x85f   :  { %7127 = vmatpush1.bf16.msra.mxu1 %v3499_v52  ;;  %7087 = vmatprep.subr.bf16.mxu0 %v3228_v12  ;;  %v3660_v52 = vunpack.c.l.s8.bf16 %v2140_v15  ;;  %v1996_v12 = vld [vmem:[#allocation7 + $0xb78] sm:$0xff] }
 0x860   :  { %7128 = vmatprep.subr.bf16.mxu1 %v3484_v16  ;;  %v3403_v16 = vunpack.c.l.s8.bf16 %v2011_v49  ;;  %v2092_v49 = vld [vmem:[#allocation7 + $0xe78] sm:$0xff] }
 0x862   :  { %7088 = vmatpush1.bf16.msra.mxu0 %v3227_v21  ;;  %v3388_v21 = vunpack.c.h.s8.bf16 %v1996_v12 }
 0x863   :  { %7129 = vmatpush1.bf16.msra.mxu1 %v3483_v36  ;;  %7089 = vmatprep.subr.bf16.mxu0 %v3212_v48  ;;  %v1995_v36 = vld [vmem:[#allocation7 + $0xb70] sm:$0xff]  ;;  %v3644_v48 = vunpack.c.h.s8.bf16 %v2124_v45 }
 0x864   :  { %7130 = vmatprep.subr.bf16.mxu1 %v3468_v58  ;;  %v2123_v58 = vld [vmem:[#allocation7 + $0xf70] sm:$0xff]  ;;  %v3387_v7 = vunpack.c.h.s8.bf16 %v1995_v36 }
 0x865   :  { %v3643_v39 = vunpack.c.h.s8.bf16 %v2123_v58  ;;  %v3627_v32 = vunpack.c.l.s8.bf16 %v2123_v58 }
 0x866   :  { %7090 = vmatpush1.bf16.msra.mxu0 %v3211_v29  ;;  %v3372_v29 = vunpack.c.l.s8.bf16 %v1996_v12 }
 0x867   :  { %7131 = vmatpush1.bf16.msra.mxu1 %v3467_v26  ;;  %7091 = vmatprep.subr.bf16.mxu0 %v3196_v30  ;;  %v3628_v26 = vunpack.c.l.s8.bf16 %v2124_v45  ;;  %v1980_v30 = vld [vmem:[#allocation7 + $0xaf8] sm:$0xff] }
 0x868   :  { %7132 = vmatprep.subr.bf16.mxu1 %v3452_v56  ;;  %v3371_v56 = vunpack.c.l.s8.bf16 %v1995_v36  ;;  %v2332_v36 = vld [vmem:[#allocation7 + $0x15f8] sm:$0xff] }
 0x86a   :  { %7092 = vmatpush1.bf16.msra.mxu0 %v3195_v47  ;;  %v3356_v47 = vunpack.c.h.s8.bf16 %v1980_v30 }
 0x86b   :  { %7133 = vmatpush1.bf16.msra.mxu1 %v3451_v41  ;;  %7093 = vmatprep.subr.bf16.mxu0 %v3180_v59  ;;  %v1979_v41 = vld [vmem:[#allocation7 + $0xaf0] sm:$0xff]  ;;  %v3612_v59 = vunpack.c.h.s8.bf16 %v2108_v22 }
 0x86c   :  { %7134 = vmatprep.subr.bf16.mxu1 %v3436_v17  ;;  %v2107_v17 = vld [vmem:[#allocation7 + $0xef0] sm:$0xff]  ;;  %v3355_v44 = vunpack.c.h.s8.bf16 %v1979_v41 }
 0x86d   :  { %v3611_v15 = vunpack.c.h.s8.bf16 %v2107_v17  ;;  %v3595_v18 = vunpack.c.l.s8.bf16 %v2107_v17 }
 0x86e   :  { %7094 = vmatpush1.bf16.msra.mxu0 %v3179_v54  ;;  %v3340_v54 = vunpack.c.l.s8.bf16 %v1980_v30 }
 0x86f   :  { %7135 = vmatpush1.bf16.msra.mxu1 %v3435_v50  ;;  %7095 = vmatprep.subr.bf16.mxu0 %v3420_v46  ;;  %v3596_v50 = vunpack.c.l.s8.bf16 %v2108_v22  ;;  %v1964_v46 = vld [vmem:[#allocation7 + $0xa78] sm:$0xff] }
 0x870   :  { %7136 = vmatprep.subr.bf16.mxu1 %v3676_v51  ;;  %v3339_v51 = vunpack.c.l.s8.bf16 %v1979_v41  ;;  %v4044_v41 = vunpack.c.l.s8.bf16 %v2332_v36 }
 0x872   :  { %7096 = vmatpush2.bf16.msra.mxu0 %v3419_v31  ;;  %v3324_v31 = vunpack.c.h.s8.bf16 %v1964_v46 }
 0x873   :  { %7137 = vmatpush2.bf16.msra.mxu1 %v3675_v55  ;;  %7097 = vmatprep.subr.bf16.mxu0 %v3404_v6  ;;  %v1963_v55 = vld [vmem:[#allocation7 + $0xa70] sm:$0xff]  ;;  %v3580_v6 = vunpack.c.h.s8.bf16 %v2092_v49 }
 0x874   :  { %7138 = vmatprep.subr.bf16.mxu1 %v3660_v52  ;;  %v2091_v52 = vld [vmem:[#allocation7 + $0xe70] sm:$0xff]  ;;  %v3323_v12 = vunpack.c.h.s8.bf16 %v1963_v55 }
 0x875   :  { %v3579_v45 = vunpack.c.h.s8.bf16 %v2091_v52  ;;  %v3563_v58 = vunpack.c.l.s8.bf16 %v2091_v52 }
 0x876   :  { %7098 = vmatpush2.bf16.msra.mxu0 %v3403_v16  ;;  %v3308_v16 = vunpack.c.l.s8.bf16 %v1964_v46 }
 0x877   :  { %7139 = vmatpush2.bf16.msra.mxu1 %v3659_v40  ;;  %7099 = vmatprep.subr.bf16.mxu0 %v3388_v21  ;;  %v3564_v40 = vunpack.c.l.s8.bf16 %v2092_v49  ;;  %v2204_v21 = vld [vmem:[#allocation7 + $0x11f8] sm:$0xff]  ;;  %v2187_v49 = vld [vmem:[#allocation7 + $0x1170] sm:$0xff] }
 0x878   :  { %7140 = vmatprep.subr.bf16.mxu1 %v3644_v48  ;;  %v3307_v48 = vunpack.c.l.s8.bf16 %v1963_v55 }
 0x87a   :  { %7100 = vmatpush2.bf16.msra.mxu0 %v3387_v7  ;;  %v3804_v7 = vunpack.c.h.s8.bf16 %v2204_v21 }
 0x87b   :  { %7141 = vmatpush2.bf16.msra.mxu1 %v3643_v39  ;;  %7101 = vmatprep.subr.bf16.mxu0 %v3372_v29  ;;  %v2203_v39 = vld [vmem:[#allocation7 + $0x11f0] sm:$0xff]  ;;  %v4060_v29 = vunpack.c.h.s8.bf16 %v2332_v36 }
 0x87c   :  { %7142 = vmatprep.subr.bf16.mxu1 %v3628_v26  ;;  %v2331_v26 = vld [vmem:[#allocation7 + $0x15f0] sm:$0xff]  ;;  %v3803_v30 = vunpack.c.h.s8.bf16 %v2203_v39 }
 0x87d   :  { %v4059_v22 = vunpack.c.h.s8.bf16 %v2331_v26 }
 0x87e   :  { %7102 = vmatpush2.bf16.msra.mxu0 %v3371_v56  ;;  %v3788_v56 = vunpack.c.l.s8.bf16 %v2204_v21  ;;  %v3755_v21 = vunpack.c.l.s8.bf16 %v2187_v49 }
 0x87f   :  { %7143 = vmatpush2.bf16.msra.mxu1 %v3627_v32  ;;  %7103 = vmatprep.subr.bf16.mxu0 %v3356_v47  ;;  %v2188_v32 = vld [vmem:[#allocation7 + $0x1178] sm:$0xff] }
 0x880   :  { %7144 = vmatprep.subr.bf16.mxu1 %v3612_v59  ;;  %v2316_v59 = vld [vmem:[#allocation7 + $0x1578] sm:$0xff]  ;;  %v3772_v46 = vunpack.c.h.s8.bf16 %v2188_v32 }
 0x882   :  { %7104 = vmatpush2.bf16.msra.mxu0 %v3355_v44 }
 0x883   :  { %7145 = vmatpush2.bf16.msra.mxu1 %v3611_v15  ;;  %7105 = vmatprep.subr.bf16.mxu0 %v3340_v54  ;;  %v3787_v15 = vunpack.c.l.s8.bf16 %v2203_v39  ;;  %v2299_v39 = vld [vmem:[#allocation7 + $0x14f0] sm:$0xff] }
 0x884   :  { %7146 = vmatprep.subr.bf16.mxu1 %v3596_v50  ;;  %v4043_v50 = vunpack.c.l.s8.bf16 %v2331_v26  ;;  %v3995_v26 = vunpack.c.h.s8.bf16 %v2299_v39 }
 0x886   :  { %7106 = vmatpush2.bf16.msra.mxu0 %v3339_v51 }
 0x887   :  { %7147 = vmatpush2.bf16.msra.mxu1 %v3595_v18  ;;  %7107 = vmatprep.subr.bf16.mxu0 %v3324_v31  ;;  %v2315_v31 = vld [vmem:[#allocation7 + $0x1570] sm:$0xff] }
 0x888   :  { %7148 = vmatprep.subr.bf16.mxu1 %v3580_v6  ;;  %v3771_v6 = vunpack.c.h.s8.bf16 %v2187_v49  ;;  %v4011_v36 = vunpack.c.l.s8.bf16 %v2315_v31 }
 0x88a   :  { %7108 = vmatpush2.bf16.msra.mxu0 %v3323_v12  ;;  %v4027_v12 = vunpack.c.h.s8.bf16 %v2315_v31 }
 0x88b   :  { %7149 = vmatpush2.bf16.msra.mxu1 %v3579_v45  ;;  %7109 = vmatprep.subr.bf16.mxu0 %v3308_v16  ;;  %v3756_v45 = vunpack.c.l.s8.bf16 %v2188_v32  ;;  %v2284_v32 = vld [vmem:[#allocation7 + $0x1478] sm:$0xff] }
 0x88c   :  { %7150 = vmatprep.subr.bf16.mxu1 %v3564_v40  ;;  %v2300_v40 = vld [vmem:[#allocation7 + $0x14f8] sm:$0xff]  ;;  %v3948_v49 = vunpack.c.l.s8.bf16 %v2284_v32 }
 0x88e   :  { %7110 = vmatpush2.bf16.msra.mxu0 %v3307_v48 }
 0x88f   :  { %7151 = vmatpush2.bf16.msra.mxu1 %v3563_v58  ;;  %7161 = vmatprep.subr.bf16.mxu0 %v3804_v7  ;;  %v2171_v58 = vld [vmem:[#allocation7 + $0x10f0] sm:$0xff]  ;;  %v3996_v7 = vunpack.c.h.s8.bf16 %v2300_v40 }
 0x890   :  { %7202 = vmatprep.subr.bf16.mxu1 %v4060_v29  ;;  %v3739_v29 = vunpack.c.h.s8.bf16 %v2171_v58 }
 0x891   :  { %v6867_v47 = vpop.f32.mrf.mxu0  ;;  %7112 = vmatmul.mubr.bf16.vlgmr.msra.gmra.mxu0 %v9919_v63 }
 0x892   :  { %v6868_v17 = vadd.f32 %v6867_v47, %v10217_v0  ;;  %v6908_v44 = vpop.f32.mrf.mxu1  ;;  %7153 = vmatmul.mubr.bf16.vlgmr.msra.gmra.mxu1 %v9921_v1  ;;  %7162 = vmatpush1.bf16.msra.mxu0 %v3803_v30  ;;  %v4028_v0 = vunpack.c.h.s8.bf16 %v2316_v59  ;;  %v3723_v47 = vunpack.c.l.s8.bf16 %v2171_v58  ;;  %v2251_v58 = vld [vmem:[#allocation7 + $0x1370] sm:$0xff] }
 0x893   :  { %7193 = vmatprep.mubr.bf16.mxu0 %v9935_v34  ;;  %7203 = vmatpush1.bf16.msra.mxu1 %v4059_v22  ;;  %v6869_v54 = vpop.f32.mrf.mxu0  ;;  %v3980_v22 = vunpack.c.l.s8.bf16 %v2300_v40  ;;  %v2380_v40 = vld [vmem:[#allocation7 + $0x1778] sm:$0xff] }
 0x894   :  { %v10227_v51 = vadd.f32 %v6908_v44, %v6868_v17  ;;  %7234 = vmatprep.mubr.bf16.mxu1 %v9937_v4  ;;  %v6870_v63 = vadd.f32 %v6869_v54, %v10221_v37  ;;  %v6910_v18 = vpop.f32.mrf.mxu1  ;;  %7163 = vmatprep.subr.bf16.mxu0 %v3788_v56  ;;  %v4012_v4 = vunpack.c.l.s8.bf16 %v2316_v59  ;;  %v2172_v37 = vld [vmem:[#allocation7 + $0x10f8] sm:$0xff]  ;;  %v2155_v17 = vld [vmem:[#allocation7 + $0x1070] sm:$0xff]  ;;  %v3964_v44 = vunpack.c.h.s8.bf16 %v2284_v32 }
 0x895   :  { %v6871_v1 = vpop.f32.mrf.mxu0  ;;  %7204 = vmatprep.subr.bf16.mxu1 %v4044_v41  ;;  %v3740_v48 = vunpack.c.h.s8.bf16 %v2172_v37  ;;  %v3724_v30 = vunpack.c.l.s8.bf16 %v2172_v37  ;;  %v2156_v56 = vld [vmem:[#allocation7 + $0x1078] sm:$0xff]  ;;  %v3979_v41 = vunpack.c.l.s8.bf16 %v2299_v39  ;;  %v3707_v54 = vunpack.c.h.s8.bf16 %v2155_v17  ;;  %v2379_v39 = vld [vmem:[#allocation7 + $0x1770] sm:$0xff] }
 0x896   :  { %v10231_v55 = vadd.f32 %v6910_v18, %v6870_v63  ;;  %v6912_v34 = vpop.f32.mrf.mxu1  ;;  %7164 = vmatpush1.bf16.msra.mxu0 %v3787_v15  ;;  %v3708_v59 = vunpack.c.h.s8.bf16 %v2156_v56  ;;  %v2283_v15 = vld [vmem:[#allocation7 + $0x1470] sm:$0xff]  ;;  %v2268_v63 = vld [vmem:[#allocation7 + $0x13f8] sm:$0xff] }
 0x897   :  { %7205 = vmatpush1.bf16.msra.mxu1 %v4043_v50  ;;  %v6872_v52 = vpop.f32.mrf.mxu0  ;;  %7165 = vmatprep.subr.bf16.mxu0 %v3772_v46  ;;  %v3963_v50 = vunpack.c.h.s8.bf16 %v2283_v15  ;;  %v3692_v46 = vunpack.c.l.s8.bf16 %v2156_v56  ;;  %v2396_v18 = vld [vmem:[#allocation7 + $0x17f8] sm:$0xff]  ;;  %v3947_v31 = vunpack.c.l.s8.bf16 %v2283_v15  ;;  %v3932_v1 = vunpack.c.h.s8.bf16 %v2268_v63  ;;  %v2267_v34 = vld [vmem:[#allocation7 + $0x13f0] sm:$0xff] }
 0x898   :  { %v6913_v16 = vpop.f32.mrf.mxu1  ;;  %7206 = vmatprep.subr.bf16.mxu1 %v4028_v0  ;;  %v3691_v0 = vunpack.c.l.s8.bf16 %v2155_v17  ;;  %v2395_v52 = vld [vmem:[#allocation7 + $0x17f0] sm:$0xff]  ;;  %v2252_v37 = vld [vmem:[#allocation7 + $0x1378] sm:$0xff] }
 0x899   :  { %v3916_v16 = vunpack.c.l.s8.bf16 %v2268_v63  ;;  %v2236_v56 = vld [vmem:[#allocation7 + $0x12f8] sm:$0xff]  ;;  %v2235_v17 = vld [vmem:[#allocation7 + $0x12f0] sm:$0xff] }
 0x89a   :  { %7166 = vmatpush1.bf16.msra.mxu0 %v3771_v6  ;;  %v4188_v6 = vunpack.c.h.s8.bf16 %v2396_v18  ;;  %v2364_v32 = vld [vmem:[#allocation7 + $0x16f8] sm:$0xff]  ;;  %v2363_v15 = vld [vmem:[#allocation7 + $0x16f0] sm:$0xff] }
 0x89b   :  { %7207 = vmatpush1.bf16.msra.mxu1 %v4027_v12  ;;  %7167 = vmatprep.subr.bf16.mxu0 %v3756_v45  ;;  %v3931_v12 = vunpack.c.h.s8.bf16 %v2267_v34  ;;  %v4187_v45 = vunpack.c.h.s8.bf16 %v2395_v52  ;;  %v2220_v63 = vld [vmem:[#allocation7 + $0x1278] sm:$0xff] }
 0x89c   :  { %7208 = vmatprep.subr.bf16.mxu1 %v4012_v4  ;;  %v4172_v4 = vunpack.c.l.s8.bf16 %v2396_v18  ;;  %v2348_v18 = vld [vmem:[#allocation7 + $0x1678] sm:$0xff] }
 0x89e   :  { %7168 = vmatpush1.bf16.msra.mxu0 %v3755_v21  ;;  %v3915_v21 = vunpack.c.l.s8.bf16 %v2267_v34  ;;  %v2219_v34 = vld [vmem:[#allocation7 + $0x1270] sm:$0xff] }
 0x89f   :  { %7209 = vmatpush1.bf16.msra.mxu1 %v4011_v36  ;;  %7169 = vmatprep.subr.bf16.mxu0 %v3740_v48  ;;  %v4171_v36 = vunpack.c.l.s8.bf16 %v2395_v52  ;;  %v3900_v48 = vunpack.c.h.s8.bf16 %v2252_v37  ;;  %v2347_v52 = vld [vmem:[#allocation7 + $0x1670] sm:$0xff] }
 0x8a0   :  { %7210 = vmatprep.subr.bf16.mxu1 %v3996_v7  ;;  %v4156_v7 = vunpack.c.h.s8.bf16 %v2380_v40 }
 0x8a2   :  { %7170 = vmatpush1.bf16.msra.mxu0 %v3739_v29  ;;  %v3899_v29 = vunpack.c.h.s8.bf16 %v2251_v58 }
 0x8a3   :  { %7211 = vmatpush1.bf16.msra.mxu1 %v3995_v26  ;;  %7171 = vmatprep.subr.bf16.mxu0 %v3724_v30  ;;  %v4155_v26 = vunpack.c.h.s8.bf16 %v2379_v39  ;;  %v3884_v30 = vunpack.c.l.s8.bf16 %v2252_v37  ;;  %v2460_v37 = vld [vmem:[#allocation7 + $0x19f8] sm:$0xff] }
 0x8a4   :  { %7212 = vmatprep.subr.bf16.mxu1 %v3980_v22  ;;  %v4140_v22 = vunpack.c.l.s8.bf16 %v2380_v40  ;;  %v2588_v40 = vld [vmem:[#allocation7 + $0x1df8] sm:$0xff] }
 0x8a6   :  { %7172 = vmatpush1.bf16.msra.mxu0 %v3723_v47  ;;  %v3883_v47 = vunpack.c.l.s8.bf16 %v2251_v58  ;;  %v2459_v58 = vld [vmem:[#allocation7 + $0x19f0] sm:$0xff] }
 0x8a7   :  { %7213 = vmatpush1.bf16.msra.mxu1 %v3979_v41  ;;  %7173 = vmatprep.subr.bf16.mxu0 %v3708_v59  ;;  %v4139_v41 = vunpack.c.l.s8.bf16 %v2379_v39  ;;  %v3868_v59 = vunpack.c.h.s8.bf16 %v2236_v56  ;;  %v2587_v39 = vld [vmem:[#allocation7 + $0x1df0] sm:$0xff] }
 0x8a8   :  { %7214 = vmatprep.subr.bf16.mxu1 %v3964_v44  ;;  %v4124_v44 = vunpack.c.h.s8.bf16 %v2364_v32 }
 0x8aa   :  { %7174 = vmatpush1.bf16.msra.mxu0 %v3707_v54  ;;  %v3867_v54 = vunpack.c.h.s8.bf16 %v2235_v17 }
 0x8ab   :  { %7215 = vmatpush1.bf16.msra.mxu1 %v3963_v50  ;;  %7175 = vmatprep.subr.bf16.mxu0 %v3692_v46  ;;  %v4123_v50 = vunpack.c.h.s8.bf16 %v2363_v15  ;;  %v3852_v46 = vunpack.c.l.s8.bf16 %v2236_v56 }
 0x8ac   :  { %7216 = vmatprep.subr.bf16.mxu1 %v3948_v49  ;;  %v4108_v49 = vunpack.c.l.s8.bf16 %v2364_v32  ;;  %v4556_v32 = vunpack.c.l.s8.bf16 %v2588_v40 }
 0x8ae   :  { %7176 = vmatpush1.bf16.msra.mxu0 %v3691_v0  ;;  %v3851_v0 = vunpack.c.l.s8.bf16 %v2235_v17  ;;  %v4299_v17 = vunpack.c.l.s8.bf16 %v2459_v58 }
 0x8af   :  { %7217 = vmatpush1.bf16.msra.mxu1 %v3947_v31  ;;  %7177 = vmatprep.subr.bf16.mxu0 %v3932_v1  ;;  %v4107_v31 = vunpack.c.l.s8.bf16 %v2363_v15  ;;  %v3836_v1 = vunpack.c.h.s8.bf16 %v2220_v63  ;;  %v4555_v15 = vunpack.c.l.s8.bf16 %v2587_v39 }
 0x8b0   :  { %7218 = vmatprep.subr.bf16.mxu1 %v4188_v6  ;;  %v4092_v6 = vunpack.c.h.s8.bf16 %v2348_v18 }
 0x8b2   :  { %7178 = vmatpush2.bf16.msra.mxu0 %v3931_v12  ;;  %v3835_v12 = vunpack.c.h.s8.bf16 %v2219_v34 }
 0x8b3   :  { %7219 = vmatpush2.bf16.msra.mxu1 %v4187_v45  ;;  %7179 = vmatprep.subr.bf16.mxu0 %v3916_v16  ;;  %v4091_v45 = vunpack.c.h.s8.bf16 %v2347_v52  ;;  %v3820_v16 = vunpack.c.l.s8.bf16 %v2220_v63  ;;  %v2571_v63 = vld [vmem:[#allocation7 + $0x1d70] sm:$0xff] }
 0x8b4   :  { %7220 = vmatprep.subr.bf16.mxu1 %v4172_v4  ;;  %v4076_v4 = vunpack.c.l.s8.bf16 %v2348_v18 }
 0x8b6   :  { %7180 = vmatpush2.bf16.msra.mxu0 %v3915_v21  ;;  %v3819_v21 = vunpack.c.l.s8.bf16 %v2219_v34 }
 0x8b7   :  { %7221 = vmatpush2.bf16.msra.mxu1 %v4171_v36  ;;  %7181 = vmatprep.subr.bf16.mxu0 %v3900_v48  ;;  %v4075_v36 = vunpack.c.l.s8.bf16 %v2347_v52  ;;  %v4316_v48 = vunpack.c.h.s8.bf16 %v2460_v37  ;;  %v2556_v52 = vld [vmem:[#allocation7 + $0x1cf8] sm:$0xff] }
 0x8b8   :  { %7222 = vmatprep.subr.bf16.mxu1 %v4156_v7  ;;  %v4572_v7 = vunpack.c.h.s8.bf16 %v2588_v40  ;;  %v2555_v40 = vld [vmem:[#allocation7 + $0x1cf0] sm:$0xff] }
 0x8ba   :  { %7182 = vmatpush2.bf16.msra.mxu0 %v3899_v29  ;;  %v4315_v29 = vunpack.c.h.s8.bf16 %v2459_v58  ;;  %v4492_v58 = vunpack.c.l.s8.bf16 %v2556_v52 }
 0x8bb   :  { %7223 = vmatpush2.bf16.msra.mxu1 %v4155_v26  ;;  %7183 = vmatprep.subr.bf16.mxu0 %v3884_v30  ;;  %v4571_v26 = vunpack.c.h.s8.bf16 %v2587_v39  ;;  %v4300_v30 = vunpack.c.l.s8.bf16 %v2460_v37  ;;  %v4508_v37 = vunpack.c.h.s8.bf16 %v2556_v52  ;;  %v2540_v39 = vld [vmem:[#allocation7 + $0x1c78] sm:$0xff]  ;;  %v2507_v52 = vld [vmem:[#allocation7 + $0x1b70] sm:$0xff] }
 0x8bc   :  { %7224 = vmatprep.subr.bf16.mxu1 %v4140_v22  ;;  %v2444_v22 = vld [vmem:[#allocation7 + $0x1978] sm:$0xff] }
 0x8bd   :  { %v4268_v34 = vunpack.c.l.s8.bf16 %v2444_v22 }
 0x8be   :  { %7184 = vmatpush2.bf16.msra.mxu0 %v3883_v47  ;;  %v2572_v47 = vld [vmem:[#allocation7 + $0x1d78] sm:$0xff] }
 0x8bf   :  { %7225 = vmatpush2.bf16.msra.mxu1 %v4139_v41  ;;  %7185 = vmatprep.subr.bf16.mxu0 %v3868_v59 }
 0x8c0   :  { %7226 = vmatprep.subr.bf16.mxu1 %v4124_v44 }
 0x8c2   :  { %7186 = vmatpush2.bf16.msra.mxu0 %v3867_v54  ;;  %v4284_v54 = vunpack.c.h.s8.bf16 %v2444_v22  ;;  %v2411_v22 = vld [vmem:[#allocation7 + $0x1870] sm:$0xff] }
 0x8c3   :  { %7227 = vmatpush2.bf16.msra.mxu1 %v4123_v50  ;;  %7187 = vmatprep.subr.bf16.mxu0 %v3852_v46  ;;  %v2443_v50 = vld [vmem:[#allocation7 + $0x1970] sm:$0xff] }
 0x8c4   :  { %7228 = vmatprep.subr.bf16.mxu1 %v4108_v49 }
 0x8c6   :  { %7188 = vmatpush2.bf16.msra.mxu0 %v3851_v0  ;;  %v4283_v0 = vunpack.c.h.s8.bf16 %v2443_v50 }
 0x8c7   :  { %7229 = vmatpush2.bf16.msra.mxu1 %v4107_v31  ;;  %7189 = vmatprep.subr.bf16.mxu0 %v3836_v1  ;;  %v4539_v1 = vunpack.c.h.s8.bf16 %v2571_v63 }
 0x8c8   :  { %7230 = vmatprep.subr.bf16.mxu1 %v4092_v6 }
 0x8ca   :  { %7190 = vmatpush2.bf16.msra.mxu0 %v3835_v12  ;;  %v4267_v12 = vunpack.c.l.s8.bf16 %v2443_v50 }
 0x8cb   :  { %7231 = vmatpush2.bf16.msra.mxu1 %v4091_v45  ;;  %7191 = vmatprep.subr.bf16.mxu0 %v3820_v16  ;;  %v4523_v45 = vunpack.c.l.s8.bf16 %v2571_v63  ;;  %v2651_v63 = vld [vmem:[#allocation7 + $0x1ff0] sm:$0xff] }
 0x8cc   :  { %7232 = vmatprep.subr.bf16.mxu1 %v4076_v4  ;;  %v2427_v4 = vld [vmem:[#allocation7 + $0x18f0] sm:$0xff] }
 0x8ce   :  { %7192 = vmatpush2.bf16.msra.mxu0 %v3819_v21  ;;  %v4251_v21 = vunpack.c.h.s8.bf16 %v2427_v4 }
 0x8cf   :  { %7233 = vmatpush2.bf16.msra.mxu1 %v4075_v36  ;;  %7243 = vmatprep.subr.bf16.mxu0 %v4316_v48  ;;  %v4507_v36 = vunpack.c.h.s8.bf16 %v2555_v40 }
 0x8d0   :  { %7284 = vmatprep.subr.bf16.mxu1 %v4572_v7  ;;  %v2412_v7 = vld [vmem:[#allocation7 + $0x1878] sm:$0xff] }
 0x8d1   :  { %v6949_v56 = vpop.f32.mrf.mxu0  ;;  %7194 = vmatmul.mubr.bf16.vlgmr.msra.gmra.mxu0 %v9955_v53 }
 0x8d2   :  { %v6950_v41 = vadd.f32 %v6949_v56, %v10227_v51  ;;  %v6990_v59 = vpop.f32.mrf.mxu1  ;;  %7235 = vmatmul.mubr.bf16.vlgmr.msra.gmra.mxu1 %v9957_v57  ;;  %7244 = vmatpush1.bf16.msra.mxu0 %v4315_v29  ;;  %v4540_v51 = vunpack.c.h.s8.bf16 %v2572_v47  ;;  %v4235_v29 = vunpack.c.l.s8.bf16 %v2427_v4  ;;  %v4476_v56 = vunpack.c.h.s8.bf16 %v2540_v39 }
 0x8d3   :  { %7275 = vmatprep.mubr.bf16.mxu0 %v9960_v2  ;;  %7285 = vmatpush1.bf16.msra.mxu1 %v4571_v26  ;;  %v6951_v44 = vpop.f32.mrf.mxu0  ;;  %v4491_v26 = vunpack.c.l.s8.bf16 %v2555_v40 }
 0x8d4   :  { %v10237_v46 = vadd.f32 %v6990_v59, %v6950_v41  ;;  %7316 = vmatprep.mubr.bf16.mxu1 %v9963_v9  ;;  %v6952_v53 = vadd.f32 %v6951_v44, %v10231_v55  ;;  %v6992_v49 = vpop.f32.mrf.mxu1  ;;  %7245 = vmatprep.subr.bf16.mxu0 %v4300_v30  ;;  %v4524_v9 = vunpack.c.l.s8.bf16 %v2572_v47  ;;  %v2428_v55 = vld [vmem:[#allocation7 + $0x18f8] sm:$0xff]  ;;  %v4220_v30 = vunpack.c.h.s8.bf16 %v2412_v7 }
 0x8d5   :  { %v6953_v57 = vpop.f32.mrf.mxu0  ;;  %7286 = vmatprep.subr.bf16.mxu1 %v4556_v32  ;;  %v4252_v16 = vunpack.c.h.s8.bf16 %v2428_v55  ;;  %v4236_v48 = vunpack.c.l.s8.bf16 %v2428_v55  ;;  %v2539_v32 = vld [vmem:[#allocation7 + $0x1c70] sm:$0xff]  ;;  %v4219_v47 = vunpack.c.h.s8.bf16 %v2411_v22  ;;  %v4204_v59 = vunpack.c.l.s8.bf16 %v2412_v7  ;;  %v2524_v44 = vld [vmem:[#allocation7 + $0x1bf8] sm:$0xff] }
 0x8d6   :  { %v10241_v18 = vadd.f32 %v6992_v49, %v6952_v53  ;;  %v6994_v2 = vpop.f32.mrf.mxu1  ;;  %7246 = vmatpush1.bf16.msra.mxu0 %v4299_v17  ;;  %v4475_v41 = vunpack.c.h.s8.bf16 %v2539_v32  ;;  %v4460_v17 = vunpack.c.l.s8.bf16 %v2540_v39  ;;  %v4459_v50 = vunpack.c.l.s8.bf16 %v2539_v32  ;;  %v2523_v49 = vld [vmem:[#allocation7 + $0x1bf0] sm:$0xff]  ;;  %v10243_v32 = vld [vmem:[#allocation8] sm:$0xff] }
 0x8d7   :  { %7287 = vmatpush1.bf16.msra.mxu1 %v4555_v15  ;;  %v6954_v31 = vpop.f32.mrf.mxu0  ;;  %7247 = vmatprep.subr.bf16.mxu0 %v4284_v54  ;;  %v2652_v15 = vld [vmem:[#allocation7 + $0x1ff8] sm:$0xff]  ;;  %v4203_v54 = vunpack.c.l.s8.bf16 %v2411_v22  ;;  %v4444_v53 = vunpack.c.h.s8.bf16 %v2524_v44  ;;  %v4443_v57 = vunpack.c.h.s8.bf16 %v2523_v49  ;;  %v4699_v2 = vunpack.c.h.s8.bf16 %v2651_v63  ;;  %v2491_v39 = vld [vmem:[#allocation7 + $0x1af0] sm:$0xff] }
 0x8d8   :  { %v6995_v6 = vpop.f32.mrf.mxu1  ;;  %7288 = vmatprep.subr.bf16.mxu1 %v4540_v51  ;;  %v4700_v51 = vunpack.c.h.s8.bf16 %v2652_v15  ;;  %v4684_v31 = vunpack.c.l.s8.bf16 %v2652_v15  ;;  %v4363_v15 = vunpack.c.l.s8.bf16 %v2491_v39 }
 0x8d9   :  { %v4427_v6 = vunpack.c.l.s8.bf16 %v2523_v49  ;;  %v10249_v49 = vld [vmem:[#allocation10] sm:$0xff] }
 0x8da   :  { %7248 = vmatpush1.bf16.msra.mxu0 %v4283_v0  ;;  %v4428_v0 = vunpack.c.l.s8.bf16 %v2524_v44  ;;  %v7344_v44 = vrot.slane %v10243_v32, %v9865_v14 }
 0x8db   :  { %7289 = vmatpush1.bf16.msra.mxu1 %v4539_v1  ;;  %7249 = vmatprep.subr.bf16.mxu0 %v4268_v34  ;;  %v2508_v1 = vld [vmem:[#allocation7 + $0x1b78] sm:$0xff] }
 0x8dc   :  { %7290 = vmatprep.subr.bf16.mxu1 %v4524_v9  ;;  %v2636_v34 = vld [vmem:[#allocation7 + $0x1f78] sm:$0xff]  ;;  %v4683_v9 = vunpack.c.l.s8.bf16 %v2651_v63  ;;  %v4412_v55 = vunpack.c.h.s8.bf16 %v2508_v1  ;;  %v2603_v63 = vld [vmem:[#allocation7 + $0x1e70] sm:$0xff] }
 0x8dd   :  { %v4652_v40 = vunpack.c.l.s8.bf16 %v2636_v34 }
 0x8de   :  { %7250 = vmatpush1.bf16.msra.mxu0 %v4267_v12  ;;  %v4668_v12 = vunpack.c.h.s8.bf16 %v2636_v34  ;;  %v4603_v34 = vunpack.c.h.s8.bf16 %v2603_v63 }
 0x8df   :  { %7291 = vmatpush1.bf16.msra.mxu1 %v4523_v45  ;;  %7251 = vmatprep.subr.bf16.mxu0 %v4252_v16  ;;  %v2635_v45 = vld [vmem:[#allocation7 + $0x1f70] sm:$0xff]  ;;  %v4411_v16 = vunpack.c.h.s8.bf16 %v2507_v52 }
 0x8e0   :  { %7292 = vmatprep.subr.bf16.mxu1 %v4508_v37  ;;  %v4667_v4 = vunpack.c.h.s8.bf16 %v2635_v45  ;;  %v4396_v37 = vunpack.c.l.s8.bf16 %v2508_v1 }
 0x8e2   :  { %7252 = vmatpush1.bf16.msra.mxu0 %v4251_v21  ;;  %v2492_v21 = vld [vmem:[#allocation7 + $0x1af8] sm:$0xff] }
 0x8e3   :  { %7293 = vmatpush1.bf16.msra.mxu1 %v4507_v36  ;;  %7253 = vmatprep.subr.bf16.mxu0 %v4236_v48  ;;  %v2620_v36 = vld [vmem:[#allocation7 + $0x1ef8] sm:$0xff]  ;;  %v4395_v48 = vunpack.c.l.s8.bf16 %v2507_v52  ;;  %v4380_v7 = vunpack.c.h.s8.bf16 %v2492_v21 }
 0x8e4   :  { %7294 = vmatprep.subr.bf16.mxu1 %v4492_v58  ;;  %v4651_v58 = vunpack.c.l.s8.bf16 %v2635_v45  ;;  %v9437_v45 = vld [vmem:[#allocation11 + $0x78] sm:$0xff]  }
 0x8e6   :  { %7254 = vmatpush1.bf16.msra.mxu0 %v4235_v29  ;;  %v4636_v29 = vunpack.c.h.s8.bf16 %v2620_v36 }
 0x8e7   :  { %7295 = vmatpush1.bf16.msra.mxu1 %v4491_v26  ;;  %7255 = vmatprep.subr.bf16.mxu0 %v4220_v30  ;;  %v2619_v26 = vld [vmem:[#allocation7 + $0x1ef0] sm:$0xff]  ;;  %v4379_v30 = vunpack.c.h.s8.bf16 %v2491_v39 }
 0x8e8   :  { %7296 = vmatprep.subr.bf16.mxu1 %v4476_v56  ;;  %v4635_v22 = vunpack.c.h.s8.bf16 %v2619_v26  ;;  %v4364_v56 = vunpack.c.l.s8.bf16 %v2492_v21  ;;  %v9441_v21 = vld [vmem:[#allocation11 + $0x70] sm:$0xff]  }
 0x8ea   :  { %7256 = vmatpush1.bf16.msra.mxu0 %v4219_v47  ;;  %v4620_v47 = vunpack.c.l.s8.bf16 %v2620_v36 }
 0x8eb   :  { %7297 = vmatpush1.bf16.msra.mxu1 %v4475_v41  ;;  %7257 = vmatprep.subr.bf16.mxu0 %v4204_v59  ;;  %v2476_v41 = vld [vmem:[#allocation7 + $0x1a78] sm:$0xff]  ;;  %v7336_v59 = vrot.slane %v10243_v32, %v9862_v11 }
 0x8ec   :  { %7298 = vmatprep.subr.bf16.mxu1 %v4460_v17  ;;  %v2604_v17 = vld [vmem:[#allocation7 + $0x1e78] sm:$0xff] }
 0x8ee   :  { %7258 = vmatpush1.bf16.msra.mxu0 %v4203_v54  ;;  %v4619_v54 = vunpack.c.l.s8.bf16 %v2619_v26 }
 0x8ef   :  { %7299 = vmatpush1.bf16.msra.mxu1 %v4459_v50  ;;  %7259 = vmatprep.subr.bf16.mxu0 %v4444_v53  ;;  %v4348_v50 = vunpack.c.h.s8.bf16 %v2476_v41  ;;  %v2475_v53 = vld [vmem:[#allocation7 + $0x1a70] sm:$0xff] }
 0x8f0   :  { %7300 = vmatprep.subr.bf16.mxu1 %v4700_v51  ;;  %v4604_v51 = vunpack.c.h.s8.bf16 %v2604_v17  ;;  %v4347_v1 = vunpack.c.h.s8.bf16 %v2475_v53 }
 0x8f2   :  { %7260 = vmatpush2.bf16.msra.mxu0 %v4443_v57  ;;  %v7410_v57 = vmul.f32 %v7336_v59, %v10013_v27  ;;  %v4331_v27 = vunpack.c.l.s8.bf16 %v2475_v53  ;;  %v9450_v53 = vld [vmem:[#allocation11 + $0xe0] sm:$0xff]  }
 0x8f3   :  { %7301 = vmatpush2.bf16.msra.mxu1 %v4699_v2  ;;  %7261 = vmatprep.subr.bf16.mxu0 %v4428_v0  ;;  %v7436_v2 = vrot.slane %v10249_v49, %v9862_v11  ;;  %v7412_v0 = vmul.f32 %v7344_v44, %v10051_v62  ;;  %v9438_v62 = vld [vmem:[#allocation11 + $0xf8] sm:$0xff]  }
 0x8f4   :  { %7302 = vmatprep.subr.bf16.mxu1 %v4684_v31  ;;  %v7444_v31 = vrot.slane %v10249_v49, %v9865_v14 }
 0x8f6   :  { %7262 = vmatpush2.bf16.msra.mxu0 %v4427_v6  ;;  %v4332_v6 = vunpack.c.l.s8.bf16 %v2476_v41  ;;  %v7512_v52 = vadd.f32 %v7444_v31, %v7412_v0  ;;  %v9446_v41 = vld [vmem:[#allocation11 + $0xe8] sm:$0xff]   ;;  %v9455_v0 = vld [vmem:[#allocation11 + $0x18] sm:$0xff]   ;;  %v7332_v31 = vrot.slane %v10243_v32, %v9854_v5 }
 0x8f7   :  { %7303 = vmatpush2.bf16.msra.mxu1 %v4683_v9  ;;  %7263 = vmatprep.subr.bf16.mxu0 %v4412_v55  ;;  %v4588_v9 = vunpack.c.l.s8.bf16 %v2604_v17  ;;  %v7510_v55 = vadd.f32 %v7436_v2, %v7410_v57  ;;  %v9453_v57 = vld [vmem:[#allocation11 + $0x58] sm:$0xff]  }
 0x8f8   :  { %7304 = vmatprep.subr.bf16.mxu1 %v4668_v12  ;;  %v4587_v12 = vunpack.c.l.s8.bf16 %v2603_v63  ;;  %v9452_v63 = vld [vmem:[#allocation11 + $0xa0] sm:$0xff]   ;;  %v9454_v2 = vld [vmem:[#allocation11 + $0xd8] sm:$0xff]  }
 0x8fa   :  { %7264 = vmatpush2.bf16.msra.mxu0 %v4411_v16  ;;  %v7526_v16 = vmax.f32 %v7510_v55, 0.0  ;;  %v7352_v55 = vrot.slane %v10243_v32, %v9888_v38 }
 0x8fb   :  { %7305 = vmatpush2.bf16.msra.mxu1 %v4667_v4  ;;  %7265 = vmatprep.subr.bf16.mxu0 %v4396_v37  ;;  %v9439_v4 = vld [vmem:[#allocation11 + $0x38] sm:$0xff]   ;;  %v7528_v37 = vmax.f32 %v7512_v52, 0.0  ;;  %v7360_v52 = vrot.slane %v10243_v32, %v9891_v42 }
 0x8fc   :  { %7306 = vmatprep.subr.bf16.mxu1 %v4652_v40  ;;  %v9440_v40 = vld [vmem:[#allocation11 + $0xb8] sm:$0xff]  }
 0x8fd   :  { %v7544_v39 = vpack.c.bf16 %v7528_v37, %v7528_v37  ;;  %v7440_v37 = vrot.slane %v10249_v49, %v9859_v8 }
 0x8fe   :  { %7266 = vmatpush2.bf16.msra.mxu0 %v4395_v48  ;;  %v7542_v48 = vpack.c.bf16 %v7526_v16, %v7526_v16  ;;  %v9461_v16 = vld [vmem:[#allocation11 + $0x48] sm:$0xff]  }
 0x8ff   :  { %7307 = vmatpush2.bf16.msra.mxu1 %v4651_v58  ;;  %7267 = vmatprep.subr.bf16.mxu0 %v4380_v7  ;;  %v9442_v58 = vld [vmem:[#allocation11 + $0xf0] sm:$0xff]  }
 0x900   :  { %7308 = vmatprep.subr.bf16.mxu1 %v4636_v29  ;;  %v9443_v29 = vld [vmem:[#allocation11 + $0x30] sm:$0xff]  }
 0x902   :  { %7268 = vmatpush2.bf16.msra.mxu0 %v4379_v30 }
 0x903   :  { %7309 = vmatpush2.bf16.msra.mxu1 %v4635_v22  ;;  %7269 = vmatprep.subr.bf16.mxu0 %v4364_v56  ;;  %v9444_v22 = vld [vmem:[#allocation11 + $0xb0] sm:$0xff]   ;;  %v9445_v56 = vld [vmem:[#allocation11 + $0x68] sm:$0xff]  }
 0x904   :  { %7310 = vmatprep.subr.bf16.mxu1 %v4620_v47 }
 0x906   :  { %7270 = vmatpush2.bf16.msra.mxu0 %v4363_v15  ;;  %v9448_v15 = vld [vmem:[#allocation11 + $0xa8] sm:$0xff]  }
 0x907   :  { %7311 = vmatpush2.bf16.msra.mxu1 %v4619_v54  ;;  %7271 = vmatprep.subr.bf16.mxu0 %v4348_v50  ;;  %v9449_v54 = vld [vmem:[#allocation11 + $0x60] sm:$0xff]  }
 0x908   :  { %7312 = vmatprep.subr.bf16.mxu1 %v4604_v51  ;;  %v9451_v51 = vld [vmem:[#allocation11 + $0x20] sm:$0xff]  }
 0x90a   :  { %7272 = vmatpush2.bf16.msra.mxu0 %v4347_v1  ;;  %v9456_v1 = vld [vmem:[#allocation11 + $0x98] sm:$0xff]  }
 0x90b   :  { %7313 = vmatpush2.bf16.msra.mxu1 %v4603_v34  ;;  %7273 = vmatprep.subr.bf16.mxu0 %v4332_v6  ;;  %v9457_v34 = vld [vmem:[#allocation11 + $0x50] sm:$0xff]   ;;  %v7340_v6 = vrot.slane %v10243_v32, %v9859_v8 }
 0x90c   :  { %7314 = vmatprep.subr.bf16.mxu1 %v4588_v9  ;;  %v9458_v9 = vld [vmem:[#allocation11 + $0xd0] sm:$0xff]  }
 0x90e   :  { %7274 = vmatpush2.bf16.msra.mxu0 %v4331_v27  ;;  %v9459_v27 = vld [vmem:[#allocation11 + $0x10] sm:$0xff]  }
 0x90f   :  { %7315 = vmatpush2.bf16.msra.mxu1 %v4587_v12  ;;  %9246 = vmatprep.subr.bf16.mxu0 %v9437_v45  ;;  %v7409_v12 = vmul.f32 %v7332_v31, %v10009_v19  ;;  %v7432_v45 = vrot.slane %v10249_v49, %v9854_v5  ;;  %v7416_v19 = vmul.f32 %v7360_v52, %v10127_v23  ;;  %v9468_v23 = vld [vmem:[#allocation11 + $0x80] sm:$0xff]   ;;  %v9476_v31 = vld [vmem:[#allocation11 + $0x1b0] sm:$0xff]  }
 0x910   :  { %9268 = vmatprep.subr.bf16.mxu1 %v9438_v62  ;;  %v9460_v62 = vld [vmem:[#allocation11 + $0x90] sm:$0xff]   ;;  %v9482_v52 = vld [vmem:[#allocation11 + $0x1e0] sm:$0xff]  }
 0x911   :  { %v7031_v36 = vpop.f32.mrf.mxu0  ;;  %7276 = vmatmul.mubr.bf16.vlgmr.msra.gmra.mxu0 %v9973_v33 }
 0x912   :  { %v7072_v7 = vpop.f32.mrf.mxu1  ;;  %7317 = vmatmul.mubr.bf16.vlgmr.msra.gmra.mxu1 %v9975_v35  ;;  %9247 = vmatpush3.bf16.msra.mxu0 %v9439_v4  ;;  %v9447_v35 = vld [vmem:[#allocation11 + $0x28] sm:$0xff]   ;;  %v7411_v4 = vmul.f32 %v7340_v6, %v10047_v43 }
 0x913   :  { %v10259_v26 = vadd.f32 %v7072_v7, %v7031_v36  ;;  %8624 = vmatprep.mubr.bf16.mxu0 %v7542_v48  ;;  %9269 = vmatpush3.bf16.msra.mxu1 %v9440_v40  ;;  %v7033_v30 = vpop.f32.mrf.mxu0  ;;  %v9462_v40 = vld [vmem:[#allocation11 + $0xc8] sm:$0xff]   ;;  %v7452_v36 = vrot.slane %v10249_v49, %v9888_v38  ;;  %v7460_v48 = vrot.slane %v10249_v49, %v9891_v42 }
 0x914   :  { %8664 = vmatprep.mubr.bf16.mxu1 %v7544_v39  ;;  %v7074_v47 = vpop.f32.mrf.mxu1  ;;  %9248 = vmatprep.subr.bf16.mxu0 %v9441_v21  ;;  %v7414_v21 = vmul.f32 %v7352_v55, %v10089_v10  ;;  %v7509_v7 = vadd.f32 %v7432_v45, %v7409_v12  ;;  %v9464_v43 = vld [vmem:[#allocation11 + $0x88] sm:$0xff]   ;;  %v9465_v39 = vld [vmem:[#allocation11 + $0x40] sm:$0xff]   ;;  %v9485_v45 = vld [vmem:[#allocation11 + $0x158] sm:$0xff]  }
 0x915   :  { %v10261_v33 = vadd.f32 %v7074_v47, %v7033_v30  ;;  %v7035_v59 = vpop.f32.mrf.mxu0  ;;  %9270 = vmatprep.subr.bf16.mxu1 %v9442_v58  ;;  %v9463_v58 = vld [vmem:[#allocation11 + $0x8] sm:$0xff]   ;;  %v9466_v30 = vld [vmem:[#allocation11 + $0xc0] sm:$0xff]   ;;  %v7516_v10 = vadd.f32 %v7460_v48, %v7416_v19  ;;  %v9490_v19 = vld [vmem:[#allocation11 + $0x1d0] sm:$0xff]  }
 0x916   :  { %v7076_v17 = vpop.f32.mrf.mxu1  ;;  %9249 = vmatpush3.bf16.msra.mxu0 %v9443_v29  ;;  %v7511_v29 = vadd.f32 %v7440_v37, %v7411_v4  ;;  %v7525_v47 = vmax.f32 %v7509_v7, 0.0  ;;  %v9479_v6 = vld [vmem:[#allocation11 + $0x128] sm:$0xff]   ;;  %v9481_v55 = vld [vmem:[#allocation11 + $0x160] sm:$0xff]   ;;  %v7348_v4 = vrot.slane %v10243_v32, %v9908_v25  ;;  %v9488_v37 = vld [vmem:[#allocation11 + $0x198] sm:$0xff]  }
 0x917   :  { %9271 = vmatpush3.bf16.msra.mxu1 %v9444_v22  ;;  %v7036_v44 = vpop.f32.mrf.mxu0  ;;  %9250 = vmatprep.subr.bf16.mxu0 %v9445_v56  ;;  %v7514_v22 = vadd.f32 %v7452_v36, %v7414_v21  ;;  %v9467_v56 = vld [vmem:[#allocation11] sm:$0xff]   ;;  %v9470_v17 = vld [vmem:[#allocation11 + $0x1f8] sm:$0xff]   ;;  %v7356_v21 = vrot.slane %v10243_v32, %v9911_v28  ;;  %v10287_v36 = vld [vmem:[#allocation8 + $0x8] sm:$0xff] }
 0x918   :  { %v7077_v50 = vpop.f32.mrf.mxu1  ;;  %9272 = vmatprep.subr.bf16.mxu1 %v9446_v41  ;;  %v9469_v41 = vld [vmem:[#allocation11 + $0x178] sm:$0xff]   ;;  %v7527_v59 = vmax.f32 %v7511_v29, 0.0  ;;  %v9484_v12 = vld [vmem:[#allocation11 + $0x1a0] sm:$0xff]   ;;  %v7368_v48 = vrot.slane %v10287_v36, %v9862_v11  ;;  %v9491_v7 = vld [vmem:[#allocation11 + $0x110] sm:$0xff]  }
 0x919   :  { %v9471_v44 = vld [vmem:[#allocation11 + $0x138] sm:$0xff]   ;;  %v9492_v32 = vld [vmem:[#allocation11 + $0x190] sm:$0xff]   ;;  %v9493_v29 = vld [vmem:[#allocation11 + $0x148] sm:$0xff]  }
 0x91a   :  { %9251 = vmatpush3.bf16.msra.mxu0 %v9447_v35  ;;  %v7530_v35 = vmax.f32 %v7514_v22, 0.0  ;;  %v9472_v50 = vld [vmem:[#allocation11 + $0x1b8] sm:$0xff]   ;;  %v7456_v22 = vrot.slane %v10249_v49, %v9911_v28 }
 0x91b   :  { %9273 = vmatpush3.bf16.msra.mxu1 %v9448_v15  ;;  %9252 = vmatprep.subr.bf16.mxu0 %v9449_v54  ;;  %v7532_v15 = vmax.f32 %v7516_v10, 0.0  ;;  %v7541_v54 = vpack.c.bf16 %v7525_v47, %v7525_v47  ;;  %v10299_v10 = vld [vmem:[#allocation10 + $0x8] sm:$0xff]  ;;  %v7418_v47 = vmul.f32 %v7368_v48, %v10165_v60 }
 0x91c   :  { %9274 = vmatprep.subr.bf16.mxu1 %v9450_v53  ;;  %v7543_v53 = vpack.c.bf16 %v7527_v59, %v7527_v59  ;;  %v9495_v59 = vld [vmem:[#allocation11 + $0x108] sm:$0xff]  }
 0x91e   :  { %9253 = vmatpush3.bf16.msra.mxu0 %v9451_v51  ;;  %v9473_v51 = vld [vmem:[#allocation11 + $0x170] sm:$0xff]  }
 0x91f   :  { %9275 = vmatpush3.bf16.msra.mxu1 %v9452_v63  ;;  %9254 = vmatprep.subr.bf16.mxu0 %v9453_v57  ;;  %v7546_v63 = vpack.c.bf16 %v7530_v35, %v7530_v35  ;;  %v9474_v57 = vld [vmem:[#allocation11 + $0x1f0] sm:$0xff]  }
 0x920   :  { %9276 = vmatprep.subr.bf16.mxu1 %v9454_v2  ;;  %v7548_v2 = vpack.c.bf16 %v7532_v15, %v7532_v15 }
 0x922   :  { %9255 = vmatpush3.bf16.msra.mxu0 %v9455_v0  ;;  %v9475_v0 = vld [vmem:[#allocation11 + $0x130] sm:$0xff]  }
 0x923   :  { %9277 = vmatpush3.bf16.msra.mxu1 %v9456_v1  ;;  %9256 = vmatprep.subr.bf16.mxu0 %v9457_v34  ;;  %v9477_v1 = vld [vmem:[#allocation11 + $0x168] sm:$0xff]  }
 0x924   :  { %9278 = vmatprep.subr.bf16.mxu1 %v9458_v9  ;;  %v9478_v34 = vld [vmem:[#allocation11 + $0x1e8] sm:$0xff]  }
 0x925   :  { %v9480_v9 = vld [vmem:[#allocation11 + $0x1a8] sm:$0xff]  }
 0x926   :  { %9257 = vmatpush3.bf16.msra.mxu0 %v9459_v27  ;;  %v9483_v27 = vld [vmem:[#allocation11 + $0x120] sm:$0xff]  }
 0x927   :  { %9279 = vmatpush3.bf16.msra.mxu1 %v9460_v62  ;;  %9258 = vmatprep.subr.bf16.mxu0 %v9461_v16  ;;  %v9486_v62 = vld [vmem:[#allocation11 + $0x1d8] sm:$0xff]  }
 0x928   :  { %9280 = vmatprep.subr.bf16.mxu1 %v9462_v40  ;;  %v9487_v16 = vld [vmem:[#allocation11 + $0x118] sm:$0xff]   ;;  %v9489_v40 = vld [vmem:[#allocation11 + $0x150] sm:$0xff]  }
 0x92a   :  { %9259 = vmatpush3.bf16.msra.mxu0 %v9463_v58  ;;  %v7376_v58 = vrot.slane %v10287_v36, %v9865_v14 }
 0x92b   :  { %9281 = vmatpush3.bf16.msra.mxu1 %v9464_v43  ;;  %9260 = vmatprep.subr.bf16.mxu0 %v9465_v39  ;;  %v7413_v43 = vmul.f32 %v7348_v4, %v10085_v20  ;;  %v7448_v39 = vrot.slane %v10249_v49, %v9908_v25  ;;  %v7468_v20 = vrot.slane %v10299_v10, %v9862_v11  ;;  %v9496_v49 = vld [vmem:[#allocation11 + $0x188] sm:$0xff]  }
 0x92c   :  { %9282 = vmatprep.subr.bf16.mxu1 %v9466_v30  ;;  %v7415_v30 = vmul.f32 %v7356_v21, %v10123_v3  ;;  %v9510_v21 = vld [vmem:[#allocation11 + $0x2e8] sm:$0xff]  }
 0x92d   :  { %v7513_v3 = vadd.f32 %v7448_v39, %v7413_v43  ;;  %v7518_v15 = vadd.f32 %v7468_v20, %v7418_v47  ;;  %v9512_v43 = vld [vmem:[#allocation11 + $0x2a8] sm:$0xff]   ;;  %v9513_v39 = vld [vmem:[#allocation11 + $0x260] sm:$0xff]   ;;  %v9519_v47 = vld [vmem:[#allocation11 + $0x218] sm:$0xff]   ;;  %v7364_v20 = vrot.slane %v10287_v36, %v9854_v5 }
 0x92e   :  { %9261 = vmatpush3.bf16.msra.mxu0 %v9467_v56  ;;  %v9494_v56 = vld [vmem:[#allocation11 + $0x1c8] sm:$0xff]   ;;  %v7515_v35 = vadd.f32 %v7456_v22, %v7415_v30  ;;  %v9516_v30 = vld [vmem:[#allocation11 + $0x2a0] sm:$0xff]   ;;  %v9517_v22 = vld [vmem:[#allocation11 + $0x258] sm:$0xff]  }
 0x92f   :  { %9283 = vmatpush3.bf16.msra.mxu1 %v9468_v23  ;;  %9290 = vmatprep.subr.bf16.mxu0 %v9469_v41  ;;  %v7420_v23 = vmul.f32 %v7376_v58, %v10203_v61  ;;  %v7476_v41 = vrot.slane %v10299_v10, %v9865_v14  ;;  %v7529_v11 = vmax.f32 %v7513_v3, 0.0  ;;  %v9500_v61 = vld [vmem:[#allocation11 + $0x180] sm:$0xff]   ;;  %v9511_v58 = vld [vmem:[#allocation11 + $0x228] sm:$0xff]   ;;  %v9522_v3 = vld [vmem:[#allocation11 + $0x2d0] sm:$0xff]  }
 0x930   :  { %9312 = vmatprep.subr.bf16.mxu1 %v9470_v17  ;;  %v9497_v17 = vld [vmem:[#allocation11 + $0x140] sm:$0xff]   ;;  %v7531_v14 = vmax.f32 %v7515_v35, 0.0  ;;  %v7417_v35 = vmul.f32 %v7364_v20, %v10161_v24  ;;  %v9527_v24 = vld [vmem:[#allocation11 + $0x208] sm:$0xff]   ;;  %v7480_v20 = vrot.slane %v10299_v10, %v9908_v25 }
 0x931   :  { %8625 = vmatmul.mubr.bf16.vlgmr.msra.gmra.mxu0 %v7541_v54  ;;  %v7520_v60 = vadd.f32 %v7476_v41, %v7420_v23  ;;  %v9499_v54 = vld [vmem:[#allocation11 + $0x100] sm:$0xff]   ;;  %v9520_v23 = vld [vmem:[#allocation11 + $0x298] sm:$0xff]   ;;  %v9521_v41 = vld [vmem:[#allocation11 + $0x250] sm:$0xff]  }
 0x932   :  { %8665 = vmatmul.mubr.bf16.vlgmr.msra.gmra.mxu1 %v7543_v53  ;;  %9291 = vmatpush3.bf16.msra.mxu0 %v9471_v44  ;;  %v9498_v44 = vld [vmem:[#allocation11 + $0x1c0] sm:$0xff]   ;;  %v9502_v53 = vld [vmem:[#allocation11 + $0x2f8] sm:$0xff]  }
 0x933   :  { %8704 = vmatprep.mubr.bf16.mxu0 %v7546_v63  ;;  %9313 = vmatpush3.bf16.msra.mxu1 %v9472_v50  ;;  %v9501_v50 = vld [vmem:[#allocation11 + $0x278] sm:$0xff]  }
 0x934   :  { %8744 = vmatprep.mubr.bf16.mxu1 %v7548_v2  ;;  %9292 = vmatprep.subr.bf16.mxu0 %v9473_v51  ;;  %v7534_v51 = vmax.f32 %v7518_v15, 0.0  ;;  %v9503_v63 = vld [vmem:[#allocation11 + $0x238] sm:$0xff]   ;;  %v7545_v2 = vpack.c.bf16 %v7529_v11, %v7529_v11  ;;  %v9524_v15 = vld [vmem:[#allocation11 + $0x290] sm:$0xff]   ;;  %v7472_v11 = vrot.slane %v10299_v10, %v9859_v8 }
 0x935   :  { %9314 = vmatprep.subr.bf16.mxu1 %v9474_v57  ;;  %v7536_v57 = vmax.f32 %v7520_v60, 0.0  ;;  %v9525_v60 = vld [vmem:[#allocation11 + $0x248] sm:$0xff]  }
 0x936   :  { %9293 = vmatpush3.bf16.msra.mxu0 %v9475_v0  ;;  %v9504_v0 = vld [vmem:[#allocation11 + $0x2b8] sm:$0xff]  }
 0x937   :  { %9315 = vmatpush3.bf16.msra.mxu1 %v9476_v31  ;;  %9294 = vmatprep.subr.bf16.mxu0 %v9477_v1  ;;  %v7547_v31 = vpack.c.bf16 %v7531_v14, %v7531_v14  ;;  %v9505_v1 = vld [vmem:[#allocation11 + $0x270] sm:$0xff]   ;;  %v7484_v14 = vrot.slane %v10299_v10, %v9888_v38 }
 0x938   :  { %9316 = vmatprep.subr.bf16.mxu1 %v9478_v34 }
 0x93a   :  { %9295 = vmatpush3.bf16.msra.mxu0 %v9479_v6  ;;  %v7550_v6 = vpack.c.bf16 %v7534_v51, %v7534_v51  ;;  %v9529_v51 = vld [vmem:[#allocation11 + $0x240] sm:$0xff]  }
 0x93b   :  { %9317 = vmatpush3.bf16.msra.mxu1 %v9480_v9  ;;  %9296 = vmatprep.subr.bf16.mxu0 %v9481_v55  ;;  %v9506_v9 = vld [vmem:[#allocation11 + $0x2f0] sm:$0xff]  }
 0x93c   :  { %9318 = vmatprep.subr.bf16.mxu1 %v9482_v52 }
 0x93e   :  { %9297 = vmatpush3.bf16.msra.mxu0 %v9483_v27  ;;  %v7552_v27 = vpack.c.bf16 %v7536_v57, %v7536_v57 }
 0x93f   :  { %9319 = vmatpush3.bf16.msra.mxu1 %v9484_v12  ;;  %9298 = vmatprep.subr.bf16.mxu0 %v9485_v45  ;;  %v9507_v12 = vld [vmem:[#allocation11 + $0x230] sm:$0xff]  }
 0x940   :  { %9320 = vmatprep.subr.bf16.mxu1 %v9486_v62  ;;  %v9508_v62 = vld [vmem:[#allocation11 + $0x2b0] sm:$0xff]  }
 0x942   :  { %9299 = vmatpush3.bf16.msra.mxu0 %v9487_v16  ;;  %v9509_v16 = vld [vmem:[#allocation11 + $0x268] sm:$0xff]  }
 0x943   :  { %9321 = vmatpush3.bf16.msra.mxu1 %v9488_v37  ;;  %9300 = vmatprep.subr.bf16.mxu0 %v9489_v40 }
 0x944   :  { %9322 = vmatprep.subr.bf16.mxu1 %v9490_v19 }
 0x946   :  { %9301 = vmatpush3.bf16.msra.mxu0 %v9491_v7 }
 0x947   :  { %9323 = vmatpush3.bf16.msra.mxu1 %v9492_v32  ;;  %9302 = vmatprep.subr.bf16.mxu0 %v9493_v29  ;;  %v9514_v29 = vld [vmem:[#allocation11 + $0x2e0] sm:$0xff]  }
 0x948   :  { %9324 = vmatprep.subr.bf16.mxu1 %v9494_v56  ;;  %v9518_v56 = vld [vmem:[#allocation11 + $0x2d8] sm:$0xff]  }
 0x94a   :  { %9303 = vmatpush3.bf16.msra.mxu0 %v9495_v59  ;;  %v7372_v59 = vrot.slane %v10287_v36, %v9859_v8  ;;  %v9531_v8 = vld [vmem:[#allocation11 + $0x200] sm:$0xff]  }
 0x94b   :  { %9325 = vmatpush3.bf16.msra.mxu1 %v9496_v49  ;;  %9304 = vmatprep.subr.bf16.mxu0 %v9497_v17  ;;  %v7384_v49 = vrot.slane %v10287_v36, %v9888_v38  ;;  %v9523_v17 = vld [vmem:[#allocation11 + $0x210] sm:$0xff]   ;;  %v9549_v38 = vld [vmem:[#allocation11 + $0x3f8] sm:$0xff]  }
 0x94c   :  { %9326 = vmatprep.subr.bf16.mxu1 %v9498_v44  ;;  %v7464_v44 = vrot.slane %v10299_v10, %v9854_v5  ;;  %v9528_v5 = vld [vmem:[#allocation11 + $0x288] sm:$0xff]  }
 0x94e   :  { %9305 = vmatpush3.bf16.msra.mxu0 %v9499_v54  ;;  %v7419_v54 = vmul.f32 %v7372_v59, %v10199_v13  ;;  %v9530_v13 = vld [vmem:[#allocation11 + $0x2c0] sm:$0xff]   ;;  %v9561_v59 = vld [vmem:[#allocation11 + $0x3c8] sm:$0xff]  }
 0x94f   :  { %9327 = vmatpush3.bf16.msra.mxu1 %v9500_v61  ;;  %9334 = vmatprep.subr.bf16.mxu0 %v9501_v50  ;;  %v9526_v61 = vld [vmem:[#allocation11 + $0x2c8] sm:$0xff]   ;;  %v7422_v50 = vmul.f32 %v7384_v49, %v10241_v18  ;;  %v9532_v18 = vld [vmem:[#allocation11 + $0x280] sm:$0xff]  }
 0x950   :  { %9356 = vmatprep.subr.bf16.mxu1 %v9502_v53  ;;  %v7517_v53 = vadd.f32 %v7464_v44, %v7417_v35  ;;  %v9562_v35 = vld [vmem:[#allocation11 + $0x388] sm:$0xff]   ;;  %v9563_v44 = vld [vmem:[#allocation11 + $0x3c0] sm:$0xff]  }
 0x951   :  { %v7113_v34 = vpop.f32.mrf.mxu0  ;;  %8705 = vmatmul.mubr.bf16.vlgmr.msra.gmra.mxu0 %v7545_v2  ;;  %v7522_v57 = vadd.f32 %v7484_v14, %v7422_v50 }
 0x952   :  { %v7114_v55 = vadd.f32 %v7113_v34, %v10259_v26  ;;  %v7154_v52 = vpop.f32.mrf.mxu1  ;;  %8745 = vmatmul.mubr.bf16.vlgmr.msra.gmra.mxu1 %v7547_v31  ;;  %9335 = vmatpush3.bf16.msra.mxu0 %v9503_v63  ;;  %v7519_v63 = vadd.f32 %v7472_v11, %v7419_v54  ;;  %v7533_v2 = vmax.f32 %v7517_v53, 0.0  ;;  %v9534_v34 = vld [vmem:[#allocation11 + $0x338] sm:$0xff]  }
 0x953   :  { %8784 = vmatprep.mubr.bf16.mxu0 %v7550_v6  ;;  %9357 = vmatpush3.bf16.msra.mxu1 %v9504_v0  ;;  %v7115_v45 = vpop.f32.mrf.mxu0  ;;  %v9533_v0 = vld [vmem:[#allocation11 + $0x378] sm:$0xff]  }
 0x954   :  { %v10308_v4 = vadd.f32 %v7154_v52, %v7114_v55  ;;  %8824 = vmatprep.mubr.bf16.mxu1 %v7552_v27  ;;  %v7116_v37 = vadd.f32 %v7115_v45, %v10261_v33  ;;  %v7156_v40 = vpop.f32.mrf.mxu1  ;;  %9336 = vmatprep.subr.bf16.mxu0 %v9505_v1  ;;  %v9515_v33 = vld [vmem:[#allocation11 + $0x220] sm:$0xff]   ;;  %v7535_v31 = vmax.f32 %v7519_v63, 0.0  ;;  %v7538_v1 = vmax.f32 %v7522_v57, 0.0  ;;  %v9550_v52 = vld [vmem:[#allocation11 + $0x3b8] sm:$0xff]   ;;  %v9536_v45 = vld [vmem:[#allocation11 + $0x330] sm:$0xff]  }
 0x955   :  { %v7117_v19 = vpop.f32.mrf.mxu0  ;;  %9358 = vmatprep.subr.bf16.mxu1 %v9506_v9  ;;  %v7549_v6 = vpack.c.bf16 %v7533_v2, %v7533_v2  ;;  %v9535_v9 = vld [vmem:[#allocation11 + $0x370] sm:$0xff]  }
 0x956   :  { %v10311_v26 = vadd.f32 %v7156_v40, %v7116_v37  ;;  %v7158_v48 = vpop.f32.mrf.mxu1  ;;  %9337 = vmatpush3.bf16.msra.mxu0 %v9507_v12  ;;  %v7551_v55 = vpack.c.bf16 %v7535_v31, %v7535_v31  ;;  %v7554_v27 = vpack.c.bf16 %v7538_v1, %v7538_v1  ;;  %v9551_v12 = vld [vmem:[#allocation11 + $0x3f0] sm:$0xff]   ;;  %v9553_v37 = vld [vmem:[#allocation11 + $0x3e8] sm:$0xff]  }
 0x957   :  { %9359 = vmatpush3.bf16.msra.mxu1 %v9508_v62  ;;  %v7118_v7 = vpop.f32.mrf.mxu0  ;;  %9338 = vmatprep.subr.bf16.mxu0 %v9509_v16  ;;  %v9537_v62 = vld [vmem:[#allocation11 + $0x368] sm:$0xff]   ;;  %v9552_v16 = vld [vmem:[#allocation11 + $0x3b0] sm:$0xff]   ;;  %v9555_v48 = vld [vmem:[#allocation11 + $0x3e0] sm:$0xff]  }
 0x958   :  { %v7159_v32 = vpop.f32.mrf.mxu1  ;;  %9360 = vmatprep.subr.bf16.mxu1 %v9510_v21  ;;  %v9538_v40 = vld [vmem:[#allocation11 + $0x328] sm:$0xff]   ;;  %v9539_v21 = vld [vmem:[#allocation11 + $0x360] sm:$0xff]   ;;  %v9541_v7 = vld [vmem:[#allocation11 + $0x358] sm:$0xff]  }
 0x959   :  { %v9554_v19 = vld [vmem:[#allocation11 + $0x3a8] sm:$0xff]   ;;  %v9542_v32 = vld [vmem:[#allocation11 + $0x318] sm:$0xff]  }
 0x95a   :  { %9339 = vmatpush3.bf16.msra.mxu0 %v9511_v58  ;;  %v9540_v58 = vld [vmem:[#allocation11 + $0x320] sm:$0xff]  }
 0x95b   :  { %9361 = vmatpush3.bf16.msra.mxu1 %v9512_v43  ;;  %9340 = vmatprep.subr.bf16.mxu0 %v9513_v39  ;;  %v9556_v43 = vld [vmem:[#allocation11 + $0x3a0] sm:$0xff]   ;;  %v9557_v39 = vld [vmem:[#allocation11 + $0x3d8] sm:$0xff]  }
 0x95c   :  { %9362 = vmatprep.subr.bf16.mxu1 %v9514_v29  ;;  %v7380_v29 = vrot.slane %v10287_v36, %v9908_v25  ;;  %v9564_v25 = vld [vmem:[#allocation11 + $0x380] sm:$0xff]  }
 0x95e   :  { %9341 = vmatpush3.bf16.msra.mxu0 %v9515_v33  ;;  %v9543_v33 = vld [vmem:[#allocation11 + $0x350] sm:$0xff]  }
 0x95f   :  { %9363 = vmatpush3.bf16.msra.mxu1 %v9516_v30  ;;  %9342 = vmatprep.subr.bf16.mxu0 %v9517_v22  ;;  %v9558_v30 = vld [vmem:[#allocation11 + $0x398] sm:$0xff]   ;;  %v9559_v22 = vld [vmem:[#allocation11 + $0x3d0] sm:$0xff]  }
 0x960   :  { %9364 = vmatprep.subr.bf16.mxu1 %v9518_v56  ;;  %v9544_v56 = vld [vmem:[#allocation11 + $0x310] sm:$0xff]  }
 0x962   :  { %9343 = vmatpush3.bf16.msra.mxu0 %v9519_v47  ;;  %v7421_v47 = vmul.f32 %v7380_v29, %v10237_v46  ;;  %v9548_v46 = vld [vmem:[#allocation11 + $0x300] sm:$0xff]  }
 0x963   :  { %9365 = vmatpush3.bf16.msra.mxu1 %v9520_v23  ;;  %9344 = vmatprep.subr.bf16.mxu0 %v9521_v41  ;;  %v9545_v23 = vld [vmem:[#allocation11 + $0x348] sm:$0xff]   ;;  %v9560_v41 = vld [vmem:[#allocation11 + $0x390] sm:$0xff]  }
 0x964   :  { %9366 = vmatprep.subr.bf16.mxu1 %v9522_v3  ;;  %v9546_v3 = vld [vmem:[#allocation11 + $0x308] sm:$0xff]   ;;  %v7521_v49 = vadd.f32 %v7480_v20, %v7421_v47 }
 0x966   :  { %9345 = vmatpush3.bf16.msra.mxu0 %v9523_v17  ;;  %v9547_v17 = vld [vmem:[#allocation11 + $0x340] sm:$0xff]  }
 0x967   :  { %9367 = vmatpush3.bf16.msra.mxu1 %v9524_v15  ;;  %9346 = vmatprep.subr.bf16.mxu0 %v9525_v60  ;;  %v7537_v15 = vmax.f32 %v7521_v49, 0.0 }
 0x968   :  { %9368 = vmatprep.subr.bf16.mxu1 %v9526_v61 }
 0x969   :  { %v7553_v60 = vpack.c.bf16 %v7537_v15, %v7537_v15 }
 0x96a   :  { %9347 = vmatpush3.bf16.msra.mxu0 %v9527_v24 }
 0x96b   :  { %9369 = vmatpush3.bf16.msra.mxu1 %v9528_v5  ;;  %9348 = vmatprep.subr.bf16.mxu0 %v9529_v51 }
 0x96c   :  { %9370 = vmatprep.subr.bf16.mxu1 %v9530_v13 }
 0x96e   :  { %9349 = vmatpush3.bf16.msra.mxu0 %v9531_v8 }
 0x96f   :  { %9371 = vmatpush3.bf16.msra.mxu1 %v9532_v18  ;;  %9378 = vmatprep.subr.bf16.mxu0 %v9533_v0  ;;  %v7388_v0 = vrot.slane %v10287_v36, %v9911_v28 }
 0x970   :  { %9400 = vmatprep.subr.bf16.mxu1 %v9549_v38 }
 0x971   :  { %8785 = vmatmul.mubr.bf16.vlgmr.msra.gmra.mxu0 %v7549_v6  ;;  %v7392_v6 = vrot.slane %v10287_v36, %v9891_v42 }
 0x972   :  { %8825 = vmatmul.mubr.bf16.vlgmr.msra.gmra.mxu1 %v7551_v55  ;;  %9379 = vmatpush3.bf16.msra.mxu0 %v9534_v34 }
 0x973   :  { %8864 = vmatprep.mubr.bf16.mxu0 %v7554_v27  ;;  %9380 = vmatprep.subr.bf16.mxu0 %v9535_v9 }
 0x974   :  { %9401 = vmatpush3.bf16.msra.mxu1 %v9550_v52  ;;  %v7492_v52 = vrot.slane %v10299_v10, %v9891_v42 }
 0x975   :  { %9402 = vmatprep.subr.bf16.mxu1 %v9551_v12 }
 0x976   :  { %9381 = vmatpush3.bf16.msra.mxu0 %v9536_v45 }
 0x977   :  { %9382 = vmatprep.subr.bf16.mxu0 %v9537_v62 }
 0x978   :  { %9403 = vmatpush3.bf16.msra.mxu1 %v9552_v16 }
 0x979   :  { %9404 = vmatprep.subr.bf16.mxu1 %v9553_v37 }
 0x97a   :  { %9383 = vmatpush3.bf16.msra.mxu0 %v9538_v40 }
 0x97b   :  { %9384 = vmatprep.subr.bf16.mxu0 %v9539_v21 }
 0x97c   :  { %9405 = vmatpush3.bf16.msra.mxu1 %v9554_v19 }
 0x97d   :  { %9406 = vmatprep.subr.bf16.mxu1 %v9555_v48 }
 0x97e   :  { %9385 = vmatpush3.bf16.msra.mxu0 %v9540_v58  ;;  %v9117_v58 = vld [vmem:[#allocation13] ss:$0 sm:$0xff] }
 0x97f   :  { %9386 = vmatprep.subr.bf16.mxu0 %v9541_v7 }
 0x980   :  { %9407 = vmatpush3.bf16.msra.mxu1 %v9556_v43 }
 0x981   :  { %9408 = vmatprep.subr.bf16.mxu1 %v9557_v39 }
 0x982   :  { %9387 = vmatpush3.bf16.msra.mxu0 %v9542_v32 }
 0x983   :  { %9388 = vmatprep.subr.bf16.mxu0 %v9543_v33 }
 0x984   :  { %9409 = vmatpush3.bf16.msra.mxu1 %v9558_v30 }
 0x985   :  { %9410 = vmatprep.subr.bf16.mxu1 %v9559_v22 }
 0x986   :  { %9389 = vmatpush3.bf16.msra.mxu0 %v9544_v56 }
 0x987   :  { %9390 = vmatprep.subr.bf16.mxu0 %v9545_v23 }
 0x988   :  { %9411 = vmatpush3.bf16.msra.mxu1 %v9560_v41 }
 0x989   :  { %9412 = vmatprep.subr.bf16.mxu1 %v9561_v59 }
 0x98a   :  { %9391 = vmatpush3.bf16.msra.mxu0 %v9546_v3 }
 0x98b   :  { %9392 = vmatprep.subr.bf16.mxu0 %v9547_v17 }
 0x98c   :  { %9413 = vmatpush3.bf16.msra.mxu1 %v9562_v35 }
 0x98d   :  { %9414 = vmatprep.subr.bf16.mxu1 %v9563_v44 }
 0x98e   :  { %9393 = vmatpush3.bf16.msra.mxu0 %v9548_v46 }
 0x990   :  { %9415 = vmatpush3.bf16.msra.mxu1 %v9564_v25 }
 0x991   :  { %v7195_v54 = vpop.f32.mrf.mxu0  ;;  %8865 = vmatmul.mubr.bf16.vlgmr.msra.gmra.mxu0 %v7553_v60 }
 0x992   :  { %v7196_v11 = vadd.f32 %v7195_v54, %v10308_v4  ;;  %v7236_v61 = vpop.f32.mrf.mxu1  ;;  %v7488_v4 = vrot.slane %v10299_v10, %v9911_v28 }
 0x993   :  { %v7197_v50 = vpop.f32.mrf.mxu0 }
 0x994   :  { %v7237_v14 = vadd.f32 %v7236_v61, %v7196_v11  ;;  %v7238_v24 = vpop.f32.mrf.mxu1  ;;  %v7198_v13 = vadd.f32 %v7197_v50, %v10311_v26 }
 0x995   :  { %v7199_v53 = vpop.f32.mrf.mxu0 }
 0x996   :  { %v7240_v5 = vpop.f32.mrf.mxu1  ;;  %v7239_v8 = vadd.f32 %v7238_v24, %v7198_v13 }
 0x997   :  { %v7200_v51 = vpop.f32.mrf.mxu0 }
 0x998   :  { %v7241_v63 = vpop.f32.mrf.mxu1 }
 0x9d1   :  { %v7277_v57 = vpop.f32.mrf.mxu0 }
 0x9d2   :  { %v7278_v2 = vadd.f32 %v7277_v57, %v7237_v14  ;;  %v7318_v18 = vpop.f32.mrf.mxu1 }
 0x9d3   :  { %v7279_v31 = vpop.f32.mrf.mxu0 }
 0x9d4   :  { %v7319_v38 = vadd.f32 %v7318_v18, %v7278_v2  ;;  %v7280_v1 = vadd.f32 %v7279_v31, %v7239_v8  ;;  %v7320_v34 = vpop.f32.mrf.mxu1 }
 0x9d5   :  { %v7281_v9 = vpop.f32.mrf.mxu0 }
 0x9d6   :  { %v7423_v55 = vmul.f32 %v7388_v0, %v7319_v38  ;;  %v7321_v26 = vadd.f32 %v7320_v34, %v7280_v1  ;;  %v7322_v27 = vpop.f32.mrf.mxu1 }
 0x9d7   :  { %v7282_v12 = vpop.f32.mrf.mxu0 }
 0x9d8   :  { %v7523_v45 = vadd.f32 %v7488_v4, %v7423_v55  ;;  %v7424_v62 = vmul.f32 %v7392_v6, %v7321_v26  ;;  %v7323_v16 = vpop.f32.mrf.mxu1 }
 0x9da   :  { %v7524_v37 = vadd.f32 %v7492_v52, %v7424_v62  ;;  %v7539_v40 = vmax.f32 %v7523_v45, 0.0 }
 0x9dc   :  { %v7540_v21 = vmax.f32 %v7524_v37, 0.0  ;;  %v7555_v19 = vpack.c.bf16 %v7539_v40, %v7539_v40 }
 0x9de   :  { %v7556_v28 = vpack.c.bf16 %v7540_v21, %v7540_v21 }
 0x9e0   :  { %8904 = vmatprep.mubr.bf16.mxu1 %v7556_v28 }
 0x9e1   :  { %8905 = vmatmul.mubr.bf16.vlgmr.msra.gmra.mxu1 %v7555_v19 }
 0x9f1   :  { %v9262_v48 = vpop.f32.mrf.mxu0 }
 0x9f2   :  { %v9284_v36 = vpop.f32.mrf.mxu1 }
 0x9f3   :  { %v9263_v7 = vpop.f32.mrf.mxu0 }
 0x9f4   :  { %v9264_v43 = vadd.f32 %v9263_v7, %v9262_v48  ;;  %v9285_v39 = vpop.f32.mrf.mxu1 }
 0x9f5   :  { %v9286_v32 = vadd.f32 %v9285_v39, %v9284_v36  ;;  %v9265_v42 = vpop.f32.mrf.mxu0 }
 0x9f6   :  { %v8627_v10 = vadd.f32 %v9264_v43, %v9117_v58  ;;  %v9287_v29 = vpop.f32.mrf.mxu1 }
 0x9f7   :  { %v9266_v33 = vpop.f32.mrf.mxu0 }
 0x9f8   :  { %v8667_v30 = vadd.f32 %v9286_v32, %v8627_v10  ;;  %v9288_v22 = vpop.f32.mrf.mxu1 }
 0xa11   :  { %v9306_v56 = vpop.f32.mrf.mxu0 }
 0xa12   :  { %v9328_v47 = vpop.f32.mrf.mxu1 }
 0xa13   :  { %v9307_v20 = vpop.f32.mrf.mxu0 }
 0xa14   :  { %v9308_v23 = vadd.f32 %v9307_v20, %v9306_v56  ;;  %v9329_v41 = vpop.f32.mrf.mxu1 }
 0xa15   :  { %v9330_v59 = vadd.f32 %v9329_v41, %v9328_v47  ;;  %v9309_v3 = vpop.f32.mrf.mxu0 }
 0xa16   :  { %v8707_v49 = vadd.f32 %v9308_v23, %v8667_v30  ;;  %v9331_v17 = vpop.f32.mrf.mxu1 }
 0xa17   :  { %v9310_v35 = vpop.f32.mrf.mxu0 }
 0xa18   :  { %v8747_v44 = vadd.f32 %v9330_v59, %v8707_v49  ;;  %v9332_v46 = vpop.f32.mrf.mxu1 }
 0xa31   :  { %v9350_v15 = vpop.f32.mrf.mxu0 }
 0xa32   :  { %v9372_v25 = vpop.f32.mrf.mxu1 }
 0xa33   :  { %v9351_v60 = vpop.f32.mrf.mxu0 }
 0xa34   :  { %v9352_v54 = vadd.f32 %v9351_v60, %v9350_v15  ;;  %v9373_v11 = vpop.f32.mrf.mxu1 }
 0xa35   :  { %v9374_v61 = vadd.f32 %v9373_v11, %v9372_v25  ;;  %v9353_v50 = vpop.f32.mrf.mxu0 }
 0xa36   :  { %v8787_v14 = vadd.f32 %v9352_v54, %v8747_v44  ;;  %v9375_v24 = vpop.f32.mrf.mxu1 }
 0xa37   :  { %v9354_v53 = vpop.f32.mrf.mxu0 }
 0xa38   :  { %v8827_v5 = vadd.f32 %v9374_v61, %v8787_v14  ;;  %v9376_v51 = vpop.f32.mrf.mxu1 }
 0xa51   :  { %v9394_v63 = vpop.f32.mrf.mxu0 }
 0xa53   :  { %v9395_v13 = vpop.f32.mrf.mxu0 }
 0xa54   :  { %v9396_v57 = vadd.f32 %v9395_v13, %v9394_v63 }
 0xa55   :  { %v9397_v8 = vpop.f32.mrf.mxu0 }
 0xa56   :  { %v8867_v2 = vadd.f32 %v9396_v57, %v8827_v5 }
 0xa57   :  { %v9398_v18 = vpop.f32.mrf.mxu0 }
 0xaa1   :  { %v9416_v0 = vpop.f32.mrf.mxu1 }
 0xaa3   :  { %v9417_v31 = vpop.f32.mrf.mxu1 }
 0xaa4   :  { %v9418_v38 = vadd.f32 %v9417_v31, %v9416_v0 }
 0xaa5   :  { %v9419_v4 = vpop.f32.mrf.mxu1 }
 0xaa6   :  { %v8907_v1 = vadd.f32 %v9418_v38, %v8867_v2 }
 0xaa7   :  { %v9420_v34 = vpop.f32.mrf.mxu1 }
 0xaa8   :  { %8912 = vst [vmem:[#allocation14] sm:$0xff] %v8907_v1 }
 0xaa9   :  { %9716 = shalt.err (!%p9713_p11)
}
 0xaaa   :  { %8922 = dma.vmem_to_hbm [thread:$0]  %s8920_s18, 128, %s10354_s8, [#allocation4]  }
 0xaab   :  { %9733 = dma.done.wait [#allocation4], 128  }
 0xaac   :  { %9734 = vsyncadd [#allocation4], 4294967168 }
 0xaad   :  { %8926 = vsyncpa [#allocation3], 1 }
 0xaae   :  { %8927 = vsyncpa [#allocation6], 1 }
 0xaaf   :  { %8928 = vsyncpa [#allocation9], 1 }
 0xab0   :  { %8929 = vsyncpa [#allocation12], 1 }
 0xab1   :  { %8930 = vsyncpa [#allocation4], 1 }

</bundles_post_ra>
